<compile_context>
chip_gen: v7x
topology: tpu7x:2x2x1
jax: 0.10.0
libtpu: 0.0.40
codegen_flags: <defaults>
</compile_context>

<pallas_src>
import functools

import numpy as np

import jax
import jax.numpy as jnp
from jax import lax
from jax.experimental import pallas as pl
from jax.experimental.pallas import tpu as pltpu


# ----------------------------------------------------------------------------
# activations (used inside kernels)
# ----------------------------------------------------------------------------
def _apply_act(y, act):
    if act == "silu":
        return y * jax.nn.sigmoid(y)
    if act == "relu":
        return jnp.maximum(y, 0.0)
    if act == "lrelu":  # PyTorch default negative_slope
        return jnp.where(y >= 0.0, y, 0.01 * y)
    if act == "sigmoid":
        return jax.nn.sigmoid(y)
    return y


# ----------------------------------------------------------------------------
# Head kernel: fused conv = W(Cout,K) @ patches(K, Ho*Wo) + bias, activation.
# Output block (Cout, Ho*Wo): lane dim = Ho*Wo (lane-dense), result is NCHW.
# ----------------------------------------------------------------------------
def _make_head_kernel(act):
    def kernel(w_ref, b_ref, p_ref, o_ref):
        y = jnp.dot(w_ref[...], p_ref[...], preferred_element_type=jnp.float32)
        o_ref[...] = _apply_act(y + b_ref[...], act)
    return kernel


def head_conv(x, w_mat, bias, k, stride, padding, act):
    """Conv2d (NCHW) + folded BN + activation via one Pallas call (grid=batch)."""
    b, _, _, _ = x.shape
    cout, kdim = w_mat.shape
    patches = lax.conv_general_dilated_patches(
        x, filter_shape=(k, k), window_strides=(stride, stride),
        padding=((padding, padding), (padding, padding)),
        dimension_numbers=("NCHW", "OIHW", "NCHW"))      # (B, Cin*k*k, Ho, Wo)
    _, kdim2, ho, wo = patches.shape
    assert kdim2 == kdim, (kdim2, kdim)
    l = ho * wo
    patches = patches.reshape(b, kdim, l)

    out = pl.pallas_call(
        _make_head_kernel(act),
        out_shape=jax.ShapeDtypeStruct((b, cout, l), jnp.float32),
        grid=(b,),
        in_specs=[
            pl.BlockSpec((cout, kdim), lambda i: (0, 0)),   # weights (BN folded)
            pl.BlockSpec((cout, 1), lambda i: (0, 0)),      # per-channel bias
            pl.BlockSpec((None, kdim, l), lambda i: (i, 0, 0)),
        ],
        out_specs=pl.BlockSpec((None, cout, l), lambda i: (i, 0, 0)),
        compiler_params=pltpu.CompilerParams(
            dimension_semantics=("parallel",)),
    )(w_mat, bias, patches)
    return out.reshape(b, cout, ho, wo)


# ----------------------------------------------------------------------------
# Tail kernel: Residual x2 + CBAM + ConvBlock x2 fused in a single Pallas call.
# Feature maps live as (NB*SB, C) rows (row = b*SB + y*W + x; rows [npix, SB)
# per image are zero padding).  3x3 convs:  out = sum_t P3[t] @ x @ W[t].
# ----------------------------------------------------------------------------
def make_tail_kernel(nb, sb, npix, c_mid, c4_out, c_out):
    mp = nb * sb

    def conv3x3(h, p3_ref, w_ref, b_ref, cout):
        acc = jnp.zeros((mp, cout), jnp.float32)
        for t in range(9):                              # unrolled tap offsets
            y = jnp.dot(h, w_ref[t], preferred_element_type=jnp.float32)
            acc = acc + jnp.dot(p3_ref[t], y, preferred_element_type=jnp.float32)
        return acc + b_ref[...]

    def kernel(x_ref, p3_ref,
               r1a_w, r1a_b, r1b_w, r1b_b,
               r2a_w, r2a_b, r2b_w, r2b_b,
               ca_w1, ca_w2, saq_ref,
               c4_w, c4_b, c5_w, c5_b,
               o_ref):
        x = x_ref[...]                                  # (mp, c_mid)

        # --- res_blocks_1 / res_blocks_2: relu(bn(conv(relu(bn(conv)))) + id)
        h = jnp.maximum(conv3x3(x, p3_ref, r1a_w, r1a_b, c_mid), 0.0)
        x = jnp.maximum(conv3x3(h, p3_ref, r1b_w, r1b_b, c_mid) + x, 0.0)
        h = jnp.maximum(conv3x3(x, p3_ref, r2a_w, r2a_b, c_mid), 0.0)
        x = jnp.maximum(conv3x3(h, p3_ref, r2b_w, r2b_b, c_mid) + x, 0.0)

        # --- CBAM channel attention (shared MLP over avg / max spatial pool)
        row = lax.broadcasted_iota(jnp.int32, (mp, c_mid), 0)

        def mlp(v):                                     # v: (1, c_mid)
            hdn = jnp.maximum(
                jnp.dot(v, ca_w1[...], preferred_element_type=jnp.float32), 0.0)
            return jnp.dot(hdn, ca_w2[...], preferred_element_type=jnp.float32)

        gains = []
        for bi in range(nb):
            valid = (row >= bi * sb) & (row < bi * sb + npix)
            avg = jnp.sum(jnp.where(valid, x, 0.0), axis=0,
                          keepdims=True) * (1.0 / npix)
            mxv = jnp.max(jnp.where(valid, x, -1e30), axis=0, keepdims=True)
            att = jax.nn.sigmoid(mlp(avg) + mlp(mxv))   # (1, c_mid)
            gains.append(jnp.broadcast_to(att, (mp, c_mid)))
        ca = gains[nb - 1]
        for bi in range(nb - 2, -1, -1):
            ca = jnp.where(row < (bi + 1) * sb, gains[bi], ca)
        x = x * ca

        # --- CBAM spatial attention (7x7 conv folded into saq matmuls)
        savg = jnp.mean(x, axis=1, keepdims=True)       # (mp, 1)
        smax = jnp.max(x, axis=1, keepdims=True)        # (mp, 1)
        logit = (jnp.dot(saq_ref[0], savg, preferred_element_type=jnp.float32)
                 + jnp.dot(saq_ref[1], smax, preferred_element_type=jnp.float32))
        x = x * jax.nn.sigmoid(logit)

        # --- conv_blocks_4 / conv_blocks_5 (LeakyReLU, slope 0.01)
        y = conv3x3(x, p3_ref, c4_w, c4_b, c4_out)
        y = jnp.where(y >= 0.0, y, 0.01 * y)
        z = conv3x3(y, p3_ref, c5_w, c5_b, c_out)
        o_ref[...] = jnp.where(z >= 0.0, z, 0.01 * z)

    return kernel


# ----------------------------------------------------------------------------
# Host-side (setup-time) builders: gather matrices for the in-kernel convs.
# ----------------------------------------------------------------------------
def build_gather_3x3(nb, h, w, sb):
    """P3[t, r, r'] = 1 iff pixel r' is the (3x3, pad=1) tap t of pixel r."""
    mp = nb * sb
    p = np.zeros((9, mp, mp), np.float32)
    for b in range(nb):
        for y in range(h):
            for x in range(w):
                r = b * sb + y * w + x
                for i in range(3):
                    for j in range(3):
                        yy, xx = y + i - 1, x + j - 1
                        if 0 <= yy < h and 0 <= xx < w:
                            p[i * 3 + j, r, b * sb + yy * w + xx] = 1.0
    return jnp.asarray(p)


def build_spatial_gather(sa_w, nb, h, w, sb):
    """Fold the CBAM 7x7 spatial-attention conv into two (mp, mp) matrices
    (channel 0 = mean map, channel 1 = max map)."""
    sa_w = np.asarray(sa_w)
    k = sa_w.shape[-1]
    pad = k // 2
    mp = nb * sb
    q = np.zeros((2, mp, mp), np.float32)
    for b in range(nb):
        for y in range(h):
            for x in range(w):
                r = b * sb + y * w + x
                for i in range(k):
                    for j in range(k):
                        yy, xx = y + i - pad, x + j - pad
                        if 0 <= yy < h and 0 <= xx < w:
                            rp = b * sb + yy * w + xx
                            q[0, r, rp] += sa_w[0, 0, i, j]
                            q[1, r, rp] += sa_w[0, 1, i, j]
    return jnp.asarray(q)


# ----------------------------------------------------------------------------
# Parameter construction: synthetic Conv+BN params with BN folded on the host.
# ----------------------------------------------------------------------------
def make_conv_bn(key, cin, cout, k):
    w = jax.random.normal(key, (cout, cin, k, k), jnp.float32)
    w = w * (1.0 / (cin * k * k) ** 0.5)
    gamma = jnp.ones((cout,), jnp.float32)
    beta = jnp.zeros((cout,), jnp.float32)
    mean = jnp.zeros((cout,), jnp.float32)
    var = jnp.ones((cout,), jnp.float32)
    scale = gamma * lax.rsqrt(var + 1e-5)
    bias = beta - mean * scale
    return w, scale, bias


def fold_head(w, scale, bias):
    """Conv+BN -> (Cout, Cin*k*k) matrix with BN scale folded, (Cout, 1) bias."""
    cout, cin, kh, kw = w.shape
    w_mat = (w * scale[:, None, None, None]).reshape(cout, cin * kh * kw)
    return w_mat, bias.reshape(cout, 1)


def fold_tail(w, scale, bias):
    """Conv+BN -> per-tap (9, Cin, Cout) weights with BN folded, (1, Cout) bias."""
    cout, cin, kh, kw = w.shape
    wf = w * scale[:, None, None, None]
    w_taps = jnp.transpose(wf, (2, 3, 1, 0)).reshape(kh * kw, cin, cout)
    return w_taps, bias.reshape(1, cout)


# ----------------------------------------------------------------------------
# APM forward (4 pallas_calls total)
# ----------------------------------------------------------------------------
def apm_forward(x, params):
    # head: three strided ConvBlocks (SiLU), one Pallas call each
    x = head_conv(x, *params["c1"], 13, 2, 1, "silu")
    x = head_conv(x, *params["c2"], 7, 2, 1, "silu")
    x = head_conv(x, *params["c3"], 5, 2, 1, "silu")

    # tail: Residual x2 + CBAM + ConvBlock x2 fused into ONE Pallas call
    b, c, h, w = x.shape
    npix = h * w
    sb = params["p3"].shape[1] // b                     # padded rows per image
    c4_out = params["c4"][0].shape[-1]
    c_out = params["c5"][0].shape[-1]

    t = jnp.transpose(x.reshape(b, c, npix), (0, 2, 1))     # (b, npix, c), tiny
    t = jnp.pad(t, ((0, 0), (0, sb - npix), (0, 0)))        # zero pad rows
    x_tail = t.reshape(b * sb, c)

    tail = pl.pallas_call(
        make_tail_kernel(b, sb, npix, c, c4_out, c_out),
        out_shape=jax.ShapeDtypeStruct((b * sb, c_out), jnp.float32),
    )
    y = tail(x_tail, params["p3"],
             *params["r1a"], *params["r1b"], *params["r2a"], *params["r2b"],
             params["ca_w1"], params["ca_w2"], params["saq"],
             *params["c4"], *params["c5"])

    y = y.reshape(b, sb, c_out)[:, :npix, :]                # drop pad rows
    return jnp.transpose(y, (0, 2, 1)).reshape(b, c_out, h, w)


def _conv_out_size(n, k, s, p):
    return (n + 2 * p - k) // s + 1


if __name__ == "__main__":
    key = jax.random.PRNGKey(0)
    keys = jax.random.split(key, 16)

    in_chs, out_chs = 4, 8
    B, H, W = 2, 64, 64  # k=13 conv with padding=1 needs a 64x64 input

    # spatial sizes after the three stride-2 head convs: 64 -> 27 -> 12 -> 5
    h3 = _conv_out_size(_conv_out_size(_conv_out_size(H, 13, 2, 1), 7, 2, 1), 5, 2, 1)
    w3 = _conv_out_size(_conv_out_size(_conv_out_size(W, 13, 2, 1), 7, 2, 1), 5, 2, 1)
    npix = h3 * w3
    sb = ((npix + 7) // 8) * 8          # rows-per-image padded to sublane mult

    sa_w = jax.random.normal(keys[9], (1, 2, 7, 7), jnp.float32) * 0.1

    params = {
        # head ConvBlocks: (Cout, K) weight (BN scale folded), (Cout, 1) bias
        "c1": fold_head(*make_conv_bn(keys[0], in_chs, 4, 13)),
        "c2": fold_head(*make_conv_bn(keys[1], 4, 16, 7)),
        "c3": fold_head(*make_conv_bn(keys[2], 16, 32, 5)),
        # tail convs: per-tap (9, Cin, Cout) weights (BN folded), (1, Cout) bias
        "r1a": fold_tail(*make_conv_bn(keys[3], 32, 32, 3)),
        "r1b": fold_tail(*make_conv_bn(keys[4], 32, 32, 3)),
        "r2a": fold_tail(*make_conv_bn(keys[5], 32, 32, 3)),
        "r2b": fold_tail(*make_conv_bn(keys[6], 32, 32, 3)),
        # CBAM channel-attention MLP (r=16 -> hidden=2), no bias
        "ca_w1": jax.random.normal(keys[7], (32, 2), jnp.float32) * 0.1,
        "ca_w2": jax.random.normal(keys[8], (2, 32), jnp.float32) * 0.1,
        # tail ConvBlocks 4/5 (LeakyReLU)
        "c4": fold_tail(*make_conv_bn(keys[10], 32, 8, 3)),
        "c5": fold_tail(*make_conv_bn(keys[11], 8, out_chs, 3)),
        # host-precomputed gather matrices for the fused tail kernel
        "p3": build_gather_3x3(B, h3, w3, sb),
        "saq": build_spatial_gather(sa_w, B, h3, w3, sb),
    }

    x = jax.random.normal(keys[12], (B, in_chs, H, W), jnp.float32)

    fwd = jax.jit(functools.partial(apm_forward, params=params))
    out = jax.block_until_ready(fwd(x))

    assert out.shape == (B, out_chs, h3, w3), out.shape
    assert out.dtype == jnp.float32
    assert bool(jnp.isfinite(out).all())
    print("KERNEL_OK")
</pallas_src>

<mosaic_0001>
module attributes {stable_mosaic.version = 11 : i64} {
  func.func @kernel(%arg0: i32, %arg1: memref<4x676xf32, #tpu.memory_space<vmem>>, %arg2: memref<4x1xf32, #tpu.memory_space<vmem>>, %arg3: memref<1x676x729xf32, #tpu.memory_space<vmem>>, %arg4: memref<1x4x729xf32, #tpu.memory_space<vmem>>) attributes {dimension_semantics = [#tpu.dimension_semantics<parallel>], iteration_bounds = array<i64: 2>, scalar_prefetch = 0 : i64, scratch_operands = 0 : i64, tpu.core_type = #tpu.core_type<tc>, window_params = [{pipeline_mode = #tpu.pipeline_mode<synchronous>, transform_indices = @transform_0, window_bounds = array<i64: 4, 676>}, {pipeline_mode = #tpu.pipeline_mode<synchronous>, transform_indices = @transform_1, window_bounds = array<i64: 4, 1>}, {transform_indices = @transform_2, window_bounds = array<i64: 1, 676, 729>}, {transform_indices = @transform_3, window_bounds = array<i64: 1, 4, 729>}]} {
    %c0 = arith.constant 0 : index
    %c0_0 = arith.constant 0 : index
    %0 = vector.load %arg1[%c0, %c0_0] : memref<4x676xf32, #tpu.memory_space<vmem>>, vector<4x676xf32>
    %c0_1 = arith.constant 0 : index
    %c0_2 = arith.constant 0 : index
    %c0_3 = arith.constant 0 : index
    %1 = vector.load %arg3[%c0_1, %c0_2, %c0_3] : memref<1x676x729xf32, #tpu.memory_space<vmem>>, vector<1x676x729xf32>
    %2 = vector.shape_cast %1 : vector<1x676x729xf32> to vector<676x729xf32>
    %cst = arith.constant dense<0.000000e+00> : vector<4x729xf32>
    %3 = tpu.matmul %0, %2, %cst {dimension_numbers = #tpu.dot_dimension_numbers<[1], [0], [0], [1], [0, 0, 1, 1], [], []>} : vector<4x676xf32>, vector<676x729xf32>, vector<4x729xf32> -> vector<4x729xf32>
    %c0_4 = arith.constant 0 : index
    %c0_5 = arith.constant 0 : index
    %4 = vector.load %arg2[%c0_4, %c0_5] : memref<4x1xf32, #tpu.memory_space<vmem>>, vector<4x1xf32>
    %5 = vector.broadcast %4 : vector<4x1xf32> to vector<4x729xf32>
    %6 = arith.addf %3, %5 : vector<4x729xf32>
    %7 = arith.negf %6 : vector<4x729xf32>
    %8 = math.exp %7 : vector<4x729xf32>
    %cst_6 = arith.constant 1.000000e+00 : f32
    %9 = vector.broadcast %cst_6 : f32 to vector<4x729xf32>
    %10 = arith.addf %9, %8 : vector<4x729xf32>
    %11 = arith.divf %9, %10 : vector<4x729xf32>
    %12 = arith.mulf %6, %11 : vector<4x729xf32>
    %c0_7 = arith.constant 0 : index
    %c0_8 = arith.constant 0 : index
    %c0_9 = arith.constant 0 : index
    %13 = vector.load %arg4[%c0_7, %c0_8, %c0_9] : memref<1x4x729xf32, #tpu.memory_space<vmem>>, vector<1x4x729xf32>
    %14 = vector.shape_cast %13 : vector<1x4x729xf32> to vector<4x729xf32>
    %15 = vector.shape_cast %12 : vector<4x729xf32> to vector<1x4x729xf32>
    tpu.vector_store %arg4[%c0_7, %c0_8, %c0_9], %15 {strides = array<i32>} : memref<1x4x729xf32, #tpu.memory_space<vmem>>, vector<1x4x729xf32>,
    return
  }
  func.func @transform_0(%arg0: i32) -> (i32, i32) {
    %c0_i32 = arith.constant 0 : i32
    %c0_i32_0 = arith.constant 0 : i32
    %c0_i32_1 = arith.constant 0 : i32
    return %c0_i32, %c0_i32_0 : i32, i32
  }
  func.func @transform_1(%arg0: i32) -> (i32, i32) {
    %c0_i32 = arith.constant 0 : i32
    %c0_i32_0 = arith.constant 0 : i32
    %c0_i32_1 = arith.constant 0 : i32
    return %c0_i32, %c0_i32_0 : i32, i32
  }
  func.func @transform_2(%arg0: i32) -> (i32, i32, i32) {
    %c0_i32 = arith.constant 0 : i32
    %c0_i32_0 = arith.constant 0 : i32
    %c0_i32_1 = arith.constant 0 : i32
    return %arg0, %c0_i32, %c0_i32_0 : i32, i32, i32
  }
  func.func @transform_3(%arg0: i32) -> (i32, i32, i32) {
    %c0_i32 = arith.constant 0 : i32
    %c0_i32_0 = arith.constant 0 : i32
    %c0_i32_1 = arith.constant 0 : i32
    return %arg0, %c0_i32, %c0_i32_0 : i32, i32, i32
  }
}

module attributes {stable_mosaic.version = 11 : i64} {
  func.func @kernel(%arg0: i32, %arg1: memref<16x196xf32, #tpu.memory_space<vmem>>, %arg2: memref<16x1xf32, #tpu.memory_space<vmem>>, %arg3: memref<1x196x144xf32, #tpu.memory_space<vmem>>, %arg4: memref<1x16x144xf32, #tpu.memory_space<vmem>>) attributes {dimension_semantics = [#tpu.dimension_semantics<parallel>], iteration_bounds = array<i64: 2>, scalar_prefetch = 0 : i64, scratch_operands = 0 : i64, tpu.core_type = #tpu.core_type<tc>, window_params = [{pipeline_mode = #tpu.pipeline_mode<synchronous>, transform_indices = @transform_0, window_bounds = array<i64: 16, 196>}, {pipeline_mode = #tpu.pipeline_mode<synchronous>, transform_indices = @transform_1, window_bounds = array<i64: 16, 1>}, {transform_indices = @transform_2, window_bounds = array<i64: 1, 196, 144>}, {transform_indices = @transform_3, window_bounds = array<i64: 1, 16, 144>}]} {
    %c0 = arith.constant 0 : index
    %c0_0 = arith.constant 0 : index
    %0 = vector.load %arg1[%c0, %c0_0] : memref<16x196xf32, #tpu.memory_space<vmem>>, vector<16x196xf32>
    %c0_1 = arith.constant 0 : index
    %c0_2 = arith.constant 0 : index
    %c0_3 = arith.constant 0 : index
    %1 = vector.load %arg3[%c0_1, %c0_2, %c0_3] : memref<1x196x144xf32, #tpu.memory_space<vmem>>, vector<1x196x144xf32>
    %2 = vector.shape_cast %1 : vector<1x196x144xf32> to vector<196x144xf32>
    %cst = arith.constant dense<0.000000e+00> : vector<16x144xf32>
    %3 = tpu.matmul %0, %2, %cst {dimension_numbers = #tpu.dot_dimension_numbers<[1], [0], [0], [1], [0, 0, 1, 1], [], []>} : vector<16x196xf32>, vector<196x144xf32>, vector<16x144xf32> -> vector<16x144xf32>
    %c0_4 = arith.constant 0 : index
    %c0_5 = arith.constant 0 : index
    %4 = vector.load %arg2[%c0_4, %c0_5] : memref<16x1xf32, #tpu.memory_space<vmem>>, vector<16x1xf32>
    %5 = vector.broadcast %4 : vector<16x1xf32> to vector<16x144xf32>
    %6 = arith.addf %3, %5 : vector<16x144xf32>
    %7 = arith.negf %6 : vector<16x144xf32>
    %8 = math.exp %7 : vector<16x144xf32>
    %cst_6 = arith.constant 1.000000e+00 : f32
    %9 = vector.broadcast %cst_6 : f32 to vector<16x144xf32>
    %10 = arith.addf %9, %8 : vector<16x144xf32>
    %11 = arith.divf %9, %10 : vector<16x144xf32>
    %12 = arith.mulf %6, %11 : vector<16x144xf32>
    %c0_7 = arith.constant 0 : index
    %c0_8 = arith.constant 0 : index
    %c0_9 = arith.constant 0 : index
    %13 = vector.load %arg4[%c0_7, %c0_8, %c0_9] : memref<1x16x144xf32, #tpu.memory_space<vmem>>, vector<1x16x144xf32>
    %14 = vector.shape_cast %13 : vector<1x16x144xf32> to vector<16x144xf32>
    %15 = vector.shape_cast %12 : vector<16x144xf32> to vector<1x16x144xf32>
    tpu.vector_store %arg4[%c0_7, %c0_8, %c0_9], %15 {strides = array<i32>} : memref<1x16x144xf32, #tpu.memory_space<vmem>>, vector<1x16x144xf32>,
    return
  }
  func.func @transform_0(%arg0: i32) -> (i32, i32) {
    %c0_i32 = arith.constant 0 : i32
    %c0_i32_0 = arith.constant 0 : i32
    %c0_i32_1 = arith.constant 0 : i32
    return %c0_i32, %c0_i32_0 : i32, i32
  }
  func.func @transform_1(%arg0: i32) -> (i32, i32) {
    %c0_i32 = arith.constant 0 : i32
    %c0_i32_0 = arith.constant 0 : i32
    %c0_i32_1 = arith.constant 0 : i32
    return %c0_i32, %c0_i32_0 : i32, i32
  }
  func.func @transform_2(%arg0: i32) -> (i32, i32, i32) {
    %c0_i32 = arith.constant 0 : i32
    %c0_i32_0 = arith.constant 0 : i32
    %c0_i32_1 = arith.constant 0 : i32
    return %arg0, %c0_i32, %c0_i32_0 : i32, i32, i32
  }
  func.func @transform_3(%arg0: i32) -> (i32, i32, i32) {
    %c0_i32 = arith.constant 0 : i32
    %c0_i32_0 = arith.constant 0 : i32
    %c0_i32_1 = arith.constant 0 : i32
    return %arg0, %c0_i32, %c0_i32_0 : i32, i32, i32
  }
}

module attributes {stable_mosaic.version = 11 : i64} {
  func.func @kernel(%arg0: i32, %arg1: memref<32x400xf32, #tpu.memory_space<vmem>>, %arg2: memref<32x1xf32, #tpu.memory_space<vmem>>, %arg3: memref<1x400x25xf32, #tpu.memory_space<vmem>>, %arg4: memref<1x32x25xf32, #tpu.memory_space<vmem>>) attributes {dimension_semantics = [#tpu.dimension_semantics<parallel>], iteration_bounds = array<i64: 2>, scalar_prefetch = 0 : i64, scratch_operands = 0 : i64, tpu.core_type = #tpu.core_type<tc>, window_params = [{pipeline_mode = #tpu.pipeline_mode<synchronous>, transform_indices = @transform_0, window_bounds = array<i64: 32, 400>}, {pipeline_mode = #tpu.pipeline_mode<synchronous>, transform_indices = @transform_1, window_bounds = array<i64: 32, 1>}, {transform_indices = @transform_2, window_bounds = array<i64: 1, 400, 25>}, {transform_indices = @transform_3, window_bounds = array<i64: 1, 32, 25>}]} {
    %c0 = arith.constant 0 : index
    %c0_0 = arith.constant 0 : index
    %0 = vector.load %arg1[%c0, %c0_0] : memref<32x400xf32, #tpu.memory_space<vmem>>, vector<32x400xf32>
    %c0_1 = arith.constant 0 : index
    %c0_2 = arith.constant 0 : index
    %c0_3 = arith.constant 0 : index
    %1 = vector.load %arg3[%c0_1, %c0_2, %c0_3] : memref<1x400x25xf32, #tpu.memory_space<vmem>>, vector<1x400x25xf32>
    %2 = vector.shape_cast %1 : vector<1x400x25xf32> to vector<400x25xf32>
    %cst = arith.constant dense<0.000000e+00> : vector<32x25xf32>
    %3 = tpu.matmul %0, %2, %cst {dimension_numbers = #tpu.dot_dimension_numbers<[1], [0], [0], [1], [0, 0, 1, 1], [], []>} : vector<32x400xf32>, vector<400x25xf32>, vector<32x25xf32> -> vector<32x25xf32>
    %c0_4 = arith.constant 0 : index
    %c0_5 = arith.constant 0 : index
    %4 = vector.load %arg2[%c0_4, %c0_5] : memref<32x1xf32, #tpu.memory_space<vmem>>, vector<32x1xf32>
    %5 = vector.broadcast %4 : vector<32x1xf32> to vector<32x25xf32>
    %6 = arith.addf %3, %5 : vector<32x25xf32>
    %7 = arith.negf %6 : vector<32x25xf32>
    %8 = math.exp %7 : vector<32x25xf32>
    %cst_6 = arith.constant 1.000000e+00 : f32
    %9 = vector.broadcast %cst_6 : f32 to vector<32x25xf32>
    %10 = arith.addf %9, %8 : vector<32x25xf32>
    %11 = arith.divf %9, %10 : vector<32x25xf32>
    %12 = arith.mulf %6, %11 : vector<32x25xf32>
    %c0_7 = arith.constant 0 : index
    %c0_8 = arith.constant 0 : index
    %c0_9 = arith.constant 0 : index
    %13 = vector.load %arg4[%c0_7, %c0_8, %c0_9] : memref<1x32x25xf32, #tpu.memory_space<vmem>>, vector<1x32x25xf32>
    %14 = vector.shape_cast %13 : vector<1x32x25xf32> to vector<32x25xf32>
    %15 = vector.shape_cast %12 : vector<32x25xf32> to vector<1x32x25xf32>
    tpu.vector_store %arg4[%c0_7, %c0_8, %c0_9], %15 {strides = array<i32>} : memref<1x32x25xf32, #tpu.memory_space<vmem>>, vector<1x32x25xf32>,
    return
  }
  func.func @transform_0(%arg0: i32) -> (i32, i32) {
    %c0_i32 = arith.constant 0 : i32
    %c0_i32_0 = arith.constant 0 : i32
    %c0_i32_1 = arith.constant 0 : i32
    return %c0_i32, %c0_i32_0 : i32, i32
  }
  func.func @transform_1(%arg0: i32) -> (i32, i32) {
    %c0_i32 = arith.constant 0 : i32
    %c0_i32_0 = arith.constant 0 : i32
    %c0_i32_1 = arith.constant 0 : i32
    return %c0_i32, %c0_i32_0 : i32, i32
  }
  func.func @transform_2(%arg0: i32) -> (i32, i32, i32) {
    %c0_i32 = arith.constant 0 : i32
    %c0_i32_0 = arith.constant 0 : i32
    %c0_i32_1 = arith.constant 0 : i32
    return %arg0, %c0_i32, %c0_i32_0 : i32, i32, i32
  }
  func.func @transform_3(%arg0: i32) -> (i32, i32, i32) {
    %c0_i32 = arith.constant 0 : i32
    %c0_i32_0 = arith.constant 0 : i32
    %c0_i32_1 = arith.constant 0 : i32
    return %arg0, %c0_i32, %c0_i32_0 : i32, i32, i32
  }
}

module attributes {stable_mosaic.version = 11 : i64} {
  func.func @kernel(%arg0: memref<64x32xf32, #tpu.memory_space<vmem>>, %arg1: memref<9x64x64xf32, #tpu.memory_space<vmem>>, %arg2: memref<9x32x32xf32, #tpu.memory_space<vmem>>, %arg3: memref<1x32xf32, #tpu.memory_space<vmem>>, %arg4: memref<9x32x32xf32, #tpu.memory_space<vmem>>, %arg5: memref<1x32xf32, #tpu.memory_space<vmem>>, %arg6: memref<9x32x32xf32, #tpu.memory_space<vmem>>, %arg7: memref<1x32xf32, #tpu.memory_space<vmem>>, %arg8: memref<9x32x32xf32, #tpu.memory_space<vmem>>, %arg9: memref<1x32xf32, #tpu.memory_space<vmem>>, %arg10: memref<32x2xf32, #tpu.memory_space<vmem>>, %arg11: memref<2x32xf32, #tpu.memory_space<vmem>>, %arg12: memref<2x64x64xf32, #tpu.memory_space<vmem>>, %arg13: memref<9x32x8xf32, #tpu.memory_space<vmem>>, %arg14: memref<1x8xf32, #tpu.memory_space<vmem>>, %arg15: memref<9x8x8xf32, #tpu.memory_space<vmem>>, %arg16: memref<1x8xf32, #tpu.memory_space<vmem>>, %arg17: memref<64x8xf32, #tpu.memory_space<vmem>>) attributes {dimension_semantics = [], scalar_prefetch = 0 : i64, scratch_operands = 0 : i64, tpu.core_type = #tpu.core_type<tc>} {
    %c0 = arith.constant 0 : index
    %c0_0 = arith.constant 0 : index
    %0 = vector.load %arg0[%c0, %c0_0] : memref<64x32xf32, #tpu.memory_space<vmem>>, vector<64x32xf32>
    %cst = arith.constant 0.000000e+00 : f32
    %1 = vector.broadcast %cst : f32 to vector<64x32xf32>
    %c0_1 = arith.constant 0 : index
    %c0_2 = arith.constant 0 : index
    %c0_3 = arith.constant 0 : index
    %2 = vector.load %arg2[%c0_1, %c0_2, %c0_3] : memref<9x32x32xf32, #tpu.memory_space<vmem>>, vector<1x32x32xf32>
    %3 = vector.shape_cast %2 : vector<1x32x32xf32> to vector<32x32xf32>
    %cst_4 = arith.constant dense<0.000000e+00> : vector<64x32xf32>
    %4 = tpu.matmul %0, %3, %cst_4 {dimension_numbers = #tpu.dot_dimension_numbers<[1], [0], [0], [1], [0, 0, 1, 1], [], []>} : vector<64x32xf32>, vector<32x32xf32>, vector<64x32xf32> -> vector<64x32xf32>
    %c0_5 = arith.constant 0 : index
    %c0_6 = arith.constant 0 : index
    %c0_7 = arith.constant 0 : index
    %5 = vector.load %arg1[%c0_5, %c0_6, %c0_7] : memref<9x64x64xf32, #tpu.memory_space<vmem>>, vector<1x64x64xf32>
    %6 = vector.shape_cast %5 : vector<1x64x64xf32> to vector<64x64xf32>
    %cst_8 = arith.constant dense<0.000000e+00> : vector<64x32xf32>
    %7 = tpu.matmul %6, %4, %cst_8 {dimension_numbers = #tpu.dot_dimension_numbers<[1], [0], [0], [1], [0, 0, 1, 1], [], []>} : vector<64x64xf32>, vector<64x32xf32>, vector<64x32xf32> -> vector<64x32xf32>
    %8 = arith.addf %1, %7 : vector<64x32xf32>
    %c1 = arith.constant 1 : index
    %c0_9 = arith.constant 0 : index
    %c0_10 = arith.constant 0 : index
    %9 = vector.load %arg2[%c1, %c0_9, %c0_10] : memref<9x32x32xf32, #tpu.memory_space<vmem>>, vector<1x32x32xf32>
    %10 = vector.shape_cast %9 : vector<1x32x32xf32> to vector<32x32xf32>
    %cst_11 = arith.constant dense<0.000000e+00> : vector<64x32xf32>
    %11 = tpu.matmul %0, %10, %cst_11 {dimension_numbers = #tpu.dot_dimension_numbers<[1], [0], [0], [1], [0, 0, 1, 1], [], []>} : vector<64x32xf32>, vector<32x32xf32>, vector<64x32xf32> -> vector<64x32xf32>
    %c1_12 = arith.constant 1 : index
    %c0_13 = arith.constant 0 : index
    %c0_14 = arith.constant 0 : index
    %12 = vector.load %arg1[%c1_12, %c0_13, %c0_14] : memref<9x64x64xf32, #tpu.memory_space<vmem>>, vector<1x64x64xf32>
    %13 = vector.shape_cast %12 : vector<1x64x64xf32> to vector<64x64xf32>
    %cst_15 = arith.constant dense<0.000000e+00> : vector<64x32xf32>
    %14 = tpu.matmul %13, %11, %cst_15 {dimension_numbers = #tpu.dot_dimension_numbers<[1], [0], [0], [1], [0, 0, 1, 1], [], []>} : vector<64x64xf32>, vector<64x32xf32>, vector<64x32xf32> -> vector<64x32xf32>
    %15 = arith.addf %8, %14 : vector<64x32xf32>
    %c2 = arith.constant 2 : index
    %c0_16 = arith.constant 0 : index
    %c0_17 = arith.constant 0 : index
    %16 = vector.load %arg2[%c2, %c0_16, %c0_17] : memref<9x32x32xf32, #tpu.memory_space<vmem>>, vector<1x32x32xf32>
    %17 = vector.shape_cast %16 : vector<1x32x32xf32> to vector<32x32xf32>
    %cst_18 = arith.constant dense<0.000000e+00> : vector<64x32xf32>
    %18 = tpu.matmul %0, %17, %cst_18 {dimension_numbers = #tpu.dot_dimension_numbers<[1], [0], [0], [1], [0, 0, 1, 1], [], []>} : vector<64x32xf32>, vector<32x32xf32>, vector<64x32xf32> -> vector<64x32xf32>
    %c2_19 = arith.constant 2 : index
    %c0_20 = arith.constant 0 : index
    %c0_21 = arith.constant 0 : index
    %19 = vector.load %arg1[%c2_19, %c0_20, %c0_21] : memref<9x64x64xf32, #tpu.memory_space<vmem>>, vector<1x64x64xf32>
    %20 = vector.shape_cast %19 : vector<1x64x64xf32> to vector<64x64xf32>
    %cst_22 = arith.constant dense<0.000000e+00> : vector<64x32xf32>
    %21 = tpu.matmul %20, %18, %cst_22 {dimension_numbers = #tpu.dot_dimension_numbers<[1], [0], [0], [1], [0, 0, 1, 1], [], []>} : vector<64x64xf32>, vector<64x32xf32>, vector<64x32xf32> -> vector<64x32xf32>
    %22 = arith.addf %15, %21 : vector<64x32xf32>
    %c3 = arith.constant 3 : index
    %c0_23 = arith.constant 0 : index
    %c0_24 = arith.constant 0 : index
    %23 = vector.load %arg2[%c3, %c0_23, %c0_24] : memref<9x32x32xf32, #tpu.memory_space<vmem>>, vector<1x32x32xf32>
    %24 = vector.shape_cast %23 : vector<1x32x32xf32> to vector<32x32xf32>
    %cst_25 = arith.constant dense<0.000000e+00> : vector<64x32xf32>
    %25 = tpu.matmul %0, %24, %cst_25 {dimension_numbers = #tpu.dot_dimension_numbers<[1], [0], [0], [1], [0, 0, 1, 1], [], []>} : vector<64x32xf32>, vector<32x32xf32>, vector<64x32xf32> -> vector<64x32xf32>
    %c3_26 = arith.constant 3 : index
    %c0_27 = arith.constant 0 : index
    %c0_28 = arith.constant 0 : index
    %26 = vector.load %arg1[%c3_26, %c0_27, %c0_28] : memref<9x64x64xf32, #tpu.memory_space<vmem>>, vector<1x64x64xf32>
    %27 = vector.shape_cast %26 : vector<1x64x64xf32> to vector<64x64xf32>
    %cst_29 = arith.constant dense<0.000000e+00> : vector<64x32xf32>
    %28 = tpu.matmul %27, %25, %cst_29 {dimension_numbers = #tpu.dot_dimension_numbers<[1], [0], [0], [1], [0, 0, 1, 1], [], []>} : vector<64x64xf32>, vector<64x32xf32>, vector<64x32xf32> -> vector<64x32xf32>
    %29 = arith.addf %22, %28 : vector<64x32xf32>
    %c4 = arith.constant 4 : index
    %c0_30 = arith.constant 0 : index
    %c0_31 = arith.constant 0 : index
    %30 = vector.load %arg2[%c4, %c0_30, %c0_31] : memref<9x32x32xf32, #tpu.memory_space<vmem>>, vector<1x32x32xf32>
    %31 = vector.shape_cast %30 : vector<1x32x32xf32> to vector<32x32xf32>
    %cst_32 = arith.constant dense<0.000000e+00> : vector<64x32xf32>
    %32 = tpu.matmul %0, %31, %cst_32 {dimension_numbers = #tpu.dot_dimension_numbers<[1], [0], [0], [1], [0, 0, 1, 1], [], []>} : vector<64x32xf32>, vector<32x32xf32>, vector<64x32xf32> -> vector<64x32xf32>
    %c4_33 = arith.constant 4 : index
    %c0_34 = arith.constant 0 : index
    %c0_35 = arith.constant 0 : index
    %33 = vector.load %arg1[%c4_33, %c0_34, %c0_35] : memref<9x64x64xf32, #tpu.memory_space<vmem>>, vector<1x64x64xf32>
    %34 = vector.shape_cast %33 : vector<1x64x64xf32> to vector<64x64xf32>
    %cst_36 = arith.constant dense<0.000000e+00> : vector<64x32xf32>
    %35 = tpu.matmul %34, %32, %cst_36 {dimension_numbers = #tpu.dot_dimension_numbers<[1], [0], [0], [1], [0, 0, 1, 1], [], []>} : vector<64x64xf32>, vector<64x32xf32>, vector<64x32xf32> -> vector<64x32xf32>
    %36 = arith.addf %29, %35 : vector<64x32xf32>
    %c5 = arith.constant 5 : index
    %c0_37 = arith.constant 0 : index
    %c0_38 = arith.constant 0 : index
    %37 = vector.load %arg2[%c5, %c0_37, %c0_38] : memref<9x32x32xf32, #tpu.memory_space<vmem>>, vector<1x32x32xf32>
    %38 = vector.shape_cast %37 : vector<1x32x32xf32> to vector<32x32xf32>
    %cst_39 = arith.constant dense<0.000000e+00> : vector<64x32xf32>
    %39 = tpu.matmul %0, %38, %cst_39 {dimension_numbers = #tpu.dot_dimension_numbers<[1], [0], [0], [1], [0, 0, 1, 1], [], []>} : vector<64x32xf32>, vector<32x32xf32>, vector<64x32xf32> -> vector<64x32xf32>
    %c5_40 = arith.constant 5 : index
    %c0_41 = arith.constant 0 : index
    %c0_42 = arith.constant 0 : index
    %40 = vector.load %arg1[%c5_40, %c0_41, %c0_42] : memref<9x64x64xf32, #tpu.memory_space<vmem>>, vector<1x64x64xf32>
    %41 = vector.shape_cast %40 : vector<1x64x64xf32> to vector<64x64xf32>
    %cst_43 = arith.constant dense<0.000000e+00> : vector<64x32xf32>
    %42 = tpu.matmul %41, %39, %cst_43 {dimension_numbers = #tpu.dot_dimension_numbers<[1], [0], [0], [1], [0, 0, 1, 1], [], []>} : vector<64x64xf32>, vector<64x32xf32>, vector<64x32xf32> -> vector<64x32xf32>
    %43 = arith.addf %36, %42 : vector<64x32xf32>
    %c6 = arith.constant 6 : index
    %c0_44 = arith.constant 0 : index
    %c0_45 = arith.constant 0 : index
    %44 = vector.load %arg2[%c6, %c0_44, %c0_45] : memref<9x32x32xf32, #tpu.memory_space<vmem>>, vector<1x32x32xf32>
    %45 = vector.shape_cast %44 : vector<1x32x32xf32> to vector<32x32xf32>
    %cst_46 = arith.constant dense<0.000000e+00> : vector<64x32xf32>
    %46 = tpu.matmul %0, %45, %cst_46 {dimension_numbers = #tpu.dot_dimension_numbers<[1], [0], [0], [1], [0, 0, 1, 1], [], []>} : vector<64x32xf32>, vector<32x32xf32>, vector<64x32xf32> -> vector<64x32xf32>
    %c6_47 = arith.constant 6 : index
    %c0_48 = arith.constant 0 : index
    %c0_49 = arith.constant 0 : index
    %47 = vector.load %arg1[%c6_47, %c0_48, %c0_49] : memref<9x64x64xf32, #tpu.memory_space<vmem>>, vector<1x64x64xf32>
    %48 = vector.shape_cast %47 : vector<1x64x64xf32> to vector<64x64xf32>
    %cst_50 = arith.constant dense<0.000000e+00> : vector<64x32xf32>
    %49 = tpu.matmul %48, %46, %cst_50 {dimension_numbers = #tpu.dot_dimension_numbers<[1], [0], [0], [1], [0, 0, 1, 1], [], []>} : vector<64x64xf32>, vector<64x32xf32>, vector<64x32xf32> -> vector<64x32xf32>
    %50 = arith.addf %43, %49 : vector<64x32xf32>
    %c7 = arith.constant 7 : index
    %c0_51 = arith.constant 0 : index
    %c0_52 = arith.constant 0 : index
    %51 = vector.load %arg2[%c7, %c0_51, %c0_52] : memref<9x32x32xf32, #tpu.memory_space<vmem>>, vector<1x32x32xf32>
    %52 = vector.shape_cast %51 : vector<1x32x32xf32> to vector<32x32xf32>
    %cst_53 = arith.constant dense<0.000000e+00> : vector<64x32xf32>
    %53 = tpu.matmul %0, %52, %cst_53 {dimension_numbers = #tpu.dot_dimension_numbers<[1], [0], [0], [1], [0, 0, 1, 1], [], []>} : vector<64x32xf32>, vector<32x32xf32>, vector<64x32xf32> -> vector<64x32xf32>
    %c7_54 = arith.constant 7 : index
    %c0_55 = arith.constant 0 : index
    %c0_56 = arith.constant 0 : index
    %54 = vector.load %arg1[%c7_54, %c0_55, %c0_56] : memref<9x64x64xf32, #tpu.memory_space<vmem>>, vector<1x64x64xf32>
    %55 = vector.shape_cast %54 : vector<1x64x64xf32> to vector<64x64xf32>
    %cst_57 = arith.constant dense<0.000000e+00> : vector<64x32xf32>
    %56 = tpu.matmul %55, %53, %cst_57 {dimension_numbers = #tpu.dot_dimension_numbers<[1], [0], [0], [1], [0, 0, 1, 1], [], []>} : vector<64x64xf32>, vector<64x32xf32>, vector<64x32xf32> -> vector<64x32xf32>
    %57 = arith.addf %50, %56 : vector<64x32xf32>
    %c8 = arith.constant 8 : index
    %c0_58 = arith.constant 0 : index
    %c0_59 = arith.constant 0 : index
    %58 = vector.load %arg2[%c8, %c0_58, %c0_59] : memref<9x32x32xf32, #tpu.memory_space<vmem>>, vector<1x32x32xf32>
    %59 = vector.shape_cast %58 : vector<1x32x32xf32> to vector<32x32xf32>
    %cst_60 = arith.constant dense<0.000000e+00> : vector<64x32xf32>
    %60 = tpu.matmul %0, %59, %cst_60 {dimension_numbers = #tpu.dot_dimension_numbers<[1], [0], [0], [1], [0, 0, 1, 1], [], []>} : vector<64x32xf32>, vector<32x32xf32>, vector<64x32xf32> -> vector<64x32xf32>
    %c8_61 = arith.constant 8 : index
    %c0_62 = arith.constant 0 : index
    %c0_63 = arith.constant 0 : index
    %61 = vector.load %arg1[%c8_61, %c0_62, %c0_63] : memref<9x64x64xf32, #tpu.memory_space<vmem>>, vector<1x64x64xf32>
    %62 = vector.shape_cast %61 : vector<1x64x64xf32> to vector<64x64xf32>
    %cst_64 = arith.constant dense<0.000000e+00> : vector<64x32xf32>
    %63 = tpu.matmul %62, %60, %cst_64 {dimension_numbers = #tpu.dot_dimension_numbers<[1], [0], [0], [1], [0, 0, 1, 1], [], []>} : vector<64x64xf32>, vector<64x32xf32>, vector<64x32xf32> -> vector<64x32xf32>
    %64 = arith.addf %57, %63 : vector<64x32xf32>
    %c0_65 = arith.constant 0 : index
    %c0_66 = arith.constant 0 : index
    %65 = vector.load %arg3[%c0_65, %c0_66] : memref<1x32xf32, #tpu.memory_space<vmem>>, vector<1x32xf32>
    %66 = vector.broadcast %65 : vector<1x32xf32> to vector<64x32xf32>
    %67 = arith.addf %64, %66 : vector<64x32xf32>
    %cst_67 = arith.constant 0.000000e+00 : f32
    %68 = vector.broadcast %cst_67 : f32 to vector<64x32xf32>
    %69 = arith.maximumf %67, %68 : vector<64x32xf32>
    %cst_68 = arith.constant 0.000000e+00 : f32
    %70 = vector.broadcast %cst_68 : f32 to vector<64x32xf32>
    %c0_69 = arith.constant 0 : index
    %c0_70 = arith.constant 0 : index
    %c0_71 = arith.constant 0 : index
    %71 = vector.load %arg4[%c0_69, %c0_70, %c0_71] : memref<9x32x32xf32, #tpu.memory_space<vmem>>, vector<1x32x32xf32>
    %72 = vector.shape_cast %71 : vector<1x32x32xf32> to vector<32x32xf32>
    %cst_72 = arith.constant dense<0.000000e+00> : vector<64x32xf32>
    %73 = tpu.matmul %69, %72, %cst_72 {dimension_numbers = #tpu.dot_dimension_numbers<[1], [0], [0], [1], [0, 0, 1, 1], [], []>} : vector<64x32xf32>, vector<32x32xf32>, vector<64x32xf32> -> vector<64x32xf32>
    %c0_73 = arith.constant 0 : index
    %c0_74 = arith.constant 0 : index
    %c0_75 = arith.constant 0 : index
    %74 = vector.load %arg1[%c0_73, %c0_74, %c0_75] : memref<9x64x64xf32, #tpu.memory_space<vmem>>, vector<1x64x64xf32>
    %75 = vector.shape_cast %74 : vector<1x64x64xf32> to vector<64x64xf32>
    %cst_76 = arith.constant dense<0.000000e+00> : vector<64x32xf32>
    %76 = tpu.matmul %75, %73, %cst_76 {dimension_numbers = #tpu.dot_dimension_numbers<[1], [0], [0], [1], [0, 0, 1, 1], [], []>} : vector<64x64xf32>, vector<64x32xf32>, vector<64x32xf32> -> vector<64x32xf32>
    %77 = arith.addf %70, %76 : vector<64x32xf32>
    %c1_77 = arith.constant 1 : index
    %c0_78 = arith.constant 0 : index
    %c0_79 = arith.constant 0 : index
    %78 = vector.load %arg4[%c1_77, %c0_78, %c0_79] : memref<9x32x32xf32, #tpu.memory_space<vmem>>, vector<1x32x32xf32>
    %79 = vector.shape_cast %78 : vector<1x32x32xf32> to vector<32x32xf32>
    %cst_80 = arith.constant dense<0.000000e+00> : vector<64x32xf32>
    %80 = tpu.matmul %69, %79, %cst_80 {dimension_numbers = #tpu.dot_dimension_numbers<[1], [0], [0], [1], [0, 0, 1, 1], [], []>} : vector<64x32xf32>, vector<32x32xf32>, vector<64x32xf32> -> vector<64x32xf32>
    %c1_81 = arith.constant 1 : index
    %c0_82 = arith.constant 0 : index
    %c0_83 = arith.constant 0 : index
    %81 = vector.load %arg1[%c1_81, %c0_82, %c0_83] : memref<9x64x64xf32, #tpu.memory_space<vmem>>, vector<1x64x64xf32>
    %82 = vector.shape_cast %81 : vector<1x64x64xf32> to vector<64x64xf32>
    %cst_84 = arith.constant dense<0.000000e+00> : vector<64x32xf32>
    %83 = tpu.matmul %82, %80, %cst_84 {dimension_numbers = #tpu.dot_dimension_numbers<[1], [0], [0], [1], [0, 0, 1, 1], [], []>} : vector<64x64xf32>, vector<64x32xf32>, vector<64x32xf32> -> vector<64x32xf32>
    %84 = arith.addf %77, %83 : vector<64x32xf32>
    %c2_85 = arith.constant 2 : index
    %c0_86 = arith.constant 0 : index
    %c0_87 = arith.constant 0 : index
    %85 = vector.load %arg4[%c2_85, %c0_86, %c0_87] : memref<9x32x32xf32, #tpu.memory_space<vmem>>, vector<1x32x32xf32>
    %86 = vector.shape_cast %85 : vector<1x32x32xf32> to vector<32x32xf32>
    %cst_88 = arith.constant dense<0.000000e+00> : vector<64x32xf32>
    %87 = tpu.matmul %69, %86, %cst_88 {dimension_numbers = #tpu.dot_dimension_numbers<[1], [0], [0], [1], [0, 0, 1, 1], [], []>} : vector<64x32xf32>, vector<32x32xf32>, vector<64x32xf32> -> vector<64x32xf32>
    %c2_89 = arith.constant 2 : index
    %c0_90 = arith.constant 0 : index
    %c0_91 = arith.constant 0 : index
    %88 = vector.load %arg1[%c2_89, %c0_90, %c0_91] : memref<9x64x64xf32, #tpu.memory_space<vmem>>, vector<1x64x64xf32>
    %89 = vector.shape_cast %88 : vector<1x64x64xf32> to vector<64x64xf32>
    %cst_92 = arith.constant dense<0.000000e+00> : vector<64x32xf32>
    %90 = tpu.matmul %89, %87, %cst_92 {dimension_numbers = #tpu.dot_dimension_numbers<[1], [0], [0], [1], [0, 0, 1, 1], [], []>} : vector<64x64xf32>, vector<64x32xf32>, vector<64x32xf32> -> vector<64x32xf32>
    %91 = arith.addf %84, %90 : vector<64x32xf32>
    %c3_93 = arith.constant 3 : index
    %c0_94 = arith.constant 0 : index
    %c0_95 = arith.constant 0 : index
    %92 = vector.load %arg4[%c3_93, %c0_94, %c0_95] : memref<9x32x32xf32, #tpu.memory_space<vmem>>, vector<1x32x32xf32>
    %93 = vector.shape_cast %92 : vector<1x32x32xf32> to vector<32x32xf32>
    %cst_96 = arith.constant dense<0.000000e+00> : vector<64x32xf32>
    %94 = tpu.matmul %69, %93, %cst_96 {dimension_numbers = #tpu.dot_dimension_numbers<[1], [0], [0], [1], [0, 0, 1, 1], [], []>} : vector<64x32xf32>, vector<32x32xf32>, vector<64x32xf32> -> vector<64x32xf32>
    %c3_97 = arith.constant 3 : index
    %c0_98 = arith.constant 0 : index
    %c0_99 = arith.constant 0 : index
    %95 = vector.load %arg1[%c3_97, %c0_98, %c0_99] : memref<9x64x64xf32, #tpu.memory_space<vmem>>, vector<1x64x64xf32>
    %96 = vector.shape_cast %95 : vector<1x64x64xf32> to vector<64x64xf32>
    %cst_100 = arith.constant dense<0.000000e+00> : vector<64x32xf32>
    %97 = tpu.matmul %96, %94, %cst_100 {dimension_numbers = #tpu.dot_dimension_numbers<[1], [0], [0], [1], [0, 0, 1, 1], [], []>} : vector<64x64xf32>, vector<64x32xf32>, vector<64x32xf32> -> vector<64x32xf32>
    %98 = arith.addf %91, %97 : vector<64x32xf32>
    %c4_101 = arith.constant 4 : index
    %c0_102 = arith.constant 0 : index
    %c0_103 = arith.constant 0 : index
    %99 = vector.load %arg4[%c4_101, %c0_102, %c0_103] : memref<9x32x32xf32, #tpu.memory_space<vmem>>, vector<1x32x32xf32>
    %100 = vector.shape_cast %99 : vector<1x32x32xf32> to vector<32x32xf32>
    %cst_104 = arith.constant dense<0.000000e+00> : vector<64x32xf32>
    %101 = tpu.matmul %69, %100, %cst_104 {dimension_numbers = #tpu.dot_dimension_numbers<[1], [0], [0], [1], [0, 0, 1, 1], [], []>} : vector<64x32xf32>, vector<32x32xf32>, vector<64x32xf32> -> vector<64x32xf32>
    %c4_105 = arith.constant 4 : index
    %c0_106 = arith.constant 0 : index
    %c0_107 = arith.constant 0 : index
    %102 = vector.load %arg1[%c4_105, %c0_106, %c0_107] : memref<9x64x64xf32, #tpu.memory_space<vmem>>, vector<1x64x64xf32>
    %103 = vector.shape_cast %102 : vector<1x64x64xf32> to vector<64x64xf32>
    %cst_108 = arith.constant dense<0.000000e+00> : vector<64x32xf32>
    %104 = tpu.matmul %103, %101, %cst_108 {dimension_numbers = #tpu.dot_dimension_numbers<[1], [0], [0], [1], [0, 0, 1, 1], [], []>} : vector<64x64xf32>, vector<64x32xf32>, vector<64x32xf32> -> vector<64x32xf32>
    %105 = arith.addf %98, %104 : vector<64x32xf32>
    %c5_109 = arith.constant 5 : index
    %c0_110 = arith.constant 0 : index
    %c0_111 = arith.constant 0 : index
    %106 = vector.load %arg4[%c5_109, %c0_110, %c0_111] : memref<9x32x32xf32, #tpu.memory_space<vmem>>, vector<1x32x32xf32>
    %107 = vector.shape_cast %106 : vector<1x32x32xf32> to vector<32x32xf32>
    %cst_112 = arith.constant dense<0.000000e+00> : vector<64x32xf32>
    %108 = tpu.matmul %69, %107, %cst_112 {dimension_numbers = #tpu.dot_dimension_numbers<[1], [0], [0], [1], [0, 0, 1, 1], [], []>} : vector<64x32xf32>, vector<32x32xf32>, vector<64x32xf32> -> vector<64x32xf32>
    %c5_113 = arith.constant 5 : index
    %c0_114 = arith.constant 0 : index
    %c0_115 = arith.constant 0 : index
    %109 = vector.load %arg1[%c5_113, %c0_114, %c0_115] : memref<9x64x64xf32, #tpu.memory_space<vmem>>, vector<1x64x64xf32>
    %110 = vector.shape_cast %109 : vector<1x64x64xf32> to vector<64x64xf32>
    %cst_116 = arith.constant dense<0.000000e+00> : vector<64x32xf32>
    %111 = tpu.matmul %110, %108, %cst_116 {dimension_numbers = #tpu.dot_dimension_numbers<[1], [0], [0], [1], [0, 0, 1, 1], [], []>} : vector<64x64xf32>, vector<64x32xf32>, vector<64x32xf32> -> vector<64x32xf32>
    %112 = arith.addf %105, %111 : vector<64x32xf32>
    %c6_117 = arith.constant 6 : index
    %c0_118 = arith.constant 0 : index
    %c0_119 = arith.constant 0 : index
    %113 = vector.load %arg4[%c6_117, %c0_118, %c0_119] : memref<9x32x32xf32, #tpu.memory_space<vmem>>, vector<1x32x32xf32>
    %114 = vector.shape_cast %113 : vector<1x32x32xf32> to vector<32x32xf32>
    %cst_120 = arith.constant dense<0.000000e+00> : vector<64x32xf32>
    %115 = tpu.matmul %69, %114, %cst_120 {dimension_numbers = #tpu.dot_dimension_numbers<[1], [0], [0], [1], [0, 0, 1, 1], [], []>} : vector<64x32xf32>, vector<32x32xf32>, vector<64x32xf32> -> vector<64x32xf32>
    %c6_121 = arith.constant 6 : index
    %c0_122 = arith.constant 0 : index
    %c0_123 = arith.constant 0 : index
    %116 = vector.load %arg1[%c6_121, %c0_122, %c0_123] : memref<9x64x64xf32, #tpu.memory_space<vmem>>, vector<1x64x64xf32>
    %117 = vector.shape_cast %116 : vector<1x64x64xf32> to vector<64x64xf32>
    %cst_124 = arith.constant dense<0.000000e+00> : vector<64x32xf32>
    %118 = tpu.matmul %117, %115, %cst_124 {dimension_numbers = #tpu.dot_dimension_numbers<[1], [0], [0], [1], [0, 0, 1, 1], [], []>} : vector<64x64xf32>, vector<64x32xf32>, vector<64x32xf32> -> vector<64x32xf32>
    %119 = arith.addf %112, %118 : vector<64x32xf32>
    %c7_125 = arith.constant 7 : index
    %c0_126 = arith.constant 0 : index
    %c0_127 = arith.constant 0 : index
    %120 = vector.load %arg4[%c7_125, %c0_126, %c0_127] : memref<9x32x32xf32, #tpu.memory_space<vmem>>, vector<1x32x32xf32>
    %121 = vector.shape_cast %120 : vector<1x32x32xf32> to vector<32x32xf32>
    %cst_128 = arith.constant dense<0.000000e+00> : vector<64x32xf32>
    %122 = tpu.matmul %69, %121, %cst_128 {dimension_numbers = #tpu.dot_dimension_numbers<[1], [0], [0], [1], [0, 0, 1, 1], [], []>} : vector<64x32xf32>, vector<32x32xf32>, vector<64x32xf32> -> vector<64x32xf32>
    %c7_129 = arith.constant 7 : index
    %c0_130 = arith.constant 0 : index
    %c0_131 = arith.constant 0 : index
    %123 = vector.load %arg1[%c7_129, %c0_130, %c0_131] : memref<9x64x64xf32, #tpu.memory_space<vmem>>, vector<1x64x64xf32>
    %124 = vector.shape_cast %123 : vector<1x64x64xf32> to vector<64x64xf32>
    %cst_132 = arith.constant dense<0.000000e+00> : vector<64x32xf32>
    %125 = tpu.matmul %124, %122, %cst_132 {dimension_numbers = #tpu.dot_dimension_numbers<[1], [0], [0], [1], [0, 0, 1, 1], [], []>} : vector<64x64xf32>, vector<64x32xf32>, vector<64x32xf32> -> vector<64x32xf32>
    %126 = arith.addf %119, %125 : vector<64x32xf32>
    %c8_133 = arith.constant 8 : index
    %c0_134 = arith.constant 0 : index
    %c0_135 = arith.constant 0 : index
    %127 = vector.load %arg4[%c8_133, %c0_134, %c0_135] : memref<9x32x32xf32, #tpu.memory_space<vmem>>, vector<1x32x32xf32>
    %128 = vector.shape_cast %127 : vector<1x32x32xf32> to vector<32x32xf32>
    %cst_136 = arith.constant dense<0.000000e+00> : vector<64x32xf32>
    %129 = tpu.matmul %69, %128, %cst_136 {dimension_numbers = #tpu.dot_dimension_numbers<[1], [0], [0], [1], [0, 0, 1, 1], [], []>} : vector<64x32xf32>, vector<32x32xf32>, vector<64x32xf32> -> vector<64x32xf32>
    %c8_137 = arith.constant 8 : index
    %c0_138 = arith.constant 0 : index
    %c0_139 = arith.constant 0 : index
    %130 = vector.load %arg1[%c8_137, %c0_138, %c0_139] : memref<9x64x64xf32, #tpu.memory_space<vmem>>, vector<1x64x64xf32>
    %131 = vector.shape_cast %130 : vector<1x64x64xf32> to vector<64x64xf32>
    %cst_140 = arith.constant dense<0.000000e+00> : vector<64x32xf32>
    %132 = tpu.matmul %131, %129, %cst_140 {dimension_numbers = #tpu.dot_dimension_numbers<[1], [0], [0], [1], [0, 0, 1, 1], [], []>} : vector<64x64xf32>, vector<64x32xf32>, vector<64x32xf32> -> vector<64x32xf32>
    %133 = arith.addf %126, %132 : vector<64x32xf32>
    %c0_141 = arith.constant 0 : index
    %c0_142 = arith.constant 0 : index
    %134 = vector.load %arg5[%c0_141, %c0_142] : memref<1x32xf32, #tpu.memory_space<vmem>>, vector<1x32xf32>
    %135 = vector.broadcast %134 : vector<1x32xf32> to vector<64x32xf32>
    %136 = arith.addf %133, %135 : vector<64x32xf32>
    %137 = arith.addf %136, %0 : vector<64x32xf32>
    %cst_143 = arith.constant 0.000000e+00 : f32
    %138 = vector.broadcast %cst_143 : f32 to vector<64x32xf32>
    %139 = arith.maximumf %137, %138 : vector<64x32xf32>
    %cst_144 = arith.constant 0.000000e+00 : f32
    %140 = vector.broadcast %cst_144 : f32 to vector<64x32xf32>
    %c0_145 = arith.constant 0 : index
    %c0_146 = arith.constant 0 : index
    %c0_147 = arith.constant 0 : index
    %141 = vector.load %arg6[%c0_145, %c0_146, %c0_147] : memref<9x32x32xf32, #tpu.memory_space<vmem>>, vector<1x32x32xf32>
    %142 = vector.shape_cast %141 : vector<1x32x32xf32> to vector<32x32xf32>
    %cst_148 = arith.constant dense<0.000000e+00> : vector<64x32xf32>
    %143 = tpu.matmul %139, %142, %cst_148 {dimension_numbers = #tpu.dot_dimension_numbers<[1], [0], [0], [1], [0, 0, 1, 1], [], []>} : vector<64x32xf32>, vector<32x32xf32>, vector<64x32xf32> -> vector<64x32xf32>
    %c0_149 = arith.constant 0 : index
    %c0_150 = arith.constant 0 : index
    %c0_151 = arith.constant 0 : index
    %144 = vector.load %arg1[%c0_149, %c0_150, %c0_151] : memref<9x64x64xf32, #tpu.memory_space<vmem>>, vector<1x64x64xf32>
    %145 = vector.shape_cast %144 : vector<1x64x64xf32> to vector<64x64xf32>
    %cst_152 = arith.constant dense<0.000000e+00> : vector<64x32xf32>
    %146 = tpu.matmul %145, %143, %cst_152 {dimension_numbers = #tpu.dot_dimension_numbers<[1], [0], [0], [1], [0, 0, 1, 1], [], []>} : vector<64x64xf32>, vector<64x32xf32>, vector<64x32xf32> -> vector<64x32xf32>
    %147 = arith.addf %140, %146 : vector<64x32xf32>
    %c1_153 = arith.constant 1 : index
    %c0_154 = arith.constant 0 : index
    %c0_155 = arith.constant 0 : index
    %148 = vector.load %arg6[%c1_153, %c0_154, %c0_155] : memref<9x32x32xf32, #tpu.memory_space<vmem>>, vector<1x32x32xf32>
    %149 = vector.shape_cast %148 : vector<1x32x32xf32> to vector<32x32xf32>
    %cst_156 = arith.constant dense<0.000000e+00> : vector<64x32xf32>
    %150 = tpu.matmul %139, %149, %cst_156 {dimension_numbers = #tpu.dot_dimension_numbers<[1], [0], [0], [1], [0, 0, 1, 1], [], []>} : vector<64x32xf32>, vector<32x32xf32>, vector<64x32xf32> -> vector<64x32xf32>
    %c1_157 = arith.constant 1 : index
    %c0_158 = arith.constant 0 : index
    %c0_159 = arith.constant 0 : index
    %151 = vector.load %arg1[%c1_157, %c0_158, %c0_159] : memref<9x64x64xf32, #tpu.memory_space<vmem>>, vector<1x64x64xf32>
    %152 = vector.shape_cast %151 : vector<1x64x64xf32> to vector<64x64xf32>
    %cst_160 = arith.constant dense<0.000000e+00> : vector<64x32xf32>
    %153 = tpu.matmul %152, %150, %cst_160 {dimension_numbers = #tpu.dot_dimension_numbers<[1], [0], [0], [1], [0, 0, 1, 1], [], []>} : vector<64x64xf32>, vector<64x32xf32>, vector<64x32xf32> -> vector<64x32xf32>
    %154 = arith.addf %147, %153 : vector<64x32xf32>
    %c2_161 = arith.constant 2 : index
    %c0_162 = arith.constant 0 : index
    %c0_163 = arith.constant 0 : index
    %155 = vector.load %arg6[%c2_161, %c0_162, %c0_163] : memref<9x32x32xf32, #tpu.memory_space<vmem>>, vector<1x32x32xf32>
    %156 = vector.shape_cast %155 : vector<1x32x32xf32> to vector<32x32xf32>
    %cst_164 = arith.constant dense<0.000000e+00> : vector<64x32xf32>
    %157 = tpu.matmul %139, %156, %cst_164 {dimension_numbers = #tpu.dot_dimension_numbers<[1], [0], [0], [1], [0, 0, 1, 1], [], []>} : vector<64x32xf32>, vector<32x32xf32>, vector<64x32xf32> -> vector<64x32xf32>
    %c2_165 = arith.constant 2 : index
    %c0_166 = arith.constant 0 : index
    %c0_167 = arith.constant 0 : index
    %158 = vector.load %arg1[%c2_165, %c0_166, %c0_167] : memref<9x64x64xf32, #tpu.memory_space<vmem>>, vector<1x64x64xf32>
    %159 = vector.shape_cast %158 : vector<1x64x64xf32> to vector<64x64xf32>
    %cst_168 = arith.constant dense<0.000000e+00> : vector<64x32xf32>
    %160 = tpu.matmul %159, %157, %cst_168 {dimension_numbers = #tpu.dot_dimension_numbers<[1], [0], [0], [1], [0, 0, 1, 1], [], []>} : vector<64x64xf32>, vector<64x32xf32>, vector<64x32xf32> -> vector<64x32xf32>
    %161 = arith.addf %154, %160 : vector<64x32xf32>
    %c3_169 = arith.constant 3 : index
    %c0_170 = arith.constant 0 : index
    %c0_171 = arith.constant 0 : index
    %162 = vector.load %arg6[%c3_169, %c0_170, %c0_171] : memref<9x32x32xf32, #tpu.memory_space<vmem>>, vector<1x32x32xf32>
    %163 = vector.shape_cast %162 : vector<1x32x32xf32> to vector<32x32xf32>
    %cst_172 = arith.constant dense<0.000000e+00> : vector<64x32xf32>
    %164 = tpu.matmul %139, %163, %cst_172 {dimension_numbers = #tpu.dot_dimension_numbers<[1], [0], [0], [1], [0, 0, 1, 1], [], []>} : vector<64x32xf32>, vector<32x32xf32>, vector<64x32xf32> -> vector<64x32xf32>
    %c3_173 = arith.constant 3 : index
    %c0_174 = arith.constant 0 : index
    %c0_175 = arith.constant 0 : index
    %165 = vector.load %arg1[%c3_173, %c0_174, %c0_175] : memref<9x64x64xf32, #tpu.memory_space<vmem>>, vector<1x64x64xf32>
    %166 = vector.shape_cast %165 : vector<1x64x64xf32> to vector<64x64xf32>
    %cst_176 = arith.constant dense<0.000000e+00> : vector<64x32xf32>
    %167 = tpu.matmul %166, %164, %cst_176 {dimension_numbers = #tpu.dot_dimension_numbers<[1], [0], [0], [1], [0, 0, 1, 1], [], []>} : vector<64x64xf32>, vector<64x32xf32>, vector<64x32xf32> -> vector<64x32xf32>
    %168 = arith.addf %161, %167 : vector<64x32xf32>
    %c4_177 = arith.constant 4 : index
    %c0_178 = arith.constant 0 : index
    %c0_179 = arith.constant 0 : index
    %169 = vector.load %arg6[%c4_177, %c0_178, %c0_179] : memref<9x32x32xf32, #tpu.memory_space<vmem>>, vector<1x32x32xf32>
    %170 = vector.shape_cast %169 : vector<1x32x32xf32> to vector<32x32xf32>
    %cst_180 = arith.constant dense<0.000000e+00> : vector<64x32xf32>
    %171 = tpu.matmul %139, %170, %cst_180 {dimension_numbers = #tpu.dot_dimension_numbers<[1], [0], [0], [1], [0, 0, 1, 1], [], []>} : vector<64x32xf32>, vector<32x32xf32>, vector<64x32xf32> -> vector<64x32xf32>
    %c4_181 = arith.constant 4 : index
    %c0_182 = arith.constant 0 : index
    %c0_183 = arith.constant 0 : index
    %172 = vector.load %arg1[%c4_181, %c0_182, %c0_183] : memref<9x64x64xf32, #tpu.memory_space<vmem>>, vector<1x64x64xf32>
    %173 = vector.shape_cast %172 : vector<1x64x64xf32> to vector<64x64xf32>
    %cst_184 = arith.constant dense<0.000000e+00> : vector<64x32xf32>
    %174 = tpu.matmul %173, %171, %cst_184 {dimension_numbers = #tpu.dot_dimension_numbers<[1], [0], [0], [1], [0, 0, 1, 1], [], []>} : vector<64x64xf32>, vector<64x32xf32>, vector<64x32xf32> -> vector<64x32xf32>
    %175 = arith.addf %168, %174 : vector<64x32xf32>
    %c5_185 = arith.constant 5 : index
    %c0_186 = arith.constant 0 : index
    %c0_187 = arith.constant 0 : index
    %176 = vector.load %arg6[%c5_185, %c0_186, %c0_187] : memref<9x32x32xf32, #tpu.memory_space<vmem>>, vector<1x32x32xf32>
    %177 = vector.shape_cast %176 : vector<1x32x32xf32> to vector<32x32xf32>
    %cst_188 = arith.constant dense<0.000000e+00> : vector<64x32xf32>
    %178 = tpu.matmul %139, %177, %cst_188 {dimension_numbers = #tpu.dot_dimension_numbers<[1], [0], [0], [1], [0, 0, 1, 1], [], []>} : vector<64x32xf32>, vector<32x32xf32>, vector<64x32xf32> -> vector<64x32xf32>
    %c5_189 = arith.constant 5 : index
    %c0_190 = arith.constant 0 : index
    %c0_191 = arith.constant 0 : index
    %179 = vector.load %arg1[%c5_189, %c0_190, %c0_191] : memref<9x64x64xf32, #tpu.memory_space<vmem>>, vector<1x64x64xf32>
    %180 = vector.shape_cast %179 : vector<1x64x64xf32> to vector<64x64xf32>
    %cst_192 = arith.constant dense<0.000000e+00> : vector<64x32xf32>
    %181 = tpu.matmul %180, %178, %cst_192 {dimension_numbers = #tpu.dot_dimension_numbers<[1], [0], [0], [1], [0, 0, 1, 1], [], []>} : vector<64x64xf32>, vector<64x32xf32>, vector<64x32xf32> -> vector<64x32xf32>
    %182 = arith.addf %175, %181 : vector<64x32xf32>
    %c6_193 = arith.constant 6 : index
    %c0_194 = arith.constant 0 : index
    %c0_195 = arith.constant 0 : index
    %183 = vector.load %arg6[%c6_193, %c0_194, %c0_195] : memref<9x32x32xf32, #tpu.memory_space<vmem>>, vector<1x32x32xf32>
    %184 = vector.shape_cast %183 : vector<1x32x32xf32> to vector<32x32xf32>
    %cst_196 = arith.constant dense<0.000000e+00> : vector<64x32xf32>
    %185 = tpu.matmul %139, %184, %cst_196 {dimension_numbers = #tpu.dot_dimension_numbers<[1], [0], [0], [1], [0, 0, 1, 1], [], []>} : vector<64x32xf32>, vector<32x32xf32>, vector<64x32xf32> -> vector<64x32xf32>
    %c6_197 = arith.constant 6 : index
    %c0_198 = arith.constant 0 : index
    %c0_199 = arith.constant 0 : index
    %186 = vector.load %arg1[%c6_197, %c0_198, %c0_199] : memref<9x64x64xf32, #tpu.memory_space<vmem>>, vector<1x64x64xf32>
    %187 = vector.shape_cast %186 : vector<1x64x64xf32> to vector<64x64xf32>
    %cst_200 = arith.constant dense<0.000000e+00> : vector<64x32xf32>
    %188 = tpu.matmul %187, %185, %cst_200 {dimension_numbers = #tpu.dot_dimension_numbers<[1], [0], [0], [1], [0, 0, 1, 1], [], []>} : vector<64x64xf32>, vector<64x32xf32>, vector<64x32xf32> -> vector<64x32xf32>
    %189 = arith.addf %182, %188 : vector<64x32xf32>
    %c7_201 = arith.constant 7 : index
    %c0_202 = arith.constant 0 : index
    %c0_203 = arith.constant 0 : index
    %190 = vector.load %arg6[%c7_201, %c0_202, %c0_203] : memref<9x32x32xf32, #tpu.memory_space<vmem>>, vector<1x32x32xf32>
    %191 = vector.shape_cast %190 : vector<1x32x32xf32> to vector<32x32xf32>
    %cst_204 = arith.constant dense<0.000000e+00> : vector<64x32xf32>
    %192 = tpu.matmul %139, %191, %cst_204 {dimension_numbers = #tpu.dot_dimension_numbers<[1], [0], [0], [1], [0, 0, 1, 1], [], []>} : vector<64x32xf32>, vector<32x32xf32>, vector<64x32xf32> -> vector<64x32xf32>
    %c7_205 = arith.constant 7 : index
    %c0_206 = arith.constant 0 : index
    %c0_207 = arith.constant 0 : index
    %193 = vector.load %arg1[%c7_205, %c0_206, %c0_207] : memref<9x64x64xf32, #tpu.memory_space<vmem>>, vector<1x64x64xf32>
    %194 = vector.shape_cast %193 : vector<1x64x64xf32> to vector<64x64xf32>
    %cst_208 = arith.constant dense<0.000000e+00> : vector<64x32xf32>
    %195 = tpu.matmul %194, %192, %cst_208 {dimension_numbers = #tpu.dot_dimension_numbers<[1], [0], [0], [1], [0, 0, 1, 1], [], []>} : vector<64x64xf32>, vector<64x32xf32>, vector<64x32xf32> -> vector<64x32xf32>
    %196 = arith.addf %189, %195 : vector<64x32xf32>
    %c8_209 = arith.constant 8 : index
    %c0_210 = arith.constant 0 : index
    %c0_211 = arith.constant 0 : index
    %197 = vector.load %arg6[%c8_209, %c0_210, %c0_211] : memref<9x32x32xf32, #tpu.memory_space<vmem>>, vector<1x32x32xf32>
    %198 = vector.shape_cast %197 : vector<1x32x32xf32> to vector<32x32xf32>
    %cst_212 = arith.constant dense<0.000000e+00> : vector<64x32xf32>
    %199 = tpu.matmul %139, %198, %cst_212 {dimension_numbers = #tpu.dot_dimension_numbers<[1], [0], [0], [1], [0, 0, 1, 1], [], []>} : vector<64x32xf32>, vector<32x32xf32>, vector<64x32xf32> -> vector<64x32xf32>
    %c8_213 = arith.constant 8 : index
    %c0_214 = arith.constant 0 : index
    %c0_215 = arith.constant 0 : index
    %200 = vector.load %arg1[%c8_213, %c0_214, %c0_215] : memref<9x64x64xf32, #tpu.memory_space<vmem>>, vector<1x64x64xf32>
    %201 = vector.shape_cast %200 : vector<1x64x64xf32> to vector<64x64xf32>
    %cst_216 = arith.constant dense<0.000000e+00> : vector<64x32xf32>
    %202 = tpu.matmul %201, %199, %cst_216 {dimension_numbers = #tpu.dot_dimension_numbers<[1], [0], [0], [1], [0, 0, 1, 1], [], []>} : vector<64x64xf32>, vector<64x32xf32>, vector<64x32xf32> -> vector<64x32xf32>
    %203 = arith.addf %196, %202 : vector<64x32xf32>
    %c0_217 = arith.constant 0 : index
    %c0_218 = arith.constant 0 : index
    %204 = vector.load %arg7[%c0_217, %c0_218] : memref<1x32xf32, #tpu.memory_space<vmem>>, vector<1x32xf32>
    %205 = vector.broadcast %204 : vector<1x32xf32> to vector<64x32xf32>
    %206 = arith.addf %203, %205 : vector<64x32xf32>
    %cst_219 = arith.constant 0.000000e+00 : f32
    %207 = vector.broadcast %cst_219 : f32 to vector<64x32xf32>
    %208 = arith.maximumf %206, %207 : vector<64x32xf32>
    %cst_220 = arith.constant 0.000000e+00 : f32
    %209 = vector.broadcast %cst_220 : f32 to vector<64x32xf32>
    %c0_221 = arith.constant 0 : index
    %c0_222 = arith.constant 0 : index
    %c0_223 = arith.constant 0 : index
    %210 = vector.load %arg8[%c0_221, %c0_222, %c0_223] : memref<9x32x32xf32, #tpu.memory_space<vmem>>, vector<1x32x32xf32>
    %211 = vector.shape_cast %210 : vector<1x32x32xf32> to vector<32x32xf32>
    %cst_224 = arith.constant dense<0.000000e+00> : vector<64x32xf32>
    %212 = tpu.matmul %208, %211, %cst_224 {dimension_numbers = #tpu.dot_dimension_numbers<[1], [0], [0], [1], [0, 0, 1, 1], [], []>} : vector<64x32xf32>, vector<32x32xf32>, vector<64x32xf32> -> vector<64x32xf32>
    %c0_225 = arith.constant 0 : index
    %c0_226 = arith.constant 0 : index
    %c0_227 = arith.constant 0 : index
    %213 = vector.load %arg1[%c0_225, %c0_226, %c0_227] : memref<9x64x64xf32, #tpu.memory_space<vmem>>, vector<1x64x64xf32>
    %214 = vector.shape_cast %213 : vector<1x64x64xf32> to vector<64x64xf32>
    %cst_228 = arith.constant dense<0.000000e+00> : vector<64x32xf32>
    %215 = tpu.matmul %214, %212, %cst_228 {dimension_numbers = #tpu.dot_dimension_numbers<[1], [0], [0], [1], [0, 0, 1, 1], [], []>} : vector<64x64xf32>, vector<64x32xf32>, vector<64x32xf32> -> vector<64x32xf32>
    %216 = arith.addf %209, %215 : vector<64x32xf32>
    %c1_229 = arith.constant 1 : index
    %c0_230 = arith.constant 0 : index
    %c0_231 = arith.constant 0 : index
    %217 = vector.load %arg8[%c1_229, %c0_230, %c0_231] : memref<9x32x32xf32, #tpu.memory_space<vmem>>, vector<1x32x32xf32>
    %218 = vector.shape_cast %217 : vector<1x32x32xf32> to vector<32x32xf32>
    %cst_232 = arith.constant dense<0.000000e+00> : vector<64x32xf32>
    %219 = tpu.matmul %208, %218, %cst_232 {dimension_numbers = #tpu.dot_dimension_numbers<[1], [0], [0], [1], [0, 0, 1, 1], [], []>} : vector<64x32xf32>, vector<32x32xf32>, vector<64x32xf32> -> vector<64x32xf32>
    %c1_233 = arith.constant 1 : index
    %c0_234 = arith.constant 0 : index
    %c0_235 = arith.constant 0 : index
    %220 = vector.load %arg1[%c1_233, %c0_234, %c0_235] : memref<9x64x64xf32, #tpu.memory_space<vmem>>, vector<1x64x64xf32>
    %221 = vector.shape_cast %220 : vector<1x64x64xf32> to vector<64x64xf32>
    %cst_236 = arith.constant dense<0.000000e+00> : vector<64x32xf32>
    %222 = tpu.matmul %221, %219, %cst_236 {dimension_numbers = #tpu.dot_dimension_numbers<[1], [0], [0], [1], [0, 0, 1, 1], [], []>} : vector<64x64xf32>, vector<64x32xf32>, vector<64x32xf32> -> vector<64x32xf32>
    %223 = arith.addf %216, %222 : vector<64x32xf32>
    %c2_237 = arith.constant 2 : index
    %c0_238 = arith.constant 0 : index
    %c0_239 = arith.constant 0 : index
    %224 = vector.load %arg8[%c2_237, %c0_238, %c0_239] : memref<9x32x32xf32, #tpu.memory_space<vmem>>, vector<1x32x32xf32>
    %225 = vector.shape_cast %224 : vector<1x32x32xf32> to vector<32x32xf32>
    %cst_240 = arith.constant dense<0.000000e+00> : vector<64x32xf32>
    %226 = tpu.matmul %208, %225, %cst_240 {dimension_numbers = #tpu.dot_dimension_numbers<[1], [0], [0], [1], [0, 0, 1, 1], [], []>} : vector<64x32xf32>, vector<32x32xf32>, vector<64x32xf32> -> vector<64x32xf32>
    %c2_241 = arith.constant 2 : index
    %c0_242 = arith.constant 0 : index
    %c0_243 = arith.constant 0 : index
    %227 = vector.load %arg1[%c2_241, %c0_242, %c0_243] : memref<9x64x64xf32, #tpu.memory_space<vmem>>, vector<1x64x64xf32>
    %228 = vector.shape_cast %227 : vector<1x64x64xf32> to vector<64x64xf32>
    %cst_244 = arith.constant dense<0.000000e+00> : vector<64x32xf32>
    %229 = tpu.matmul %228, %226, %cst_244 {dimension_numbers = #tpu.dot_dimension_numbers<[1], [0], [0], [1], [0, 0, 1, 1], [], []>} : vector<64x64xf32>, vector<64x32xf32>, vector<64x32xf32> -> vector<64x32xf32>
    %230 = arith.addf %223, %229 : vector<64x32xf32>
    %c3_245 = arith.constant 3 : index
    %c0_246 = arith.constant 0 : index
    %c0_247 = arith.constant 0 : index
    %231 = vector.load %arg8[%c3_245, %c0_246, %c0_247] : memref<9x32x32xf32, #tpu.memory_space<vmem>>, vector<1x32x32xf32>
    %232 = vector.shape_cast %231 : vector<1x32x32xf32> to vector<32x32xf32>
    %cst_248 = arith.constant dense<0.000000e+00> : vector<64x32xf32>
    %233 = tpu.matmul %208, %232, %cst_248 {dimension_numbers = #tpu.dot_dimension_numbers<[1], [0], [0], [1], [0, 0, 1, 1], [], []>} : vector<64x32xf32>, vector<32x32xf32>, vector<64x32xf32> -> vector<64x32xf32>
    %c3_249 = arith.constant 3 : index
    %c0_250 = arith.constant 0 : index
    %c0_251 = arith.constant 0 : index
    %234 = vector.load %arg1[%c3_249, %c0_250, %c0_251] : memref<9x64x64xf32, #tpu.memory_space<vmem>>, vector<1x64x64xf32>
    %235 = vector.shape_cast %234 : vector<1x64x64xf32> to vector<64x64xf32>
    %cst_252 = arith.constant dense<0.000000e+00> : vector<64x32xf32>
    %236 = tpu.matmul %235, %233, %cst_252 {dimension_numbers = #tpu.dot_dimension_numbers<[1], [0], [0], [1], [0, 0, 1, 1], [], []>} : vector<64x64xf32>, vector<64x32xf32>, vector<64x32xf32> -> vector<64x32xf32>
    %237 = arith.addf %230, %236 : vector<64x32xf32>
    %c4_253 = arith.constant 4 : index
    %c0_254 = arith.constant 0 : index
    %c0_255 = arith.constant 0 : index
    %238 = vector.load %arg8[%c4_253, %c0_254, %c0_255] : memref<9x32x32xf32, #tpu.memory_space<vmem>>, vector<1x32x32xf32>
    %239 = vector.shape_cast %238 : vector<1x32x32xf32> to vector<32x32xf32>
    %cst_256 = arith.constant dense<0.000000e+00> : vector<64x32xf32>
    %240 = tpu.matmul %208, %239, %cst_256 {dimension_numbers = #tpu.dot_dimension_numbers<[1], [0], [0], [1], [0, 0, 1, 1], [], []>} : vector<64x32xf32>, vector<32x32xf32>, vector<64x32xf32> -> vector<64x32xf32>
    %c4_257 = arith.constant 4 : index
    %c0_258 = arith.constant 0 : index
    %c0_259 = arith.constant 0 : index
    %241 = vector.load %arg1[%c4_257, %c0_258, %c0_259] : memref<9x64x64xf32, #tpu.memory_space<vmem>>, vector<1x64x64xf32>
    %242 = vector.shape_cast %241 : vector<1x64x64xf32> to vector<64x64xf32>
    %cst_260 = arith.constant dense<0.000000e+00> : vector<64x32xf32>
    %243 = tpu.matmul %242, %240, %cst_260 {dimension_numbers = #tpu.dot_dimension_numbers<[1], [0], [0], [1], [0, 0, 1, 1], [], []>} : vector<64x64xf32>, vector<64x32xf32>, vector<64x32xf32> -> vector<64x32xf32>
    %244 = arith.addf %237, %243 : vector<64x32xf32>
    %c5_261 = arith.constant 5 : index
    %c0_262 = arith.constant 0 : index
    %c0_263 = arith.constant 0 : index
    %245 = vector.load %arg8[%c5_261, %c0_262, %c0_263] : memref<9x32x32xf32, #tpu.memory_space<vmem>>, vector<1x32x32xf32>
    %246 = vector.shape_cast %245 : vector<1x32x32xf32> to vector<32x32xf32>
    %cst_264 = arith.constant dense<0.000000e+00> : vector<64x32xf32>
    %247 = tpu.matmul %208, %246, %cst_264 {dimension_numbers = #tpu.dot_dimension_numbers<[1], [0], [0], [1], [0, 0, 1, 1], [], []>} : vector<64x32xf32>, vector<32x32xf32>, vector<64x32xf32> -> vector<64x32xf32>
    %c5_265 = arith.constant 5 : index
    %c0_266 = arith.constant 0 : index
    %c0_267 = arith.constant 0 : index
    %248 = vector.load %arg1[%c5_265, %c0_266, %c0_267] : memref<9x64x64xf32, #tpu.memory_space<vmem>>, vector<1x64x64xf32>
    %249 = vector.shape_cast %248 : vector<1x64x64xf32> to vector<64x64xf32>
    %cst_268 = arith.constant dense<0.000000e+00> : vector<64x32xf32>
    %250 = tpu.matmul %249, %247, %cst_268 {dimension_numbers = #tpu.dot_dimension_numbers<[1], [0], [0], [1], [0, 0, 1, 1], [], []>} : vector<64x64xf32>, vector<64x32xf32>, vector<64x32xf32> -> vector<64x32xf32>
    %251 = arith.addf %244, %250 : vector<64x32xf32>
    %c6_269 = arith.constant 6 : index
    %c0_270 = arith.constant 0 : index
    %c0_271 = arith.constant 0 : index
    %252 = vector.load %arg8[%c6_269, %c0_270, %c0_271] : memref<9x32x32xf32, #tpu.memory_space<vmem>>, vector<1x32x32xf32>
    %253 = vector.shape_cast %252 : vector<1x32x32xf32> to vector<32x32xf32>
    %cst_272 = arith.constant dense<0.000000e+00> : vector<64x32xf32>
    %254 = tpu.matmul %208, %253, %cst_272 {dimension_numbers = #tpu.dot_dimension_numbers<[1], [0], [0], [1], [0, 0, 1, 1], [], []>} : vector<64x32xf32>, vector<32x32xf32>, vector<64x32xf32> -> vector<64x32xf32>
    %c6_273 = arith.constant 6 : index
    %c0_274 = arith.constant 0 : index
    %c0_275 = arith.constant 0 : index
    %255 = vector.load %arg1[%c6_273, %c0_274, %c0_275] : memref<9x64x64xf32, #tpu.memory_space<vmem>>, vector<1x64x64xf32>
    %256 = vector.shape_cast %255 : vector<1x64x64xf32> to vector<64x64xf32>
    %cst_276 = arith.constant dense<0.000000e+00> : vector<64x32xf32>
    %257 = tpu.matmul %256, %254, %cst_276 {dimension_numbers = #tpu.dot_dimension_numbers<[1], [0], [0], [1], [0, 0, 1, 1], [], []>} : vector<64x64xf32>, vector<64x32xf32>, vector<64x32xf32> -> vector<64x32xf32>
    %258 = arith.addf %251, %257 : vector<64x32xf32>
    %c7_277 = arith.constant 7 : index
    %c0_278 = arith.constant 0 : index
    %c0_279 = arith.constant 0 : index
    %259 = vector.load %arg8[%c7_277, %c0_278, %c0_279] : memref<9x32x32xf32, #tpu.memory_space<vmem>>, vector<1x32x32xf32>
    %260 = vector.shape_cast %259 : vector<1x32x32xf32> to vector<32x32xf32>
    %cst_280 = arith.constant dense<0.000000e+00> : vector<64x32xf32>
    %261 = tpu.matmul %208, %260, %cst_280 {dimension_numbers = #tpu.dot_dimension_numbers<[1], [0], [0], [1], [0, 0, 1, 1], [], []>} : vector<64x32xf32>, vector<32x32xf32>, vector<64x32xf32> -> vector<64x32xf32>
    %c7_281 = arith.constant 7 : index
    %c0_282 = arith.constant 0 : index
    %c0_283 = arith.constant 0 : index
    %262 = vector.load %arg1[%c7_281, %c0_282, %c0_283] : memref<9x64x64xf32, #tpu.memory_space<vmem>>, vector<1x64x64xf32>
    %263 = vector.shape_cast %262 : vector<1x64x64xf32> to vector<64x64xf32>
    %cst_284 = arith.constant dense<0.000000e+00> : vector<64x32xf32>
    %264 = tpu.matmul %263, %261, %cst_284 {dimension_numbers = #tpu.dot_dimension_numbers<[1], [0], [0], [1], [0, 0, 1, 1], [], []>} : vector<64x64xf32>, vector<64x32xf32>, vector<64x32xf32> -> vector<64x32xf32>
    %265 = arith.addf %258, %264 : vector<64x32xf32>
    %c8_285 = arith.constant 8 : index
    %c0_286 = arith.constant 0 : index
    %c0_287 = arith.constant 0 : index
    %266 = vector.load %arg8[%c8_285, %c0_286, %c0_287] : memref<9x32x32xf32, #tpu.memory_space<vmem>>, vector<1x32x32xf32>
    %267 = vector.shape_cast %266 : vector<1x32x32xf32> to vector<32x32xf32>
    %cst_288 = arith.constant dense<0.000000e+00> : vector<64x32xf32>
    %268 = tpu.matmul %208, %267, %cst_288 {dimension_numbers = #tpu.dot_dimension_numbers<[1], [0], [0], [1], [0, 0, 1, 1], [], []>} : vector<64x32xf32>, vector<32x32xf32>, vector<64x32xf32> -> vector<64x32xf32>
    %c8_289 = arith.constant 8 : index
    %c0_290 = arith.constant 0 : index
    %c0_291 = arith.constant 0 : index
    %269 = vector.load %arg1[%c8_289, %c0_290, %c0_291] : memref<9x64x64xf32, #tpu.memory_space<vmem>>, vector<1x64x64xf32>
    %270 = vector.shape_cast %269 : vector<1x64x64xf32> to vector<64x64xf32>
    %cst_292 = arith.constant dense<0.000000e+00> : vector<64x32xf32>
    %271 = tpu.matmul %270, %268, %cst_292 {dimension_numbers = #tpu.dot_dimension_numbers<[1], [0], [0], [1], [0, 0, 1, 1], [], []>} : vector<64x64xf32>, vector<64x32xf32>, vector<64x32xf32> -> vector<64x32xf32>
    %272 = arith.addf %265, %271 : vector<64x32xf32>
    %c0_293 = arith.constant 0 : index
    %c0_294 = arith.constant 0 : index
    %273 = vector.load %arg9[%c0_293, %c0_294] : memref<1x32xf32, #tpu.memory_space<vmem>>, vector<1x32xf32>
    %274 = vector.broadcast %273 : vector<1x32xf32> to vector<64x32xf32>
    %275 = arith.addf %272, %274 : vector<64x32xf32>
    %276 = arith.addf %275, %139 : vector<64x32xf32>
    %cst_295 = arith.constant 0.000000e+00 : f32
    %277 = vector.broadcast %cst_295 : f32 to vector<64x32xf32>
    %278 = arith.maximumf %276, %277 : vector<64x32xf32>
    %279 = tpu.iota {dimensions = array<i32: 0>} : vector<64x32xi32>
    %c0_i32 = arith.constant 0 : i32
    %280 = vector.broadcast %c0_i32 : i32 to vector<64x32xi32>
    %281 = arith.cmpi sge, %279, %280 : vector<64x32xi32>
    %c25_i32 = arith.constant 25 : i32
    %282 = vector.broadcast %c25_i32 : i32 to vector<64x32xi32>
    %283 = arith.cmpi slt, %279, %282 : vector<64x32xi32>
    %284 = arith.andi %281, %283 : vector<64x32xi1>
    %cst_296 = arith.constant 0.000000e+00 : f32
    %285 = vector.broadcast %cst_296 : f32 to vector<64x32xf32>
    %286 = arith.select %284, %278, %285 : vector<64x32xi1>, vector<64x32xf32>
    %cst_297 = arith.constant dense<0.000000e+00> : vector<32xf32>
    %287 = vector.multi_reduction <add>, %286, %cst_297 [0] : vector<64x32xf32> to vector<32xf32>
    %288 = vector.shape_cast %287 : vector<32xf32> to vector<1x32xf32>
    %cst_298 = arith.constant 4.000000e-02 : f32
    %289 = vector.broadcast %cst_298 : f32 to vector<1x32xf32>
    %290 = arith.mulf %288, %289 : vector<1x32xf32>
    %cst_299 = arith.constant -1.000000e+30 : f32
    %291 = vector.broadcast %cst_299 : f32 to vector<64x32xf32>
    %292 = arith.select %284, %278, %291 : vector<64x32xi1>, vector<64x32xf32>
    %cst_300 = arith.constant dense<0xFF800000> : vector<32xf32>
    %293 = vector.multi_reduction <maximumf>, %292, %cst_300 [0] : vector<64x32xf32> to vector<32xf32>
    %294 = vector.shape_cast %293 : vector<32xf32> to vector<1x32xf32>
    %c0_301 = arith.constant 0 : index
    %c0_302 = arith.constant 0 : index
    %295 = vector.load %arg10[%c0_301, %c0_302] : memref<32x2xf32, #tpu.memory_space<vmem>>, vector<32x2xf32>
    %cst_303 = arith.constant dense<0.000000e+00> : vector<1x2xf32>
    %296 = tpu.matmul %290, %295, %cst_303 {dimension_numbers = #tpu.dot_dimension_numbers<[1], [0], [0], [1], [0, 0, 1, 1], [], []>} : vector<1x32xf32>, vector<32x2xf32>, vector<1x2xf32> -> vector<1x2xf32>
    %cst_304 = arith.constant 0.000000e+00 : f32
    %297 = vector.broadcast %cst_304 : f32 to vector<1x2xf32>
    %298 = arith.maximumf %296, %297 : vector<1x2xf32>
    %c0_305 = arith.constant 0 : index
    %c0_306 = arith.constant 0 : index
    %299 = vector.load %arg11[%c0_305, %c0_306] : memref<2x32xf32, #tpu.memory_space<vmem>>, vector<2x32xf32>
    %cst_307 = arith.constant dense<0.000000e+00> : vector<1x32xf32>
    %300 = tpu.matmul %298, %299, %cst_307 {dimension_numbers = #tpu.dot_dimension_numbers<[1], [0], [0], [1], [0, 0, 1, 1], [], []>} : vector<1x2xf32>, vector<2x32xf32>, vector<1x32xf32> -> vector<1x32xf32>
    %c0_308 = arith.constant 0 : index
    %c0_309 = arith.constant 0 : index
    %301 = vector.load %arg10[%c0_308, %c0_309] : memref<32x2xf32, #tpu.memory_space<vmem>>, vector<32x2xf32>
    %cst_310 = arith.constant dense<0.000000e+00> : vector<1x2xf32>
    %302 = tpu.matmul %294, %301, %cst_310 {dimension_numbers = #tpu.dot_dimension_numbers<[1], [0], [0], [1], [0, 0, 1, 1], [], []>} : vector<1x32xf32>, vector<32x2xf32>, vector<1x2xf32> -> vector<1x2xf32>
    %cst_311 = arith.constant 0.000000e+00 : f32
    %303 = vector.broadcast %cst_311 : f32 to vector<1x2xf32>
    %304 = arith.maximumf %302, %303 : vector<1x2xf32>
    %c0_312 = arith.constant 0 : index
    %c0_313 = arith.constant 0 : index
    %305 = vector.load %arg11[%c0_312, %c0_313] : memref<2x32xf32, #tpu.memory_space<vmem>>, vector<2x32xf32>
    %cst_314 = arith.constant dense<0.000000e+00> : vector<1x32xf32>
    %306 = tpu.matmul %304, %305, %cst_314 {dimension_numbers = #tpu.dot_dimension_numbers<[1], [0], [0], [1], [0, 0, 1, 1], [], []>} : vector<1x2xf32>, vector<2x32xf32>, vector<1x32xf32> -> vector<1x32xf32>
    %307 = arith.addf %300, %306 : vector<1x32xf32>
    %308 = arith.negf %307 : vector<1x32xf32>
    %309 = math.exp %308 : vector<1x32xf32>
    %cst_315 = arith.constant 1.000000e+00 : f32
    %310 = vector.broadcast %cst_315 : f32 to vector<1x32xf32>
    %311 = arith.addf %310, %309 : vector<1x32xf32>
    %312 = arith.divf %310, %311 : vector<1x32xf32>
    %313 = vector.shape_cast %312 : vector<1x32xf32> to vector<1x32xf32>
    %314 = vector.broadcast %313 : vector<1x32xf32> to vector<64x32xf32>
    %c32_i32 = arith.constant 32 : i32
    %315 = vector.broadcast %c32_i32 : i32 to vector<64x32xi32>
    %316 = arith.cmpi sge, %279, %315 : vector<64x32xi32>
    %c57_i32 = arith.constant 57 : i32
    %317 = vector.broadcast %c57_i32 : i32 to vector<64x32xi32>
    %318 = arith.cmpi slt, %279, %317 : vector<64x32xi32>
    %319 = arith.andi %316, %318 : vector<64x32xi1>
    %cst_316 = arith.constant 0.000000e+00 : f32
    %320 = vector.broadcast %cst_316 : f32 to vector<64x32xf32>
    %321 = arith.select %319, %278, %320 : vector<64x32xi1>, vector<64x32xf32>
    %cst_317 = arith.constant dense<0.000000e+00> : vector<32xf32>
    %322 = vector.multi_reduction <add>, %321, %cst_317 [0] : vector<64x32xf32> to vector<32xf32>
    %323 = vector.shape_cast %322 : vector<32xf32> to vector<1x32xf32>
    %cst_318 = arith.constant 4.000000e-02 : f32
    %324 = vector.broadcast %cst_318 : f32 to vector<1x32xf32>
    %325 = arith.mulf %323, %324 : vector<1x32xf32>
    %cst_319 = arith.constant -1.000000e+30 : f32
    %326 = vector.broadcast %cst_319 : f32 to vector<64x32xf32>
    %327 = arith.select %319, %278, %326 : vector<64x32xi1>, vector<64x32xf32>
    %cst_320 = arith.constant dense<0xFF800000> : vector<32xf32>
    %328 = vector.multi_reduction <maximumf>, %327, %cst_320 [0] : vector<64x32xf32> to vector<32xf32>
    %329 = vector.shape_cast %328 : vector<32xf32> to vector<1x32xf32>
    %c0_321 = arith.constant 0 : index
    %c0_322 = arith.constant 0 : index
    %330 = vector.load %arg10[%c0_321, %c0_322] : memref<32x2xf32, #tpu.memory_space<vmem>>, vector<32x2xf32>
    %cst_323 = arith.constant dense<0.000000e+00> : vector<1x2xf32>
    %331 = tpu.matmul %325, %330, %cst_323 {dimension_numbers = #tpu.dot_dimension_numbers<[1], [0], [0], [1], [0, 0, 1, 1], [], []>} : vector<1x32xf32>, vector<32x2xf32>, vector<1x2xf32> -> vector<1x2xf32>
    %cst_324 = arith.constant 0.000000e+00 : f32
    %332 = vector.broadcast %cst_324 : f32 to vector<1x2xf32>
    %333 = arith.maximumf %331, %332 : vector<1x2xf32>
    %c0_325 = arith.constant 0 : index
    %c0_326 = arith.constant 0 : index
    %334 = vector.load %arg11[%c0_325, %c0_326] : memref<2x32xf32, #tpu.memory_space<vmem>>, vector<2x32xf32>
    %cst_327 = arith.constant dense<0.000000e+00> : vector<1x32xf32>
    %335 = tpu.matmul %333, %334, %cst_327 {dimension_numbers = #tpu.dot_dimension_numbers<[1], [0], [0], [1], [0, 0, 1, 1], [], []>} : vector<1x2xf32>, vector<2x32xf32>, vector<1x32xf32> -> vector<1x32xf32>
    %c0_328 = arith.constant 0 : index
    %c0_329 = arith.constant 0 : index
    %336 = vector.load %arg10[%c0_328, %c0_329] : memref<32x2xf32, #tpu.memory_space<vmem>>, vector<32x2xf32>
    %cst_330 = arith.constant dense<0.000000e+00> : vector<1x2xf32>
    %337 = tpu.matmul %329, %336, %cst_330 {dimension_numbers = #tpu.dot_dimension_numbers<[1], [0], [0], [1], [0, 0, 1, 1], [], []>} : vector<1x32xf32>, vector<32x2xf32>, vector<1x2xf32> -> vector<1x2xf32>
    %cst_331 = arith.constant 0.000000e+00 : f32
    %338 = vector.broadcast %cst_331 : f32 to vector<1x2xf32>
    %339 = arith.maximumf %337, %338 : vector<1x2xf32>
    %c0_332 = arith.constant 0 : index
    %c0_333 = arith.constant 0 : index
    %340 = vector.load %arg11[%c0_332, %c0_333] : memref<2x32xf32, #tpu.memory_space<vmem>>, vector<2x32xf32>
    %cst_334 = arith.constant dense<0.000000e+00> : vector<1x32xf32>
    %341 = tpu.matmul %339, %340, %cst_334 {dimension_numbers = #tpu.dot_dimension_numbers<[1], [0], [0], [1], [0, 0, 1, 1], [], []>} : vector<1x2xf32>, vector<2x32xf32>, vector<1x32xf32> -> vector<1x32xf32>
    %342 = arith.addf %335, %341 : vector<1x32xf32>
    %343 = arith.negf %342 : vector<1x32xf32>
    %344 = math.exp %343 : vector<1x32xf32>
    %cst_335 = arith.constant 1.000000e+00 : f32
    %345 = vector.broadcast %cst_335 : f32 to vector<1x32xf32>
    %346 = arith.addf %345, %344 : vector<1x32xf32>
    %347 = arith.divf %345, %346 : vector<1x32xf32>
    %348 = vector.shape_cast %347 : vector<1x32xf32> to vector<1x32xf32>
    %349 = vector.broadcast %348 : vector<1x32xf32> to vector<64x32xf32>
    %c32_i32_336 = arith.constant 32 : i32
    %350 = vector.broadcast %c32_i32_336 : i32 to vector<64x32xi32>
    %351 = arith.cmpi slt, %279, %350 : vector<64x32xi32>
    %352 = arith.select %351, %314, %349 : vector<64x32xi1>, vector<64x32xf32>
    %353 = arith.mulf %278, %352 : vector<64x32xf32>
    %cst_337 = arith.constant dense<0.000000e+00> : vector<64xf32>
    %354 = vector.multi_reduction <add>, %353, %cst_337 [1] : vector<64x32xf32> to vector<64xf32>
    %355 = vector.shape_cast %354 : vector<64xf32> to vector<64x1xf32>
    %cst_338 = arith.constant 3.200000e+01 : f32
    %356 = vector.broadcast %cst_338 : f32 to vector<64x1xf32>
    %357 = arith.divf %355, %356 : vector<64x1xf32>
    %cst_339 = arith.constant dense<0xFF800000> : vector<64xf32>
    %358 = vector.multi_reduction <maximumf>, %353, %cst_339 [1] : vector<64x32xf32> to vector<64xf32>
    %359 = vector.shape_cast %358 : vector<64xf32> to vector<64x1xf32>
    %c0_340 = arith.constant 0 : index
    %c0_341 = arith.constant 0 : index
    %c0_342 = arith.constant 0 : index
    %360 = vector.load %arg12[%c0_340, %c0_341, %c0_342] : memref<2x64x64xf32, #tpu.memory_space<vmem>>, vector<1x64x64xf32>
    %361 = vector.shape_cast %360 : vector<1x64x64xf32> to vector<64x64xf32>
    %cst_343 = arith.constant dense<0.000000e+00> : vector<64x1xf32>
    %362 = tpu.matmul %361, %357, %cst_343 {dimension_numbers = #tpu.dot_dimension_numbers<[1], [0], [0], [1], [0, 0, 1, 1], [], []>} : vector<64x64xf32>, vector<64x1xf32>, vector<64x1xf32> -> vector<64x1xf32>
    %c1_344 = arith.constant 1 : index
    %c0_345 = arith.constant 0 : index
    %c0_346 = arith.constant 0 : index
    %363 = vector.load %arg12[%c1_344, %c0_345, %c0_346] : memref<2x64x64xf32, #tpu.memory_space<vmem>>, vector<1x64x64xf32>
    %364 = vector.shape_cast %363 : vector<1x64x64xf32> to vector<64x64xf32>
    %cst_347 = arith.constant dense<0.000000e+00> : vector<64x1xf32>
    %365 = tpu.matmul %364, %359, %cst_347 {dimension_numbers = #tpu.dot_dimension_numbers<[1], [0], [0], [1], [0, 0, 1, 1], [], []>} : vector<64x64xf32>, vector<64x1xf32>, vector<64x1xf32> -> vector<64x1xf32>
    %366 = arith.addf %362, %365 : vector<64x1xf32>
    %367 = arith.negf %366 : vector<64x1xf32>
    %368 = math.exp %367 : vector<64x1xf32>
    %cst_348 = arith.constant 1.000000e+00 : f32
    %369 = vector.broadcast %cst_348 : f32 to vector<64x1xf32>
    %370 = arith.addf %369, %368 : vector<64x1xf32>
    %371 = arith.divf %369, %370 : vector<64x1xf32>
    %372 = vector.broadcast %371 : vector<64x1xf32> to vector<64x32xf32>
    %373 = arith.mulf %353, %372 : vector<64x32xf32>
    %cst_349 = arith.constant 0.000000e+00 : f32
    %374 = vector.broadcast %cst_349 : f32 to vector<64x8xf32>
    %c0_350 = arith.constant 0 : index
    %c0_351 = arith.constant 0 : index
    %c0_352 = arith.constant 0 : index
    %375 = vector.load %arg13[%c0_350, %c0_351, %c0_352] : memref<9x32x8xf32, #tpu.memory_space<vmem>>, vector<1x32x8xf32>
    %376 = vector.shape_cast %375 : vector<1x32x8xf32> to vector<32x8xf32>
    %cst_353 = arith.constant dense<0.000000e+00> : vector<64x8xf32>
    %377 = tpu.matmul %373, %376, %cst_353 {dimension_numbers = #tpu.dot_dimension_numbers<[1], [0], [0], [1], [0, 0, 1, 1], [], []>} : vector<64x32xf32>, vector<32x8xf32>, vector<64x8xf32> -> vector<64x8xf32>
    %c0_354 = arith.constant 0 : index
    %c0_355 = arith.constant 0 : index
    %c0_356 = arith.constant 0 : index
    %378 = vector.load %arg1[%c0_354, %c0_355, %c0_356] : memref<9x64x64xf32, #tpu.memory_space<vmem>>, vector<1x64x64xf32>
    %379 = vector.shape_cast %378 : vector<1x64x64xf32> to vector<64x64xf32>
    %cst_357 = arith.constant dense<0.000000e+00> : vector<64x8xf32>
    %380 = tpu.matmul %379, %377, %cst_357 {dimension_numbers = #tpu.dot_dimension_numbers<[1], [0], [0], [1], [0, 0, 1, 1], [], []>} : vector<64x64xf32>, vector<64x8xf32>, vector<64x8xf32> -> vector<64x8xf32>
    %381 = arith.addf %374, %380 : vector<64x8xf32>
    %c1_358 = arith.constant 1 : index
    %c0_359 = arith.constant 0 : index
    %c0_360 = arith.constant 0 : index
    %382 = vector.load %arg13[%c1_358, %c0_359, %c0_360] : memref<9x32x8xf32, #tpu.memory_space<vmem>>, vector<1x32x8xf32>
    %383 = vector.shape_cast %382 : vector<1x32x8xf32> to vector<32x8xf32>
    %cst_361 = arith.constant dense<0.000000e+00> : vector<64x8xf32>
    %384 = tpu.matmul %373, %383, %cst_361 {dimension_numbers = #tpu.dot_dimension_numbers<[1], [0], [0], [1], [0, 0, 1, 1], [], []>} : vector<64x32xf32>, vector<32x8xf32>, vector<64x8xf32> -> vector<64x8xf32>
    %c1_362 = arith.constant 1 : index
    %c0_363 = arith.constant 0 : index
    %c0_364 = arith.constant 0 : index
    %385 = vector.load %arg1[%c1_362, %c0_363, %c0_364] : memref<9x64x64xf32, #tpu.memory_space<vmem>>, vector<1x64x64xf32>
    %386 = vector.shape_cast %385 : vector<1x64x64xf32> to vector<64x64xf32>
    %cst_365 = arith.constant dense<0.000000e+00> : vector<64x8xf32>
    %387 = tpu.matmul %386, %384, %cst_365 {dimension_numbers = #tpu.dot_dimension_numbers<[1], [0], [0], [1], [0, 0, 1, 1], [], []>} : vector<64x64xf32>, vector<64x8xf32>, vector<64x8xf32> -> vector<64x8xf32>
    %388 = arith.addf %381, %387 : vector<64x8xf32>
    %c2_366 = arith.constant 2 : index
    %c0_367 = arith.constant 0 : index
    %c0_368 = arith.constant 0 : index
    %389 = vector.load %arg13[%c2_366, %c0_367, %c0_368] : memref<9x32x8xf32, #tpu.memory_space<vmem>>, vector<1x32x8xf32>
    %390 = vector.shape_cast %389 : vector<1x32x8xf32> to vector<32x8xf32>
    %cst_369 = arith.constant dense<0.000000e+00> : vector<64x8xf32>
    %391 = tpu.matmul %373, %390, %cst_369 {dimension_numbers = #tpu.dot_dimension_numbers<[1], [0], [0], [1], [0, 0, 1, 1], [], []>} : vector<64x32xf32>, vector<32x8xf32>, vector<64x8xf32> -> vector<64x8xf32>
    %c2_370 = arith.constant 2 : index
    %c0_371 = arith.constant 0 : index
    %c0_372 = arith.constant 0 : index
    %392 = vector.load %arg1[%c2_370, %c0_371, %c0_372] : memref<9x64x64xf32, #tpu.memory_space<vmem>>, vector<1x64x64xf32>
    %393 = vector.shape_cast %392 : vector<1x64x64xf32> to vector<64x64xf32>
    %cst_373 = arith.constant dense<0.000000e+00> : vector<64x8xf32>
    %394 = tpu.matmul %393, %391, %cst_373 {dimension_numbers = #tpu.dot_dimension_numbers<[1], [0], [0], [1], [0, 0, 1, 1], [], []>} : vector<64x64xf32>, vector<64x8xf32>, vector<64x8xf32> -> vector<64x8xf32>
    %395 = arith.addf %388, %394 : vector<64x8xf32>
    %c3_374 = arith.constant 3 : index
    %c0_375 = arith.constant 0 : index
    %c0_376 = arith.constant 0 : index
    %396 = vector.load %arg13[%c3_374, %c0_375, %c0_376] : memref<9x32x8xf32, #tpu.memory_space<vmem>>, vector<1x32x8xf32>
    %397 = vector.shape_cast %396 : vector<1x32x8xf32> to vector<32x8xf32>
    %cst_377 = arith.constant dense<0.000000e+00> : vector<64x8xf32>
    %398 = tpu.matmul %373, %397, %cst_377 {dimension_numbers = #tpu.dot_dimension_numbers<[1], [0], [0], [1], [0, 0, 1, 1], [], []>} : vector<64x32xf32>, vector<32x8xf32>, vector<64x8xf32> -> vector<64x8xf32>
    %c3_378 = arith.constant 3 : index
    %c0_379 = arith.constant 0 : index
    %c0_380 = arith.constant 0 : index
    %399 = vector.load %arg1[%c3_378, %c0_379, %c0_380] : memref<9x64x64xf32, #tpu.memory_space<vmem>>, vector<1x64x64xf32>
    %400 = vector.shape_cast %399 : vector<1x64x64xf32> to vector<64x64xf32>
    %cst_381 = arith.constant dense<0.000000e+00> : vector<64x8xf32>
    %401 = tpu.matmul %400, %398, %cst_381 {dimension_numbers = #tpu.dot_dimension_numbers<[1], [0], [0], [1], [0, 0, 1, 1], [], []>} : vector<64x64xf32>, vector<64x8xf32>, vector<64x8xf32> -> vector<64x8xf32>
    %402 = arith.addf %395, %401 : vector<64x8xf32>
    %c4_382 = arith.constant 4 : index
    %c0_383 = arith.constant 0 : index
    %c0_384 = arith.constant 0 : index
    %403 = vector.load %arg13[%c4_382, %c0_383, %c0_384] : memref<9x32x8xf32, #tpu.memory_space<vmem>>, vector<1x32x8xf32>
    %404 = vector.shape_cast %403 : vector<1x32x8xf32> to vector<32x8xf32>
    %cst_385 = arith.constant dense<0.000000e+00> : vector<64x8xf32>
    %405 = tpu.matmul %373, %404, %cst_385 {dimension_numbers = #tpu.dot_dimension_numbers<[1], [0], [0], [1], [0, 0, 1, 1], [], []>} : vector<64x32xf32>, vector<32x8xf32>, vector<64x8xf32> -> vector<64x8xf32>
    %c4_386 = arith.constant 4 : index
    %c0_387 = arith.constant 0 : index
    %c0_388 = arith.constant 0 : index
    %406 = vector.load %arg1[%c4_386, %c0_387, %c0_388] : memref<9x64x64xf32, #tpu.memory_space<vmem>>, vector<1x64x64xf32>
    %407 = vector.shape_cast %406 : vector<1x64x64xf32> to vector<64x64xf32>
    %cst_389 = arith.constant dense<0.000000e+00> : vector<64x8xf32>
    %408 = tpu.matmul %407, %405, %cst_389 {dimension_numbers = #tpu.dot_dimension_numbers<[1], [0], [0], [1], [0, 0, 1, 1], [], []>} : vector<64x64xf32>, vector<64x8xf32>, vector<64x8xf32> -> vector<64x8xf32>
    %409 = arith.addf %402, %408 : vector<64x8xf32>
    %c5_390 = arith.constant 5 : index
    %c0_391 = arith.constant 0 : index
    %c0_392 = arith.constant 0 : index
    %410 = vector.load %arg13[%c5_390, %c0_391, %c0_392] : memref<9x32x8xf32, #tpu.memory_space<vmem>>, vector<1x32x8xf32>
    %411 = vector.shape_cast %410 : vector<1x32x8xf32> to vector<32x8xf32>
    %cst_393 = arith.constant dense<0.000000e+00> : vector<64x8xf32>
    %412 = tpu.matmul %373, %411, %cst_393 {dimension_numbers = #tpu.dot_dimension_numbers<[1], [0], [0], [1], [0, 0, 1, 1], [], []>} : vector<64x32xf32>, vector<32x8xf32>, vector<64x8xf32> -> vector<64x8xf32>
    %c5_394 = arith.constant 5 : index
    %c0_395 = arith.constant 0 : index
    %c0_396 = arith.constant 0 : index
    %413 = vector.load %arg1[%c5_394, %c0_395, %c0_396] : memref<9x64x64xf32, #tpu.memory_space<vmem>>, vector<1x64x64xf32>
    %414 = vector.shape_cast %413 : vector<1x64x64xf32> to vector<64x64xf32>
    %cst_397 = arith.constant dense<0.000000e+00> : vector<64x8xf32>
    %415 = tpu.matmul %414, %412, %cst_397 {dimension_numbers = #tpu.dot_dimension_numbers<[1], [0], [0], [1], [0, 0, 1, 1], [], []>} : vector<64x64xf32>, vector<64x8xf32>, vector<64x8xf32> -> vector<64x8xf32>
    %416 = arith.addf %409, %415 : vector<64x8xf32>
    %c6_398 = arith.constant 6 : index
    %c0_399 = arith.constant 0 : index
    %c0_400 = arith.constant 0 : index
    %417 = vector.load %arg13[%c6_398, %c0_399, %c0_400] : memref<9x32x8xf32, #tpu.memory_space<vmem>>, vector<1x32x8xf32>
    %418 = vector.shape_cast %417 : vector<1x32x8xf32> to vector<32x8xf32>
    %cst_401 = arith.constant dense<0.000000e+00> : vector<64x8xf32>
    %419 = tpu.matmul %373, %418, %cst_401 {dimension_numbers = #tpu.dot_dimension_numbers<[1], [0], [0], [1], [0, 0, 1, 1], [], []>} : vector<64x32xf32>, vector<32x8xf32>, vector<64x8xf32> -> vector<64x8xf32>
    %c6_402 = arith.constant 6 : index
    %c0_403 = arith.constant 0 : index
    %c0_404 = arith.constant 0 : index
    %420 = vector.load %arg1[%c6_402, %c0_403, %c0_404] : memref<9x64x64xf32, #tpu.memory_space<vmem>>, vector<1x64x64xf32>
    %421 = vector.shape_cast %420 : vector<1x64x64xf32> to vector<64x64xf32>
    %cst_405 = arith.constant dense<0.000000e+00> : vector<64x8xf32>
    %422 = tpu.matmul %421, %419, %cst_405 {dimension_numbers = #tpu.dot_dimension_numbers<[1], [0], [0], [1], [0, 0, 1, 1], [], []>} : vector<64x64xf32>, vector<64x8xf32>, vector<64x8xf32> -> vector<64x8xf32>
    %423 = arith.addf %416, %422 : vector<64x8xf32>
    %c7_406 = arith.constant 7 : index
    %c0_407 = arith.constant 0 : index
    %c0_408 = arith.constant 0 : index
    %424 = vector.load %arg13[%c7_406, %c0_407, %c0_408] : memref<9x32x8xf32, #tpu.memory_space<vmem>>, vector<1x32x8xf32>
    %425 = vector.shape_cast %424 : vector<1x32x8xf32> to vector<32x8xf32>
    %cst_409 = arith.constant dense<0.000000e+00> : vector<64x8xf32>
    %426 = tpu.matmul %373, %425, %cst_409 {dimension_numbers = #tpu.dot_dimension_numbers<[1], [0], [0], [1], [0, 0, 1, 1], [], []>} : vector<64x32xf32>, vector<32x8xf32>, vector<64x8xf32> -> vector<64x8xf32>
    %c7_410 = arith.constant 7 : index
    %c0_411 = arith.constant 0 : index
    %c0_412 = arith.constant 0 : index
    %427 = vector.load %arg1[%c7_410, %c0_411, %c0_412] : memref<9x64x64xf32, #tpu.memory_space<vmem>>, vector<1x64x64xf32>
    %428 = vector.shape_cast %427 : vector<1x64x64xf32> to vector<64x64xf32>
    %cst_413 = arith.constant dense<0.000000e+00> : vector<64x8xf32>
    %429 = tpu.matmul %428, %426, %cst_413 {dimension_numbers = #tpu.dot_dimension_numbers<[1], [0], [0], [1], [0, 0, 1, 1], [], []>} : vector<64x64xf32>, vector<64x8xf32>, vector<64x8xf32> -> vector<64x8xf32>
    %430 = arith.addf %423, %429 : vector<64x8xf32>
    %c8_414 = arith.constant 8 : index
    %c0_415 = arith.constant 0 : index
    %c0_416 = arith.constant 0 : index
    %431 = vector.load %arg13[%c8_414, %c0_415, %c0_416] : memref<9x32x8xf32, #tpu.memory_space<vmem>>, vector<1x32x8xf32>
    %432 = vector.shape_cast %431 : vector<1x32x8xf32> to vector<32x8xf32>
    %cst_417 = arith.constant dense<0.000000e+00> : vector<64x8xf32>
    %433 = tpu.matmul %373, %432, %cst_417 {dimension_numbers = #tpu.dot_dimension_numbers<[1], [0], [0], [1], [0, 0, 1, 1], [], []>} : vector<64x32xf32>, vector<32x8xf32>, vector<64x8xf32> -> vector<64x8xf32>
    %c8_418 = arith.constant 8 : index
    %c0_419 = arith.constant 0 : index
    %c0_420 = arith.constant 0 : index
    %434 = vector.load %arg1[%c8_418, %c0_419, %c0_420] : memref<9x64x64xf32, #tpu.memory_space<vmem>>, vector<1x64x64xf32>
    %435 = vector.shape_cast %434 : vector<1x64x64xf32> to vector<64x64xf32>
    %cst_421 = arith.constant dense<0.000000e+00> : vector<64x8xf32>
    %436 = tpu.matmul %435, %433, %cst_421 {dimension_numbers = #tpu.dot_dimension_numbers<[1], [0], [0], [1], [0, 0, 1, 1], [], []>} : vector<64x64xf32>, vector<64x8xf32>, vector<64x8xf32> -> vector<64x8xf32>
    %437 = arith.addf %430, %436 : vector<64x8xf32>
    %c0_422 = arith.constant 0 : index
    %c0_423 = arith.constant 0 : index
    %438 = vector.load %arg14[%c0_422, %c0_423] : memref<1x8xf32, #tpu.memory_space<vmem>>, vector<1x8xf32>
    %439 = vector.broadcast %438 : vector<1x8xf32> to vector<64x8xf32>
    %440 = arith.addf %437, %439 : vector<64x8xf32>
    %cst_424 = arith.constant 0.000000e+00 : f32
    %441 = vector.broadcast %cst_424 : f32 to vector<64x8xf32>
    %442 = arith.cmpf oge, %440, %441 : vector<64x8xf32>
    %cst_425 = arith.constant 0.00999999977 : f32
    %443 = vector.broadcast %cst_425 : f32 to vector<64x8xf32>
    %444 = arith.mulf %443, %440 : vector<64x8xf32>
    %445 = arith.select %442, %440, %444 : vector<64x8xi1>, vector<64x8xf32>
    %cst_426 = arith.constant 0.000000e+00 : f32
    %446 = vector.broadcast %cst_426 : f32 to vector<64x8xf32>
    %c0_427 = arith.constant 0 : index
    %c0_428 = arith.constant 0 : index
    %c0_429 = arith.constant 0 : index
    %447 = vector.load %arg15[%c0_427, %c0_428, %c0_429] : memref<9x8x8xf32, #tpu.memory_space<vmem>>, vector<1x8x8xf32>
    %448 = vector.shape_cast %447 : vector<1x8x8xf32> to vector<8x8xf32>
    %cst_430 = arith.constant dense<0.000000e+00> : vector<64x8xf32>
    %449 = tpu.matmul %445, %448, %cst_430 {dimension_numbers = #tpu.dot_dimension_numbers<[1], [0], [0], [1], [0, 0, 1, 1], [], []>} : vector<64x8xf32>, vector<8x8xf32>, vector<64x8xf32> -> vector<64x8xf32>
    %c0_431 = arith.constant 0 : index
    %c0_432 = arith.constant 0 : index
    %c0_433 = arith.constant 0 : index
    %450 = vector.load %arg1[%c0_431, %c0_432, %c0_433] : memref<9x64x64xf32, #tpu.memory_space<vmem>>, vector<1x64x64xf32>
    %451 = vector.shape_cast %450 : vector<1x64x64xf32> to vector<64x64xf32>
    %cst_434 = arith.constant dense<0.000000e+00> : vector<64x8xf32>
    %452 = tpu.matmul %451, %449, %cst_434 {dimension_numbers = #tpu.dot_dimension_numbers<[1], [0], [0], [1], [0, 0, 1, 1], [], []>} : vector<64x64xf32>, vector<64x8xf32>, vector<64x8xf32> -> vector<64x8xf32>
    %453 = arith.addf %446, %452 : vector<64x8xf32>
    %c1_435 = arith.constant 1 : index
    %c0_436 = arith.constant 0 : index
    %c0_437 = arith.constant 0 : index
    %454 = vector.load %arg15[%c1_435, %c0_436, %c0_437] : memref<9x8x8xf32, #tpu.memory_space<vmem>>, vector<1x8x8xf32>
    %455 = vector.shape_cast %454 : vector<1x8x8xf32> to vector<8x8xf32>
    %cst_438 = arith.constant dense<0.000000e+00> : vector<64x8xf32>
    %456 = tpu.matmul %445, %455, %cst_438 {dimension_numbers = #tpu.dot_dimension_numbers<[1], [0], [0], [1], [0, 0, 1, 1], [], []>} : vector<64x8xf32>, vector<8x8xf32>, vector<64x8xf32> -> vector<64x8xf32>
    %c1_439 = arith.constant 1 : index
    %c0_440 = arith.constant 0 : index
    %c0_441 = arith.constant 0 : index
    %457 = vector.load %arg1[%c1_439, %c0_440, %c0_441] : memref<9x64x64xf32, #tpu.memory_space<vmem>>, vector<1x64x64xf32>
    %458 = vector.shape_cast %457 : vector<1x64x64xf32> to vector<64x64xf32>
    %cst_442 = arith.constant dense<0.000000e+00> : vector<64x8xf32>
    %459 = tpu.matmul %458, %456, %cst_442 {dimension_numbers = #tpu.dot_dimension_numbers<[1], [0], [0], [1], [0, 0, 1, 1], [], []>} : vector<64x64xf32>, vector<64x8xf32>, vector<64x8xf32> -> vector<64x8xf32>
    %460 = arith.addf %453, %459 : vector<64x8xf32>
    %c2_443 = arith.constant 2 : index
    %c0_444 = arith.constant 0 : index
    %c0_445 = arith.constant 0 : index
    %461 = vector.load %arg15[%c2_443, %c0_444, %c0_445] : memref<9x8x8xf32, #tpu.memory_space<vmem>>, vector<1x8x8xf32>
    %462 = vector.shape_cast %461 : vector<1x8x8xf32> to vector<8x8xf32>
    %cst_446 = arith.constant dense<0.000000e+00> : vector<64x8xf32>
    %463 = tpu.matmul %445, %462, %cst_446 {dimension_numbers = #tpu.dot_dimension_numbers<[1], [0], [0], [1], [0, 0, 1, 1], [], []>} : vector<64x8xf32>, vector<8x8xf32>, vector<64x8xf32> -> vector<64x8xf32>
    %c2_447 = arith.constant 2 : index
    %c0_448 = arith.constant 0 : index
    %c0_449 = arith.constant 0 : index
    %464 = vector.load %arg1[%c2_447, %c0_448, %c0_449] : memref<9x64x64xf32, #tpu.memory_space<vmem>>, vector<1x64x64xf32>
    %465 = vector.shape_cast %464 : vector<1x64x64xf32> to vector<64x64xf32>
    %cst_450 = arith.constant dense<0.000000e+00> : vector<64x8xf32>
    %466 = tpu.matmul %465, %463, %cst_450 {dimension_numbers = #tpu.dot_dimension_numbers<[1], [0], [0], [1], [0, 0, 1, 1], [], []>} : vector<64x64xf32>, vector<64x8xf32>, vector<64x8xf32> -> vector<64x8xf32>
    %467 = arith.addf %460, %466 : vector<64x8xf32>
    %c3_451 = arith.constant 3 : index
    %c0_452 = arith.constant 0 : index
    %c0_453 = arith.constant 0 : index
    %468 = vector.load %arg15[%c3_451, %c0_452, %c0_453] : memref<9x8x8xf32, #tpu.memory_space<vmem>>, vector<1x8x8xf32>
    %469 = vector.shape_cast %468 : vector<1x8x8xf32> to vector<8x8xf32>
    %cst_454 = arith.constant dense<0.000000e+00> : vector<64x8xf32>
    %470 = tpu.matmul %445, %469, %cst_454 {dimension_numbers = #tpu.dot_dimension_numbers<[1], [0], [0], [1], [0, 0, 1, 1], [], []>} : vector<64x8xf32>, vector<8x8xf32>, vector<64x8xf32> -> vector<64x8xf32>
    %c3_455 = arith.constant 3 : index
    %c0_456 = arith.constant 0 : index
    %c0_457 = arith.constant 0 : index
    %471 = vector.load %arg1[%c3_455, %c0_456, %c0_457] : memref<9x64x64xf32, #tpu.memory_space<vmem>>, vector<1x64x64xf32>
    %472 = vector.shape_cast %471 : vector<1x64x64xf32> to vector<64x64xf32>
    %cst_458 = arith.constant dense<0.000000e+00> : vector<64x8xf32>
    %473 = tpu.matmul %472, %470, %cst_458 {dimension_numbers = #tpu.dot_dimension_numbers<[1], [0], [0], [1], [0, 0, 1, 1], [], []>} : vector<64x64xf32>, vector<64x8xf32>, vector<64x8xf32> -> vector<64x8xf32>
    %474 = arith.addf %467, %473 : vector<64x8xf32>
    %c4_459 = arith.constant 4 : index
    %c0_460 = arith.constant 0 : index
    %c0_461 = arith.constant 0 : index
    %475 = vector.load %arg15[%c4_459, %c0_460, %c0_461] : memref<9x8x8xf32, #tpu.memory_space<vmem>>, vector<1x8x8xf32>
    %476 = vector.shape_cast %475 : vector<1x8x8xf32> to vector<8x8xf32>
    %cst_462 = arith.constant dense<0.000000e+00> : vector<64x8xf32>
    %477 = tpu.matmul %445, %476, %cst_462 {dimension_numbers = #tpu.dot_dimension_numbers<[1], [0], [0], [1], [0, 0, 1, 1], [], []>} : vector<64x8xf32>, vector<8x8xf32>, vector<64x8xf32> -> vector<64x8xf32>
    %c4_463 = arith.constant 4 : index
    %c0_464 = arith.constant 0 : index
    %c0_465 = arith.constant 0 : index
    %478 = vector.load %arg1[%c4_463, %c0_464, %c0_465] : memref<9x64x64xf32, #tpu.memory_space<vmem>>, vector<1x64x64xf32>
    %479 = vector.shape_cast %478 : vector<1x64x64xf32> to vector<64x64xf32>
    %cst_466 = arith.constant dense<0.000000e+00> : vector<64x8xf32>
    %480 = tpu.matmul %479, %477, %cst_466 {dimension_numbers = #tpu.dot_dimension_numbers<[1], [0], [0], [1], [0, 0, 1, 1], [], []>} : vector<64x64xf32>, vector<64x8xf32>, vector<64x8xf32> -> vector<64x8xf32>
    %481 = arith.addf %474, %480 : vector<64x8xf32>
    %c5_467 = arith.constant 5 : index
    %c0_468 = arith.constant 0 : index
    %c0_469 = arith.constant 0 : index
    %482 = vector.load %arg15[%c5_467, %c0_468, %c0_469] : memref<9x8x8xf32, #tpu.memory_space<vmem>>, vector<1x8x8xf32>
    %483 = vector.shape_cast %482 : vector<1x8x8xf32> to vector<8x8xf32>
    %cst_470 = arith.constant dense<0.000000e+00> : vector<64x8xf32>
    %484 = tpu.matmul %445, %483, %cst_470 {dimension_numbers = #tpu.dot_dimension_numbers<[1], [0], [0], [1], [0, 0, 1, 1], [], []>} : vector<64x8xf32>, vector<8x8xf32>, vector<64x8xf32> -> vector<64x8xf32>
    %c5_471 = arith.constant 5 : index
    %c0_472 = arith.constant 0 : index
    %c0_473 = arith.constant 0 : index
    %485 = vector.load %arg1[%c5_471, %c0_472, %c0_473] : memref<9x64x64xf32, #tpu.memory_space<vmem>>, vector<1x64x64xf32>
    %486 = vector.shape_cast %485 : vector<1x64x64xf32> to vector<64x64xf32>
    %cst_474 = arith.constant dense<0.000000e+00> : vector<64x8xf32>
    %487 = tpu.matmul %486, %484, %cst_474 {dimension_numbers = #tpu.dot_dimension_numbers<[1], [0], [0], [1], [0, 0, 1, 1], [], []>} : vector<64x64xf32>, vector<64x8xf32>, vector<64x8xf32> -> vector<64x8xf32>
    %488 = arith.addf %481, %487 : vector<64x8xf32>
    %c6_475 = arith.constant 6 : index
    %c0_476 = arith.constant 0 : index
    %c0_477 = arith.constant 0 : index
    %489 = vector.load %arg15[%c6_475, %c0_476, %c0_477] : memref<9x8x8xf32, #tpu.memory_space<vmem>>, vector<1x8x8xf32>
    %490 = vector.shape_cast %489 : vector<1x8x8xf32> to vector<8x8xf32>
    %cst_478 = arith.constant dense<0.000000e+00> : vector<64x8xf32>
    %491 = tpu.matmul %445, %490, %cst_478 {dimension_numbers = #tpu.dot_dimension_numbers<[1], [0], [0], [1], [0, 0, 1, 1], [], []>} : vector<64x8xf32>, vector<8x8xf32>, vector<64x8xf32> -> vector<64x8xf32>
    %c6_479 = arith.constant 6 : index
    %c0_480 = arith.constant 0 : index
    %c0_481 = arith.constant 0 : index
    %492 = vector.load %arg1[%c6_479, %c0_480, %c0_481] : memref<9x64x64xf32, #tpu.memory_space<vmem>>, vector<1x64x64xf32>
    %493 = vector.shape_cast %492 : vector<1x64x64xf32> to vector<64x64xf32>
    %cst_482 = arith.constant dense<0.000000e+00> : vector<64x8xf32>
    %494 = tpu.matmul %493, %491, %cst_482 {dimension_numbers = #tpu.dot_dimension_numbers<[1], [0], [0], [1], [0, 0, 1, 1], [], []>} : vector<64x64xf32>, vector<64x8xf32>, vector<64x8xf32> -> vector<64x8xf32>
    %495 = arith.addf %488, %494 : vector<64x8xf32>
    %c7_483 = arith.constant 7 : index
    %c0_484 = arith.constant 0 : index
    %c0_485 = arith.constant 0 : index
    %496 = vector.load %arg15[%c7_483, %c0_484, %c0_485] : memref<9x8x8xf32, #tpu.memory_space<vmem>>, vector<1x8x8xf32>
    %497 = vector.shape_cast %496 : vector<1x8x8xf32> to vector<8x8xf32>
    %cst_486 = arith.constant dense<0.000000e+00> : vector<64x8xf32>
    %498 = tpu.matmul %445, %497, %cst_486 {dimension_numbers = #tpu.dot_dimension_numbers<[1], [0], [0], [1], [0, 0, 1, 1], [], []>} : vector<64x8xf32>, vector<8x8xf32>, vector<64x8xf32> -> vector<64x8xf32>
    %c7_487 = arith.constant 7 : index
    %c0_488 = arith.constant 0 : index
    %c0_489 = arith.constant 0 : index
    %499 = vector.load %arg1[%c7_487, %c0_488, %c0_489] : memref<9x64x64xf32, #tpu.memory_space<vmem>>, vector<1x64x64xf32>
    %500 = vector.shape_cast %499 : vector<1x64x64xf32> to vector<64x64xf32>
    %cst_490 = arith.constant dense<0.000000e+00> : vector<64x8xf32>
    %501 = tpu.matmul %500, %498, %cst_490 {dimension_numbers = #tpu.dot_dimension_numbers<[1], [0], [0], [1], [0, 0, 1, 1], [], []>} : vector<64x64xf32>, vector<64x8xf32>, vector<64x8xf32> -> vector<64x8xf32>
    %502 = arith.addf %495, %501 : vector<64x8xf32>
    %c8_491 = arith.constant 8 : index
    %c0_492 = arith.constant 0 : index
    %c0_493 = arith.constant 0 : index
    %503 = vector.load %arg15[%c8_491, %c0_492, %c0_493] : memref<9x8x8xf32, #tpu.memory_space<vmem>>, vector<1x8x8xf32>
    %504 = vector.shape_cast %503 : vector<1x8x8xf32> to vector<8x8xf32>
    %cst_494 = arith.constant dense<0.000000e+00> : vector<64x8xf32>
    %505 = tpu.matmul %445, %504, %cst_494 {dimension_numbers = #tpu.dot_dimension_numbers<[1], [0], [0], [1], [0, 0, 1, 1], [], []>} : vector<64x8xf32>, vector<8x8xf32>, vector<64x8xf32> -> vector<64x8xf32>
    %c8_495 = arith.constant 8 : index
    %c0_496 = arith.constant 0 : index
    %c0_497 = arith.constant 0 : index
    %506 = vector.load %arg1[%c8_495, %c0_496, %c0_497] : memref<9x64x64xf32, #tpu.memory_space<vmem>>, vector<1x64x64xf32>
    %507 = vector.shape_cast %506 : vector<1x64x64xf32> to vector<64x64xf32>
    %cst_498 = arith.constant dense<0.000000e+00> : vector<64x8xf32>
    %508 = tpu.matmul %507, %505, %cst_498 {dimension_numbers = #tpu.dot_dimension_numbers<[1], [0], [0], [1], [0, 0, 1, 1], [], []>} : vector<64x64xf32>, vector<64x8xf32>, vector<64x8xf32> -> vector<64x8xf32>
    %509 = arith.addf %502, %508 : vector<64x8xf32>
    %c0_499 = arith.constant 0 : index
    %c0_500 = arith.constant 0 : index
    %510 = vector.load %arg16[%c0_499, %c0_500] : memref<1x8xf32, #tpu.memory_space<vmem>>, vector<1x8xf32>
    %511 = vector.broadcast %510 : vector<1x8xf32> to vector<64x8xf32>
    %512 = arith.addf %509, %511 : vector<64x8xf32>
    %cst_501 = arith.constant 0.000000e+00 : f32
    %513 = vector.broadcast %cst_501 : f32 to vector<64x8xf32>
    %514 = arith.cmpf oge, %512, %513 : vector<64x8xf32>
    %cst_502 = arith.constant 0.00999999977 : f32
    %515 = vector.broadcast %cst_502 : f32 to vector<64x8xf32>
    %516 = arith.mulf %515, %512 : vector<64x8xf32>
    %517 = arith.select %514, %512, %516 : vector<64x8xi1>, vector<64x8xf32>
    %c0_503 = arith.constant 0 : index
    %c0_504 = arith.constant 0 : index
    %518 = vector.load %arg17[%c0_503, %c0_504] : memref<64x8xf32, #tpu.memory_space<vmem>>, vector<64x8xf32>
    tpu.vector_store %arg17[%c0_503, %c0_504], %517 {strides = array<i32>} : memref<64x8xf32, #tpu.memory_space<vmem>>, vector<64x8xf32>,
    return
  }
}

</mosaic_0001>

<bundles_post_ra>
// kernel: apm_forward.4
= control target key start
LH: loop header
LB: loop body
LE: loop exit
PB: predicated region body
PF: predicated region fallthrough
CT: control target
= control target key end

     0   :  { %s2090_s12 = smov 0   ;;  %s2701_s0 = inlined_call_operand.vmem [shape: f32[4,676], index: 0, kind: input, shape index: {}]   ;;  %s2702_s1 = inlined_call_operand.vmem [shape: f32[4,1], index: 1, kind: input, shape index: {}]   ;;  %s2703_s2 = inlined_call_operand.vmem [shape: f32[2,676,729], index: 2, kind: input, shape index: {}]   ;;  %s2704_s3 = inlined_call_operand.vmem [shape: f32[2,4,729], index: 3, kind: output, shape index: {}]  }
   0x1 LB: > { %s1473_s13 = sadd.s32 4294967295, %s2067_s12   ;;  %p1477_p0 = scmp.ge.s32.totalorder %s2067_s12, 1  ;;  %s2067_s12 = sphi %s2090_s12, %s13_s12  }
   0x2   : > { %p137_p1 = scmp.lt.s32.totalorder %s2067_s12, 3 }
   0x4   : > { %p138_p2 = pnand %p1477_p0, %p137_p1 }
   0x5   : > { %p161_p3 = scmp.lt.s32.totalorder (!%p138_p2), %s1473_s13, 1  ;;  %v2101_v0 = vld [vmem:[%s2701_s0] sm:$0xff] (!%p138_p2)  ;;  %v2106_v1 = vld [vmem:[%s2701_s0 + $0x8] sm:$0xff] (!%p138_p2)  ;;  %vm698_vm0 = vcmask (!%p138_p2), 293888   ;;  %vm701_vm1 = vcmask (!%p138_p2), 1043456   ;;  %vm1415_vm2 = vcmask (!%p138_p2), 728068  }
   0x6   : > { %141 = sbr.rel (%p138_p2) target bundleno = 543 (0x21f), region = 32  ;;  %v2110_v2 = vcombine.high (!%p138_p2), %v2101_v0, %v2101_v0  ;;  %v2114_v3 = vcombine.high (!%p138_p2), %v2106_v1, %v2106_v1  ;;  %vm1416_vm3 = vmor (!%p138_p2), %vm1415_vm2, %vm701_vm1 }
   0x8   : > { %784 = vmatprep.mubr.f32.mxu1 (!%p138_p2), %v2110_v2  ;;  %855 = vmatprep.mubr.f32.mxu0 (!%p138_p2), %v2114_v3 }
   0xd   : > { %s2706_s13 = smov (!%p161_p3, %s1473_s13), 1 }
   0xe   : > { %s2019_s18 = smul.u32 4080, %s2706_s13 }
   0xf   : > { %s2020_s5 = smul.u32 24, %s2706_s13 }
  0x10   : > { %s2124_s21 = scalar_lea.vmem %s2703_s2, %s2019_s18 }
  0x11   : > { %v175_v4 = vld [vmem:[%s2124_s21 + $0x8] sm:$0xff]  ;;  %v181_v5 = vld [vmem:[%s2124_s21 + $0x38] sm:$0xff]  ;;  %v174_v9 = vld [vmem:[%s2124_s21] sm:$0xff]  ;;  %s2692_s8 = scalar_lea.vmem %s2704_s3, %s2020_s5 }
  0x12   : > { %v367_v6 = vld [vmem:[%s2124_s21 + $0x608] sm:$0xff]  ;;  %v1497_v7 = vpack.c.bf16 %v181_v5, %v175_v4  ;;  %v373_v8 = vld [vmem:[%s2124_s21 + $0x638] sm:$0xff]  ;;  %v180_v10 = vld [vmem:[%s2124_s21 + $0x30] sm:$0xff] }
  0x13   : > { %v1561_v11 = vpack.c.bf16 %v373_v8, %v367_v6  ;;  %v1499_v12 = vpack.c.bf16 %v180_v10, %v174_v9  ;;  %v366_v13 = vld [vmem:[%s2124_s21 + $0x600] sm:$0xff]  ;;  %v372_v14 = vld [vmem:[%s2124_s21 + $0x630] sm:$0xff]  ;;  %v187_v15 = vld [vmem:[%s2124_s21 + $0x68] sm:$0xff] }
  0x14   : > { %1498 = vmatprep.subr.bf16.mxu1 %v1497_v7  ;;  %v1563_v16 = vpack.c.bf16 %v372_v14, %v366_v13  ;;  %v193_v17 = vld [vmem:[%s2124_s21 + $0x98] sm:$0xff]  ;;  %v379_v18 = vld [vmem:[%s2124_s21 + $0x668] sm:$0xff]  ;;  %v186_v22 = vld [vmem:[%s2124_s21 + $0x60] sm:$0xff] }
  0x15   : > { %v385_v19 = vld [vmem:[%s2124_s21 + $0x698] sm:$0xff]  ;;  %1562 = vmatprep.subr.bf16.mxu0 %v1561_v11  ;;  %1500 = vmatpush1.bf16.msra.mxu1 %v1499_v12  ;;  %v1501_v20 = vpack.c.bf16 %v193_v17, %v187_v15  ;;  %v192_v23 = vld [vmem:[%s2124_s21 + $0x90] sm:$0xff]  ;;  %v378_v24 = vld [vmem:[%s2124_s21 + $0x660] sm:$0xff] }
  0x16   : > { %v1565_v21 = vpack.c.bf16 %v385_v19, %v379_v18  ;;  %1564 = vmatpush1.bf16.msra.mxu0 %v1563_v16  ;;  %v1503_v25 = vpack.c.bf16 %v192_v23, %v186_v22  ;;  %v384_v26 = vld [vmem:[%s2124_s21 + $0x690] sm:$0xff]  ;;  %v199_v27 = vld [vmem:[%s2124_s21 + $0xc8] sm:$0xff]  ;;  %v205_v28 = vld [vmem:[%s2124_s21 + $0xf8] sm:$0xff] }
  0x17   : > { %1502 = vmatprep.subr.bf16.mxu1 %v1501_v20  ;;  %v1567_v29 = vpack.c.bf16 %v384_v26, %v378_v24  ;;  %v1505_v30 = vpack.c.bf16 %v205_v28, %v199_v27  ;;  %v391_v31 = vld [vmem:[%s2124_s21 + $0x6c8] sm:$0xff]  ;;  %v397_v32 = vld [vmem:[%s2124_s21 + $0x6f8] sm:$0xff]  ;;  %v198_v33 = vld [vmem:[%s2124_s21 + $0xc0] sm:$0xff] }
  0x18   : > { %1566 = vmatprep.subr.bf16.mxu0 %v1565_v21  ;;  %v1569_v34 = vpack.c.bf16 %v397_v32, %v391_v31  ;;  %v204_v35 = vld [vmem:[%s2124_s21 + $0xf0] sm:$0xff]  ;;  %v390_v36 = vld [vmem:[%s2124_s21 + $0x6c0] sm:$0xff]  ;;  %v211_v39 = vld [vmem:[%s2124_s21 + $0x128] sm:$0xff] }
  0x19   : > { %v396_v37 = vld [vmem:[%s2124_s21 + $0x6f0] sm:$0xff]  ;;  %1504 = vmatpush1.bf16.msra.mxu1 %v1503_v25  ;;  %v1507_v38 = vpack.c.bf16 %v204_v35, %v198_v33  ;;  %v217_v40 = vld [vmem:[%s2124_s21 + $0x158] sm:$0xff]  ;;  %v403_v41 = vld [vmem:[%s2124_s21 + $0x728] sm:$0xff] }
  0x1a   : > { %1568 = vmatpush1.bf16.msra.mxu0 %v1567_v29  ;;  %1506 = vmatprep.subr.bf16.mxu1 %v1505_v30  ;;  %v1571_v42 = vpack.c.bf16 %v396_v37, %v390_v36  ;;  %v1509_v43 = vpack.c.bf16 %v217_v40, %v211_v39  ;;  %v409_v44 = vld [vmem:[%s2124_s21 + $0x758] sm:$0xff]  ;;  %v210_v45 = vld [vmem:[%s2124_s21 + $0x120] sm:$0xff]  ;;  %v216_v46 = vld [vmem:[%s2124_s21 + $0x150] sm:$0xff] }
  0x1b   : > { %1570 = vmatprep.subr.bf16.mxu0 %v1569_v34  ;;  %v1573_v47 = vpack.c.bf16 %v409_v44, %v403_v41  ;;  %v402_v48 = vld [vmem:[%s2124_s21 + $0x720] sm:$0xff]  ;;  %v408_v49 = vld [vmem:[%s2124_s21 + $0x750] sm:$0xff]  ;;  %v223_v50 = vld [vmem:[%s2124_s21 + $0x188] sm:$0xff]  ;;  %v1511_v54 = vpack.c.bf16 %v216_v46, %v210_v45 }
  0x1c   : > { %v229_v51 = vld [vmem:[%s2124_s21 + $0x1b8] sm:$0xff]  ;;  %v415_v52 = vld [vmem:[%s2124_s21 + $0x788] sm:$0xff]  ;;  %v1575_v55 = vpack.c.bf16 %v408_v49, %v402_v48  ;;  %v222_v57 = vld [vmem:[%s2124_s21 + $0x180] sm:$0xff] }
  0x1d   : > { %v421_v53 = vld [vmem:[%s2124_s21 + $0x7b8] sm:$0xff]  ;;  %1508 = vmatpush1.bf16.msra.mxu1 %v1507_v38  ;;  %v1513_v56 = vpack.c.bf16 %v229_v51, %v223_v50  ;;  %v228_v58 = vld [vmem:[%s2124_s21 + $0x1b0] sm:$0xff]  ;;  %v414_v59 = vld [vmem:[%s2124_s21 + $0x780] sm:$0xff] }
  0x1e   : > { %1572 = vmatpush1.bf16.msra.mxu0 %v1571_v42  ;;  %1510 = vmatprep.subr.bf16.mxu1 %v1509_v43  ;;  %v1577_v60 = vpack.c.bf16 %v421_v53, %v415_v52  ;;  %v420_v61 = vld [vmem:[%s2124_s21 + $0x7b0] sm:$0xff]  ;;  %v235_v62 = vld [vmem:[%s2124_s21 + $0x1e8] sm:$0xff]  ;;  %v241_v63 = vld [vmem:[%s2124_s21 + $0x218] sm:$0xff]  ;;  %v1515_v6 = vpack.c.bf16 %v228_v58, %v222_v57 }
  0x1f   : > { %1574 = vmatprep.subr.bf16.mxu0 %v1573_v47  ;;  %v427_v4 = vld [vmem:[%s2124_s21 + $0x7e8] sm:$0xff]  ;;  %v433_v5 = vld [vmem:[%s2124_s21 + $0x818] sm:$0xff]  ;;  %v1579_v7 = vpack.c.bf16 %v420_v61, %v414_v59  ;;  %v1517_v8 = vpack.c.bf16 %v241_v63, %v235_v62  ;;  %v234_v9 = vld [vmem:[%s2124_s21 + $0x1e0] sm:$0xff] }
  0x20   : > { %v240_v10 = vld [vmem:[%s2124_s21 + $0x210] sm:$0xff]  ;;  %v426_v11 = vld [vmem:[%s2124_s21 + $0x7e0] sm:$0xff]  ;;  %v1581_v12 = vpack.c.bf16 %v433_v5, %v427_v4  ;;  %v247_v14 = vld [vmem:[%s2124_s21 + $0x248] sm:$0xff] }
  0x21   : > { %1512 = vmatpush1.bf16.msra.mxu1 %v1511_v54  ;;  %v432_v13 = vld [vmem:[%s2124_s21 + $0x810] sm:$0xff]  ;;  %v253_v15 = vld [vmem:[%s2124_s21 + $0x278] sm:$0xff]  ;;  %v439_v16 = vld [vmem:[%s2124_s21 + $0x848] sm:$0xff]  ;;  %v1519_v18 = vpack.c.bf16 %v240_v10, %v234_v9 }
  0x22   : > { %1576 = vmatpush1.bf16.msra.mxu0 %v1575_v55  ;;  %1514 = vmatprep.subr.bf16.mxu1 %v1513_v56  ;;  %v445_v17 = vld [vmem:[%s2124_s21 + $0x878] sm:$0xff]  ;;  %v1583_v19 = vpack.c.bf16 %v432_v13, %v426_v11  ;;  %v1521_v20 = vpack.c.bf16 %v253_v15, %v247_v14  ;;  %v246_v21 = vld [vmem:[%s2124_s21 + $0x240] sm:$0xff]  ;;  %v252_v22 = vld [vmem:[%s2124_s21 + $0x270] sm:$0xff] }
  0x23   : > { %1578 = vmatprep.subr.bf16.mxu0 %v1577_v60  ;;  %v438_v23 = vld [vmem:[%s2124_s21 + $0x840] sm:$0xff]  ;;  %v1585_v24 = vpack.c.bf16 %v445_v17, %v439_v16  ;;  %v444_v25 = vld [vmem:[%s2124_s21 + $0x870] sm:$0xff]  ;;  %v259_v26 = vld [vmem:[%s2124_s21 + $0x2a8] sm:$0xff]  ;;  %v1523_v30 = vpack.c.bf16 %v252_v22, %v246_v21 }
  0x24   : > { %v265_v27 = vld [vmem:[%s2124_s21 + $0x2d8] sm:$0xff]  ;;  %v451_v28 = vld [vmem:[%s2124_s21 + $0x8a8] sm:$0xff]  ;;  %v1587_v31 = vpack.c.bf16 %v444_v25, %v438_v23  ;;  %v258_v33 = vld [vmem:[%s2124_s21 + $0x2a0] sm:$0xff] }
  0x25   : > { %1516 = vmatpush1.bf16.msra.mxu1 %v1515_v6  ;;  %v457_v29 = vld [vmem:[%s2124_s21 + $0x8d8] sm:$0xff]  ;;  %v1525_v32 = vpack.c.bf16 %v265_v27, %v259_v26  ;;  %v264_v34 = vld [vmem:[%s2124_s21 + $0x2d0] sm:$0xff]  ;;  %v450_v35 = vld [vmem:[%s2124_s21 + $0x8a0] sm:$0xff] }
  0x26   : > { %1580 = vmatpush1.bf16.msra.mxu0 %v1579_v7  ;;  %1518 = vmatprep.subr.bf16.mxu1 %v1517_v8  ;;  %v1589_v36 = vpack.c.bf16 %v457_v29, %v451_v28  ;;  %v456_v37 = vld [vmem:[%s2124_s21 + $0x8d0] sm:$0xff]  ;;  %v271_v38 = vld [vmem:[%s2124_s21 + $0x308] sm:$0xff]  ;;  %v277_v39 = vld [vmem:[%s2124_s21 + $0x338] sm:$0xff]  ;;  %v1527_v42 = vpack.c.bf16 %v264_v34, %v258_v33 }
  0x27   : > { %1582 = vmatprep.subr.bf16.mxu0 %v1581_v12  ;;  %v463_v40 = vld [vmem:[%s2124_s21 + $0x908] sm:$0xff]  ;;  %v469_v41 = vld [vmem:[%s2124_s21 + $0x938] sm:$0xff]  ;;  %v1591_v43 = vpack.c.bf16 %v456_v37, %v450_v35  ;;  %v1529_v44 = vpack.c.bf16 %v277_v39, %v271_v38  ;;  %v270_v45 = vld [vmem:[%s2124_s21 + $0x300] sm:$0xff] }
  0x28   : > { %v276_v46 = vld [vmem:[%s2124_s21 + $0x330] sm:$0xff]  ;;  %v462_v47 = vld [vmem:[%s2124_s21 + $0x900] sm:$0xff]  ;;  %v1593_v48 = vpack.c.bf16 %v469_v41, %v463_v40  ;;  %v283_v50 = vld [vmem:[%s2124_s21 + $0x368] sm:$0xff] }
  0x29   : > { %1520 = vmatpush1.bf16.msra.mxu1 %v1519_v18  ;;  %v468_v49 = vld [vmem:[%s2124_s21 + $0x930] sm:$0xff]  ;;  %v289_v51 = vld [vmem:[%s2124_s21 + $0x398] sm:$0xff]  ;;  %v475_v52 = vld [vmem:[%s2124_s21 + $0x968] sm:$0xff]  ;;  %v1531_v54 = vpack.c.bf16 %v276_v46, %v270_v45 }
  0x2a   : > { %1584 = vmatpush1.bf16.msra.mxu0 %v1583_v19  ;;  %1522 = vmatprep.subr.bf16.mxu1 %v1521_v20  ;;  %v481_v53 = vld [vmem:[%s2124_s21 + $0x998] sm:$0xff]  ;;  %v1595_v55 = vpack.c.bf16 %v468_v49, %v462_v47  ;;  %v1533_v56 = vpack.c.bf16 %v289_v51, %v283_v50  ;;  %v282_v57 = vld [vmem:[%s2124_s21 + $0x360] sm:$0xff]  ;;  %v288_v58 = vld [vmem:[%s2124_s21 + $0x390] sm:$0xff] }
  0x2b   : > { %1586 = vmatprep.subr.bf16.mxu0 %v1585_v24  ;;  %v474_v59 = vld [vmem:[%s2124_s21 + $0x960] sm:$0xff]  ;;  %v1597_v60 = vpack.c.bf16 %v481_v53, %v475_v52  ;;  %v480_v61 = vld [vmem:[%s2124_s21 + $0x990] sm:$0xff]  ;;  %v295_v62 = vld [vmem:[%s2124_s21 + $0x3c8] sm:$0xff]  ;;  %v1535_v6 = vpack.c.bf16 %v288_v58, %v282_v57 }
  0x2c   : > { %v301_v63 = vld [vmem:[%s2124_s21 + $0x3f8] sm:$0xff]  ;;  %v487_v4 = vld [vmem:[%s2124_s21 + $0x9c8] sm:$0xff]  ;;  %v1599_v7 = vpack.c.bf16 %v480_v61, %v474_v59  ;;  %v294_v9 = vld [vmem:[%s2124_s21 + $0x3c0] sm:$0xff] }
  0x2d   : > { %1524 = vmatpush1.bf16.msra.mxu1 %v1523_v30  ;;  %v493_v5 = vld [vmem:[%s2124_s21 + $0x9f8] sm:$0xff]  ;;  %v1537_v8 = vpack.c.bf16 %v301_v63, %v295_v62  ;;  %v300_v10 = vld [vmem:[%s2124_s21 + $0x3f0] sm:$0xff]  ;;  %v486_v11 = vld [vmem:[%s2124_s21 + $0x9c0] sm:$0xff] }
  0x2e   : > { %1588 = vmatpush1.bf16.msra.mxu0 %v1587_v31  ;;  %1526 = vmatprep.subr.bf16.mxu1 %v1525_v32  ;;  %v1601_v12 = vpack.c.bf16 %v493_v5, %v487_v4  ;;  %v492_v13 = vld [vmem:[%s2124_s21 + $0x9f0] sm:$0xff]  ;;  %v307_v14 = vld [vmem:[%s2124_s21 + $0x428] sm:$0xff]  ;;  %v313_v15 = vld [vmem:[%s2124_s21 + $0x458] sm:$0xff]  ;;  %v1539_v18 = vpack.c.bf16 %v300_v10, %v294_v9 }
  0x2f   : > { %1590 = vmatprep.subr.bf16.mxu0 %v1589_v36  ;;  %v499_v16 = vld [vmem:[%s2124_s21 + $0xa28] sm:$0xff]  ;;  %v505_v17 = vld [vmem:[%s2124_s21 + $0xa58] sm:$0xff]  ;;  %v1603_v19 = vpack.c.bf16 %v492_v13, %v486_v11  ;;  %v1541_v20 = vpack.c.bf16 %v313_v15, %v307_v14  ;;  %v306_v21 = vld [vmem:[%s2124_s21 + $0x420] sm:$0xff] }
  0x30   : > { %v312_v22 = vld [vmem:[%s2124_s21 + $0x450] sm:$0xff]  ;;  %v498_v23 = vld [vmem:[%s2124_s21 + $0xa20] sm:$0xff]  ;;  %v1605_v24 = vpack.c.bf16 %v505_v17, %v499_v16  ;;  %v319_v26 = vld [vmem:[%s2124_s21 + $0x488] sm:$0xff] }
  0x31   : > { %1528 = vmatpush1.bf16.msra.mxu1 %v1527_v42  ;;  %v504_v25 = vld [vmem:[%s2124_s21 + $0xa50] sm:$0xff]  ;;  %v325_v27 = vld [vmem:[%s2124_s21 + $0x4b8] sm:$0xff]  ;;  %v511_v28 = vld [vmem:[%s2124_s21 + $0xa88] sm:$0xff]  ;;  %v1543_v30 = vpack.c.bf16 %v312_v22, %v306_v21 }
  0x32   : > { %1592 = vmatpush1.bf16.msra.mxu0 %v1591_v43  ;;  %1530 = vmatprep.subr.bf16.mxu1 %v1529_v44  ;;  %v517_v29 = vld [vmem:[%s2124_s21 + $0xab8] sm:$0xff]  ;;  %v1607_v31 = vpack.c.bf16 %v504_v25, %v498_v23  ;;  %v1545_v32 = vpack.c.bf16 %v325_v27, %v319_v26  ;;  %v318_v33 = vld [vmem:[%s2124_s21 + $0x480] sm:$0xff]  ;;  %v324_v34 = vld [vmem:[%s2124_s21 + $0x4b0] sm:$0xff] }
  0x33   : > { %1594 = vmatprep.subr.bf16.mxu0 %v1593_v48  ;;  %v510_v35 = vld [vmem:[%s2124_s21 + $0xa80] sm:$0xff]  ;;  %v1609_v36 = vpack.c.bf16 %v517_v29, %v511_v28  ;;  %v516_v37 = vld [vmem:[%s2124_s21 + $0xab0] sm:$0xff]  ;;  %v331_v38 = vld [vmem:[%s2124_s21 + $0x4e8] sm:$0xff]  ;;  %v1547_v42 = vpack.c.bf16 %v324_v34, %v318_v33  ;;  %v2069_v28 = vmov 0  }
  0x34   : > { %v337_v39 = vld [vmem:[%s2124_s21 + $0x518] sm:$0xff]  ;;  %v523_v40 = vld [vmem:[%s2124_s21 + $0xae8] sm:$0xff]  ;;  %v1611_v43 = vpack.c.bf16 %v516_v37, %v510_v35  ;;  %v330_v45 = vld [vmem:[%s2124_s21 + $0x4e0] sm:$0xff]  ;;  %2030 = vset.pattern.permute.xlu0 %v2069_v28 }
  0x35   : > { %1532 = vmatpush1.bf16.msra.mxu1 %v1531_v54  ;;  %v529_v41 = vld [vmem:[%s2124_s21 + $0xb18] sm:$0xff]  ;;  %v1549_v44 = vpack.c.bf16 %v337_v39, %v331_v38  ;;  %v336_v46 = vld [vmem:[%s2124_s21 + $0x510] sm:$0xff]  ;;  %v522_v47 = vld [vmem:[%s2124_s21 + $0xae0] sm:$0xff] }
  0x36   : > { %1596 = vmatpush1.bf16.msra.mxu0 %v1595_v55  ;;  %1534 = vmatprep.subr.bf16.mxu1 %v1533_v56  ;;  %v1613_v48 = vpack.c.bf16 %v529_v41, %v523_v40  ;;  %v528_v49 = vld [vmem:[%s2124_s21 + $0xb10] sm:$0xff]  ;;  %v343_v50 = vld [vmem:[%s2124_s21 + $0x548] sm:$0xff]  ;;  %v349_v51 = vld [vmem:[%s2124_s21 + $0x578] sm:$0xff]  ;;  %v1551_v54 = vpack.c.bf16 %v336_v46, %v330_v45 }
  0x37   : > { %1598 = vmatprep.subr.bf16.mxu0 %v1597_v60  ;;  %v535_v52 = vld [vmem:[%s2124_s21 + $0xb48] sm:$0xff]  ;;  %v541_v53 = vld [vmem:[%s2124_s21 + $0xb78] sm:$0xff]  ;;  %v1615_v55 = vpack.c.bf16 %v528_v49, %v522_v47  ;;  %v1553_v56 = vpack.c.bf16 %v349_v51, %v343_v50  ;;  %v342_v57 = vld [vmem:[%s2124_s21 + $0x540] sm:$0xff] }
  0x38   : > { %v348_v58 = vld [vmem:[%s2124_s21 + $0x570] sm:$0xff]  ;;  %v534_v59 = vld [vmem:[%s2124_s21 + $0xb40] sm:$0xff]  ;;  %v1617_v60 = vpack.c.bf16 %v541_v53, %v535_v52  ;;  %v355_v62 = vld [vmem:[%s2124_s21 + $0x5a8] sm:$0xff] }
  0x39   : > { %1536 = vmatpush1.bf16.msra.mxu1 %v1535_v6  ;;  %v540_v61 = vld [vmem:[%s2124_s21 + $0xb70] sm:$0xff]  ;;  %v361_v63 = vld [vmem:[%s2124_s21 + $0x5d8] sm:$0xff]  ;;  %v547_v4 = vld [vmem:[%s2124_s21 + $0xba8] sm:$0xff]  ;;  %v1555_v6 = vpack.c.bf16 %v348_v58, %v342_v57 }
  0x3a   : > { %1600 = vmatpush1.bf16.msra.mxu0 %v1599_v7  ;;  %1538 = vmatprep.subr.bf16.mxu1 %v1537_v8  ;;  %v553_v5 = vld [vmem:[%s2124_s21 + $0xbd8] sm:$0xff]  ;;  %v1619_v7 = vpack.c.bf16 %v540_v61, %v534_v59  ;;  %v1557_v8 = vpack.c.bf16 %v361_v63, %v355_v62  ;;  %v354_v9 = vld [vmem:[%s2124_s21 + $0x5a0] sm:$0xff]  ;;  %v360_v10 = vld [vmem:[%s2124_s21 + $0x5d0] sm:$0xff] }
  0x3b   : > { %1602 = vmatprep.subr.bf16.mxu0 %v1601_v12  ;;  %v546_v11 = vld [vmem:[%s2124_s21 + $0xba0] sm:$0xff]  ;;  %v1621_v12 = vpack.c.bf16 %v553_v5, %v547_v4  ;;  %v552_v13 = vld [vmem:[%s2124_s21 + $0xbd0] sm:$0xff]  ;;  %v177_v14 = vld [vmem:[%s2124_s21 + $0x18] sm:$0xff] }
  0x3c   : > { %v183_v15 = vld [vmem:[%s2124_s21 + $0x48] sm:$0xff]  ;;  %v565_v17 = vld [vmem:[%s2124_s21 + $0xc38] sm:$0xff]  ;;  %v558_v21 = vld [vmem:[%s2124_s21 + $0xc00] sm:$0xff] }
  0x3d   : > { %1540 = vmatpush1.bf16.msra.mxu1 %v1539_v18  ;;  %v559_v16 = vld [vmem:[%s2124_s21 + $0xc08] sm:$0xff]  ;;  %v1559_v18 = vpack.c.bf16 %v360_v10, %v354_v9  ;;  %v176_v22 = vld [vmem:[%s2124_s21 + $0x10] sm:$0xff]  ;;  %v182_v23 = vld [vmem:[%s2124_s21 + $0x40] sm:$0xff] }
  0x3e   : > { %1604 = vmatpush1.bf16.msra.mxu0 %v1603_v19  ;;  %1542 = vmatprep.subr.bf16.mxu1 %v1541_v20  ;;  %v1623_v19 = vpack.c.bf16 %v552_v13, %v546_v11  ;;  %v1665_v20 = vpack.c.bf16 %v183_v15, %v177_v14  ;;  %v564_v25 = vld [vmem:[%s2124_s21 + $0xc30] sm:$0xff]  ;;  %v189_v26 = vld [vmem:[%s2124_s21 + $0x78] sm:$0xff]  ;;  %v195_v27 = vld [vmem:[%s2124_s21 + $0xa8] sm:$0xff] }
  0x3f   : > { %1606 = vmatprep.subr.bf16.mxu0 %v1605_v24  ;;  %v1625_v24 = vpack.c.bf16 %v565_v17, %v559_v16  ;;  %v571_v29 = vld [vmem:[%s2124_s21 + $0xc68] sm:$0xff]  ;;  %v1627_v33 = vpack.c.bf16 %v564_v25, %v558_v21  ;;  %v1669_v34 = vpack.c.bf16 %v195_v27, %v189_v26  ;;  %v570_v35 = vld [vmem:[%s2124_s21 + $0xc60] sm:$0xff]  ;;  %v576_v39 = vld [vmem:[%s2124_s21 + $0xc90] sm:$0xff] }
  0x40   : > { %v194_v37 = vld [vmem:[%s2124_s21 + $0xa0] sm:$0xff]  ;;  %v201_v40 = vld [vmem:[%s2124_s21 + $0xd8] sm:$0xff]  ;;  %v207_v41 = vld [vmem:[%s2124_s21 + $0x108] sm:$0xff]  ;;  %v1631_v46 = vpack.c.bf16 %v576_v39, %v570_v35 }
  0x41   : > { %1544 = vmatpush1.bf16.msra.mxu1 %v1543_v30  ;;  %v577_v30 = vld [vmem:[%s2124_s21 + $0xc98] sm:$0xff]  ;;  %v1673_v47 = vpack.c.bf16 %v207_v41, %v201_v40  ;;  %v200_v49 = vld [vmem:[%s2124_s21 + $0xd0] sm:$0xff]  ;;  %v206_v50 = vld [vmem:[%s2124_s21 + $0x100] sm:$0xff] }
  0x42   : > { %1608 = vmatpush1.bf16.msra.mxu0 %v1607_v31  ;;  %1546 = vmatprep.subr.bf16.mxu1 %v1545_v32  ;;  %v2269_v31 = vld [vmem:[%s2701_s0 + $0x10] sm:$0xff]  ;;  %v1667_v32 = vpack.c.bf16 %v182_v23, %v176_v22  ;;  %v1629_v38 = vpack.c.bf16 %v577_v30, %v571_v29  ;;  %v213_v52 = vld [vmem:[%s2124_s21 + $0x138] sm:$0xff]  ;;  %v219_v53 = vld [vmem:[%s2124_s21 + $0x168] sm:$0xff] }
  0x43   : > { %1610 = vmatprep.subr.bf16.mxu0 %v1609_v36  ;;  %v188_v36 = vld [vmem:[%s2124_s21 + $0x70] sm:$0xff]  ;;  %v1677_v57 = vpack.c.bf16 %v219_v53, %v213_v52  ;;  %v594_v58 = vld [vmem:[%s2124_s21 + $0xd20] sm:$0xff]  ;;  %v225_v63 = vld [vmem:[%s2124_s21 + $0x198] sm:$0xff] }
  0x44   : > { %v1671_v45 = vpack.c.bf16 %v194_v37, %v188_v36  ;;  %v588_v51 = vld [vmem:[%s2124_s21 + $0xcf0] sm:$0xff]  ;;  %v231_v4 = vld [vmem:[%s2124_s21 + $0x1c8] sm:$0xff]  ;;  %v606_v10 = vld [vmem:[%s2124_s21 + $0xd80] sm:$0xff] }
  0x45   : > { %1548 = vmatpush1.bf16.msra.mxu1 %v1547_v42  ;;  %v2279_v42 = vcombine.high %v2269_v31, %v2269_v31  ;;  %v212_v59 = vld [vmem:[%s2124_s21 + $0x130] sm:$0xff]  ;;  %v607_v5 = vld [vmem:[%s2124_s21 + $0xd88] sm:$0xff]  ;;  %v1681_v9 = vpack.c.bf16 %v231_v4, %v225_v63  ;;  %v237_v15 = vld [vmem:[%s2124_s21 + $0x1f8] sm:$0xff] }
  0x46   : > { %1612 = vmatpush1.bf16.msra.mxu0 %v1611_v43  ;;  %1550 = vmatprep.subr.bf16.mxu1 %v1549_v44  ;;  %v583_v43 = vld [vmem:[%s2124_s21 + $0xcc8] sm:$0xff]  ;;  %v589_v44 = vld [vmem:[%s2124_s21 + $0xcf8] sm:$0xff]  ;;  %v600_v62 = vld [vmem:[%s2124_s21 + $0xd50] sm:$0xff] }
  0x47   : > { %1614 = vmatprep.subr.bf16.mxu0 %v1613_v48  ;;  %v582_v48 = vld [vmem:[%s2124_s21 + $0xcc0] sm:$0xff]  ;;  %v224_v11 = vld [vmem:[%s2124_s21 + $0x190] sm:$0xff]  ;;  %v243_v16 = vld [vmem:[%s2124_s21 + $0x228] sm:$0xff] }
  0x48   : > { %v612_v14 = vld [vmem:[%s2124_s21 + $0xdb0] sm:$0xff]  ;;  %v619_v17 = vld [vmem:[%s2124_s21 + $0xde8] sm:$0xff]  ;;  %v1685_v21 = vpack.c.bf16 %v243_v16, %v237_v15  ;;  %v618_v22 = vld [vmem:[%s2124_s21 + $0xde0] sm:$0xff] }
  0x49   : > { %1552 = vmatpush1.bf16.msra.mxu1 %v1551_v54  ;;  %v601_v54 = vld [vmem:[%s2124_s21 + $0xd58] sm:$0xff]  ;;  %v236_v23 = vld [vmem:[%s2124_s21 + $0x1f0] sm:$0xff]  ;;  %v255_v28 = vld [vmem:[%s2124_s21 + $0x288] sm:$0xff] }
  0x4a   : > { %1616 = vmatpush1.bf16.msra.mxu0 %v1615_v55  ;;  %1554 = vmatprep.subr.bf16.mxu1 %v1553_v56  ;;  %v1675_v55 = vpack.c.bf16 %v206_v50, %v200_v49  ;;  %v1635_v56 = vpack.c.bf16 %v588_v51, %v582_v48  ;;  %v624_v26 = vld [vmem:[%s2124_s21 + $0xe10] sm:$0xff]  ;;  %v249_v27 = vld [vmem:[%s2124_s21 + $0x258] sm:$0xff]  ;;  %v631_v29 = vld [vmem:[%s2124_s21 + $0xe48] sm:$0xff] }
  0x4b   : > { %1618 = vmatprep.subr.bf16.mxu0 %v1617_v60  ;;  %v218_v60 = vld [vmem:[%s2124_s21 + $0x160] sm:$0xff]  ;;  %v637_v30 = vld [vmem:[%s2124_s21 + $0xe78] sm:$0xff]  ;;  %v248_v36 = vld [vmem:[%s2124_s21 + $0x250] sm:$0xff] }
  0x4c   : > { %v630_v35 = vld [vmem:[%s2124_s21 + $0xe40] sm:$0xff]  ;;  %v636_v39 = vld [vmem:[%s2124_s21 + $0xe70] sm:$0xff]  ;;  %v261_v40 = vld [vmem:[%s2124_s21 + $0x2b8] sm:$0xff] }
  0x4d   : > { %1556 = vmatpush1.bf16.msra.mxu1 %v1555_v6  ;;  %v613_v6 = vld [vmem:[%s2124_s21 + $0xdb8] sm:$0xff]  ;;  %v254_v37 = vld [vmem:[%s2124_s21 + $0x280] sm:$0xff]  ;;  %v267_v41 = vld [vmem:[%s2124_s21 + $0x2e8] sm:$0xff] }
  0x4e   : > { %1620 = vmatpush1.bf16.msra.mxu0 %v1619_v7  ;;  %1558 = vmatprep.subr.bf16.mxu1 %v1557_v8  ;;  %v1679_v7 = vpack.c.bf16 %v218_v60, %v212_v59  ;;  %v1639_v8 = vpack.c.bf16 %v600_v62, %v594_v58  ;;  %v1641_v13 = vpack.c.bf16 %v613_v6, %v607_v5  ;;  %v642_v48 = vld [vmem:[%s2124_s21 + $0xea0] sm:$0xff]  ;;  %v260_v49 = vld [vmem:[%s2124_s21 + $0x2b0] sm:$0xff]  ;;  %v273_v52 = vld [vmem:[%s2124_s21 + $0x318] sm:$0xff] }
  0x4f   : > { %1622 = vmatprep.subr.bf16.mxu0 %v1621_v12  ;;  %v230_v12 = vld [vmem:[%s2124_s21 + $0x1c0] sm:$0xff]  ;;  %v648_v51 = vld [vmem:[%s2124_s21 + $0xed0] sm:$0xff]  ;;  %v279_v53 = vld [vmem:[%s2124_s21 + $0x348] sm:$0xff] }
  0x50   : > { %v266_v50 = vld [vmem:[%s2124_s21 + $0x2e0] sm:$0xff]  ;;  %v272_v59 = vld [vmem:[%s2124_s21 + $0x310] sm:$0xff]  ;;  %v285_v63 = vld [vmem:[%s2124_s21 + $0x378] sm:$0xff] }
  0x51   : > { %1560 = vmatpush1.bf16.msra.mxu1 %v1559_v18  ;;  %v625_v18 = vld [vmem:[%s2124_s21 + $0xe18] sm:$0xff]  ;;  %v654_v58 = vld [vmem:[%s2124_s21 + $0xf00] sm:$0xff]  ;;  %v660_v62 = vld [vmem:[%s2124_s21 + $0xf30] sm:$0xff] }
  0x52   : > { %1624 = vmatpush1.bf16.msra.mxu0 %v1623_v19  ;;  %1666 = vmatprep.subr.bf16.mxu1 %v1665_v20  ;;  %v1683_v19 = vpack.c.bf16 %v230_v12, %v224_v11  ;;  %v1643_v20 = vpack.c.bf16 %v612_v14, %v606_v10  ;;  %v1645_v25 = vpack.c.bf16 %v625_v18, %v619_v17  ;;  %v278_v60 = vld [vmem:[%s2124_s21 + $0x340] sm:$0xff]  ;;  %v291_v4 = vld [vmem:[%s2124_s21 + $0x3a8] sm:$0xff]  ;;  %v673_v6 = vld [vmem:[%s2124_s21 + $0xf98] sm:$0xff] }
  0x53   : > { %1626 = vmatprep.subr.bf16.mxu0 %v1625_v24  ;;  %v242_v24 = vld [vmem:[%s2124_s21 + $0x220] sm:$0xff]  ;;  %v667_v5 = vld [vmem:[%s2124_s21 + $0xf68] sm:$0xff]  ;;  %v284_v11 = vld [vmem:[%s2124_s21 + $0x370] sm:$0xff] }
  0x54   : > { %785 = vmatmul.mubr.f32.vlgmr.msra.gmra.mrb[0].mxu1 %v2101_v0  ;;  %v1633_v0 = vpack.c.bf16 %v589_v44, %v583_v43  ;;  %v643_v43 = vld [vmem:[%s2124_s21 + $0xea8] sm:$0xff]  ;;  %v649_v44 = vld [vmem:[%s2124_s21 + $0xed8] sm:$0xff]  ;;  %v666_v10 = vld [vmem:[%s2124_s21 + $0xf60] sm:$0xff] }
  0x55   : > { %856 = vmatmul.mubr.f32.vlgmr.msra.gmra.mrb[0].mxu0 %v2106_v1  ;;  %1668 = vmatpush1.bf16.msra.mxu1 %v1667_v32  ;;  %v595_v1 = vld [vmem:[%s2124_s21 + $0xd28] sm:$0xff]  ;;  %v1687_v32 = vpack.c.bf16 %v242_v24, %v236_v23  ;;  %v290_v12 = vld [vmem:[%s2124_s21 + $0x3a0] sm:$0xff]  ;;  %v672_v14 = vld [vmem:[%s2124_s21 + $0xf90] sm:$0xff] }
  0x56   : > { %1628 = vmatpush1.bf16.msra.mxu0 %v1627_v33  ;;  %1670 = vmatprep.subr.bf16.mxu1 %v1669_v34  ;;  %v1637_v61 = vpack.c.bf16 %v601_v54, %v595_v1  ;;  %v1647_v33 = vpack.c.bf16 %v624_v26, %v618_v22  ;;  %v1689_v34 = vpack.c.bf16 %v255_v28, %v249_v27  ;;  %v655_v1 = vld [vmem:[%s2124_s21 + $0xf08] sm:$0xff]  ;;  %v661_v54 = vld [vmem:[%s2124_s21 + $0xf38] sm:$0xff]  ;;  %v178_v28 = vld [vmem:[%s2124_s21 + $0x20] sm:$0xff] }
  0x57   : > { %1630 = vmatprep.subr.bf16.mxu0 %v1629_v38  ;;  %1482 = vmatprep.mubr.msk.f32.mxu0 %vm698_vm0, %v2279_v42  ;;  %v1649_v38 = vpack.c.bf16 %v637_v30, %v631_v29  ;;  %v297_v15 = vld [vmem:[%s2124_s21 + $0x3d8] sm:$0xff]  ;;  %v303_v16 = vld [vmem:[%s2124_s21 + $0x408] sm:$0xff]  ;;  %v1703_v17 = vpack.c.bf16 %v290_v12, %v284_v11  ;;  %v1663_v18 = vpack.c.bf16 %v672_v14, %v666_v10  ;;  %v184_v29 = vld [vmem:[%s2124_s21 + $0x50] sm:$0xff] }
  0x58   : > { %997 = vmatprep.mubr.f32.mxu1 %v2110_v2  ;;  %v309_v22 = vld [vmem:[%s2124_s21 + $0x438] sm:$0xff]  ;;  %v315_v23 = vld [vmem:[%s2124_s21 + $0x468] sm:$0xff]  ;;  %v308_v30 = vld [vmem:[%s2124_s21 + $0x430] sm:$0xff] }
  0x59   : > { %1672 = vmatpush1.bf16.msra.mxu1 %v1671_v45  ;;  %v1691_v45 = vpack.c.bf16 %v254_v37, %v248_v36  ;;  %v679_v24 = vld [vmem:[%s2124_s21 + $0xfc8] sm:$0xf]  ;;  %v185_v26 = vld [vmem:[%s2124_s21 + $0x58] sm:$0xff]  ;;  %v678_v36 = vld [vmem:[%s2124_s21 + $0xfc0] sm:$0xf] }
  0x5a   : > { %1632 = vmatpush1.bf16.msra.mxu0 %v1631_v46  ;;  %1674 = vmatprep.subr.bf16.mxu1 %v1673_v47  ;;  %v1651_v46 = vpack.c.bf16 %v636_v39, %v630_v35  ;;  %v1693_v47 = vpack.c.bf16 %v267_v41, %v261_v40  ;;  %v197_v35 = vld [vmem:[%s2124_s21 + $0xb8] sm:$0xff]  ;;  %v327_v39 = vld [vmem:[%s2124_s21 + $0x4c8] sm:$0xff]  ;;  %v1835_v40 = vpack.c.bf16 %v184_v29, %v178_v28  ;;  %v238_v28 = vld [vmem:[%s2124_s21 + $0x200] sm:$0xff] }
  0x5b   : > { %1634 = vmatprep.subr.bf16.mxu0 %v1633_v0  ;;  %v1653_v0 = vpack.c.bf16 %v649_v44, %v643_v43  ;;  %v190_v44 = vld [vmem:[%s2124_s21 + $0x80] sm:$0xff]  ;;  %v233_v10 = vld [vmem:[%s2124_s21 + $0x1d8] sm:$0xff]  ;;  %v363_v12 = vld [vmem:[%s2124_s21 + $0x5e8] sm:$0xff] }
  0x5c   : > { %v357_v11 = vld [vmem:[%s2124_s21 + $0x5b8] sm:$0xff]  ;;  %v244_v29 = vld [vmem:[%s2124_s21 + $0x230] sm:$0xff] }
  0x5d   : > { %1676 = vmatpush1.bf16.msra.mxu1 %v1675_v55  ;;  %v1695_v55 = vpack.c.bf16 %v266_v50, %v260_v49  ;;  %v203_v49 = vld [vmem:[%s2124_s21 + $0xe8] sm:$0xff]  ;;  %v209_v50 = vld [vmem:[%s2124_s21 + $0x118] sm:$0xff] }
  0x5e   : > { %1636 = vmatpush1.bf16.msra.mxu0 %v1635_v56  ;;  %1678 = vmatprep.subr.bf16.mxu1 %v1677_v57  ;;  %v1655_v56 = vpack.c.bf16 %v648_v51, %v642_v48  ;;  %v1697_v57 = vpack.c.bf16 %v279_v53, %v273_v52  ;;  %v326_v48 = vld [vmem:[%s2124_s21 + $0x4c0] sm:$0xff]  ;;  %v339_v51 = vld [vmem:[%s2124_s21 + $0x528] sm:$0xff] }
  0x5f   : > { %1638 = vmatprep.subr.bf16.mxu0 %v1637_v61  ;;  %v1657_v61 = vpack.c.bf16 %v661_v54, %v655_v1  ;;  %v1841_v1 = vpack.c.bf16 %v209_v50, %v203_v49  ;;  %v202_v54 = vld [vmem:[%s2124_s21 + $0xe0] sm:$0xff]  ;;  %v269_v49 = vld [vmem:[%s2124_s21 + $0x2f8] sm:$0xff] }
  0x60   : > { %v393_v50 = vld [vmem:[%s2124_s21 + $0x6d8] sm:$0xff] }
  0x61   : > { %1680 = vmatpush1.bf16.msra.mxu1 %v1679_v7  ;;  %v1699_v7 = vpack.c.bf16 %v278_v60, %v272_v59  ;;  %v221_v59 = vld [vmem:[%s2124_s21 + $0x178] sm:$0xff] }
  0x62   : > { %1640 = vmatpush1.bf16.msra.mxu0 %v1639_v8  ;;  %1682 = vmatprep.subr.bf16.mxu1 %v1681_v9  ;;  %v1659_v8 = vpack.c.bf16 %v660_v62, %v654_v58  ;;  %v1701_v9 = vpack.c.bf16 %v291_v4, %v285_v63  ;;  %v215_v58 = vld [vmem:[%s2124_s21 + $0x148] sm:$0xff]  ;;  %v345_v60 = vld [vmem:[%s2124_s21 + $0x558] sm:$0xff]  ;;  %v214_v4 = vld [vmem:[%s2124_s21 + $0x140] sm:$0xff] }
  0x63   : > { %1642 = vmatprep.subr.bf16.mxu0 %v1641_v13  ;;  %v1661_v13 = vpack.c.bf16 %v673_v6, %v667_v5  ;;  %v1845_v63 = vpack.c.bf16 %v221_v59, %v215_v58  ;;  %v220_v5 = vld [vmem:[%s2124_s21 + $0x170] sm:$0xff]  ;;  %v275_v58 = vld [vmem:[%s2124_s21 + $0x328] sm:$0xff]  ;;  %v281_v59 = vld [vmem:[%s2124_s21 + $0x358] sm:$0xff] }
  0x64   : > { %v344_v6 = vld [vmem:[%s2124_s21 + $0x550] sm:$0xff] }
  0x65   : > { %1684 = vmatpush1.bf16.msra.mxu1 %v1683_v19  ;;  %v1705_v19 = vpack.c.bf16 %v303_v16, %v297_v15  ;;  %v226_v16 = vld [vmem:[%s2124_s21 + $0x1a0] sm:$0xff] }
  0x66   : > { %1644 = vmatpush1.bf16.msra.mxu0 %v1643_v20  ;;  %1686 = vmatprep.subr.bf16.mxu1 %v1685_v21  ;;  %v296_v20 = vld [vmem:[%s2124_s21 + $0x3d0] sm:$0xff]  ;;  %v302_v21 = vld [vmem:[%s2124_s21 + $0x400] sm:$0xff] }
  0x67   : > { %1646 = vmatprep.subr.bf16.mxu0 %v1645_v25  ;;  %v179_v25 = vld [vmem:[%s2124_s21 + $0x28] sm:$0xff]  ;;  %v1707_v27 = vpack.c.bf16 %v302_v21, %v296_v20  ;;  %v362_v20 = vld [vmem:[%s2124_s21 + $0x5e0] sm:$0xff] }
  0x68   : > { %v1833_v37 = vpack.c.bf16 %v185_v26, %v179_v25  ;;  %v239_v21 = vld [vmem:[%s2124_s21 + $0x208] sm:$0xff] }
  0x69   : > { %1688 = vmatpush1.bf16.msra.mxu1 %v1687_v32  ;;  %v1709_v32 = vpack.c.bf16 %v315_v23, %v309_v22  ;;  %v245_v22 = vld [vmem:[%s2124_s21 + $0x238] sm:$0xff] }
  0x6a   : > { %1648 = vmatpush1.bf16.msra.mxu0 %v1647_v33  ;;  %1690 = vmatprep.subr.bf16.mxu1 %v1689_v34  ;;  %v314_v33 = vld [vmem:[%s2124_s21 + $0x460] sm:$0xff]  ;;  %v191_v34 = vld [vmem:[%s2124_s21 + $0x88] sm:$0xff]  ;;  %v369_v23 = vld [vmem:[%s2124_s21 + $0x618] sm:$0xff] }
  0x6b   : > { %1650 = vmatprep.subr.bf16.mxu0 %v1649_v38  ;;  %v321_v38 = vld [vmem:[%s2124_s21 + $0x498] sm:$0xff]  ;;  %v1711_v41 = vpack.c.bf16 %v314_v33, %v308_v30  ;;  %v1837_v43 = vpack.c.bf16 %v197_v35, %v191_v34  ;;  %v368_v30 = vld [vmem:[%s2124_s21 + $0x610] sm:$0xff]  ;;  %v374_v33 = vld [vmem:[%s2124_s21 + $0x640] sm:$0xff] }
  0x6c   : > { %v251_v34 = vld [vmem:[%s2124_s21 + $0x268] sm:$0xff]  ;;  %v257_v35 = vld [vmem:[%s2124_s21 + $0x298] sm:$0xff] }
  0x6d   : > { %1692 = vmatpush1.bf16.msra.mxu1 %v1691_v45  ;;  %v196_v45 = vld [vmem:[%s2124_s21 + $0xb0] sm:$0xff] }
  0x6e   : > { %1652 = vmatpush1.bf16.msra.mxu0 %v1651_v46  ;;  %1694 = vmatprep.subr.bf16.mxu1 %v1693_v47  ;;  %v320_v46 = vld [vmem:[%s2124_s21 + $0x490] sm:$0xff]  ;;  %v1713_v47 = vpack.c.bf16 %v327_v39, %v321_v38  ;;  %v1839_v52 = vpack.c.bf16 %v196_v45, %v190_v44  ;;  %v684_v38 = vld [vmem:[%s2702_s1] sm:$0xf]  ;;  %v1855_v39 = vpack.c.bf16 %v244_v29, %v238_v28 }
  0x6f   : > { %1654 = vmatprep.subr.bf16.mxu0 %v1653_v0  ;;  %v333_v0 = vld [vmem:[%s2124_s21 + $0x4f8] sm:$0xff]  ;;  %v1715_v53 = vpack.c.bf16 %v326_v48, %v320_v46  ;;  %687 = vperm.xlu0 %2030, %v684_v38   ;;  %v256_v44 = vld [vmem:[%s2124_s21 + $0x290] sm:$0xff]  ;;  %v263_v48 = vld [vmem:[%s2124_s21 + $0x2c8] sm:$0xff] }
  0x70   : > { %v380_v45 = vld [vmem:[%s2124_s21 + $0x670] sm:$0xff]  ;;  %v298_v28 = vld [vmem:[%s2124_s21 + $0x3e0] sm:$0xff] }
  0x71   : > { %1696 = vmatpush1.bf16.msra.mxu1 %v1695_v55  ;;  %v208_v55 = vld [vmem:[%s2124_s21 + $0x110] sm:$0xff] }
  0x72   : > { %1656 = vmatpush1.bf16.msra.mxu0 %v1655_v56  ;;  %1698 = vmatprep.subr.bf16.mxu1 %v1697_v57  ;;  %v1717_v56 = vpack.c.bf16 %v339_v51, %v333_v0  ;;  %v338_v57 = vld [vmem:[%s2124_s21 + $0x520] sm:$0xff]  ;;  %v399_v0 = vld [vmem:[%s2124_s21 + $0x708] sm:$0xff]  ;;  %v304_v29 = vld [vmem:[%s2124_s21 + $0x410] sm:$0xff] }
  0x73   : > { %1658 = vmatprep.subr.bf16.mxu0 %v1657_v61  ;;  %v1843_v61 = vpack.c.bf16 %v208_v55, %v202_v54  ;;  %v2424_v51 = vld [vmem:[%s2701_s0] sm:$0xff]  ;;  %v268_v55 = vld [vmem:[%s2124_s21 + $0x2f0] sm:$0xff]  ;;  %v1875_v38 = vpack.c.bf16 %v304_v29, %v298_v28 }
  0x74   : > { %v262_v54 = vld [vmem:[%s2124_s21 + $0x2c0] sm:$0xff]  ;;  %v364_v28 = vld [vmem:[%s2124_s21 + $0x5f0] sm:$0xff] }
  0x75   : > { %1700 = vmatpush1.bf16.msra.mxu1 %v1699_v7  ;;  %v488_v29 = vld [vmem:[%s2124_s21 + $0x9d0] sm:$0xff] }
  0x76   : > { %1660 = vmatpush1.bf16.msra.mxu0 %v1659_v8  ;;  %1702 = vmatprep.subr.bf16.mxu1 %v1701_v9  ;;  %v350_v8 = vld [vmem:[%s2124_s21 + $0x580] sm:$0xff]  ;;  %v227_v9 = vld [vmem:[%s2124_s21 + $0x1a8] sm:$0xff] }
  0x77   : > { %1662 = vmatprep.subr.bf16.mxu0 %v1661_v13  ;;  %v1847_v13 = vpack.c.bf16 %v220_v5, %v214_v4  ;;  %v1723_v14 = vpack.c.bf16 %v350_v8, %v344_v6  ;;  %v1849_v15 = vpack.c.bf16 %v233_v10, %v227_v9  ;;  %v274_v4 = vld [vmem:[%s2124_s21 + $0x320] sm:$0xff]  ;;  %v280_v5 = vld [vmem:[%s2124_s21 + $0x350] sm:$0xff]  ;;  %v287_v9 = vld [vmem:[%s2124_s21 + $0x388] sm:$0xff] }
  0x78   : > { %v404_v6 = vld [vmem:[%s2124_s21 + $0x730] sm:$0xff]  ;;  %v410_v8 = vld [vmem:[%s2124_s21 + $0x760] sm:$0xff]  ;;  %v293_v10 = vld [vmem:[%s2124_s21 + $0x3b8] sm:$0xff] }
  0x79   : > { %1704 = vmatpush1.bf16.msra.mxu1 %v1703_v17  ;;  %v232_v17 = vld [vmem:[%s2124_s21 + $0x1d0] sm:$0xff] }
  0x7a   : > { %1664 = vmatpush1.bf16.msra.mxu0 %v1663_v18  ;;  %1706 = vmatprep.subr.bf16.mxu1 %v1705_v19  ;;  %v356_v18 = vld [vmem:[%s2124_s21 + $0x5b0] sm:$0xff]  ;;  %v1725_v19 = vpack.c.bf16 %v363_v12, %v357_v11  ;;  %v1851_v25 = vpack.c.bf16 %v232_v17, %v226_v16  ;;  %v417_v11 = vld [vmem:[%s2124_s21 + $0x798] sm:$0xff]  ;;  %v423_v12 = vld [vmem:[%s2124_s21 + $0x7c8] sm:$0xff] }
  0x7b   : > { %1480 = vmatprep.subr.msk.mxu0 %vm701_vm1, %v679_v24  ;;  %v375_v24 = vld [vmem:[%s2124_s21 + $0x648] sm:$0xff]  ;;  %v1727_v26 = vpack.c.bf16 %v362_v20, %v356_v18  ;;  %v286_v16 = vld [vmem:[%s2124_s21 + $0x380] sm:$0xff]  ;;  %v292_v17 = vld [vmem:[%s2124_s21 + $0x3b0] sm:$0xff] }
  0x7c   : > { %v416_v18 = vld [vmem:[%s2124_s21 + $0x790] sm:$0xff]  ;;  %v422_v20 = vld [vmem:[%s2124_s21 + $0x7c0] sm:$0xff] }
  0x7d   : > { %1708 = vmatpush1.bf16.msra.mxu1 %v1707_v27  ;;  %v1853_v27 = vpack.c.bf16 %v245_v22, %v239_v21  ;;  %v299_v21 = vld [vmem:[%s2124_s21 + $0x3e8] sm:$0xff]  ;;  %v305_v22 = vld [vmem:[%s2124_s21 + $0x418] sm:$0xff] }
  0x7e   : > { %1481 = vmatpush1.msk.msra.mxu0 %vm701_vm1, %v678_v36  ;;  %1710 = vmatprep.subr.bf16.mxu1 %v1709_v32  ;;  %v1729_v32 = vpack.c.bf16 %v375_v24, %v369_v23  ;;  %v381_v36 = vld [vmem:[%s2124_s21 + $0x678] sm:$0xff]  ;;  %v435_v24 = vld [vmem:[%s2124_s21 + $0x828] sm:$0xff] }
  0x7f   : > { %927 = vmatmul.mubr.f32.vlgmr.msra.gmra.mrb[0].mxu0 %v2269_v31  ;;  %1834 = vmatprep.subr.bf16.mxu0 %v1833_v37  ;;  %v332_v31 = vld [vmem:[%s2124_s21 + $0x4f0] sm:$0xff]  ;;  %v387_v37 = vld [vmem:[%s2124_s21 + $0x6a8] sm:$0xff]  ;;  %v429_v23 = vld [vmem:[%s2124_s21 + $0x7f8] sm:$0xff] }
  0x80   : > { %1836 = vmatpush1.bf16.msra.mxu0 %v1835_v40  ;;  %1210 = vmatprep.mubr.f32.mxu0 %v2110_v2  ;;  %v351_v2 = vld [vmem:[%s2124_s21 + $0x588] sm:$0xff]  ;;  %v1719_v62 = vpack.c.bf16 %v338_v57, %v332_v31  ;;  %v1731_v40 = vpack.c.bf16 %v374_v33, %v368_v30  ;;  %v1733_v46 = vpack.c.bf16 %v387_v37, %v381_v36  ;;  %v392_v31 = vld [vmem:[%s2124_s21 + $0x6d0] sm:$0xff]  ;;  %v398_v57 = vld [vmem:[%s2124_s21 + $0x700] sm:$0xff] }
  0x81   : > { %1712 = vmatpush1.bf16.msra.mxu1 %v1711_v41  ;;  %1838 = vmatprep.subr.bf16.mxu0 %v1837_v43  ;;  %v1721_v7 = vpack.c.bf16 %v351_v2, %v345_v60  ;;  %v1857_v41 = vpack.c.bf16 %v257_v35, %v251_v34  ;;  %v250_v43 = vld [vmem:[%s2124_s21 + $0x260] sm:$0xff]  ;;  %v405_v60 = vld [vmem:[%s2124_s21 + $0x738] sm:$0xff]  ;;  %v411_v2 = vld [vmem:[%s2124_s21 + $0x768] sm:$0xff] }
  0x82   : > { %1714 = vmatprep.subr.bf16.mxu1 %v1713_v47  ;;  %v386_v47 = vld [vmem:[%s2124_s21 + $0x6a0] sm:$0xff]  ;;  %v428_v30 = vld [vmem:[%s2124_s21 + $0x7f0] sm:$0xff]  ;;  %v311_v34 = vld [vmem:[%s2124_s21 + $0x448] sm:$0xff] }
  0x83   : > { %v434_v33 = vld [vmem:[%s2124_s21 + $0x820] sm:$0xff]  ;;  %v317_v35 = vld [vmem:[%s2124_s21 + $0x478] sm:$0xff]  ;;  %v447_v37 = vld [vmem:[%s2124_s21 + $0x888] sm:$0xff] }
  0x84   : > { %1840 = vmatpush1.bf16.msra.mxu0 %v1839_v52  ;;  %v1859_v52 = vpack.c.bf16 %v256_v44, %v250_v43  ;;  %v441_v36 = vld [vmem:[%s2124_s21 + $0x858] sm:$0xff]  ;;  %v316_v43 = vld [vmem:[%s2124_s21 + $0x470] sm:$0xff] }
  0x85   : > { %1716 = vmatpush1.bf16.msra.mxu1 %v1715_v53  ;;  %1842 = vmatprep.subr.bf16.mxu0 %v1841_v1  ;;  %v1735_v53 = vpack.c.bf16 %v386_v47, %v380_v45  ;;  %v1861_v1 = vpack.c.bf16 %v269_v49, %v263_v48  ;;  %v440_v44 = vld [vmem:[%s2124_s21 + $0x850] sm:$0xff]  ;;  %v1753_v45 = vpack.c.bf16 %v447_v37, %v441_v36  ;;  %v323_v47 = vld [vmem:[%s2124_s21 + $0x4a8] sm:$0xff]  ;;  %v329_v48 = vld [vmem:[%s2124_s21 + $0x4d8] sm:$0xff] }
  0x86   : > { %1718 = vmatprep.subr.bf16.mxu1 %v1717_v56  ;;  %v1737_v56 = vpack.c.bf16 %v399_v0, %v393_v50  ;;  %v453_v49 = vld [vmem:[%s2124_s21 + $0x8b8] sm:$0xff]  ;;  %v459_v50 = vld [vmem:[%s2124_s21 + $0x8e8] sm:$0xff] }
  0x87   : > { %v507_v36 = vld [vmem:[%s2124_s21 + $0xa68] sm:$0xff] }
  0x88   : > { %1844 = vmatpush1.bf16.msra.mxu0 %v1843_v61  ;;  %v1863_v61 = vpack.c.bf16 %v268_v55, %v262_v54  ;;  %v328_v54 = vld [vmem:[%s2124_s21 + $0x4d0] sm:$0xff] }
  0x89   : > { %1720 = vmatpush1.bf16.msra.mxu1 %v1719_v62  ;;  %1846 = vmatprep.subr.bf16.mxu0 %v1845_v63  ;;  %v1739_v62 = vpack.c.bf16 %v398_v57, %v392_v31  ;;  %v1865_v63 = vpack.c.bf16 %v281_v59, %v275_v58  ;;  %v452_v55 = vld [vmem:[%s2124_s21 + $0x8b0] sm:$0xff]  ;;  %v1757_v31 = vpack.c.bf16 %v459_v50, %v453_v49  ;;  %v335_v57 = vld [vmem:[%s2124_s21 + $0x508] sm:$0xff]  ;;  %v341_v58 = vld [vmem:[%s2124_s21 + $0x538] sm:$0xff] }
  0x8a   : > { %1722 = vmatprep.subr.bf16.mxu1 %v1721_v7  ;;  %v1741_v7 = vpack.c.bf16 %v411_v2, %v405_v60  ;;  %v465_v59 = vld [vmem:[%s2124_s21 + $0x918] sm:$0xff]  ;;  %v471_v60 = vld [vmem:[%s2124_s21 + $0x948] sm:$0xff] }
  0x8b   : > { %v519_v49 = vld [vmem:[%s2124_s21 + $0xac8] sm:$0xff] }
  0x8c   : > { %1848 = vmatpush1.bf16.msra.mxu0 %v1847_v13  ;;  %v1867_v13 = vpack.c.bf16 %v280_v5, %v274_v4  ;;  %v340_v4 = vld [vmem:[%s2124_s21 + $0x530] sm:$0xff] }
  0x8d   : > { %1724 = vmatpush1.bf16.msra.mxu1 %v1723_v14  ;;  %1850 = vmatprep.subr.bf16.mxu0 %v1849_v15  ;;  %v1743_v14 = vpack.c.bf16 %v410_v8, %v404_v6  ;;  %v1869_v15 = vpack.c.bf16 %v293_v10, %v287_v9  ;;  %v464_v5 = vld [vmem:[%s2124_s21 + $0x910] sm:$0xff]  ;;  %v1761_v6 = vpack.c.bf16 %v471_v60, %v465_v59  ;;  %v347_v8 = vld [vmem:[%s2124_s21 + $0x568] sm:$0xff]  ;;  %v353_v9 = vld [vmem:[%s2124_s21 + $0x598] sm:$0xff] }
  0x8e   : > { %1726 = vmatprep.subr.bf16.mxu1 %v1725_v19  ;;  %v1745_v19 = vpack.c.bf16 %v423_v12, %v417_v11  ;;  %v477_v10 = vld [vmem:[%s2124_s21 + $0x978] sm:$0xff]  ;;  %v483_v11 = vld [vmem:[%s2124_s21 + $0x9a8] sm:$0xff] }
  0x8f   : > { %v531_v59 = vld [vmem:[%s2124_s21 + $0xb28] sm:$0xff] }
  0x90   : > { %1852 = vmatpush1.bf16.msra.mxu0 %v1851_v25  ;;  %v1871_v25 = vpack.c.bf16 %v292_v17, %v286_v16  ;;  %v352_v16 = vld [vmem:[%s2124_s21 + $0x590] sm:$0xff] }
  0x91   : > { %1728 = vmatpush1.bf16.msra.mxu1 %v1727_v26  ;;  %1854 = vmatprep.subr.bf16.mxu0 %v1853_v27  ;;  %v1747_v26 = vpack.c.bf16 %v422_v20, %v416_v18  ;;  %v1873_v27 = vpack.c.bf16 %v305_v22, %v299_v21  ;;  %v476_v17 = vld [vmem:[%s2124_s21 + $0x970] sm:$0xff]  ;;  %v1765_v18 = vpack.c.bf16 %v483_v11, %v477_v10  ;;  %v359_v20 = vld [vmem:[%s2124_s21 + $0x5c8] sm:$0xff]  ;;  %v365_v21 = vld [vmem:[%s2124_s21 + $0x5f8] sm:$0xff] }
  0x92   : > { %1730 = vmatprep.subr.bf16.mxu1 %v1729_v32  ;;  %v1749_v32 = vpack.c.bf16 %v435_v24, %v429_v23  ;;  %v489_v22 = vld [vmem:[%s2124_s21 + $0x9d8] sm:$0xff]  ;;  %v495_v23 = vld [vmem:[%s2124_s21 + $0xa08] sm:$0xff] }
  0x94   : > { %1856 = vmatpush1.bf16.msra.mxu0 %v1855_v39  ;;  %998 = vmatmul.mubr.f32.vlgmr.msra.gmra.mrb[2].mxu1 %v2424_v51  ;;  %v1751_v39 = vpack.c.bf16 %v434_v33, %v428_v30  ;;  %v1769_v30 = vpack.c.bf16 %v495_v23, %v489_v22  ;;  %v371_v33 = vld [vmem:[%s2124_s21 + $0x628] sm:$0xff] }
  0x95   : > { %1732 = vmatpush1.bf16.msra.mxu1 %v1731_v40  ;;  %1858 = vmatprep.subr.bf16.mxu0 %v1857_v41  ;;  %v1877_v40 = vpack.c.bf16 %v317_v35, %v311_v34  ;;  %v310_v41 = vld [vmem:[%s2124_s21 + $0x440] sm:$0xff]  ;;  %v377_v34 = vld [vmem:[%s2124_s21 + $0x658] sm:$0xff] }
  0x96   : > { %1734 = vmatprep.subr.bf16.mxu1 %v1733_v46  ;;  %1068 = vmatprep.mubr.f32.mxu1 %v2114_v3  ;;  %v446_v46 = vld [vmem:[%s2124_s21 + $0x880] sm:$0xff]  ;;  %v1879_v0 = vpack.c.bf16 %v316_v43, %v310_v41  ;;  %v501_v35 = vld [vmem:[%s2124_s21 + $0xa38] sm:$0xff]  ;;  %v376_v41 = vld [vmem:[%s2124_s21 + $0x650] sm:$0xff] }
  0x97   : > { %v500_v43 = vld [vmem:[%s2124_s21 + $0xa30] sm:$0xff] }
  0x98   : > { %1860 = vmatpush1.bf16.msra.mxu0 %v1859_v52  ;;  %v1755_v52 = vpack.c.bf16 %v446_v46, %v440_v44  ;;  %v1773_v44 = vpack.c.bf16 %v507_v36, %v501_v35  ;;  %v383_v46 = vld [vmem:[%s2124_s21 + $0x688] sm:$0xff] }
  0x99   : > { %1736 = vmatpush1.bf16.msra.mxu1 %v1735_v53  ;;  %1862 = vmatprep.subr.bf16.mxu0 %v1861_v1  ;;  %v1881_v53 = vpack.c.bf16 %v329_v48, %v323_v47  ;;  %v322_v1 = vld [vmem:[%s2124_s21 + $0x4a0] sm:$0xff]  ;;  %v389_v47 = vld [vmem:[%s2124_s21 + $0x6b8] sm:$0xff] }
  0x9a   : > { %1738 = vmatprep.subr.bf16.mxu1 %v1737_v56  ;;  %v458_v56 = vld [vmem:[%s2124_s21 + $0x8e0] sm:$0xff]  ;;  %v1883_v2 = vpack.c.bf16 %v328_v54, %v322_v1  ;;  %v513_v48 = vld [vmem:[%s2124_s21 + $0xa98] sm:$0xff]  ;;  %v388_v1 = vld [vmem:[%s2124_s21 + $0x6b0] sm:$0xff] }
  0x9b   : > { %v512_v54 = vld [vmem:[%s2124_s21 + $0xa90] sm:$0xff] }
  0x9c   : > { %1864 = vmatpush1.bf16.msra.mxu0 %v1863_v61  ;;  %v1759_v61 = vpack.c.bf16 %v458_v56, %v452_v55  ;;  %v1777_v55 = vpack.c.bf16 %v519_v49, %v513_v48  ;;  %v395_v56 = vld [vmem:[%s2124_s21 + $0x6e8] sm:$0xff] }
  0x9d   : > { %1740 = vmatpush1.bf16.msra.mxu1 %v1739_v62  ;;  %1866 = vmatprep.subr.bf16.mxu0 %v1865_v63  ;;  %v1885_v62 = vpack.c.bf16 %v341_v58, %v335_v57  ;;  %v334_v63 = vld [vmem:[%s2124_s21 + $0x500] sm:$0xff]  ;;  %v401_v57 = vld [vmem:[%s2124_s21 + $0x718] sm:$0xff] }
  0x9e   : > { %1742 = vmatprep.subr.bf16.mxu1 %v1741_v7  ;;  %v470_v7 = vld [vmem:[%s2124_s21 + $0x940] sm:$0xff]  ;;  %v1887_v12 = vpack.c.bf16 %v340_v4, %v334_v63  ;;  %v525_v58 = vld [vmem:[%s2124_s21 + $0xaf8] sm:$0xff]  ;;  %v400_v63 = vld [vmem:[%s2124_s21 + $0x710] sm:$0xff] }
  0x9f   : > { %v524_v4 = vld [vmem:[%s2124_s21 + $0xaf0] sm:$0xff] }
  0xa0   : > { %1868 = vmatpush1.bf16.msra.mxu0 %v1867_v13  ;;  %v1763_v13 = vpack.c.bf16 %v470_v7, %v464_v5  ;;  %v530_v5 = vld [vmem:[%s2124_s21 + $0xb20] sm:$0xff]  ;;  %v413_v7 = vld [vmem:[%s2124_s21 + $0x778] sm:$0xff] }
  0xa1   : > { %1744 = vmatpush1.bf16.msra.mxu1 %v1743_v14  ;;  %1870 = vmatprep.subr.bf16.mxu0 %v1869_v15  ;;  %v1889_v14 = vpack.c.bf16 %v353_v9, %v347_v8  ;;  %v346_v15 = vld [vmem:[%s2124_s21 + $0x560] sm:$0xff]  ;;  %v537_v8 = vld [vmem:[%s2124_s21 + $0xb58] sm:$0xff]  ;;  %v1783_v10 = vpack.c.bf16 %v530_v5, %v524_v4 }
  0xa2   : > { %1746 = vmatprep.subr.bf16.mxu1 %v1745_v19  ;;  %v482_v19 = vld [vmem:[%s2124_s21 + $0x9a0] sm:$0xff]  ;;  %v1891_v24 = vpack.c.bf16 %v352_v16, %v346_v15  ;;  %v473_v5 = vld [vmem:[%s2124_s21 + $0x958] sm:$0xff] }
  0xa3   : > { %v542_v16 = vld [vmem:[%s2124_s21 + $0xb80] sm:$0xff] }
  0xa4   : > { %1872 = vmatpush1.bf16.msra.mxu0 %v1871_v25  ;;  %v1767_v25 = vpack.c.bf16 %v482_v19, %v476_v17  ;;  %v419_v17 = vld [vmem:[%s2124_s21 + $0x7a8] sm:$0xff]  ;;  %v549_v19 = vld [vmem:[%s2124_s21 + $0xbb8] sm:$0xff]  ;;  %v590_v4 = vld [vmem:[%s2124_s21 + $0xd00] sm:$0xff] }
  0xa5   : > { %1748 = vmatpush1.bf16.msra.mxu1 %v1747_v26  ;;  %1874 = vmatprep.subr.bf16.mxu0 %v1873_v27  ;;  %v1893_v26 = vpack.c.bf16 %v365_v21, %v359_v20  ;;  %v358_v27 = vld [vmem:[%s2124_s21 + $0x5c0] sm:$0xff]  ;;  %v555_v20 = vld [vmem:[%s2124_s21 + $0xbe8] sm:$0xff] }
  0xa6   : > { %1750 = vmatprep.subr.bf16.mxu1 %v1749_v32  ;;  %v494_v32 = vld [vmem:[%s2124_s21 + $0xa00] sm:$0xff]  ;;  %v1895_v37 = vpack.c.bf16 %v364_v28, %v358_v27  ;;  %v1789_v27 = vpack.c.bf16 %v555_v20, %v549_v19 }
  0xa7   : > { %v554_v28 = vld [vmem:[%s2124_s21 + $0xbe0] sm:$0xff] }
  0xa8   : > { %1876 = vmatpush1.bf16.msra.mxu0 %v1875_v38  ;;  %v1771_v38 = vpack.c.bf16 %v494_v32, %v488_v29  ;;  %v431_v29 = vld [vmem:[%s2124_s21 + $0x808] sm:$0xff]  ;;  %v561_v32 = vld [vmem:[%s2124_s21 + $0xc18] sm:$0xff] }
  0xa9   : > { %1752 = vmatpush1.bf16.msra.mxu1 %v1751_v39  ;;  %1878 = vmatprep.subr.bf16.mxu0 %v1877_v40  ;;  %v1897_v39 = vpack.c.bf16 %v377_v34, %v371_v33  ;;  %v370_v40 = vld [vmem:[%s2124_s21 + $0x620] sm:$0xff]  ;;  %v567_v33 = vld [vmem:[%s2124_s21 + $0xc48] sm:$0xff] }
  0xaa   : > { %1754 = vmatprep.subr.bf16.mxu1 %v1753_v45  ;;  %v506_v45 = vld [vmem:[%s2124_s21 + $0xa60] sm:$0xff]  ;;  %v1899_v50 = vpack.c.bf16 %v376_v41, %v370_v40  ;;  %v1793_v40 = vpack.c.bf16 %v567_v33, %v561_v32 }
  0xab   : > { %v566_v41 = vld [vmem:[%s2124_s21 + $0xc40] sm:$0xff] }
  0xac   : > { %1880 = vmatpush1.bf16.msra.mxu0 %v1879_v0  ;;  %v1775_v0 = vpack.c.bf16 %v506_v45, %v500_v43  ;;  %v443_v43 = vld [vmem:[%s2124_s21 + $0x868] sm:$0xff]  ;;  %v573_v45 = vld [vmem:[%s2124_s21 + $0xc78] sm:$0xff] }
  0xad   : > { %1756 = vmatpush1.bf16.msra.mxu1 %v1755_v52  ;;  %1882 = vmatprep.subr.bf16.mxu0 %v1881_v53  ;;  %v1901_v52 = vpack.c.bf16 %v389_v47, %v383_v46  ;;  %v382_v53 = vld [vmem:[%s2124_s21 + $0x680] sm:$0xff]  ;;  %v579_v46 = vld [vmem:[%s2124_s21 + $0xca8] sm:$0xff] }
  0xae   : > { %1758 = vmatprep.subr.bf16.mxu1 %v1757_v31  ;;  %v518_v31 = vld [vmem:[%s2124_s21 + $0xac0] sm:$0xff]  ;;  %v1903_v60 = vpack.c.bf16 %v388_v1, %v382_v53  ;;  %v1797_v53 = vpack.c.bf16 %v579_v46, %v573_v45 }
  0xaf   : > { %v578_v1 = vld [vmem:[%s2124_s21 + $0xca0] sm:$0xff] }
  0xb0   : > { %1884 = vmatpush1.bf16.msra.mxu0 %v1883_v2  ;;  %v1779_v2 = vpack.c.bf16 %v518_v31, %v512_v54  ;;  %v455_v54 = vld [vmem:[%s2124_s21 + $0x8c8] sm:$0xff]  ;;  %v585_v31 = vld [vmem:[%s2124_s21 + $0xcd8] sm:$0xff] }
  0xb1   : > { %1760 = vmatpush1.bf16.msra.mxu1 %v1759_v61  ;;  %1886 = vmatprep.subr.bf16.mxu0 %v1885_v62  ;;  %v1905_v61 = vpack.c.bf16 %v401_v57, %v395_v56  ;;  %v394_v62 = vld [vmem:[%s2124_s21 + $0x6e0] sm:$0xff]  ;;  %v591_v56 = vld [vmem:[%s2124_s21 + $0xd08] sm:$0xff] }
  0xb2   : > { %1762 = vmatprep.subr.bf16.mxu1 %v1761_v6  ;;  %v407_v6 = vld [vmem:[%s2124_s21 + $0x748] sm:$0xff]  ;;  %v1907_v9 = vpack.c.bf16 %v400_v63, %v394_v62  ;;  %v584_v62 = vld [vmem:[%s2124_s21 + $0xcd0] sm:$0xff]  ;;  %v1801_v63 = vpack.c.bf16 %v591_v56, %v585_v31 }
  0xb3   : > { %v1909_v11 = vpack.c.bf16 %v413_v7, %v407_v6  ;;  %v2561_v57 = vld [vmem:[%s2701_s0 + $0x8] sm:$0xff]  ;;  %v597_v6 = vld [vmem:[%s2124_s21 + $0xd38] sm:$0xff] }
  0xb4   : > { %1888 = vmatpush1.bf16.msra.mxu0 %v1887_v12  ;;  %v406_v12 = vld [vmem:[%s2124_s21 + $0x740] sm:$0xff]  ;;  %v603_v7 = vld [vmem:[%s2124_s21 + $0xd68] sm:$0xff] }
  0xb5   : > { %1764 = vmatpush1.bf16.msra.mxu1 %v1763_v13  ;;  %1890 = vmatprep.subr.bf16.mxu0 %v1889_v14  ;;  %v412_v13 = vld [vmem:[%s2124_s21 + $0x770] sm:$0xff] }
  0xb6   : > { %1766 = vmatprep.subr.bf16.mxu1 %v1765_v18  ;;  %v536_v14 = vld [vmem:[%s2124_s21 + $0xb50] sm:$0xff]  ;;  %v425_v18 = vld [vmem:[%s2124_s21 + $0x7d8] sm:$0xff]  ;;  %v1911_v21 = vpack.c.bf16 %v412_v13, %v406_v12  ;;  %v1805_v13 = vpack.c.bf16 %v603_v7, %v597_v6 }
  0xb7   : > { %v1787_v22 = vpack.c.bf16 %v542_v16, %v536_v14  ;;  %v1913_v23 = vpack.c.bf16 %v425_v18, %v419_v17  ;;  %v596_v12 = vld [vmem:[%s2124_s21 + $0xd30] sm:$0xff]  ;;  %v602_v14 = vld [vmem:[%s2124_s21 + $0xd60] sm:$0xff]  ;;  %v485_v16 = vld [vmem:[%s2124_s21 + $0x9b8] sm:$0xff] }
  0xb8   : > { %1892 = vmatpush1.bf16.msra.mxu0 %v1891_v24  ;;  %v418_v24 = vld [vmem:[%s2124_s21 + $0x7a0] sm:$0xff]  ;;  %v609_v17 = vld [vmem:[%s2124_s21 + $0xd98] sm:$0xff]  ;;  %v615_v18 = vld [vmem:[%s2124_s21 + $0xdc8] sm:$0xff]  ;;  %v1807_v20 = vpack.c.bf16 %v602_v14, %v596_v12 }
  0xb9   : > { %1768 = vmatpush1.bf16.msra.mxu1 %v1767_v25  ;;  %1894 = vmatprep.subr.bf16.mxu0 %v1893_v26  ;;  %v424_v25 = vld [vmem:[%s2124_s21 + $0x7d0] sm:$0xff]  ;;  %v662_v12 = vld [vmem:[%s2124_s21 + $0xf40] sm:$0xff]  ;;  %v545_v14 = vld [vmem:[%s2124_s21 + $0xb98] sm:$0xff] }
  0xba   : > { %1770 = vmatprep.subr.bf16.mxu1 %v1769_v30  ;;  %v548_v26 = vld [vmem:[%s2124_s21 + $0xbb0] sm:$0xff]  ;;  %v437_v30 = vld [vmem:[%s2124_s21 + $0x838] sm:$0xff]  ;;  %v1915_v34 = vpack.c.bf16 %v424_v25, %v418_v24  ;;  %v1809_v25 = vpack.c.bf16 %v615_v18, %v609_v17 }
  0xbb   : > { %v1791_v35 = vpack.c.bf16 %v554_v28, %v548_v26  ;;  %v1917_v36 = vpack.c.bf16 %v437_v30, %v431_v29  ;;  %v608_v24 = vld [vmem:[%s2124_s21 + $0xd90] sm:$0xff]  ;;  %v614_v26 = vld [vmem:[%s2124_s21 + $0xdc0] sm:$0xff]  ;;  %v497_v28 = vld [vmem:[%s2124_s21 + $0xa18] sm:$0xff] }
  0xbc   : > { %1896 = vmatpush1.bf16.msra.mxu0 %v1895_v37  ;;  %v430_v37 = vld [vmem:[%s2124_s21 + $0x800] sm:$0xff]  ;;  %v621_v29 = vld [vmem:[%s2124_s21 + $0xdf8] sm:$0xff]  ;;  %v627_v30 = vld [vmem:[%s2124_s21 + $0xe28] sm:$0xff]  ;;  %v1811_v33 = vpack.c.bf16 %v614_v26, %v608_v24 }
  0xbd   : > { %1772 = vmatpush1.bf16.msra.mxu1 %v1771_v38  ;;  %1898 = vmatprep.subr.bf16.mxu0 %v1897_v39  ;;  %v436_v38 = vld [vmem:[%s2124_s21 + $0x830] sm:$0xff]  ;;  %v674_v24 = vld [vmem:[%s2124_s21 + $0xfa0] sm:$0xff]  ;;  %v557_v26 = vld [vmem:[%s2124_s21 + $0xbf8] sm:$0xff] }
  0xbe   : > { %1774 = vmatprep.subr.bf16.mxu1 %v1773_v44  ;;  %v560_v39 = vld [vmem:[%s2124_s21 + $0xc10] sm:$0xff]  ;;  %v449_v44 = vld [vmem:[%s2124_s21 + $0x898] sm:$0xff]  ;;  %v1919_v47 = vpack.c.bf16 %v436_v38, %v430_v37  ;;  %v1813_v38 = vpack.c.bf16 %v627_v30, %v621_v29  ;;  %v550_v30 = vld [vmem:[%s2124_s21 + $0xbc0] sm:$0xff] }
  0xbf   : > { %1211 = vmatmul.mubr.f32.vlgmr.msra.gmra.mrb[2].mxu0 %v2424_v51  ;;  %v1781_v51 = vpack.c.bf16 %v531_v59, %v525_v58  ;;  %v1795_v48 = vpack.c.bf16 %v566_v41, %v560_v39  ;;  %v1921_v49 = vpack.c.bf16 %v449_v44, %v443_v43  ;;  %v620_v37 = vld [vmem:[%s2124_s21 + $0xdf0] sm:$0xff]  ;;  %v626_v39 = vld [vmem:[%s2124_s21 + $0xe20] sm:$0xff]  ;;  %v509_v41 = vld [vmem:[%s2124_s21 + $0xa78] sm:$0xff] }
  0xc0   : > { %1900 = vmatpush1.bf16.msra.mxu0 %v1899_v50  ;;  %1281 = vmatprep.mubr.f32.mxu0 %v2114_v3  ;;  %v543_v3 = vld [vmem:[%s2124_s21 + $0xb88] sm:$0xff]  ;;  %v442_v50 = vld [vmem:[%s2124_s21 + $0x860] sm:$0xff]  ;;  %v633_v43 = vld [vmem:[%s2124_s21 + $0xe58] sm:$0xff]  ;;  %v1815_v46 = vpack.c.bf16 %v626_v39, %v620_v37 }
  0xc1   : > { %1776 = vmatpush1.bf16.msra.mxu1 %v1775_v0  ;;  %1902 = vmatprep.subr.bf16.mxu0 %v1901_v52  ;;  %v1785_v15 = vpack.c.bf16 %v543_v3, %v537_v8  ;;  %v448_v0 = vld [vmem:[%s2124_s21 + $0x890] sm:$0xff]  ;;  %v1803_v3 = vpack.c.bf16 %v590_v4, %v584_v62  ;;  %v639_v44 = vld [vmem:[%s2124_s21 + $0xe88] sm:$0xff]  ;;  %v650_v62 = vld [vmem:[%s2124_s21 + $0xee0] sm:$0xff] }
  0xc2   : > { %1778 = vmatprep.subr.bf16.mxu1 %v1777_v55  ;;  %v572_v52 = vld [vmem:[%s2124_s21 + $0xc70] sm:$0xff]  ;;  %v461_v55 = vld [vmem:[%s2124_s21 + $0x8f8] sm:$0xff]  ;;  %v1923_v58 = vpack.c.bf16 %v448_v0, %v442_v50  ;;  %v1817_v0 = vpack.c.bf16 %v639_v44, %v633_v43 }
  0xc3   : > { %v1799_v59 = vpack.c.bf16 %v578_v1, %v572_v52  ;;  %v632_v50 = vld [vmem:[%s2124_s21 + $0xe50] sm:$0xff]  ;;  %v638_v52 = vld [vmem:[%s2124_s21 + $0xe80] sm:$0xff]  ;;  %v521_v1 = vld [vmem:[%s2124_s21 + $0xad8] sm:$0xff] }
  0xc4   : > { %1904 = vmatpush1.bf16.msra.mxu0 %v1903_v60  ;;  %v1925_v60 = vpack.c.bf16 %v461_v55, %v455_v54  ;;  %v645_v54 = vld [vmem:[%s2124_s21 + $0xeb8] sm:$0xff]  ;;  %v651_v55 = vld [vmem:[%s2124_s21 + $0xee8] sm:$0xff]  ;;  %v1819_v56 = vpack.c.bf16 %v638_v52, %v632_v50  ;;  %v568_v39 = vld [vmem:[%s2124_s21 + $0xc50] sm:$0xff] }
  0xc5   : > { %1780 = vmatpush1.bf16.msra.mxu1 %v1779_v2  ;;  %1906 = vmatprep.subr.bf16.mxu0 %v1905_v61  ;;  %v454_v2 = vld [vmem:[%s2124_s21 + $0x8c0] sm:$0xff]  ;;  %v460_v61 = vld [vmem:[%s2124_s21 + $0x8f0] sm:$0xff]  ;;  %v533_v4 = vld [vmem:[%s2124_s21 + $0xb38] sm:$0xff] }
  0xc6   : > { %1782 = vmatprep.subr.bf16.mxu1 %v1781_v51  ;;  %v467_v51 = vld [vmem:[%s2124_s21 + $0x928] sm:$0xff]  ;;  %v1927_v8 = vpack.c.bf16 %v460_v61, %v454_v2  ;;  %v644_v2 = vld [vmem:[%s2124_s21 + $0xeb0] sm:$0xff]  ;;  %v1821_v61 = vpack.c.bf16 %v651_v55, %v645_v54  ;;  %v581_v43 = vld [vmem:[%s2124_s21 + $0xcb8] sm:$0xff] }
  0xc7   : > { %v1823_v7 = vpack.c.bf16 %v650_v62, %v644_v2  ;;  %v593_v50 = vld [vmem:[%s2124_s21 + $0xd18] sm:$0xff]  ;;  %v599_v54 = vld [vmem:[%s2124_s21 + $0xd48] sm:$0xff]  ;;  %v616_v62 = vld [vmem:[%s2124_s21 + $0xdd0] sm:$0xff] }
  0xc8   : > { %1908 = vmatpush1.bf16.msra.mxu0 %v1907_v9  ;;  %v1929_v9 = vpack.c.bf16 %v473_v5, %v467_v51  ;;  %v657_v51 = vld [vmem:[%s2124_s21 + $0xf18] sm:$0xff]  ;;  %v663_v5 = vld [vmem:[%s2124_s21 + $0xf48] sm:$0xff] }
  0xc9   : > { %1784 = vmatpush1.bf16.msra.mxu1 %v1783_v10  ;;  %1910 = vmatprep.subr.bf16.mxu0 %v1909_v11  ;;  %v466_v10 = vld [vmem:[%s2124_s21 + $0x920] sm:$0xff]  ;;  %v472_v11 = vld [vmem:[%s2124_s21 + $0x950] sm:$0xff]  ;;  %v605_v55 = vld [vmem:[%s2124_s21 + $0xd78] sm:$0xff] }
  0xca   : > { %1786 = vmatprep.subr.bf16.mxu1 %v1785_v15  ;;  %v479_v15 = vld [vmem:[%s2124_s21 + $0x988] sm:$0xff]  ;;  %v1931_v19 = vpack.c.bf16 %v472_v11, %v466_v10  ;;  %v656_v10 = vld [vmem:[%s2124_s21 + $0xf10] sm:$0xff]  ;;  %v1825_v11 = vpack.c.bf16 %v663_v5, %v657_v51 }
  0xcb   : > { %v1827_v18 = vpack.c.bf16 %v662_v12, %v656_v10  ;;  %v640_v12 = vld [vmem:[%s2124_s21 + $0xe90] sm:$0xff] }
  0xcc   : > { %1912 = vmatpush1.bf16.msra.mxu0 %v1911_v21  ;;  %v1933_v21 = vpack.c.bf16 %v485_v16, %v479_v15  ;;  %v669_v15 = vld [vmem:[%s2124_s21 + $0xf78] sm:$0xff]  ;;  %v675_v16 = vld [vmem:[%s2124_s21 + $0xfa8] sm:$0xff] }
  0xcd   : > { %1788 = vmatpush1.bf16.msra.mxu1 %v1787_v22  ;;  %1914 = vmatprep.subr.bf16.mxu0 %v1913_v23  ;;  %v478_v22 = vld [vmem:[%s2124_s21 + $0x980] sm:$0xff]  ;;  %v484_v23 = vld [vmem:[%s2124_s21 + $0x9b0] sm:$0xff] }
  0xce   : > { %1790 = vmatprep.subr.bf16.mxu1 %v1789_v27  ;;  %v491_v27 = vld [vmem:[%s2124_s21 + $0x9e8] sm:$0xff]  ;;  %v1935_v32 = vpack.c.bf16 %v484_v23, %v478_v22  ;;  %v668_v22 = vld [vmem:[%s2124_s21 + $0xf70] sm:$0xff]  ;;  %v1829_v23 = vpack.c.bf16 %v675_v16, %v669_v15 }
  0xd0   : > { %1916 = vmatpush1.bf16.msra.mxu0 %v1915_v34  ;;  %v1937_v34 = vpack.c.bf16 %v497_v28, %v491_v27  ;;  %v1831_v28 = vpack.c.bf16 %v674_v24, %v668_v22  ;;  %v664_v24 = vld [vmem:[%s2124_s21 + $0xf50] sm:$0xff] }
  0xd1   : > { %1792 = vmatpush1.bf16.msra.mxu1 %v1791_v35  ;;  %1918 = vmatprep.subr.bf16.mxu0 %v1917_v36  ;;  %v490_v35 = vld [vmem:[%s2124_s21 + $0x9e0] sm:$0xff]  ;;  %v496_v36 = vld [vmem:[%s2124_s21 + $0xa10] sm:$0xff] }
  0xd2   : > { %1794 = vmatprep.subr.bf16.mxu1 %v1793_v40  ;;  %v503_v40 = vld [vmem:[%s2124_s21 + $0xa48] sm:$0xff]  ;;  %v1939_v45 = vpack.c.bf16 %v496_v36, %v490_v35  ;;  %v681_v35 = vld [vmem:[%s2124_s21 + $0xfd8] sm:$0xf] }
  0xd4   : > { %1920 = vmatpush1.bf16.msra.mxu0 %v1919_v47  ;;  %1069 = vmatmul.mubr.f32.vlgmr.msra.gmra.mrb[2].mxu1 %v2561_v57  ;;  %v1941_v47 = vpack.c.bf16 %v509_v41, %v503_v40  ;;  %v680_v40 = vld [vmem:[%s2124_s21 + $0xfd0] sm:$0xf]  ;;  %v575_v41 = vld [vmem:[%s2124_s21 + $0xc88] sm:$0xff] }
  0xd5   : > { %1796 = vmatpush1.bf16.msra.mxu1 %v1795_v48  ;;  %1922 = vmatprep.subr.bf16.mxu0 %v1921_v49  ;;  %v502_v48 = vld [vmem:[%s2124_s21 + $0xa40] sm:$0xff]  ;;  %v508_v49 = vld [vmem:[%s2124_s21 + $0xa70] sm:$0xff] }
  0xd6   : > { %1798 = vmatprep.subr.bf16.mxu1 %v1797_v53  ;;  %1485 = vmatprep.mubr.msk.f32.mxu1 %vm698_vm0, %v2279_v42  ;;  %v515_v53 = vld [vmem:[%s2124_s21 + $0xaa8] sm:$0xff]  ;;  %v1943_v31 = vpack.c.bf16 %v508_v49, %v502_v48  ;;  %v2645_v48 = vld [vmem:[%s2701_s0 + $0x10] sm:$0xff] }
  0xd7   : > { %v587_v49 = vld [vmem:[%s2124_s21 + $0xce8] sm:$0xff] }
  0xd8   : > { %1924 = vmatpush1.bf16.msra.mxu0 %v1923_v58  ;;  %v1945_v58 = vpack.c.bf16 %v521_v1, %v515_v53  ;;  %v1969_v52 = vpack.c.bf16 %v593_v50, %v587_v49  ;;  %v586_v53 = vld [vmem:[%s2124_s21 + $0xce0] sm:$0xff]  ;;  %v592_v1 = vld [vmem:[%s2124_s21 + $0xd10] sm:$0xff] }
  0xd9   : > { %1800 = vmatpush1.bf16.msra.mxu1 %v1799_v59  ;;  %1926 = vmatprep.subr.bf16.mxu0 %v1925_v60  ;;  %v514_v59 = vld [vmem:[%s2124_s21 + $0xaa0] sm:$0xff]  ;;  %v520_v60 = vld [vmem:[%s2124_s21 + $0xad0] sm:$0xff] }
  0xda   : > { %1802 = vmatprep.subr.bf16.mxu1 %v1801_v63  ;;  %v527_v63 = vld [vmem:[%s2124_s21 + $0xb08] sm:$0xff]  ;;  %v1947_v6 = vpack.c.bf16 %v520_v60, %v514_v59 }
  0xdb   : > { %v611_v59 = vld [vmem:[%s2124_s21 + $0xda8] sm:$0xff] }
  0xdc   : > { %1928 = vmatpush1.bf16.msra.mxu0 %v1927_v8  ;;  %v1949_v8 = vpack.c.bf16 %v533_v4, %v527_v63  ;;  %v623_v63 = vld [vmem:[%s2124_s21 + $0xe08] sm:$0xff]  ;;  %v629_v4 = vld [vmem:[%s2124_s21 + $0xe38] sm:$0xff] }
  0xdd   : > { %1804 = vmatpush1.bf16.msra.mxu1 %v1803_v3  ;;  %1930 = vmatprep.subr.bf16.mxu0 %v1929_v9  ;;  %v526_v3 = vld [vmem:[%s2124_s21 + $0xb00] sm:$0xff]  ;;  %v532_v9 = vld [vmem:[%s2124_s21 + $0xb30] sm:$0xff]  ;;  %v1981_v5 = vpack.c.bf16 %v629_v4, %v623_v63 }
  0xde   : > { %1806 = vmatprep.subr.bf16.mxu1 %v1805_v13  ;;  %v539_v13 = vld [vmem:[%s2124_s21 + $0xb68] sm:$0xff]  ;;  %v1951_v17 = vpack.c.bf16 %v532_v9, %v526_v3  ;;  %v641_v3 = vld [vmem:[%s2124_s21 + $0xe98] sm:$0xff] }
  0xe0   : > { %1932 = vmatpush1.bf16.msra.mxu0 %v1931_v19  ;;  %v1953_v19 = vpack.c.bf16 %v545_v14, %v539_v13  ;;  %v647_v13 = vld [vmem:[%s2124_s21 + $0xec8] sm:$0xff]  ;;  %v653_v14 = vld [vmem:[%s2124_s21 + $0xef8] sm:$0xff] }
  0xe1   : > { %1808 = vmatpush1.bf16.msra.mxu1 %v1807_v20  ;;  %1934 = vmatprep.subr.bf16.mxu0 %v1933_v21  ;;  %v538_v20 = vld [vmem:[%s2124_s21 + $0xb60] sm:$0xff]  ;;  %v544_v21 = vld [vmem:[%s2124_s21 + $0xb90] sm:$0xff]  ;;  %v1989_v16 = vpack.c.bf16 %v653_v14, %v647_v13 }
  0xe2   : > { %1810 = vmatprep.subr.bf16.mxu1 %v1809_v25  ;;  %v551_v25 = vld [vmem:[%s2124_s21 + $0xbc8] sm:$0xff]  ;;  %v1955_v27 = vpack.c.bf16 %v544_v21, %v538_v20  ;;  %v665_v20 = vld [vmem:[%s2124_s21 + $0xf58] sm:$0xff] }
  0xe3   : > { %v1957_v29 = vpack.c.bf16 %v557_v26, %v551_v25  ;;  %v671_v25 = vld [vmem:[%s2124_s21 + $0xf88] sm:$0xff]  ;;  %v677_v26 = vld [vmem:[%s2124_s21 + $0xfb8] sm:$0xff] }
  0xe4   : > { %1936 = vmatpush1.bf16.msra.mxu0 %v1935_v32  ;;  %v556_v32 = vld [vmem:[%s2124_s21 + $0xbf0] sm:$0xff] }
  0xe5   : > { %1812 = vmatpush1.bf16.msra.mxu1 %v1811_v33  ;;  %1938 = vmatprep.subr.bf16.mxu0 %v1937_v34  ;;  %v563_v33 = vld [vmem:[%s2124_s21 + $0xc28] sm:$0xff]  ;;  %v569_v34 = vld [vmem:[%s2124_s21 + $0xc58] sm:$0xff]  ;;  %v1959_v36 = vpack.c.bf16 %v556_v32, %v550_v30  ;;  %v676_v30 = vld [vmem:[%s2124_s21 + $0xfb0] sm:$0xff] }
  0xe6   : > { %1814 = vmatprep.subr.bf16.mxu1 %v1813_v38  ;;  %v1961_v37 = vpack.c.bf16 %v569_v34, %v563_v33  ;;  %v562_v38 = vld [vmem:[%s2124_s21 + $0xc20] sm:$0xff]  ;;  %v683_v33 = vld [vmem:[%s2124_s21 + $0xfe8] sm:$0xf] }
  0xe7   : > { %v1963_v44 = vpack.c.bf16 %v568_v39, %v562_v38  ;;  %v682_v34 = vld [vmem:[%s2124_s21 + $0xfe0] sm:$0xf] }
  0xe8   : > { %1940 = vmatpush1.bf16.msra.mxu0 %v1939_v45  ;;  %v1965_v45 = vpack.c.bf16 %v581_v43, %v575_v41 }
  0xe9   : > { %1816 = vmatpush1.bf16.msra.mxu1 %v1815_v46  ;;  %1942 = vmatprep.subr.bf16.mxu0 %v1941_v47  ;;  %v574_v46 = vld [vmem:[%s2124_s21 + $0xc80] sm:$0xff]  ;;  %v580_v47 = vld [vmem:[%s2124_s21 + $0xcb0] sm:$0xff] }
  0xea   : > { %1818 = vmatprep.subr.bf16.mxu1 %v1817_v0  ;;  %v1967_v0 = vpack.c.bf16 %v580_v47, %v574_v46 }
  0xec   : > { %1944 = vmatpush1.bf16.msra.mxu0 %v1943_v31  ;;  %v1971_v31 = vpack.c.bf16 %v592_v1, %v586_v53 }
  0xed   : > { %1820 = vmatpush1.bf16.msra.mxu1 %v1819_v56  ;;  %1946 = vmatprep.subr.bf16.mxu0 %v1945_v58  ;;  %v598_v56 = vld [vmem:[%s2124_s21 + $0xd40] sm:$0xff]  ;;  %v604_v58 = vld [vmem:[%s2124_s21 + $0xd70] sm:$0xff] }
  0xee   : > { %1822 = vmatprep.subr.bf16.mxu1 %v1821_v61  ;;  %v1975_v60 = vpack.c.bf16 %v604_v58, %v598_v56  ;;  %v610_v61 = vld [vmem:[%s2124_s21 + $0xda0] sm:$0xff] }
  0xef   : > { %v1979_v51 = vpack.c.bf16 %v616_v62, %v610_v61 }
  0xf0   : > { %1948 = vmatpush1.bf16.msra.mxu0 %v1947_v6  ;;  %v622_v6 = vld [vmem:[%s2124_s21 + $0xe00] sm:$0xff] }
  0xf1   : > { %1824 = vmatpush1.bf16.msra.mxu1 %v1823_v7  ;;  %1950 = vmatprep.subr.bf16.mxu0 %v1949_v8  ;;  %v628_v7 = vld [vmem:[%s2124_s21 + $0xe30] sm:$0xff]  ;;  %v635_v8 = vld [vmem:[%s2124_s21 + $0xe68] sm:$0xff] }
  0xf2   : > { %1826 = vmatprep.subr.bf16.mxu1 %v1825_v11  ;;  %v1983_v9 = vpack.c.bf16 %v628_v7, %v622_v6  ;;  %v1985_v10 = vpack.c.bf16 %v641_v3, %v635_v8  ;;  %v634_v11 = vld [vmem:[%s2124_s21 + $0xe60] sm:$0xff] }
  0xf3   : > { %v1987_v15 = vpack.c.bf16 %v640_v12, %v634_v11 }
  0xf4   : > { %1952 = vmatpush1.bf16.msra.mxu0 %v1951_v17  ;;  %v646_v17 = vld [vmem:[%s2124_s21 + $0xec0] sm:$0xff] }
  0xf5   : > { %1828 = vmatpush1.bf16.msra.mxu1 %v1827_v18  ;;  %1954 = vmatprep.subr.bf16.mxu0 %v1953_v19  ;;  %v652_v18 = vld [vmem:[%s2124_s21 + $0xef0] sm:$0xff]  ;;  %v659_v19 = vld [vmem:[%s2124_s21 + $0xf28] sm:$0xff] }
  0xf6   : > { %1830 = vmatprep.subr.bf16.mxu1 %v1829_v23  ;;  %v1991_v21 = vpack.c.bf16 %v652_v18, %v646_v17  ;;  %v1993_v22 = vpack.c.bf16 %v665_v20, %v659_v19  ;;  %v658_v23 = vld [vmem:[%s2124_s21 + $0xf20] sm:$0xff] }
  0xf8   : > { %1956 = vmatpush1.bf16.msra.mxu0 %v1955_v27  ;;  %v1995_v27 = vpack.c.bf16 %v664_v24, %v658_v23 }
  0xf9   : > { %1832 = vmatpush1.bf16.msra.mxu1 %v1831_v28  ;;  %1958 = vmatprep.subr.bf16.mxu0 %v1957_v29  ;;  %v1997_v28 = vpack.c.bf16 %v677_v26, %v671_v25  ;;  %v670_v29 = vld [vmem:[%s2124_s21 + $0xf80] sm:$0xff] }
  0xfa   : > { %1483 = vmatprep.subr.msk.mxu1 %vm701_vm1, %v681_v35  ;;  %v1999_v32 = vpack.c.bf16 %v676_v30, %v670_v29 }
  0xfc   : > { %1960 = vmatpush1.bf16.msra.mxu0 %v1959_v36 }
  0xfd   : > { %1484 = vmatpush1.msk.msra.mxu1 %vm701_vm1, %v680_v40  ;;  %1962 = vmatprep.subr.bf16.mxu0 %v1961_v37  ;;  %v688_v37 = vpop.permute.xlu0 %687 }
  0xfe   : > { %1140 = vmatmul.mubr.f32.vlgmr.msra.gmra.mrb[2].mxu1 %v2645_v48 }
  0xff   : > { %1282 = vmatmul.mubr.f32.vlgmr.msra.gmra.mrb[2].mxu0 %v2561_v57  ;;  %v1973_v57 = vpack.c.bf16 %v605_v55, %v599_v54 }
 0x100   : > { %1964 = vmatpush1.bf16.msra.mxu0 %v1963_v44  ;;  %1488 = vmatprep.mubr.msk.f32.mxu0 %vm698_vm0, %v2279_v42  ;;  %v617_v42 = vld [vmem:[%s2124_s21 + $0xdd8] sm:$0xff] }
 0x101   : > { %1966 = vmatprep.subr.bf16.mxu0 %v1965_v45  ;;  %v1977_v2 = vpack.c.bf16 %v617_v42, %v611_v59 }
 0x104   : > { %1968 = vmatpush1.bf16.msra.mxu0 %v1967_v0 }
 0x105   : > { %1970 = vmatprep.subr.bf16.mxu0 %v1969_v52 }
 0x108   : > { %1972 = vmatpush1.bf16.msra.mxu0 %v1971_v31 }
 0x109   : > { %1974 = vmatprep.subr.bf16.mxu0 %v1973_v57 }
 0x10c   : > { %1976 = vmatpush1.bf16.msra.mxu0 %v1975_v60 }
 0x10d   : > { %1978 = vmatprep.subr.bf16.mxu0 %v1977_v2 }
 0x110   : > { %1980 = vmatpush1.bf16.msra.mxu0 %v1979_v51 }
 0x111   : > { %1982 = vmatprep.subr.bf16.mxu0 %v1981_v5 }
 0x114   : > { %1984 = vmatpush1.bf16.msra.mxu0 %v1983_v9 }
 0x115   : > { %1986 = vmatprep.subr.bf16.mxu0 %v1985_v10 }
 0x118   : > { %1988 = vmatpush1.bf16.msra.mxu0 %v1987_v15 }
 0x119   : > { %1990 = vmatprep.subr.bf16.mxu0 %v1989_v16 }
 0x11c   : > { %1992 = vmatpush1.bf16.msra.mxu0 %v1991_v21 }
 0x11d   : > { %1994 = vmatprep.subr.bf16.mxu0 %v1993_v22 }
 0x120   : > { %1996 = vmatpush1.bf16.msra.mxu0 %v1995_v27 }
 0x121   : > { %1998 = vmatprep.subr.bf16.mxu0 %v1997_v28 }
 0x124   : > { %2000 = vmatpush1.bf16.msra.mxu0 %v1999_v32 }
 0x125   : > { %1486 = vmatprep.subr.msk.mxu0 %vm701_vm1, %v683_v33 }
 0x127   : > { %v786_v35 = vpop.f32.mrb[0].mxu1 }
 0x128   : > { %1487 = vmatpush1.msk.msra.mxu0 %vm701_vm1, %v682_v34  ;;  %v788_v36 = vpop.f32.mrb[1].mxu1  ;;  %v787_v38 = vadd.f32 %v786_v35, %v688_v37 }
 0x129   : > { %1353 = vmatmul.mubr.f32.vlgmr.msra.gmra.mrb[2].mxu0 %v2645_v48  ;;  %v789_v39 = vadd.f32 %v788_v36, %v688_v37 }
 0x152   : > { %v928_v40 = vpop.f32.mrb[0].mxu0 }
 0x153   : > { %v2002_v41 = vadd.f32 %v928_v40, %v787_v38  ;;  %v930_v43 = vpop.f32.mrb[1].mxu0 }
 0x154   : > { %v2004_v44 = vadd.f32 %v930_v43, %v789_v39 }
 0x155   : > { %v1489_v45 = vmul.f32 -1.442695, %v2002_v41 }
 0x156   : > { %v1490_v46 = vmul.f32 -1.442695, %v2004_v44 }
 0x157   : > { %2034 = vpow2.f32 %v1489_v45 }
 0x158   : > { %2036 = vpow2.f32 %v1490_v46 }
 0x161   : > { %v2035_v47 = vpop.eup %2034 }
 0x162   : > { %v2037_v49 = vpop.eup %2036  ;;  %v1377_v50 = vadd.f32 1.0, %v2035_v47 }
 0x163   : > { %v1378_v0 = vadd.f32 1.0, %v2037_v49 }
 0x164   : > { %2038 = vrcp.f32 %v1377_v50 }
 0x165   : > { %2040 = vrcp.f32 %v1378_v0 }
 0x16e   : > { %v2039_v48 = vpop.eup %2038 }
 0x16f   : > { %v2041_v52 = vpop.eup %2040  ;;  %v1395_v53 = vmul.f32 %v2039_v48, %v2002_v41 }
 0x170   : > { %v1396_v1 = vmul.f32 %v2041_v52, %v2004_v44 }
 0x172   : > { %v1407_v54 = vcombine.low %v1395_v53, %v1396_v1 }
 0x174   : > { %1413 = vst [vmem:[%s2692_s8] sm:$0xff] %v1407_v54 }
 0x1d1   : > { %v1141_v55 = vpop.f32.mrb[2].mxu1 }
 0x1d2   : > { %v2005_v31 = vadd.f32 %v1141_v55, %v688_v37  ;;  %v1143_v57 = vpop.f32.mrb[3].mxu1 }
 0x1d3   : > { %v2006_v56 = vadd.f32 %v1143_v57, %v688_v37 }
 0x1d4   : > { %v1491_v58 = vmul.f32 -1.442695, %v2005_v31 }
 0x1d5   : > { %v1492_v59 = vmul.f32 -1.442695, %v2006_v56 }
 0x1d6   : > { %2042 = vpow2.f32 %v1491_v58 }
 0x1d7   : > { %2044 = vpow2.f32 %v1492_v59 }
 0x1e0   : > { %v2043_v42 = vpop.eup %2042 }
 0x1e1   : > { %v2045_v60 = vpop.eup %2044  ;;  %v1379_v2 = vadd.f32 1.0, %v2043_v42 }
 0x1e2   : > { %v1380_v61 = vadd.f32 1.0, %v2045_v60 }
 0x1e3   : > { %2046 = vrcp.f32 %v1379_v2 }
 0x1e4   : > { %2048 = vrcp.f32 %v1380_v61 }
 0x1ed   : > { %v2047_v62 = vpop.eup %2046 }
 0x1ee   : > { %v2049_v63 = vpop.eup %2048  ;;  %v1397_v4 = vmul.f32 %v2047_v62, %v2005_v31 }
 0x1ef   : > { %v1398_v51 = vmul.f32 %v2049_v63, %v2006_v56 }
 0x1f1   : > { %v1408_v5 = vcombine.low %v1397_v4, %v1398_v51 }
 0x1f3   : > { %1414 = vst [vmem:[%s2692_s8 + $0x8] sm:$0xff] %v1408_v5 }
 0x1fc   : > { %v1354_v6 = vpop.f32.mrb[2].mxu0 }
 0x1fd   : > { %v2007_v7 = vadd.f32 %v1354_v6, %v688_v37  ;;  %v1356_v8 = vpop.f32.mrb[3].mxu0 }
 0x1fe   : > { %v2008_v3 = vadd.f32 %v1356_v8, %v688_v37 }
 0x1ff   : > { %v1493_v9 = vmul.f32 -1.442695, %v2007_v7 }
 0x200   : > { %v1494_v10 = vmul.f32 -1.442695, %v2008_v3 }
 0x201   : > { %2050 = vpow2.f32 %v1493_v9 }
 0x202   : > { %2052 = vpow2.f32 %v1494_v10 }
 0x20b   : > { %v2051_v11 = vpop.eup %2050 }
 0x20c   : > { %v2053_v12 = vpop.eup %2052  ;;  %v1381_v13 = vadd.f32 1.0, %v2051_v11 }
 0x20d   : > { %v1382_v14 = vadd.f32 1.0, %v2053_v12 }
 0x20e   : > { %2054 = vrcp.f32 %v1381_v13 }
 0x20f   : > { %2056 = vrcp.f32 %v1382_v14 }
 0x218   : > { %v2055_v15 = vpop.eup %2054 }
 0x219   : > { %v2057_v16 = vpop.eup %2056  ;;  %v1399_v17 = vmul.f32 %v2055_v15, %v2007_v7 }
 0x21a   : > { %v1400_v18 = vmul.f32 %v2057_v16, %v2008_v3 }
 0x21c   : > { %v1409_v19 = vcombine.low %v1399_v17, %v1400_v18 }
 0x21e   : > { %1417 = vst.msk [vmem:[%s2692_s8 + $0x10] sm:$0xff] %vm1416_vm3, %v1409_v19 }
 0x21f PF: > { %s13_s12 = sadd.s32 1, %s2067_s12  }
 0x220   : > { %p10_p4 = scmp.ge.s32.totalorder %s13_s12, 4  }
 0x222   :  { %12 = sbr.rel (!%p10_p4) target bundleno = 1 (0x1), region = 62 }

// kernel: apm_forward.5
= control target key start
LH: loop header
LB: loop body
LE: loop exit
PB: predicated region body
PF: predicated region fallthrough
CT: control target
= control target key end

     0   :  { %s565_s12 = smov 0   ;;  %s656_s0 = inlined_call_operand.vmem [shape: f32[16,196], index: 0, kind: input, shape index: {}]   ;;  %s657_s1 = inlined_call_operand.vmem [shape: f32[16,1], index: 1, kind: input, shape index: {}]   ;;  %s658_s2 = inlined_call_operand.vmem [shape: f32[2,196,144], index: 2, kind: input, shape index: {}]   ;;  %s659_s3 = inlined_call_operand.vmem [shape: f32[2,16,144], index: 3, kind: output, shape index: {}]  }
   0x1 LB: > { %s416_s13 = sadd.s32 4294967295, %s542_s12   ;;  %p420_p0 = scmp.ge.s32.totalorder %s542_s12, 1  ;;  %s542_s12 = sphi %s565_s12, %s13_s12  }
   0x2   : > { %p137_p1 = scmp.lt.s32.totalorder %s542_s12, 3 }
   0x4   : > { %p138_p2 = pnand %p420_p0, %p137_p1 }
   0x5   : > { %p161_p3 = scmp.lt.s32.totalorder (!%p138_p2), %s416_s13, 1  ;;  %v172_v0 = vld [vmem:[%s656_s0 + $0x8] sm:$0xff] (!%p138_p2)  ;;  %vm237_vm0 = vcmask (!%p138_p2), 556032   ;;  %v174_v1 = vld [vmem:[%s656_s0 + $0x18] sm:$0xff] (!%p138_p2)  ;;  %v225_v2 = vld [vmem:[%s657_s1] sm:$0xff] (!%p138_p2)  ;;  %v544_v3 = vmov (!%p138_p2), 0  }
   0x6   : > { %141 = sbr.rel (%p138_p2) target bundleno = 316 (0x13c), region = 32  ;;  %426 = vmatprep.mubr.msk.f32.mxu0 (!%p138_p2), %vm237_vm0, %v172_v0  ;;  %427 = vmatprep.mubr.msk.f32.mxu1 (!%p138_p2), %vm237_vm0, %v174_v1  ;;  %v226_v4 = vld [vmem:[%s657_s1 + $0x8] sm:$0xff] (!%p138_p2)  ;;  %vm244_vm1 = vcmask (!%p138_p2), 1043456   ;;  %vm357_vm2 = vcmask (!%p138_p2), 130048  }
   0x7   : > { %519 = vset.pattern.permute.xlu0 (!%p138_p2), %v544_v3 }
   0x8   : > { %229 = vperm.xlu0 (!%p138_p2), %519, %v225_v2  }
   0xc   : > { %234 = vperm.xlu0 (!%p138_p2), %519, %v226_v4  }
   0xd   : > { %s661_s13 = smov (!%p161_p3, %s416_s13), 1 }
   0xe   : > { %s509_s20 = smul.u32 400, %s661_s13  ;;  %s434_s30 = sshll.u32 %s661_s13, 5 }
   0xf   : > { %s170_s6 = scalar_lea.vmem %s659_s3, %s434_s30 }
  0x10   : > { %s591_s25 = scalar_lea.vmem %s658_s2, %s509_s20 }
  0x11   : > { %v176_v5 = vld [vmem:[%s591_s25 + $0x8] sm:$0xff]  ;;  %v178_v6 = vld [vmem:[%s591_s25 + $0x18] sm:$0xff]  ;;  %v175_v7 = vld [vmem:[%s591_s25] sm:$0xff] }
  0x12   : > { %v435_v8 = vpack.c.bf16 %v178_v6, %v176_v5  ;;  %v177_v9 = vld [vmem:[%s591_s25 + $0x10] sm:$0xff]  ;;  %v180_v10 = vld [vmem:[%s591_s25 + $0x28] sm:$0xff]  ;;  %v182_v11 = vld [vmem:[%s591_s25 + $0x38] sm:$0xff] }
  0x13   : > { %v437_v12 = vpack.c.bf16 %v177_v9, %v175_v7  ;;  %v439_v13 = vpack.c.bf16 %v182_v11, %v180_v10  ;;  %v179_v14 = vld [vmem:[%s591_s25 + $0x20] sm:$0xff]  ;;  %v181_v15 = vld [vmem:[%s591_s25 + $0x30] sm:$0xff]  ;;  %v184_v16 = vld [vmem:[%s591_s25 + $0x48] sm:$0xff] }
  0x14   : > { %436 = vmatprep.subr.bf16.mxu0 %v435_v8  ;;  %483 = vmatprep.subr.bf16.mxu1 %v435_v8  ;;  %v186_v17 = vld [vmem:[%s591_s25 + $0x58] sm:$0xff]  ;;  %v441_v18 = vpack.c.bf16 %v181_v15, %v179_v14  ;;  %v183_v20 = vld [vmem:[%s591_s25 + $0x40] sm:$0xff]  ;;  %v185_v21 = vld [vmem:[%s591_s25 + $0x50] sm:$0xff] }
  0x15   : > { %438 = vmatpush1.bf16.msra.mxu0 %v437_v12  ;;  %496 = vmatpush1.bf16.msra.mxu1 %v437_v12  ;;  %v443_v19 = vpack.c.bf16 %v186_v17, %v184_v16  ;;  %v188_v22 = vld [vmem:[%s591_s25 + $0x68] sm:$0xff]  ;;  %v190_v23 = vld [vmem:[%s591_s25 + $0x78] sm:$0xff]  ;;  %v445_v24 = vpack.c.bf16 %v185_v21, %v183_v20  ;;  %v187_v26 = vld [vmem:[%s591_s25 + $0x60] sm:$0xff] }
  0x16   : > { %440 = vmatprep.subr.bf16.mxu0 %v439_v13  ;;  %484 = vmatprep.subr.bf16.mxu1 %v439_v13  ;;  %v447_v25 = vpack.c.bf16 %v190_v23, %v188_v22  ;;  %v189_v27 = vld [vmem:[%s591_s25 + $0x70] sm:$0xff]  ;;  %v192_v28 = vld [vmem:[%s591_s25 + $0x88] sm:$0xff]  ;;  %v194_v29 = vld [vmem:[%s591_s25 + $0x98] sm:$0xff] }
  0x17   : > { %v449_v30 = vpack.c.bf16 %v189_v27, %v187_v26  ;;  %v451_v31 = vpack.c.bf16 %v194_v29, %v192_v28  ;;  %v191_v32 = vld [vmem:[%s591_s25 + $0x80] sm:$0xff]  ;;  %v193_v33 = vld [vmem:[%s591_s25 + $0x90] sm:$0xff]  ;;  %v196_v34 = vld [vmem:[%s591_s25 + $0xa8] sm:$0xff] }
  0x18   : > { %v198_v35 = vld [vmem:[%s591_s25 + $0xb8] sm:$0xff]  ;;  %v453_v36 = vpack.c.bf16 %v193_v33, %v191_v32  ;;  %v195_v38 = vld [vmem:[%s591_s25 + $0xa0] sm:$0xff]  ;;  %v197_v39 = vld [vmem:[%s591_s25 + $0xb0] sm:$0xff] }
  0x19   : > { %442 = vmatpush1.bf16.msra.mxu0 %v441_v18  ;;  %497 = vmatpush1.bf16.msra.mxu1 %v441_v18  ;;  %v455_v37 = vpack.c.bf16 %v198_v35, %v196_v34  ;;  %v200_v40 = vld [vmem:[%s591_s25 + $0xc8] sm:$0xff]  ;;  %v202_v41 = vld [vmem:[%s591_s25 + $0xd8] sm:$0xff]  ;;  %v457_v42 = vpack.c.bf16 %v197_v39, %v195_v38  ;;  %v199_v44 = vld [vmem:[%s591_s25 + $0xc0] sm:$0xff] }
  0x1a   : > { %444 = vmatprep.subr.bf16.mxu0 %v443_v19  ;;  %485 = vmatprep.subr.bf16.mxu1 %v443_v19  ;;  %v459_v43 = vpack.c.bf16 %v202_v41, %v200_v40  ;;  %v201_v45 = vld [vmem:[%s591_s25 + $0xd0] sm:$0xff]  ;;  %v204_v46 = vld [vmem:[%s591_s25 + $0xe8] sm:$0xff]  ;;  %v206_v47 = vld [vmem:[%s591_s25 + $0xf8] sm:$0xff] }
  0x1b   : > { %v461_v48 = vpack.c.bf16 %v201_v45, %v199_v44  ;;  %v463_v49 = vpack.c.bf16 %v206_v47, %v204_v46  ;;  %v203_v50 = vld [vmem:[%s591_s25 + $0xe0] sm:$0xff]  ;;  %v205_v51 = vld [vmem:[%s591_s25 + $0xf0] sm:$0xff]  ;;  %v208_v52 = vld [vmem:[%s591_s25 + $0x108] sm:$0xff] }
  0x1c   : > { %v210_v53 = vld [vmem:[%s591_s25 + $0x118] sm:$0xff]  ;;  %v465_v54 = vpack.c.bf16 %v205_v51, %v203_v50  ;;  %v207_v56 = vld [vmem:[%s591_s25 + $0x100] sm:$0xff]  ;;  %v209_v57 = vld [vmem:[%s591_s25 + $0x110] sm:$0xff] }
  0x1d   : > { %446 = vmatpush1.bf16.msra.mxu0 %v445_v24  ;;  %498 = vmatpush1.bf16.msra.mxu1 %v445_v24  ;;  %v467_v55 = vpack.c.bf16 %v210_v53, %v208_v52  ;;  %v212_v58 = vld [vmem:[%s591_s25 + $0x128] sm:$0xff]  ;;  %v214_v59 = vld [vmem:[%s591_s25 + $0x138] sm:$0xff]  ;;  %v469_v60 = vpack.c.bf16 %v209_v57, %v207_v56  ;;  %v211_v62 = vld [vmem:[%s591_s25 + $0x120] sm:$0xff] }
  0x1e   : > { %448 = vmatprep.subr.bf16.mxu0 %v447_v25  ;;  %486 = vmatprep.subr.bf16.mxu1 %v447_v25  ;;  %v471_v61 = vpack.c.bf16 %v214_v59, %v212_v58  ;;  %v213_v63 = vld [vmem:[%s591_s25 + $0x130] sm:$0xff]  ;;  %v216_v0 = vld [vmem:[%s591_s25 + $0x148] sm:$0xff]  ;;  %v218_v1 = vld [vmem:[%s591_s25 + $0x158] sm:$0xff] }
  0x1f   : > { %v473_v2 = vpack.c.bf16 %v213_v63, %v211_v62  ;;  %v475_v3 = vpack.c.bf16 %v218_v1, %v216_v0  ;;  %v215_v4 = vld [vmem:[%s591_s25 + $0x140] sm:$0xff]  ;;  %v217_v5 = vld [vmem:[%s591_s25 + $0x150] sm:$0xff]  ;;  %v220_v6 = vld [vmem:[%s591_s25 + $0x168] sm:$0xff] }
  0x20   : > { %v222_v7 = vld [vmem:[%s591_s25 + $0x178] sm:$0xff]  ;;  %v477_v8 = vpack.c.bf16 %v217_v5, %v215_v4  ;;  %v219_v10 = vld [vmem:[%s591_s25 + $0x160] sm:$0xff]  ;;  %v221_v11 = vld [vmem:[%s591_s25 + $0x170] sm:$0xff] }
  0x21   : > { %450 = vmatpush1.bf16.msra.mxu0 %v449_v30  ;;  %499 = vmatpush1.bf16.msra.mxu1 %v449_v30  ;;  %v479_v9 = vpack.c.bf16 %v222_v7, %v220_v6  ;;  %v481_v12 = vpack.c.bf16 %v221_v11, %v219_v10  ;;  %v224_v13 = vld [vmem:[%s591_s25 + $0x188] sm:$0xf]  ;;  %v223_v14 = vld [vmem:[%s591_s25 + $0x180] sm:$0xf]  ;;  %v173_v16 = vld [vmem:[%s656_s0 + $0x10] sm:$0xff] }
  0x22   : > { %452 = vmatprep.subr.bf16.mxu0 %v451_v31  ;;  %487 = vmatprep.subr.bf16.mxu1 %v451_v31  ;;  %v171_v15 = vld [vmem:[%s656_s0] sm:$0xff] }
  0x25   : > { %454 = vmatpush1.bf16.msra.mxu0 %v453_v36  ;;  %500 = vmatpush1.bf16.msra.mxu1 %v453_v36 }
  0x26   : > { %456 = vmatprep.subr.bf16.mxu0 %v455_v37  ;;  %488 = vmatprep.subr.bf16.mxu1 %v455_v37 }
  0x29   : > { %458 = vmatpush1.bf16.msra.mxu0 %v457_v42  ;;  %501 = vmatpush1.bf16.msra.mxu1 %v457_v42 }
  0x2a   : > { %460 = vmatprep.subr.bf16.mxu0 %v459_v43  ;;  %489 = vmatprep.subr.bf16.mxu1 %v459_v43 }
  0x2d   : > { %462 = vmatpush1.bf16.msra.mxu0 %v461_v48  ;;  %502 = vmatpush1.bf16.msra.mxu1 %v461_v48 }
  0x2e   : > { %464 = vmatprep.subr.bf16.mxu0 %v463_v49  ;;  %490 = vmatprep.subr.bf16.mxu1 %v463_v49 }
  0x31   : > { %466 = vmatpush1.bf16.msra.mxu0 %v465_v54  ;;  %503 = vmatpush1.bf16.msra.mxu1 %v465_v54 }
  0x32   : > { %468 = vmatprep.subr.bf16.mxu0 %v467_v55  ;;  %491 = vmatprep.subr.bf16.mxu1 %v467_v55 }
  0x35   : > { %470 = vmatpush1.bf16.msra.mxu0 %v469_v60  ;;  %504 = vmatpush1.bf16.msra.mxu1 %v469_v60 }
  0x36   : > { %472 = vmatprep.subr.bf16.mxu0 %v471_v61  ;;  %492 = vmatprep.subr.bf16.mxu1 %v471_v61 }
  0x39   : > { %474 = vmatpush1.bf16.msra.mxu0 %v473_v2  ;;  %505 = vmatpush1.bf16.msra.mxu1 %v473_v2 }
  0x3a   : > { %476 = vmatprep.subr.bf16.mxu0 %v475_v3  ;;  %493 = vmatprep.subr.bf16.mxu1 %v475_v3 }
  0x3d   : > { %478 = vmatpush1.bf16.msra.mxu0 %v477_v8  ;;  %506 = vmatpush1.bf16.msra.mxu1 %v477_v8 }
  0x3e   : > { %480 = vmatprep.subr.bf16.mxu0 %v479_v9  ;;  %494 = vmatprep.subr.bf16.mxu1 %v479_v9 }
  0x41   : > { %482 = vmatpush1.bf16.msra.mxu0 %v481_v12  ;;  %507 = vmatpush1.bf16.msra.mxu1 %v481_v12 }
  0x42   : > { %424 = vmatprep.subr.msk.mxu0 %vm244_vm1, %v224_v13  ;;  %495 = vmatprep.subr.msk.mxu1 %vm244_vm1, %v224_v13 }
  0x45   : > { %425 = vmatpush1.msk.msra.mxu0 %vm244_vm1, %v223_v14  ;;  %508 = vmatpush1.msk.msra.mxu1 %vm244_vm1, %v223_v14 }
  0x46   : > { %316 = vmatmul.mubr.f32.vlgmr.msra.gmra.mrb[0].mxu0 %v171_v15  ;;  %322 = vmatmul.mubr.f32.vlgmr.msra.gmra.mrb[0].mxu1 %v173_v16 }
  0x87   : > { %v230_v17 = vpop.permute.xlu0 %229 }
  0x8b   : > { %v235_v18 = vpop.permute.xlu0 %234 }
 0x119   : > { %v317_v19 = vpop.f32.mrb[0].mxu0  ;;  %v323_v20 = vpop.f32.mrb[0].mxu1 }
 0x11a   : > { %v318_v21 = vadd.f32 %v317_v19, %v230_v17  ;;  %v324_v22 = vadd.f32 %v323_v20, %v235_v18  ;;  %v319_v23 = vpop.f32.mrb[1].mxu0  ;;  %v325_v24 = vpop.f32.mrb[1].mxu1 }
 0x11b   : > { %v320_v25 = vadd.f32 %v319_v23, %v230_v17  ;;  %v326_v26 = vadd.f32 %v325_v24, %v235_v18 }
 0x11c   : > { %v428_v27 = vmul.f32 -1.442695, %v318_v21  ;;  %v430_v28 = vmul.f32 -1.442695, %v324_v22 }
 0x11d   : > { %v429_v29 = vmul.f32 -1.442695, %v320_v25  ;;  %v431_v30 = vmul.f32 -1.442695, %v326_v26 }
 0x11e   : > { %520 = vpow2.f32 %v428_v27 }
 0x11f   : > { %522 = vpow2.f32 %v430_v28 }
 0x120   : > { %524 = vpow2.f32 %v429_v29 }
 0x121   : > { %526 = vpow2.f32 %v431_v30 }
 0x128   : > { %v521_v31 = vpop.eup %520 }
 0x129   : > { %v523_v32 = vpop.eup %522  ;;  %v340_v33 = vadd.f32 1.0, %v521_v31 }
 0x12a   : > { %v525_v34 = vpop.eup %524  ;;  %v342_v35 = vadd.f32 1.0, %v523_v32 }
 0x12b   : > { %v527_v36 = vpop.eup %526  ;;  %528 = vrcp.f32 %v340_v33  ;;  %v341_v37 = vadd.f32 1.0, %v525_v34 }
 0x12c   : > { %530 = vrcp.f32 %v342_v35  ;;  %v343_v38 = vadd.f32 1.0, %v527_v36 }
 0x12d   : > { %532 = vrcp.f32 %v341_v37 }
 0x12e   : > { %534 = vrcp.f32 %v343_v38 }
 0x135   : > { %v529_v39 = vpop.eup %528 }
 0x136   : > { %v531_v40 = vpop.eup %530  ;;  %v352_v41 = vmul.f32 %v529_v39, %v318_v21 }
 0x137   : > { %v533_v42 = vpop.eup %532  ;;  %v354_v43 = vmul.f32 %v531_v40, %v324_v22 }
 0x138   : > { %v535_v44 = vpop.eup %534  ;;  %356 = vst [vmem:[%s170_s6] sm:$0xff] %v352_v41  ;;  %v353_v45 = vmul.f32 %v533_v42, %v320_v25 }
 0x139   : > { %359 = vst [vmem:[%s170_s6 + $0x10] sm:$0xff] %v354_v43  ;;  %v355_v46 = vmul.f32 %v535_v44, %v326_v26 }
 0x13a   : > { %358 = vst.msk [vmem:[%s170_s6 + $0x8] sm:$0xff] %vm357_vm2, %v353_v45 }
 0x13b   : > { %360 = vst.msk [vmem:[%s170_s6 + $0x18] sm:$0xff] %vm357_vm2, %v355_v46 }
 0x13c PF: > { %s13_s12 = sadd.s32 1, %s542_s12  }
 0x13d   : > { %p10_p4 = scmp.ge.s32.totalorder %s13_s12, 4  }
 0x13f   :  { %12 = sbr.rel (!%p10_p4) target bundleno = 1 (0x1), region = 62 }

// kernel: apm_forward.6
= control target key start
LH: loop header
LB: loop body
LE: loop exit
PB: predicated region body
PF: predicated region fallthrough
CT: control target
= control target key end

     0   :  { %s713_s12 = smov 0   ;;  %s859_s0 = inlined_call_operand.vmem [shape: f32[32,400], index: 0, kind: input, shape index: {}]   ;;  %s860_s1 = inlined_call_operand.vmem [shape: f32[32,1], index: 1, kind: input, shape index: {}]   ;;  %s861_s2 = inlined_call_operand.vmem [shape: f32[2,400,25], index: 2, kind: input, shape index: {}]   ;;  %s862_s3 = inlined_call_operand.vmem [shape: f32[2,32,25], index: 3, kind: output, shape index: {}]  }
   0x1 LB: > { %s532_s13 = sadd.s32 4294967295, %s689_s12   ;;  %p536_p0 = scmp.ge.s32.totalorder %s689_s12, 1  ;;  %s689_s12 = sphi %s713_s12, %s13_s12  }
   0x2   : > { %p137_p1 = scmp.lt.s32.totalorder %s689_s12, 3 }
   0x4   : > { %p138_p2 = pnand %p536_p0, %p137_p1 }
   0x5   : > { %p161_p3 = scmp.lt.s32.totalorder (!%p138_p2), %s532_s13, 1  ;;  %v172_v0 = vld [vmem:[%s859_s0 + $0x8] sm:$0xff] (!%p138_p2)  ;;  %vm261_vm0 = vcmask (!%p138_p2), 130048   ;;  %v691_v1 = vmov (!%p138_p2), 0.0|0.0   ;;  %v174_v2 = vld [vmem:[%s859_s0 + $0x18] sm:$0xff] (!%p138_p2)  ;;  %v692_v3 = vmov (!%p138_p2), 0  }
   0x6   : > { %141 = sbr.rel (%p138_p2) target bundleno = 312 (0x138), region = 32  ;;  %627 = vmatprep.subr.bf16.mxu1 (!%p138_p2), %v691_v1  ;;  %338 = vmatprep.mubr.f32.mxu0 (!%p138_p2), %v172_v0  ;;  %v237_v4 = vld [vmem:[%s860_s1] sm:$0xff] (!%p138_p2)  ;;  %v239_v5 = vld [vmem:[%s860_s1 + $0x10] sm:$0xff] (!%p138_p2)  ;;  %v238_v6 = vld [vmem:[%s860_s1 + $0x8] sm:$0xff] (!%p138_p2)  ;;  %vm472_vm1 = vcmask (!%p138_p2), 203776  }
   0x7   : > { %540 = vmatprep.mubr.msk.f32.mxu1 (!%p138_p2), %vm261_vm0, %v174_v2  ;;  %665 = vset.pattern.permute.xlu0 (!%p138_p2), %v692_v3  ;;  %v240_v14 = vld [vmem:[%s860_s1 + $0x18] sm:$0xff] (!%p138_p2) }
   0x8   : > { %666 = vset.pattern.permute.xlu1 (!%p138_p2), %v692_v3  ;;  %243 = vperm.xlu0 (!%p138_p2), %665, %v237_v4  }
   0x9   : > { %253 = vperm.xlu1 (!%p138_p2), %666, %v239_v5  }
   0xc   : > { %248 = vperm.xlu0 (!%p138_p2), %665, %v238_v6  }
   0xd   : > { %s864_s13 = smov (!%p161_p3, %s532_s13), 1  ;;  %258 = vperm.xlu1 %666, %v240_v14  }
   0xe   : > { %s654_s18 = smul.u32 400, %s864_s13  ;;  %s550_s6 = sshll.u32 %s864_s13, 5 }
   0xf   : > { %s170_s9 = scalar_lea.vmem %s862_s3, %s550_s6 }
  0x10   : > { %s741_s25 = scalar_lea.vmem %s861_s2, %s654_s18 }
  0x11   : > { %v203_v7 = vld [vmem:[%s741_s25 + $0x80] sm:$0xff]  ;;  %v204_v8 = vld [vmem:[%s741_s25 + $0x88] sm:$0xff]  ;;  %v205_v17 = vld [vmem:[%s741_s25 + $0x90] sm:$0xff] }
  0x12   : > { %v187_v9 = vld [vmem:[%s741_s25] sm:$0xff]  ;;  %v595_v10 = vpack.c.bf16 %v204_v8, %v203_v7  ;;  %v188_v11 = vld [vmem:[%s741_s25 + $0x8] sm:$0xff]  ;;  %v206_v18 = vld [vmem:[%s741_s25 + $0x98] sm:$0xff] }
  0x13   : > { %v219_v12 = vld [vmem:[%s741_s25 + $0x100] sm:$0xff]  ;;  %v220_v13 = vld [vmem:[%s741_s25 + $0x108] sm:$0xff]  ;;  %v597_v15 = vpack.c.bf16 %v188_v11, %v187_v9  ;;  %v189_v19 = vld [vmem:[%s741_s25 + $0x10] sm:$0xff]  ;;  %v599_v20 = vpack.c.bf16 %v206_v18, %v205_v17 }
  0x14   : > { %v628_v16 = vpack.c.bf16 %v220_v13, %v219_v12  ;;  %596 = vmatprep.subr.bf16.mxu0 %v595_v10  ;;  %v190_v21 = vld [vmem:[%s741_s25 + $0x18] sm:$0xff]  ;;  %v221_v22 = vld [vmem:[%s741_s25 + $0x110] sm:$0xff]  ;;  %v207_v26 = vld [vmem:[%s741_s25 + $0xa0] sm:$0xff] }
  0x15   : > { %v222_v23 = vld [vmem:[%s741_s25 + $0x118] sm:$0xff]  ;;  %598 = vmatpush3.bf16.msra.mxu0 %v597_v15  ;;  %v601_v24 = vpack.c.bf16 %v190_v21, %v189_v19  ;;  %v208_v27 = vld [vmem:[%s741_s25 + $0xa8] sm:$0xff]  ;;  %v191_v28 = vld [vmem:[%s741_s25 + $0x20] sm:$0xff] }
  0x16   : > { %629 = vmatpush1.bf16.msra.mxu1 %v628_v16  ;;  %v631_v25 = vpack.c.bf16 %v222_v23, %v221_v22  ;;  %600 = vmatprep.subr.bf16.mxu0 %v599_v20  ;;  %v603_v29 = vpack.c.bf16 %v208_v27, %v207_v26  ;;  %v192_v30 = vld [vmem:[%s741_s25 + $0x28] sm:$0xff]  ;;  %v223_v31 = vld [vmem:[%s741_s25 + $0x120] sm:$0xff]  ;;  %v209_v33 = vld [vmem:[%s741_s25 + $0xb0] sm:$0xff] }
  0x17   : > { %630 = vmatprep.subr.bf16.mxu1 %v691_v1  ;;  %v224_v32 = vld [vmem:[%s741_s25 + $0x128] sm:$0xff]  ;;  %v210_v34 = vld [vmem:[%s741_s25 + $0xb8] sm:$0xff]  ;;  %v605_v35 = vpack.c.bf16 %v192_v30, %v191_v28  ;;  %v193_v37 = vld [vmem:[%s741_s25 + $0x30] sm:$0xff] }
  0x18   : > { %v634_v36 = vpack.c.bf16 %v224_v32, %v223_v31  ;;  %v607_v38 = vpack.c.bf16 %v210_v34, %v209_v33  ;;  %v194_v39 = vld [vmem:[%s741_s25 + $0x38] sm:$0xff]  ;;  %v225_v40 = vld [vmem:[%s741_s25 + $0x130] sm:$0xff]  ;;  %v211_v42 = vld [vmem:[%s741_s25 + $0xc0] sm:$0xff] }
  0x19   : > { %602 = vmatpush3.bf16.msra.mxu0 %v601_v24  ;;  %v226_v41 = vld [vmem:[%s741_s25 + $0x138] sm:$0xff]  ;;  %v212_v43 = vld [vmem:[%s741_s25 + $0xc8] sm:$0xff]  ;;  %v609_v44 = vpack.c.bf16 %v194_v39, %v193_v37  ;;  %v195_v46 = vld [vmem:[%s741_s25 + $0x40] sm:$0xff] }
  0x1a   : > { %632 = vmatpush1.bf16.msra.mxu1 %v631_v25  ;;  %604 = vmatprep.subr.bf16.mxu0 %v603_v29  ;;  %v637_v45 = vpack.c.bf16 %v226_v41, %v225_v40  ;;  %v611_v47 = vpack.c.bf16 %v212_v43, %v211_v42  ;;  %v196_v48 = vld [vmem:[%s741_s25 + $0x48] sm:$0xff]  ;;  %v227_v49 = vld [vmem:[%s741_s25 + $0x140] sm:$0xff]  ;;  %v213_v51 = vld [vmem:[%s741_s25 + $0xd0] sm:$0xff] }
  0x1b   : > { %633 = vmatprep.subr.bf16.mxu1 %v691_v1  ;;  %v228_v50 = vld [vmem:[%s741_s25 + $0x148] sm:$0xff]  ;;  %v214_v52 = vld [vmem:[%s741_s25 + $0xd8] sm:$0xff]  ;;  %v613_v53 = vpack.c.bf16 %v196_v48, %v195_v46  ;;  %v197_v55 = vld [vmem:[%s741_s25 + $0x50] sm:$0xff] }
  0x1c   : > { %v640_v54 = vpack.c.bf16 %v228_v50, %v227_v49  ;;  %v615_v56 = vpack.c.bf16 %v214_v52, %v213_v51  ;;  %v198_v57 = vld [vmem:[%s741_s25 + $0x58] sm:$0xff]  ;;  %v229_v58 = vld [vmem:[%s741_s25 + $0x150] sm:$0xff]  ;;  %v215_v60 = vld [vmem:[%s741_s25 + $0xe0] sm:$0xff] }
  0x1d   : > { %606 = vmatpush3.bf16.msra.mxu0 %v605_v35  ;;  %v230_v59 = vld [vmem:[%s741_s25 + $0x158] sm:$0xff]  ;;  %v216_v61 = vld [vmem:[%s741_s25 + $0xe8] sm:$0xff]  ;;  %v617_v62 = vpack.c.bf16 %v198_v57, %v197_v55  ;;  %v199_v0 = vld [vmem:[%s741_s25 + $0x60] sm:$0xff] }
  0x1e   : > { %635 = vmatpush1.bf16.msra.mxu1 %v634_v36  ;;  %608 = vmatprep.subr.bf16.mxu0 %v607_v38  ;;  %v643_v63 = vpack.c.bf16 %v230_v59, %v229_v58  ;;  %v619_v2 = vpack.c.bf16 %v216_v61, %v215_v60  ;;  %v200_v3 = vld [vmem:[%s741_s25 + $0x68] sm:$0xff]  ;;  %v231_v4 = vld [vmem:[%s741_s25 + $0x160] sm:$0xff]  ;;  %v217_v6 = vld [vmem:[%s741_s25 + $0xf0] sm:$0xff] }
  0x1f   : > { %636 = vmatprep.subr.bf16.mxu1 %v691_v1  ;;  %v232_v5 = vld [vmem:[%s741_s25 + $0x168] sm:$0xff]  ;;  %v218_v7 = vld [vmem:[%s741_s25 + $0xf8] sm:$0xff]  ;;  %v621_v8 = vpack.c.bf16 %v200_v3, %v199_v0  ;;  %v201_v10 = vld [vmem:[%s741_s25 + $0x70] sm:$0xff] }
  0x20   : > { %v646_v9 = vpack.c.bf16 %v232_v5, %v231_v4  ;;  %v623_v11 = vpack.c.bf16 %v218_v7, %v217_v6  ;;  %v202_v12 = vld [vmem:[%s741_s25 + $0x78] sm:$0xff]  ;;  %v233_v13 = vld [vmem:[%s741_s25 + $0x170] sm:$0xff]  ;;  %v235_v17 = vld [vmem:[%s741_s25 + $0x180] sm:$0xff] }
  0x21   : > { %610 = vmatpush3.bf16.msra.mxu0 %v609_v44  ;;  %v234_v14 = vld [vmem:[%s741_s25 + $0x178] sm:$0xff]  ;;  %v625_v15 = vpack.c.bf16 %v202_v12, %v201_v10  ;;  %v236_v18 = vld [vmem:[%s741_s25 + $0x188] sm:$0xff]  ;;  %v171_v19 = vld [vmem:[%s859_s0] sm:$0xff] }
  0x22   : > { %638 = vmatpush1.bf16.msra.mxu1 %v637_v45  ;;  %612 = vmatprep.subr.bf16.mxu0 %v611_v47  ;;  %v649_v16 = vpack.c.bf16 %v234_v14, %v233_v13  ;;  %v652_v20 = vpack.c.bf16 %v236_v18, %v235_v17  ;;  %v176_v21 = vld [vmem:[%s859_s0 + $0x28] sm:$0xff]  ;;  %v175_v22 = vld [vmem:[%s859_s0 + $0x20] sm:$0xff]  ;;  %v173_v23 = vld [vmem:[%s859_s0 + $0x10] sm:$0xff] }
  0x23   : > { %639 = vmatprep.subr.bf16.mxu1 %v691_v1  ;;  %v180_v24 = vld [vmem:[%s859_s0 + $0x48] sm:$0xff]  ;;  %v179_v25 = vld [vmem:[%s859_s0 + $0x40] sm:$0xff]  ;;  %v177_v26 = vld [vmem:[%s859_s0 + $0x30] sm:$0xff] }
  0x24   : > { %v184_v27 = vld [vmem:[%s859_s0 + $0x68] sm:$0xff]  ;;  %v182_v28 = vld [vmem:[%s859_s0 + $0x58] sm:$0xff]  ;;  %v183_v29 = vld [vmem:[%s859_s0 + $0x60] sm:$0xff] }
  0x25   : > { %614 = vmatpush3.bf16.msra.mxu0 %v613_v53  ;;  %v181_v30 = vld [vmem:[%s859_s0 + $0x50] sm:$0xff]  ;;  %v186_v31 = vld [vmem:[%s859_s0 + $0x78] sm:$0xff] }
  0x26   : > { %641 = vmatpush1.bf16.msra.mxu1 %v640_v54  ;;  %616 = vmatprep.subr.bf16.mxu0 %v615_v56  ;;  %v185_v32 = vld [vmem:[%s859_s0 + $0x70] sm:$0xff] }
  0x27   : > { %642 = vmatprep.subr.bf16.mxu1 %v691_v1 }
  0x29   : > { %618 = vmatpush3.bf16.msra.mxu0 %v617_v62 }
  0x2a   : > { %644 = vmatpush1.bf16.msra.mxu1 %v643_v63  ;;  %620 = vmatprep.subr.bf16.mxu0 %v619_v2 }
  0x2b   : > { %645 = vmatprep.subr.bf16.mxu1 %v691_v1 }
  0x2d   : > { %622 = vmatpush3.bf16.msra.mxu0 %v621_v8 }
  0x2e   : > { %647 = vmatpush1.bf16.msra.mxu1 %v646_v9  ;;  %624 = vmatprep.subr.bf16.mxu0 %v623_v11 }
  0x2f   : > { %648 = vmatprep.subr.bf16.mxu1 %v691_v1 }
  0x31   : > { %626 = vmatpush3.bf16.msra.mxu0 %v625_v15 }
  0x32   : > { %650 = vmatpush1.bf16.msra.mxu1 %v649_v16 }
  0x33   : > { %651 = vmatprep.subr.bf16.mxu1 %v691_v1  ;;  %v178_v1 = vld [vmem:[%s859_s0 + $0x38] sm:$0xff] }
  0x34   : > { %339 = vmatmul.mubr.f32.vlgmr.msra.gmra.mrb[0].mxu0 %v171_v19 }
  0x35   : > { %343 = vmatprep.mubr.f32.mxu0 %v176_v21 }
  0x36   : > { %653 = vmatpush1.bf16.msra.mxu1 %v652_v20 }
  0x38   : > { %344 = vmatmul.mubr.f32.gmra.mrb[2].mxu0 %v175_v22 }
  0x39   : > { %424 = vmatmul.mubr.f32.vlgmr.msra.gmra.mrb[0].mxu1 %v173_v23  ;;  %348 = vmatprep.mubr.f32.mxu0 %v180_v24 }
  0x3a   : > { %541 = vmatprep.mubr.msk.f32.mxu1 %vm261_vm0, %v178_v1 }
  0x3c   : > { %349 = vmatmul.mubr.f32.gmra.mrb[4].mxu0 %v179_v25 }
  0x3d   : > { %429 = vmatmul.mubr.f32.gmra.mrb[2].mxu1 %v177_v26  ;;  %353 = vmatprep.mubr.f32.mxu0 %v184_v27 }
  0x3e   : > { %542 = vmatprep.mubr.msk.f32.mxu1 %vm261_vm0, %v182_v28 }
  0x40   : > { %354 = vmatmul.mubr.f32.gmra.mrb[6].mxu0 %v183_v29 }
  0x41   : > { %434 = vmatmul.mubr.f32.gmra.mrb[4].mxu1 %v181_v30 }
  0x42   : > { %543 = vmatprep.mubr.msk.f32.mxu1 %vm261_vm0, %v186_v31 }
  0x45   : > { %439 = vmatmul.mubr.f32.gmra.mrb[6].mxu1 %v185_v32 }
  0x87   : > { %v244_v33 = vpop.permute.xlu0 %243 }
  0x88   : > { %v254_v45 = vpop.permute.xlu1 %253 }
  0x8b   : > { %v249_v37 = vpop.permute.xlu0 %248 }
  0x8c   : > { %v259_v62 = vpop.permute.xlu1 %258 }
 0x107   : > { %v583_v34 = vpop.f32.mrb[0].mxu0 }
 0x108   : > { %v584_v35 = vpop.f32.mrb[1].mxu0 }
 0x109   : > { %v585_v36 = vadd.f32 %v584_v35, %v583_v34 }
 0x10b   : > { %v341_v38 = vadd.f32 %v585_v36, %v244_v33  ;;  %v586_v39 = vpop.f32.mrb[2].mxu0 }
 0x10c   : > { %v425_v40 = vpop.f32.mrb[0].mxu1  ;;  %v587_v41 = vpop.f32.mrb[3].mxu0 }
 0x10d   : > { %v427_v42 = vpop.f32.mrb[1].mxu1  ;;  %v426_v43 = vadd.f32 %v425_v40, %v341_v38  ;;  %v588_v44 = vadd.f32 %v587_v41, %v586_v39 }
 0x10f   : > { %v544_v46 = vmul.f32 -1.442695, %v426_v43  ;;  %v346_v47 = vadd.f32 %v588_v44, %v249_v37  ;;  %v589_v48 = vpop.f32.mrb[4].mxu0 }
 0x110   : > { %v430_v49 = vpop.f32.mrb[2].mxu1  ;;  %v590_v50 = vpop.f32.mrb[5].mxu0 }
 0x111   : > { %v432_v51 = vpop.f32.mrb[3].mxu1  ;;  %667 = vpow2.f32 %v544_v46  ;;  %v431_v52 = vadd.f32 %v430_v49, %v346_v47  ;;  %v591_v53 = vadd.f32 %v590_v50, %v589_v48 }
 0x113   : > { %v545_v54 = vmul.f32 -1.442695, %v431_v52  ;;  %v592_v55 = vpop.f32.mrb[6].mxu0  ;;  %v351_v56 = vadd.f32 %v591_v53, %v254_v45 }
 0x114   : > { %v435_v57 = vpop.f32.mrb[4].mxu1  ;;  %v593_v58 = vpop.f32.mrb[7].mxu0 }
 0x115   : > { %v437_v59 = vpop.f32.mrb[5].mxu1  ;;  %669 = vpow2.f32 %v545_v54  ;;  %v436_v60 = vadd.f32 %v435_v57, %v351_v56  ;;  %v594_v61 = vadd.f32 %v593_v58, %v592_v55 }
 0x117   : > { %v546_v63 = vmul.f32 -1.442695, %v436_v60  ;;  %v356_v0 = vadd.f32 %v594_v61, %v259_v62 }
 0x118   : > { %v440_v2 = vpop.f32.mrb[6].mxu1 }
 0x119   : > { %v442_v3 = vpop.f32.mrb[7].mxu1  ;;  %671 = vpow2.f32 %v546_v63  ;;  %v441_v4 = vadd.f32 %v440_v2, %v356_v0 }
 0x11b   : > { %v668_v5 = vpop.eup %667  ;;  %v547_v6 = vmul.f32 -1.442695, %v441_v4 }
 0x11c   : > { %v456_v7 = vadd.f32 1.0, %v668_v5 }
 0x11d   : > { %673 = vpow2.f32 %v547_v6 }
 0x11e   : > { %675 = vrcp.f32 %v456_v7 }
 0x11f   : > { %v670_v8 = vpop.eup %669 }
 0x120   : > { %v457_v9 = vadd.f32 1.0, %v670_v8 }
 0x122   : > { %677 = vrcp.f32 %v457_v9 }
 0x123   : > { %v672_v10 = vpop.eup %671 }
 0x124   : > { %v458_v11 = vadd.f32 1.0, %v672_v10 }
 0x126   : > { %679 = vrcp.f32 %v458_v11 }
 0x127   : > { %v674_v12 = vpop.eup %673 }
 0x128   : > { %v676_v13 = vpop.eup %675  ;;  %v459_v14 = vadd.f32 1.0, %v674_v12 }
 0x129   : > { %v468_v15 = vmul.f32 %v676_v13, %v426_v43 }
 0x12a   : > { %681 = vrcp.f32 %v459_v14 }
 0x12b   : > { %473 = vst.msk [vmem:[%s170_s9] sm:$0xff] %vm472_vm1, %v468_v15 }
 0x12c   : > { %v678_v16 = vpop.eup %677 }
 0x12d   : > { %v469_v17 = vmul.f32 %v678_v16, %v431_v52 }
 0x12f   : > { %474 = vst.msk [vmem:[%s170_s9 + $0x8] sm:$0xff] %vm472_vm1, %v469_v17 }
 0x130   : > { %v680_v18 = vpop.eup %679 }
 0x131   : > { %v470_v19 = vmul.f32 %v680_v18, %v436_v60 }
 0x133   : > { %475 = vst.msk [vmem:[%s170_s9 + $0x10] sm:$0xff] %vm472_vm1, %v470_v19 }
 0x134   : > { %v682_v20 = vpop.eup %681 }
 0x135   : > { %v471_v21 = vmul.f32 %v682_v20, %v441_v4 }
 0x137   : > { %476 = vst.msk [vmem:[%s170_s9 + $0x18] sm:$0xff] %vm472_vm1, %v471_v21 }
 0x138 PF: > { %s13_s12 = sadd.s32 1, %s689_s12  }
 0x139   : > { %p10_p4 = scmp.ge.s32.totalorder %s13_s12, 4  }
 0x13b   :  { %12 = sbr.rel (!%p10_p4) target bundleno = 1 (0x1), region = 62 }

// kernel: apm_forward.7
= control target key start
LH: loop header
LB: loop body
LE: loop exit
PB: predicated region body
PF: predicated region fallthrough
CT: control target
= control target key end

     0   :  { %vm68_vm0 = vcmask 261120   ;;  %vm325_vm1 = vcmask 523264   ;;  %vm21104_vm2 = vmmov 0   ;;  %vm8775_vm5 = vcmask 1041408   ;;  %s25145_s2 = inlined_call_operand.vmem [shape: f32[9,32,32], index: 2, kind: input, shape index: {}]   ;;  %s25146_s0 = inlined_call_operand.vmem [shape: f32[64,32], index: 0, kind: input, shape index: {}]   ;;  %s25147_s1 = inlined_call_operand.vmem [shape: f32[9,64,64], index: 1, kind: input, shape index: {}]   ;;  %s25148_s4 = inlined_call_operand.vmem [shape: f32[9,32,32], index: 4, kind: input, shape index: {}]   ;;  %s25149_s3 = inlined_call_operand.vmem [shape: f32[1,32], index: 3, kind: input, shape index: {}, may-alias: {3,5,7,9}]   ;;  %s25150_s6 = inlined_call_operand.vmem [shape: f32[9,32,32], index: 6, kind: input, shape index: {}]   ;;  %s25151_s5 = inlined_call_operand.vmem [shape: f32[1,32], index: 5, kind: input, shape index: {}, may-alias: {3,5,7,9}]   ;;  %s25152_s8 = inlined_call_operand.vmem [shape: f32[9,32,32], index: 8, kind: input, shape index: {}]   ;;  %s25153_s7 = inlined_call_operand.vmem [shape: f32[1,32], index: 7, kind: input, shape index: {}, may-alias: {3,5,7,9}]   ;;  %s25154_s10 = inlined_call_operand.vmem [shape: f32[32,2], index: 10, kind: input, shape index: {}]   ;;  %s25155_s9 = inlined_call_operand.vmem [shape: f32[1,32], index: 9, kind: input, shape index: {}, may-alias: {3,5,7,9}]   ;;  %s25156_s11 = inlined_call_operand.vmem [shape: f32[2,32], index: 11, kind: input, shape index: {}]   ;;  %s25157_s12 = inlined_call_operand.vmem [shape: f32[2,64,64], index: 12, kind: input, shape index: {}]   ;;  %s25158_s13 = inlined_call_operand.vmem [shape: f32[9,32,8], index: 13, kind: input, shape index: {}]   ;;  %s25159_s15 = inlined_call_operand.vmem [shape: f32[9,8,8], index: 15, kind: input, shape index: {}]   ;;  %s25160_s14 = inlined_call_operand.vmem [shape: f32[1,8], index: 14, kind: input, shape index: {}, may-alias: {14,16}]   ;;  %s25161_s16 = inlined_call_operand.vmem [shape: f32[1,8], index: 16, kind: input, shape index: {}, may-alias: {14,16}]   ;;  %s25162_s17 = inlined_call_operand.vmem [shape: f32[64,8], index: 17, kind: output, shape index: {}]  }
   0x1   :  { %25240 = sst [smem:[#allocation30_spill]] %s25145_s2  ;;  %v21471_v62 = vld [vmem:[%s25147_s1 + $0x40] sm:$0xff]  ;;  %vm8771_vm6 = vcmask 15360   ;;  %vm11825_vm9 = vcmask 64512  }
   0x2   :  { %25241 = sst [smem:[#allocation31_spill]] %s25146_s0  ;;  %s25242_s26 = sld [smem:[#allocation30_spill]] }
   0x3   :  { %s25243_s20 = sld [smem:[#allocation31_spill]] }
   0x8   :  { %v13871_v0 = vld [vmem:[%s25242_s26 + $0x20] sm:$0xff]  ;;  %v13872_v1 = vld [vmem:[%s25242_s26 + $0x28] sm:$0xff]  ;;  %v13873_v2 = vld [vmem:[%s25242_s26 + $0x30] sm:$0xff] }
   0x9   :  { %v19222_v3 = vpack.c.bf16 %v13872_v1, %v13871_v0  ;;  %v13874_v4 = vld [vmem:[%s25242_s26 + $0x38] sm:$0xff]  ;;  %v21213_v5 = vld [vmem:[%s25243_s20] sm:$0xff]  ;;  %v65_v8 = vld [vmem:[%s25242_s26 + $0x8] sm:$0xff] }
   0xa   :  { %v19226_v6 = vpack.c.bf16 %v13874_v4, %v13873_v2  ;;  %16584 = vmatprep.mubr.msk.f32.mxu1 %vm68_vm0, %v21213_v5  ;;  %v64_v7 = vld [vmem:[%s25242_s26] sm:$0xff]  ;;  %16564 = vmatprep.mubr.msk.f32.mxu0 %vm68_vm0, %v21213_v5  ;;  %v66_v10 = vld [vmem:[%s25242_s26 + $0x10] sm:$0xff]  ;;  %v67_v11 = vld [vmem:[%s25242_s26 + $0x18] sm:$0xff] }
   0xb   :  { %19223 = vmatprep.subr.bf16.mxu1 %v19222_v3  ;;  %v19214_v9 = vpack.c.bf16 %v65_v8, %v64_v7  ;;  %v19218_v12 = vpack.c.bf16 %v67_v11, %v66_v10  ;;  %v13907_v13 = vld [vmem:[%s25242_s26 + $0x40] sm:$0xff]  ;;  %v13908_v14 = vld [vmem:[%s25242_s26 + $0x48] sm:$0xff]  ;;  %v13909_v16 = vld [vmem:[%s25242_s26 + $0x50] sm:$0xff] }
   0xc   :  { %19225 = vmatpush3.bf16.msra.mxu1 %v19222_v3  ;;  %v19262_v15 = vpack.c.bf16 %v13908_v14, %v13907_v13  ;;  %v13910_v17 = vld [vmem:[%s25242_s26 + $0x58] sm:$0xff]  ;;  %v21246_v18 = vld [vmem:[%s25243_s20 + $0x8] sm:$0xff]  ;;  %v21251_v19 = vld [vmem:[%s25243_s20 + $0x10] sm:$0xff] }
   0xd   :  { %19227 = vmatprep.subr.bf16.mxu1 %v19226_v6  ;;  %19215 = vmatprep.subr.bf16.mxu0 %v19214_v9  ;;  %v19266_v20 = vpack.c.bf16 %v13910_v17, %v13909_v16  ;;  %v13935_v21 = vld [vmem:[%s25242_s26 + $0x60] sm:$0xff]  ;;  %v13936_v22 = vld [vmem:[%s25242_s26 + $0x68] sm:$0xff]  ;;  %v21266_v23 = vld [vmem:[%s25243_s20 + $0x18] sm:$0xff] }
   0xe   :  { %19217 = vmatpush3.bf16.msra.mxu0 %v19214_v9  ;;  %v21271_v24 = vld [vmem:[%s25243_s20 + $0x20] sm:$0xff]  ;;  %v19286_v25 = vpack.c.bf16 %v13936_v22, %v13935_v21  ;;  %v21284_v26 = vld [vmem:[%s25243_s20 + $0x28] sm:$0xff]  ;;  %v21289_v27 = vld [vmem:[%s25243_s20 + $0x30] sm:$0xff] }
   0xf   :  { %19219 = vmatprep.subr.bf16.mxu0 %v19218_v12  ;;  %v21302_v28 = vld [vmem:[%s25243_s20 + $0x38] sm:$0xff]  ;;  %v13937_v29 = vld [vmem:[%s25242_s26 + $0x70] sm:$0xff]  ;;  %v13963_v32 = vld [vmem:[%s25242_s26 + $0x80] sm:$0xff] }
  0x10   :  { %19229 = vmatpush3.bf16.msra.mxu1 %v19226_v6  ;;  %v13938_v30 = vld [vmem:[%s25242_s26 + $0x78] sm:$0xff]  ;;  %v13964_v33 = vld [vmem:[%s25242_s26 + $0x88] sm:$0xff]  ;;  %v13965_v35 = vld [vmem:[%s25242_s26 + $0x90] sm:$0xff] }
  0x11   :  { %19263 = vmatprep.subr.bf16.mxu1 %v19262_v15  ;;  %v19290_v31 = vpack.c.bf16 %v13938_v30, %v13937_v29  ;;  %v19310_v34 = vpack.c.bf16 %v13964_v33, %v13963_v32  ;;  %v13966_v36 = vld [vmem:[%s25242_s26 + $0x98] sm:$0xff]  ;;  %v13991_v38 = vld [vmem:[%s25242_s26 + $0xa0] sm:$0xff]  ;;  %v13992_v39 = vld [vmem:[%s25242_s26 + $0xa8] sm:$0xff] }
  0x12   :  { %19221 = vmatpush3.bf16.msra.mxu0 %v19218_v12  ;;  %v19314_v37 = vpack.c.bf16 %v13966_v36, %v13965_v35  ;;  %v19334_v40 = vpack.c.bf16 %v13992_v39, %v13991_v38  ;;  %v13993_v41 = vld [vmem:[%s25242_s26 + $0xb0] sm:$0xff]  ;;  %v13994_v42 = vld [vmem:[%s25242_s26 + $0xb8] sm:$0xff]  ;;  %v14019_v44 = vld [vmem:[%s25242_s26 + $0xc0] sm:$0xff] }
  0x13   :  { %16585 = vmatmul.mubr.msk.f32.vlgmr.msra.gmra.mrb[0].mxu1 %vm68_vm0, %v21246_v18  ;;  %v19338_v43 = vpack.c.bf16 %v13994_v42, %v13993_v41  ;;  %v14020_v45 = vld [vmem:[%s25242_s26 + $0xc8] sm:$0xff]  ;;  %v14021_v47 = vld [vmem:[%s25242_s26 + $0xd0] sm:$0xff]  ;;  %v14022_v48 = vld [vmem:[%s25242_s26 + $0xd8] sm:$0xff] }
  0x14   :  { %16587 = vmatprep.mubr.msk.f32.mxu1 %vm68_vm0, %v21251_v19  ;;  %19265 = vmatpush3.bf16.msra.mxu1 %v19262_v15  ;;  %v19358_v46 = vpack.c.bf16 %v14020_v45, %v14019_v44  ;;  %v19362_v49 = vpack.c.bf16 %v14022_v48, %v14021_v47  ;;  %v14047_v50 = vld [vmem:[%s25242_s26 + $0xe0] sm:$0xff]  ;;  %v14048_v51 = vld [vmem:[%s25242_s26 + $0xe8] sm:$0xff]  ;;  %v14049_v53 = vld [vmem:[%s25242_s26 + $0xf0] sm:$0xff] }
  0x15   :  { %19267 = vmatprep.subr.bf16.mxu1 %v19266_v20  ;;  %16565 = vmatmul.mubr.msk.f32.vlgmr.msra.gmra.mrb[0].mxu0 %vm68_vm0, %v21246_v18  ;;  %v19382_v52 = vpack.c.bf16 %v14048_v51, %v14047_v50  ;;  %v14050_v54 = vld [vmem:[%s25242_s26 + $0xf8] sm:$0xff]  ;;  %v14075_v56 = vld [vmem:[%s25242_s26 + $0x100] sm:$0xff]  ;;  %v14076_v57 = vld [vmem:[%s25242_s26 + $0x108] sm:$0xff] }
  0x16   :  { %16567 = vmatprep.mubr.msk.f32.mxu0 %vm68_vm0, %v21251_v19  ;;  %v19386_v55 = vpack.c.bf16 %v14050_v54, %v14049_v53  ;;  %v19406_v58 = vpack.c.bf16 %v14076_v57, %v14075_v56  ;;  %v14077_v59 = vld [vmem:[%s25242_s26 + $0x110] sm:$0xff]  ;;  %v14078_v60 = vld [vmem:[%s25242_s26 + $0x118] sm:$0xff]  ;;  %v21532_v41 = vld [vmem:[%s25147_s1] sm:$0xff] }
  0x17   :  { %16588 = vmatmul.mubr.msk.f32.gmra.mrb[2].mxu1 %vm68_vm0, %v21266_v23  ;;  %v19410_v61 = vpack.c.bf16 %v14078_v60, %v14077_v59  ;;  %v13886_v29 = vld [vmem:[%s25147_s1 + $0x58] sm:$0xff]  ;;  %v13889_v36 = vld [vmem:[%s25147_s1 + $0x70] sm:$0xff]  ;;  %v2400_v47 = vld [vmem:[%s25148_s4 + $0x8] sm:$0xff] }
  0x18   :  { %16590 = vmatprep.mubr.msk.f32.mxu1 %vm68_vm0, %v21271_v24  ;;  %19269 = vmatpush3.bf16.msra.mxu1 %v19266_v20  ;;  %v21527_v39 = vld [vmem:[%s25147_s1 + $0x78] sm:$0xff]  ;;  %v2401_v48 = vld [vmem:[%s25148_s4 + $0x10] sm:$0xff]  ;;  %v21569_v57 = vld [vmem:[%s25147_s1 + $0x20] sm:$0xff] }
  0x19   :  { %19287 = vmatprep.subr.bf16.mxu1 %v19286_v25  ;;  %16568 = vmatmul.mubr.msk.f32.gmra.mrb[2].mxu0 %vm68_vm0, %v21266_v23  ;;  %v21578_v60 = vld [vmem:[%s25147_s1 + $0x28] sm:$0xff] }
  0x1a   :  { %16570 = vmatprep.mubr.msk.f32.mxu0 %vm68_vm0, %v21271_v24 }
  0x1b   :  { %16591 = vmatmul.mubr.msk.f32.gmra.mrb[4].mxu1 %vm68_vm0, %v21284_v26 }
  0x1c   :  { %16593 = vmatprep.mubr.msk.f32.mxu1 %vm68_vm0, %v21289_v27 }
  0x1d   :  { %16571 = vmatmul.mubr.msk.f32.gmra.mrb[4].mxu0 %vm68_vm0, %v21284_v26 }
  0x1e   :  { %16573 = vmatprep.mubr.msk.f32.mxu0 %vm68_vm0, %v21289_v27 }
  0x1f   :  { %16594 = vmatmul.mubr.msk.f32.gmra.mrb[6].mxu1 %vm68_vm0, %v21302_v28 }
  0x20   :  { %16660 = vmatprep.mubr.msk.f32.mxu1 %vm68_vm0, %v21213_v5 }
  0x21   :  { %16574 = vmatmul.mubr.msk.f32.gmra.mrb[6].mxu0 %vm68_vm0, %v21302_v28 }
  0x22   :  { %16612 = vmatprep.mubr.msk.f32.mxu0 %vm325_vm1, %v21471_v62 }
  0x23   :  { %16661 = vmatmul.mubr.msk.f32.vlgmr.msra.gmra.mrb[8].mxu1 %vm68_vm0, %v21246_v18 }
  0x24   :  { %19289 = vmatpush3.bf16.msra.mxu1 %v19286_v25  ;;  %16663 = vmatprep.mubr.msk.f32.mxu1 %vm68_vm0, %v21251_v19 }
  0x25   :  { %19291 = vmatprep.subr.bf16.mxu1 %v19290_v31 }
  0x27   :  { %16664 = vmatmul.mubr.msk.f32.gmra.mrb[10].mxu1 %vm68_vm0, %v21266_v23 }
  0x28   :  { %16666 = vmatprep.mubr.msk.f32.mxu1 %vm68_vm0, %v21271_v24  ;;  %19293 = vmatpush3.bf16.msra.mxu1 %v19290_v31  ;;  %v13887_v31 = vld [vmem:[%s25147_s1 + $0x60] sm:$0xff] }
  0x29   :  { %19311 = vmatprep.subr.bf16.mxu1 %v19310_v34 }
  0x2b   :  { %16667 = vmatmul.mubr.msk.f32.gmra.mrb[12].mxu1 %vm68_vm0, %v21284_v26 }
  0x2c   :  { %16669 = vmatprep.mubr.msk.f32.mxu1 %vm68_vm0, %v21289_v27 }
  0x2f   :  { %16670 = vmatmul.mubr.msk.f32.gmra.mrb[14].mxu1 %vm68_vm0, %v21302_v28 }
  0x30   :  { %16708 = vmatprep.mubr.msk.f32.mxu1 %vm68_vm0, %v21213_v5 }
  0x33   :  { %16709 = vmatmul.mubr.msk.f32.vlgmr.msra.gmra.mrb[16].mxu1 %vm68_vm0, %v21246_v18 }
  0x34   :  { %19313 = vmatpush3.bf16.msra.mxu1 %v19310_v34  ;;  %16711 = vmatprep.mubr.msk.f32.mxu1 %vm68_vm0, %v21251_v19  ;;  %v21516_v34 = vld [vmem:[%s25147_s1 + $0x68] sm:$0xff] }
  0x35   :  { %19315 = vmatprep.subr.bf16.mxu1 %v19314_v37 }
  0x37   :  { %16712 = vmatmul.mubr.msk.f32.gmra.mrb[18].mxu1 %vm68_vm0, %v21266_v23 }
  0x38   :  { %16714 = vmatprep.mubr.msk.f32.mxu1 %vm68_vm0, %v21271_v24  ;;  %19317 = vmatpush3.bf16.msra.mxu1 %v19314_v37 }
  0x39   :  { %19335 = vmatprep.subr.bf16.mxu1 %v19334_v40 }
  0x3b   :  { %16715 = vmatmul.mubr.msk.f32.gmra.mrb[20].mxu1 %vm68_vm0, %v21284_v26 }
  0x3c   :  { %16717 = vmatprep.mubr.msk.f32.mxu1 %vm68_vm0, %v21289_v27 }
  0x3f   :  { %16718 = vmatmul.mubr.msk.f32.gmra.mrb[22].mxu1 %vm68_vm0, %v21302_v28 }
  0x40   :  { %16756 = vmatprep.mubr.msk.f32.mxu1 %vm68_vm0, %v21213_v5 }
  0x43   :  { %16757 = vmatmul.mubr.msk.f32.vlgmr.msra.gmra.mrb[24].mxu1 %vm68_vm0, %v21246_v18 }
  0x44   :  { %19337 = vmatpush3.bf16.msra.mxu1 %v19334_v40  ;;  %16759 = vmatprep.mubr.msk.f32.mxu1 %vm68_vm0, %v21251_v19 }
  0x45   :  { %19339 = vmatprep.subr.bf16.mxu1 %v19338_v43 }
  0x47   :  { %16760 = vmatmul.mubr.msk.f32.gmra.mrb[26].mxu1 %vm68_vm0, %v21266_v23 }
  0x48   :  { %16762 = vmatprep.mubr.msk.f32.mxu1 %vm68_vm0, %v21271_v24  ;;  %19341 = vmatpush3.bf16.msra.mxu1 %v19338_v43  ;;  %v199_v43 = vld [vmem:[%s25147_s1 + $0x8] sm:$0xff] }
  0x49   :  { %19359 = vmatprep.subr.bf16.mxu1 %v19358_v46 }
  0x4b   :  { %16763 = vmatmul.mubr.msk.f32.gmra.mrb[28].mxu1 %vm68_vm0, %v21284_v26 }
  0x4c   :  { %16765 = vmatprep.mubr.msk.f32.mxu1 %vm68_vm0, %v21289_v27 }
  0x4f   :  { %16766 = vmatmul.mubr.msk.f32.gmra.mrb[30].mxu1 %vm68_vm0, %v21302_v28 }
  0x50   :  { %16804 = vmatprep.mubr.msk.f32.mxu1 %vm68_vm0, %v21213_v5 }
  0x53   :  { %16805 = vmatmul.mubr.msk.f32.vlgmr.msra.gmra.mrb[32].mxu1 %vm68_vm0, %v21246_v18 }
  0x54   :  { %19361 = vmatpush3.bf16.msra.mxu1 %v19358_v46  ;;  %16807 = vmatprep.mubr.msk.f32.mxu1 %vm68_vm0, %v21251_v19  ;;  %v2399_v46 = vld [vmem:[%s25148_s4] sm:$0xff] }
  0x55   :  { %19363 = vmatprep.subr.bf16.mxu1 %v19362_v49  ;;  %v19430_v51 = vpack.c.bf16 %v2400_v47, %v2399_v46  ;;  %v21709_v47 = vld [vmem:[%s25147_s1 + $0x100] sm:$0xff] }
  0x57   :  { %16808 = vmatmul.mubr.msk.f32.gmra.mrb[34].mxu1 %vm68_vm0, %v21266_v23 }
  0x58   :  { %16810 = vmatprep.mubr.msk.f32.mxu1 %vm68_vm0, %v21271_v24  ;;  %19365 = vmatpush3.bf16.msra.mxu1 %v19362_v49  ;;  %v21553_v49 = vld [vmem:[%s25147_s1 + $0x10] sm:$0xff] }
  0x59   :  { %19383 = vmatprep.subr.bf16.mxu1 %v19382_v52 }
  0x5b   :  { %16811 = vmatmul.mubr.msk.f32.gmra.mrb[36].mxu1 %vm68_vm0, %v21284_v26 }
  0x5c   :  { %16813 = vmatprep.mubr.msk.f32.mxu1 %vm68_vm0, %v21289_v27 }
  0x5f   :  { %16814 = vmatmul.mubr.msk.f32.gmra.mrb[38].mxu1 %vm68_vm0, %v21302_v28 }
  0x60   :  { %16852 = vmatprep.mubr.msk.f32.mxu1 %vm68_vm0, %v21213_v5 }
  0x63   :  { %16853 = vmatmul.mubr.msk.f32.vlgmr.msra.gmra.mrb[40].mxu1 %vm68_vm0, %v21246_v18 }
  0x64   :  { %19385 = vmatpush3.bf16.msra.mxu1 %v19382_v52  ;;  %16855 = vmatprep.mubr.msk.f32.mxu1 %vm68_vm0, %v21251_v19  ;;  %v2402_v52 = vld [vmem:[%s25148_s4 + $0x18] sm:$0xff] }
  0x65   :  { %19387 = vmatprep.subr.bf16.mxu1 %v19386_v55  ;;  %v19434_v53 = vpack.c.bf16 %v2402_v52, %v2401_v48 }
  0x67   :  { %16856 = vmatmul.mubr.msk.f32.gmra.mrb[42].mxu1 %vm68_vm0, %v21266_v23 }
  0x68   :  { %16858 = vmatprep.mubr.msk.f32.mxu1 %vm68_vm0, %v21271_v24  ;;  %19389 = vmatpush3.bf16.msra.mxu1 %v19386_v55  ;;  %v21564_v55 = vld [vmem:[%s25147_s1 + $0x18] sm:$0xff] }
  0x69   :  { %19407 = vmatprep.subr.bf16.mxu1 %v19406_v58 }
  0x6b   :  { %16859 = vmatmul.mubr.msk.f32.gmra.mrb[44].mxu1 %vm68_vm0, %v21284_v26 }
  0x6c   :  { %16861 = vmatprep.mubr.msk.f32.mxu1 %vm68_vm0, %v21289_v27 }
  0x6f   :  { %16862 = vmatmul.mubr.msk.f32.gmra.mrb[46].mxu1 %vm68_vm0, %v21302_v28 }
  0x70   :  { %16900 = vmatprep.mubr.msk.f32.mxu1 %vm68_vm0, %v21213_v5 }
  0x73   :  { %16901 = vmatmul.mubr.msk.f32.vlgmr.msra.gmra.mrb[48].mxu1 %vm68_vm0, %v21246_v18 }
  0x74   :  { %19409 = vmatpush3.bf16.msra.mxu1 %v19406_v58  ;;  %16903 = vmatprep.mubr.msk.f32.mxu1 %vm68_vm0, %v21251_v19 }
  0x75   :  { %19411 = vmatprep.subr.bf16.mxu1 %v19410_v61 }
  0x77   :  { %16904 = vmatmul.mubr.msk.f32.gmra.mrb[50].mxu1 %vm68_vm0, %v21266_v23 }
  0x78   :  { %16906 = vmatprep.mubr.msk.f32.mxu1 %vm68_vm0, %v21271_v24  ;;  %19413 = vmatpush3.bf16.msra.mxu1 %v19410_v61 }
  0x79   :  { %19431 = vmatprep.subr.bf16.mxu1 %v19430_v51 }
  0x7b   :  { %16907 = vmatmul.mubr.msk.f32.gmra.mrb[52].mxu1 %vm68_vm0, %v21284_v26 }
  0x7c   :  { %16909 = vmatprep.mubr.msk.f32.mxu1 %vm68_vm0, %v21289_v27 }
  0x7f   :  { %16910 = vmatmul.mubr.msk.f32.gmra.mrb[54].mxu1 %vm68_vm0, %v21302_v28 }
  0x80   :  { %16948 = vmatprep.mubr.msk.f32.mxu1 %vm68_vm0, %v21213_v5 }
  0x83   :  { %16949 = vmatmul.mubr.msk.f32.vlgmr.msra.gmra.mrb[56].mxu1 %vm68_vm0, %v21246_v18 }
  0x84   :  { %16951 = vmatprep.mubr.msk.f32.mxu1 %vm68_vm0, %v21251_v19  ;;  %19433 = vmatpush3.bf16.msra.mxu1 %v19430_v51  ;;  %v21718_v51 = vld [vmem:[%s25147_s1 + $0x108] sm:$0xff] }
  0x85   :  { %19435 = vmatprep.subr.bf16.mxu1 %v19434_v53 }
  0x87   :  { %16952 = vmatmul.mubr.msk.f32.gmra.mrb[58].mxu1 %vm68_vm0, %v21266_v23  ;;  %v13884_v23 = vld [vmem:[%s25147_s1 + $0x48] sm:$0xff] }
  0x88   :  { %16954 = vmatprep.mubr.msk.f32.mxu1 %vm68_vm0, %v21271_v24  ;;  %19437 = vmatpush3.bf16.msra.mxu1 %v19434_v53  ;;  %v21723_v53 = vld [vmem:[%s25147_s1 + $0x110] sm:$0xff] }
  0x8b   :  { %16955 = vmatmul.mubr.msk.f32.gmra.mrb[60].mxu1 %vm68_vm0, %v21284_v26  ;;  %v13885_v26 = vld [vmem:[%s25147_s1 + $0x50] sm:$0xff] }
  0x8c   :  { %16957 = vmatprep.mubr.msk.f32.mxu1 %vm68_vm0, %v21289_v27 }
  0x8f   :  { %16958 = vmatmul.mubr.msk.f32.gmra.mrb[62].mxu1 %vm68_vm0, %v21302_v28 }
  0xe6   :  { %v16586_v63 = vpop.f32.mrb[0].mxu1 }
  0xe7   :  { %v277_v0 = vpop.f32.mrb[1].mxu1 }
  0xe8   :  { %v19230_v1 = vpack.c.bf16 %v16586_v63, %v277_v0  ;;  %v16566_v2 = vpop.f32.mrb[0].mxu0  ;;  %v21583_v63 = vld [vmem:[%s25147_s1 + $0x30] sm:$0xff] }
  0xe9   :  { %v159_v4 = vpop.f32.mrb[1].mxu0 }
  0xea   :  { %v16589_v3 = vpop.f32.mrb[2].mxu1  ;;  %19231 = vmatprep.subr.bf16.mxu0 %v19230_v1  ;;  %v19246_v6 = vpack.c.bf16 %v16566_v2, %v159_v4  ;;  %v21592_v2 = vld [vmem:[%s25147_s1 + $0x38] sm:$0xff]  ;;  %v21597_v4 = vld [vmem:[%s25147_s1 + $0x80] sm:$0xff] }
  0xeb   :  { %v287_v5 = vpop.f32.mrb[3].mxu1  ;;  %19233 = vmatpush3.bf16.msra.mxu0 %v19230_v1 }
  0xec   :  { %v19234_v7 = vpack.c.bf16 %v16589_v3, %v287_v5  ;;  %v16569_v8 = vpop.f32.mrb[2].mxu0 }
  0xed   :  { %v169_v10 = vpop.f32.mrb[3].mxu0 }
  0xee   :  { %v16592_v9 = vpop.f32.mrb[4].mxu1  ;;  %19235 = vmatprep.subr.bf16.mxu0 %v19234_v7  ;;  %v19250_v12 = vpack.c.bf16 %v16569_v8, %v169_v10 }
  0xef   :  { %v297_v11 = vpop.f32.mrb[5].mxu1  ;;  %19237 = vmatpush3.bf16.msra.mxu0 %v19234_v7  ;;  %v21606_v7 = vld [vmem:[%s25147_s1 + $0x88] sm:$0xff] }
  0xf0   :  { %v19238_v13 = vpack.c.bf16 %v16592_v9, %v297_v11  ;;  %v16572_v14 = vpop.f32.mrb[4].mxu0  ;;  %v21611_v9 = vld [vmem:[%s25147_s1 + $0x90] sm:$0xff] }
  0xf1   :  { %v179_v16 = vpop.f32.mrb[5].mxu0 }
  0xf2   :  { %v16595_v15 = vpop.f32.mrb[6].mxu1  ;;  %19239 = vmatprep.subr.bf16.mxu0 %v19238_v13  ;;  %v19254_v18 = vpack.c.bf16 %v16572_v14, %v179_v16  ;;  %v21625_v14 = vld [vmem:[%s25147_s1 + $0xa0] sm:$0xff] }
  0xf3   :  { %v307_v17 = vpop.f32.mrb[7].mxu1  ;;  %19241 = vmatpush3.bf16.msra.mxu0 %v19238_v13 }
  0xf4   :  { %v19242_v19 = vpack.c.bf16 %v16595_v15, %v307_v17  ;;  %v16575_v20 = vpop.f32.mrb[6].mxu0  ;;  %v21634_v17 = vld [vmem:[%s25147_s1 + $0xa8] sm:$0xff] }
  0xf5   :  { %v189_v21 = vpop.f32.mrb[7].mxu0 }
  0xf6   :  { %19243 = vmatprep.subr.bf16.mxu0 %v19242_v19  ;;  %v16662_v22 = vpop.f32.mrb[8].mxu1  ;;  %v19258_v24 = vpack.c.bf16 %v16575_v20, %v189_v21 }
  0xf7   :  { %19245 = vmatpush3.bf16.msra.mxu0 %v19242_v19  ;;  %v655_v25 = vpop.f32.mrb[9].mxu1  ;;  %v21639_v19 = vld [vmem:[%s25147_s1 + $0xb0] sm:$0xff] }
  0xf8   :  { %19247 = vmatprep.subr.bf16.mxu0 %v19246_v6  ;;  %v19270_v27 = vpack.c.bf16 %v16662_v22, %v655_v25  ;;  %v21648_v22 = vld [vmem:[%s25147_s1 + $0xb8] sm:$0xff] }
  0xfa   :  { %16613 = vmatmul.mubr.msk.f32.vlgmr.msra.gmra.mrb[8].mxu0 %vm325_vm1, %v13884_v23  ;;  %v16665_v28 = vpop.f32.mrb[10].mxu1 }
  0xfb   :  { %19249 = vmatpush3.bf16.msra.mxu0 %v19246_v6  ;;  %16615 = vmatprep.mubr.msk.f32.mxu0 %vm325_vm1, %v13885_v26  ;;  %v665_v30 = vpop.f32.mrb[11].mxu1 }
  0xfc   :  { %19251 = vmatprep.subr.bf16.mxu0 %v19250_v12  ;;  %v19274_v32 = vpack.c.bf16 %v16665_v28, %v665_v30 }
  0xfe   :  { %16616 = vmatmul.mubr.msk.f32.gmra.mrb[10].mxu0 %vm325_vm1, %v13886_v29  ;;  %v16668_v33 = vpop.f32.mrb[12].mxu1  ;;  %v21667_v29 = vld [vmem:[%s25147_s1 + $0xd0] sm:$0xff] }
  0xff   :  { %19253 = vmatpush3.bf16.msra.mxu0 %v19250_v12  ;;  %16618 = vmatprep.mubr.msk.f32.mxu0 %vm325_vm1, %v13887_v31  ;;  %v675_v35 = vpop.f32.mrb[13].mxu1  ;;  %v21620_v12 = vld [vmem:[%s25147_s1 + $0x98] sm:$0xff] }
 0x100   :  { %19255 = vmatprep.subr.bf16.mxu0 %v19254_v18  ;;  %v19278_v37 = vpack.c.bf16 %v16668_v33, %v675_v35  ;;  %v21681_v35 = vld [vmem:[%s25147_s1 + $0xe0] sm:$0xff] }
 0x102   :  { %16619 = vmatmul.mubr.msk.f32.gmra.mrb[12].mxu0 %vm325_vm1, %v21516_v34  ;;  %v16671_v38 = vpop.f32.mrb[14].mxu1 }
 0x103   :  { %19257 = vmatpush3.bf16.msra.mxu0 %v19254_v18  ;;  %16621 = vmatprep.mubr.msk.f32.mxu0 %vm325_vm1, %v13889_v36  ;;  %v685_v40 = vpop.f32.mrb[15].mxu1 }
 0x104   :  { %19259 = vmatprep.subr.bf16.mxu0 %v19258_v24  ;;  %v19282_v42 = vpack.c.bf16 %v16671_v38, %v685_v40  ;;  %v21690_v38 = vld [vmem:[%s25147_s1 + $0xe8] sm:$0xff] }
 0x106   :  { %16622 = vmatmul.mubr.msk.f32.gmra.mrb[14].mxu0 %vm325_vm1, %v21527_v39  ;;  %v16710_v44 = vpop.f32.mrb[16].mxu1 }
 0x107   :  { %19261 = vmatpush3.bf16.msra.mxu0 %v19258_v24  ;;  %16640 = vmatprep.mubr.msk.f32.mxu0 %vm325_vm1, %v21532_v41  ;;  %v911_v45 = vpop.f32.mrb[17].mxu1  ;;  %v21653_v24 = vld [vmem:[%s25147_s1 + $0xc0] sm:$0xff] }
 0x108   :  { %19271 = vmatprep.subr.bf16.mxu0 %v19270_v27  ;;  %v19294_v50 = vpack.c.bf16 %v16710_v44, %v911_v45  ;;  %v21704_v45 = vld [vmem:[%s25147_s1 + $0xf8] sm:$0xff] }
 0x10a   :  { %16641 = vmatmul.mubr.msk.f32.vlgmr.msra.gmra.mrb[8].mxu0 %vm325_vm1, %v199_v43  ;;  %v16713_v54 = vpop.f32.mrb[18].mxu1 }
 0x10b   :  { %19273 = vmatpush3.bf16.msra.mxu0 %v19270_v27  ;;  %16643 = vmatprep.mubr.msk.f32.mxu0 %vm325_vm1, %v21553_v49  ;;  %v921_v56 = vpop.f32.mrb[19].mxu1  ;;  %v21662_v27 = vld [vmem:[%s25147_s1 + $0xc8] sm:$0xff] }
 0x10c   :  { %19275 = vmatprep.subr.bf16.mxu0 %v19274_v32  ;;  %v19298_v58 = vpack.c.bf16 %v16713_v54, %v921_v56 }
 0x10e   :  { %16644 = vmatmul.mubr.msk.f32.gmra.mrb[10].mxu0 %vm325_vm1, %v21564_v55  ;;  %v16716_v59 = vpop.f32.mrb[20].mxu1 }
 0x10f   :  { %19277 = vmatpush3.bf16.msra.mxu0 %v19274_v32  ;;  %16646 = vmatprep.mubr.msk.f32.mxu0 %vm325_vm1, %v21569_v57  ;;  %v931_v61 = vpop.f32.mrb[21].mxu1  ;;  %v21676_v32 = vld [vmem:[%s25147_s1 + $0xd8] sm:$0xff] }
 0x110   :  { %19279 = vmatprep.subr.bf16.mxu0 %v19278_v37  ;;  %v19302_v0 = vpack.c.bf16 %v16716_v59, %v931_v61  ;;  %v21737_v61 = vld [vmem:[%s25147_s1 + $0x120] sm:$0xff] }
 0x112   :  { %16647 = vmatmul.mubr.msk.f32.gmra.mrb[12].mxu0 %vm325_vm1, %v21578_v60  ;;  %v16719_v1 = vpop.f32.mrb[22].mxu1 }
 0x113   :  { %19281 = vmatpush3.bf16.msra.mxu0 %v19278_v37  ;;  %16649 = vmatprep.mubr.msk.f32.mxu0 %vm325_vm1, %v21583_v63  ;;  %v941_v3 = vpop.f32.mrb[23].mxu1 }
 0x114   :  { %19283 = vmatprep.subr.bf16.mxu0 %v19282_v42  ;;  %v19306_v5 = vpack.c.bf16 %v16719_v1, %v941_v3  ;;  %v21746_v3 = vld [vmem:[%s25147_s1 + $0x128] sm:$0xff] }
 0x116   :  { %16650 = vmatmul.mubr.msk.f32.gmra.mrb[14].mxu0 %vm325_vm1, %v21592_v2  ;;  %v16758_v6 = vpop.f32.mrb[24].mxu1 }
 0x117   :  { %19285 = vmatpush3.bf16.msra.mxu0 %v19282_v42  ;;  %16688 = vmatprep.mubr.msk.f32.mxu0 %vm325_vm1, %v21597_v4  ;;  %v1167_v8 = vpop.f32.mrb[25].mxu1  ;;  %v21695_v42 = vld [vmem:[%s25147_s1 + $0xf0] sm:$0xff] }
 0x118   :  { %19295 = vmatprep.subr.bf16.mxu0 %v19294_v50  ;;  %v19318_v10 = vpack.c.bf16 %v16758_v6, %v1167_v8  ;;  %v21751_v6 = vld [vmem:[%s25147_s1 + $0x130] sm:$0xff] }
 0x11a   :  { %16689 = vmatmul.mubr.msk.f32.vlgmr.msra.gmra.mrb[8].mxu0 %vm325_vm1, %v21606_v7  ;;  %v16761_v11 = vpop.f32.mrb[26].mxu1 }
 0x11b   :  { %19297 = vmatpush3.bf16.msra.mxu0 %v19294_v50  ;;  %16691 = vmatprep.mubr.msk.f32.mxu0 %vm325_vm1, %v21611_v9  ;;  %v1177_v13 = vpop.f32.mrb[27].mxu1 }
 0x11c   :  { %19299 = vmatprep.subr.bf16.mxu0 %v19298_v58  ;;  %v19322_v15 = vpack.c.bf16 %v16761_v11, %v1177_v13  ;;  %v21760_v11 = vld [vmem:[%s25147_s1 + $0x138] sm:$0xff] }
 0x11e   :  { %16692 = vmatmul.mubr.msk.f32.gmra.mrb[10].mxu0 %vm325_vm1, %v21620_v12  ;;  %v16764_v16 = vpop.f32.mrb[28].mxu1 }
 0x11f   :  { %19301 = vmatpush3.bf16.msra.mxu0 %v19298_v58  ;;  %16694 = vmatprep.mubr.msk.f32.mxu0 %vm325_vm1, %v21625_v14  ;;  %v1187_v18 = vpop.f32.mrb[29].mxu1  ;;  %v21732_v58 = vld [vmem:[%s25147_s1 + $0x118] sm:$0xff] }
 0x120   :  { %19303 = vmatprep.subr.bf16.mxu0 %v19302_v0  ;;  %v19326_v20 = vpack.c.bf16 %v16764_v16, %v1187_v18 }
 0x122   :  { %16695 = vmatmul.mubr.msk.f32.gmra.mrb[12].mxu0 %vm325_vm1, %v21634_v17  ;;  %v16767_v21 = vpop.f32.mrb[30].mxu1 }
 0x123   :  { %19305 = vmatpush3.bf16.msra.mxu0 %v19302_v0  ;;  %16697 = vmatprep.mubr.msk.f32.mxu0 %vm325_vm1, %v21639_v19  ;;  %v1197_v23 = vpop.f32.mrb[31].mxu1 }
 0x124   :  { %19307 = vmatprep.subr.bf16.mxu0 %v19306_v5  ;;  %v19330_v25 = vpack.c.bf16 %v16767_v21, %v1197_v23  ;;  %v21779_v23 = vld [vmem:[%s25147_s1 + $0x150] sm:$0xff] }
 0x126   :  { %16698 = vmatmul.mubr.msk.f32.gmra.mrb[14].mxu0 %vm325_vm1, %v21648_v22  ;;  %v16806_v26 = vpop.f32.mrb[32].mxu1 }
 0x127   :  { %19309 = vmatpush3.bf16.msra.mxu0 %v19306_v5  ;;  %16736 = vmatprep.mubr.msk.f32.mxu0 %vm325_vm1, %v21653_v24  ;;  %v1423_v28 = vpop.f32.mrb[33].mxu1 }
 0x128   :  { %19319 = vmatprep.subr.bf16.mxu0 %v19318_v10  ;;  %v19342_v30 = vpack.c.bf16 %v16806_v26, %v1423_v28  ;;  %v21788_v28 = vld [vmem:[%s25147_s1 + $0x158] sm:$0xff] }
 0x12a   :  { %16737 = vmatmul.mubr.msk.f32.vlgmr.msra.gmra.mrb[8].mxu0 %vm325_vm1, %v21662_v27  ;;  %v16809_v31 = vpop.f32.mrb[34].mxu1 }
 0x12b   :  { %19321 = vmatpush3.bf16.msra.mxu0 %v19318_v10  ;;  %16739 = vmatprep.mubr.msk.f32.mxu0 %vm325_vm1, %v21667_v29  ;;  %v1433_v33 = vpop.f32.mrb[35].mxu1 }
 0x12c   :  { %19323 = vmatprep.subr.bf16.mxu0 %v19322_v15  ;;  %v19346_v36 = vpack.c.bf16 %v16809_v31, %v1433_v33  ;;  %v21793_v31 = vld [vmem:[%s25147_s1 + $0x160] sm:$0xff] }
 0x12e   :  { %16740 = vmatmul.mubr.msk.f32.gmra.mrb[10].mxu0 %vm325_vm1, %v21676_v32  ;;  %v16812_v37 = vpop.f32.mrb[36].mxu1 }
 0x12f   :  { %19325 = vmatpush3.bf16.msra.mxu0 %v19322_v15  ;;  %16742 = vmatprep.mubr.msk.f32.mxu0 %vm325_vm1, %v21681_v35  ;;  %v1443_v40 = vpop.f32.mrb[37].mxu1  ;;  %v21765_v15 = vld [vmem:[%s25147_s1 + $0x140] sm:$0xff] }
 0x130   :  { %19327 = vmatprep.subr.bf16.mxu0 %v19326_v20  ;;  %v19350_v43 = vpack.c.bf16 %v16812_v37, %v1443_v40  ;;  %v21802_v37 = vld [vmem:[%s25147_s1 + $0x168] sm:$0xff] }
 0x132   :  { %16743 = vmatmul.mubr.msk.f32.gmra.mrb[12].mxu0 %vm325_vm1, %v21690_v38  ;;  %v16815_v44 = vpop.f32.mrb[38].mxu1 }
 0x133   :  { %19329 = vmatpush3.bf16.msra.mxu0 %v19326_v20  ;;  %16745 = vmatprep.mubr.msk.f32.mxu0 %vm325_vm1, %v21695_v42  ;;  %v1453_v46 = vpop.f32.mrb[39].mxu1  ;;  %v21774_v20 = vld [vmem:[%s25147_s1 + $0x148] sm:$0xff] }
 0x134   :  { %19331 = vmatprep.subr.bf16.mxu0 %v19330_v25  ;;  %v19354_v48 = vpack.c.bf16 %v16815_v44, %v1453_v46 }
 0x136   :  { %16746 = vmatmul.mubr.msk.f32.gmra.mrb[14].mxu0 %vm325_vm1, %v21704_v45  ;;  %v16854_v50 = vpop.f32.mrb[40].mxu1 }
 0x137   :  { %19333 = vmatpush3.bf16.msra.mxu0 %v19330_v25  ;;  %16784 = vmatprep.mubr.msk.f32.mxu0 %vm325_vm1, %v21709_v47  ;;  %v1679_v52 = vpop.f32.mrb[41].mxu1 }
 0x138   :  { %19343 = vmatprep.subr.bf16.mxu0 %v19342_v30  ;;  %v19366_v54 = vpack.c.bf16 %v16854_v50, %v1679_v52  ;;  %v21821_v52 = vld [vmem:[%s25147_s1 + $0x180] sm:$0xff] }
 0x13a   :  { %16785 = vmatmul.mubr.msk.f32.vlgmr.msra.gmra.mrb[8].mxu0 %vm325_vm1, %v21718_v51  ;;  %v16857_v56 = vpop.f32.mrb[42].mxu1 }
 0x13b   :  { %19345 = vmatpush3.bf16.msra.mxu0 %v19342_v30  ;;  %16787 = vmatprep.mubr.msk.f32.mxu0 %vm325_vm1, %v21723_v53  ;;  %v1689_v59 = vpop.f32.mrb[43].mxu1 }
 0x13c   :  { %19347 = vmatprep.subr.bf16.mxu0 %v19346_v36  ;;  %v19370_v0 = vpack.c.bf16 %v16857_v56, %v1689_v59  ;;  %v21830_v59 = vld [vmem:[%s25147_s1 + $0x188] sm:$0xff] }
 0x13e   :  { %16788 = vmatmul.mubr.msk.f32.gmra.mrb[10].mxu0 %vm325_vm1, %v21732_v58  ;;  %v16860_v1 = vpop.f32.mrb[44].mxu1 }
 0x13f   :  { %19349 = vmatpush3.bf16.msra.mxu0 %v19346_v36  ;;  %16790 = vmatprep.mubr.msk.f32.mxu0 %vm325_vm1, %v21737_v61  ;;  %v1699_v5 = vpop.f32.mrb[45].mxu1 }
 0x140   :  { %19351 = vmatprep.subr.bf16.mxu0 %v19350_v43  ;;  %v19374_v8 = vpack.c.bf16 %v16860_v1, %v1699_v5  ;;  %v21835_v1 = vld [vmem:[%s25147_s1 + $0x190] sm:$0xff] }
 0x142   :  { %16791 = vmatmul.mubr.msk.f32.gmra.mrb[12].mxu0 %vm325_vm1, %v21746_v3  ;;  %v16863_v10 = vpop.f32.mrb[46].mxu1 }
 0x143   :  { %19353 = vmatpush3.bf16.msra.mxu0 %v19350_v43  ;;  %16793 = vmatprep.mubr.msk.f32.mxu0 %vm325_vm1, %v21751_v6  ;;  %v1709_v13 = vpop.f32.mrb[47].mxu1  ;;  %v21807_v43 = vld [vmem:[%s25147_s1 + $0x170] sm:$0xff] }
 0x144   :  { %19355 = vmatprep.subr.bf16.mxu0 %v19354_v48  ;;  %v19378_v16 = vpack.c.bf16 %v16863_v10, %v1709_v13  ;;  %v21844_v10 = vld [vmem:[%s25147_s1 + $0x198] sm:$0xff] }
 0x146   :  { %16794 = vmatmul.mubr.msk.f32.gmra.mrb[14].mxu0 %vm325_vm1, %v21760_v11  ;;  %v16902_v18 = vpop.f32.mrb[48].mxu1 }
 0x147   :  { %19357 = vmatpush3.bf16.msra.mxu0 %v19354_v48  ;;  %16832 = vmatprep.mubr.msk.f32.mxu0 %vm325_vm1, %v21765_v15  ;;  %v1935_v21 = vpop.f32.mrb[49].mxu1  ;;  %v21816_v48 = vld [vmem:[%s25147_s1 + $0x178] sm:$0xff] }
 0x148   :  { %19367 = vmatprep.subr.bf16.mxu0 %v19366_v54  ;;  %v19390_v25 = vpack.c.bf16 %v16902_v18, %v1935_v21 }
 0x14a   :  { %16833 = vmatmul.mubr.msk.f32.vlgmr.msra.gmra.mrb[8].mxu0 %vm325_vm1, %v21774_v20  ;;  %v16905_v26 = vpop.f32.mrb[50].mxu1 }
 0x14b   :  { %19369 = vmatpush3.bf16.msra.mxu0 %v19366_v54  ;;  %16835 = vmatprep.mubr.msk.f32.mxu0 %vm325_vm1, %v21779_v23  ;;  %v1945_v30 = vpop.f32.mrb[51].mxu1 }
 0x14c   :  { %19371 = vmatprep.subr.bf16.mxu0 %v19370_v0  ;;  %v19394_v33 = vpack.c.bf16 %v16905_v26, %v1945_v30  ;;  %v21863_v30 = vld [vmem:[%s25147_s1 + $0x1b0] sm:$0xff] }
 0x14d   :  { %25246 = vst [vmem:[#allocation4_spill] sm:$0xff] %v21863_v30 }
 0x14e   :  { %16836 = vmatmul.mubr.msk.f32.gmra.mrb[10].mxu0 %vm325_vm1, %v21788_v28  ;;  %v16908_v36 = vpop.f32.mrb[52].mxu1 }
 0x14f   :  { %19373 = vmatpush3.bf16.msra.mxu0 %v19370_v0  ;;  %16838 = vmatprep.mubr.msk.f32.mxu0 %vm325_vm1, %v21793_v31  ;;  %v1955_v40 = vpop.f32.mrb[53].mxu1 }
 0x150   :  { %19375 = vmatprep.subr.bf16.mxu0 %v19374_v8  ;;  %v19398_v44 = vpack.c.bf16 %v16908_v36, %v1955_v40  ;;  %v21872_v40 = vld [vmem:[%s25147_s1 + $0x1b8] sm:$0xff] }
 0x151   :  { %25247 = vst [vmem:[#allocation5_spill] sm:$0xff] %v21872_v40 }
 0x152   :  { %16839 = vmatmul.mubr.msk.f32.gmra.mrb[12].mxu0 %vm325_vm1, %v21802_v37  ;;  %v16911_v46 = vpop.f32.mrb[54].mxu1 }
 0x153   :  { %19377 = vmatpush3.bf16.msra.mxu0 %v19374_v8  ;;  %16841 = vmatprep.mubr.msk.f32.mxu0 %vm325_vm1, %v21807_v43  ;;  %v1965_v50 = vpop.f32.mrb[55].mxu1 }
 0x154   :  { %19379 = vmatprep.subr.bf16.mxu0 %v19378_v16  ;;  %v19402_v54 = vpack.c.bf16 %v16911_v46, %v1965_v50  ;;  %v21877_v50 = vld [vmem:[%s25147_s1 + $0x1c0] sm:$0xff] }
 0x155   :  { %25248 = vst [vmem:[#allocation6_spill] sm:$0xff] %v21877_v50 }
 0x156   :  { %16842 = vmatmul.mubr.msk.f32.gmra.mrb[14].mxu0 %vm325_vm1, %v21816_v48  ;;  %v16950_v56 = vpop.f32.mrb[56].mxu1 }
 0x157   :  { %19381 = vmatpush3.bf16.msra.mxu0 %v19378_v16  ;;  %16880 = vmatprep.mubr.msk.f32.mxu0 %vm325_vm1, %v21821_v52  ;;  %v2191_v0 = vpop.f32.mrb[57].mxu1  ;;  %v21849_v16 = vld [vmem:[%s25147_s1 + $0x1a0] sm:$0xff] }
 0x158   :  { %19391 = vmatprep.subr.bf16.mxu0 %v19390_v25  ;;  %v19414_v5 = vpack.c.bf16 %v16950_v56, %v2191_v0  ;;  %25244 = vst [vmem:[#allocation2_spill] sm:$0xff] %v21849_v16  ;;  %v21891_v0 = vld [vmem:[%s25147_s1 + $0x1d0] sm:$0xff] }
 0x159   :  { %25250 = vst [vmem:[#allocation8_spill] sm:$0xff] %v21891_v0 }
 0x15a   :  { %16881 = vmatmul.mubr.msk.f32.vlgmr.msra.gmra.mrb[8].mxu0 %vm325_vm1, %v21830_v59  ;;  %v16953_v8 = vpop.f32.mrb[58].mxu1 }
 0x15b   :  { %19393 = vmatpush3.bf16.msra.mxu0 %v19390_v25  ;;  %16883 = vmatprep.mubr.msk.f32.mxu0 %vm325_vm1, %v21835_v1  ;;  %v2201_v13 = vpop.f32.mrb[59].mxu1  ;;  %v21858_v25 = vld [vmem:[%s25147_s1 + $0x1a8] sm:$0xff] }
 0x15c   :  { %19395 = vmatprep.subr.bf16.mxu0 %v19394_v33  ;;  %v19418_v18 = vpack.c.bf16 %v16953_v8, %v2201_v13  ;;  %25245 = vst [vmem:[#allocation3_spill] sm:$0xff] %v21858_v25  ;;  %v21905_v8 = vld [vmem:[%s25147_s1 + $0x1e0] sm:$0xff]  ;;  %v21919_v13 = vld [vmem:[%s25147_s1 + $0x1f0] sm:$0xff] }
 0x15d   :  { %25252 = vst [vmem:[#allocation10_spill] sm:$0xff] %v21905_v8  ;;  %25254 = vst [vmem:[#allocation12_spill] sm:$0xff] %v21919_v13 }
 0x15e   :  { %16884 = vmatmul.mubr.msk.f32.gmra.mrb[10].mxu0 %vm325_vm1, %v21844_v10  ;;  %v16956_v21 = vpop.f32.mrb[60].mxu1 }
 0x15f   :  { %19397 = vmatpush3.bf16.msra.mxu0 %v19394_v33  ;;  %16886 = vmatprep.mubr.msk.f32.mxu0 %vm325_vm1, %v21849_v16  ;;  %v2211_v26 = vpop.f32.mrb[61].mxu1 }
 0x160   :  { %19399 = vmatprep.subr.bf16.mxu0 %v19398_v44  ;;  %v19422_v36 = vpack.c.bf16 %v16956_v21, %v2211_v26  ;;  %v21933_v21 = vld [vmem:[%s25147_s1 + $0x200] sm:$0xff]  ;;  %v21942_v26 = vld [vmem:[%s25147_s1 + $0x208] sm:$0xff] }
 0x161   :  { %25256 = vst [vmem:[#allocation14_spill] sm:$0xff] %v21933_v21  ;;  %25257 = vst [vmem:[#allocation15_spill] sm:$0xff] %v21942_v26 }
 0x162   :  { %16887 = vmatmul.mubr.msk.f32.gmra.mrb[12].mxu0 %vm325_vm1, %v21858_v25  ;;  %v16959_v33 = vpop.f32.mrb[62].mxu1 }
 0x163   :  { %19401 = vmatpush3.bf16.msra.mxu0 %v19398_v44  ;;  %16889 = vmatprep.mubr.msk.f32.mxu0 %vm325_vm1, %v21863_v30  ;;  %v2221_v46 = vpop.f32.mrb[63].mxu1  ;;  %v21886_v44 = vld [vmem:[%s25147_s1 + $0x1c8] sm:$0xff] }
 0x164   :  { %19403 = vmatprep.subr.bf16.mxu0 %v19402_v54  ;;  %v19426_v56 = vpack.c.bf16 %v16959_v33, %v2221_v46  ;;  %25249 = vst [vmem:[#allocation7_spill] sm:$0xff] %v21886_v44  ;;  %v21956_v33 = vld [vmem:[%s25147_s1 + $0x218] sm:$0xff]  ;;  %v21961_v46 = vld [vmem:[%s25147_s1 + $0x220] sm:$0xff] }
 0x165   :  { %25259 = vst [vmem:[#allocation17_spill] sm:$0xff] %v21956_v33  ;;  %25260 = vst [vmem:[#allocation18_spill] sm:$0xff] %v21961_v46 }
 0x166   :  { %16890 = vmatmul.mubr.msk.f32.gmra.mrb[14].mxu0 %vm325_vm1, %v21872_v40 }
 0x167   :  { %19405 = vmatpush3.bf16.msra.mxu0 %v19402_v54  ;;  %16928 = vmatprep.mubr.msk.f32.mxu0 %vm325_vm1, %v21877_v50  ;;  %v21900_v54 = vld [vmem:[%s25147_s1 + $0x1d8] sm:$0xff] }
 0x168   :  { %19415 = vmatprep.subr.bf16.mxu0 %v19414_v5  ;;  %25251 = vst [vmem:[#allocation9_spill] sm:$0xff] %v21900_v54 }
 0x16a   :  { %16929 = vmatmul.mubr.msk.f32.vlgmr.msra.gmra.mrb[8].mxu0 %vm325_vm1, %v21886_v44 }
 0x16b   :  { %19417 = vmatpush3.bf16.msra.mxu0 %v19414_v5  ;;  %16931 = vmatprep.mubr.msk.f32.mxu0 %vm325_vm1, %v21891_v0  ;;  %v21914_v5 = vld [vmem:[%s25147_s1 + $0x1e8] sm:$0xff] }
 0x16c   :  { %19419 = vmatprep.subr.bf16.mxu0 %v19418_v18  ;;  %25253 = vst [vmem:[#allocation11_spill] sm:$0xff] %v21914_v5 }
 0x16e   :  { %16932 = vmatmul.mubr.msk.f32.gmra.mrb[10].mxu0 %vm325_vm1, %v21900_v54 }
 0x16f   :  { %19421 = vmatpush3.bf16.msra.mxu0 %v19418_v18  ;;  %16934 = vmatprep.mubr.msk.f32.mxu0 %vm325_vm1, %v21905_v8  ;;  %v21928_v18 = vld [vmem:[%s25147_s1 + $0x1f8] sm:$0xff] }
 0x170   :  { %19423 = vmatprep.subr.bf16.mxu0 %v19422_v36  ;;  %25255 = vst [vmem:[#allocation13_spill] sm:$0xff] %v21928_v18 }
 0x172   :  { %16935 = vmatmul.mubr.msk.f32.gmra.mrb[12].mxu0 %vm325_vm1, %v21914_v5  ;;  %v14115_v5 = vld [vmem:[%s25148_s4 + $0x38] sm:$0xff] }
 0x173   :  { %19425 = vmatpush3.bf16.msra.mxu0 %v19422_v36  ;;  %16937 = vmatprep.mubr.msk.f32.mxu0 %vm325_vm1, %v21919_v13  ;;  %v21947_v36 = vld [vmem:[%s25147_s1 + $0x210] sm:$0xff] }
 0x174   :  { %19427 = vmatprep.subr.bf16.mxu0 %v19426_v56  ;;  %25258 = vst [vmem:[#allocation16_spill] sm:$0xff] %v21947_v36 }
 0x176   :  { %16938 = vmatmul.mubr.msk.f32.gmra.mrb[14].mxu0 %vm325_vm1, %v21928_v18 }
 0x177   :  { %19429 = vmatpush3.bf16.msra.mxu0 %v19426_v56  ;;  %16976 = vmatprep.mubr.msk.f32.mxu0 %vm325_vm1, %v21933_v21  ;;  %v21970_v56 = vld [vmem:[%s25147_s1 + $0x228] sm:$0xff] }
 0x178   :  { %25261 = vst [vmem:[#allocation19_spill] sm:$0xff] %v21970_v56 }
 0x17a   :  { %16977 = vmatmul.mubr.msk.f32.vlgmr.msra.gmra.mrb[8].mxu0 %vm325_vm1, %v21942_v26  ;;  %v14103_v26 = vld [vmem:[%s25149_s3] ss:$0 sm:$0xff] }
 0x17b   :  { %16979 = vmatprep.mubr.msk.f32.mxu0 %vm325_vm1, %v21947_v36  ;;  %v21975_v36 = vld [vmem:[%s25147_s1 + $0x230] sm:$0xff] }
 0x17c   :  { %25262 = vst [vmem:[#allocation20_spill] sm:$0xff] %v21975_v36 }
 0x17e   :  { %16980 = vmatmul.mubr.msk.f32.gmra.mrb[10].mxu0 %vm325_vm1, %v21956_v33  ;;  %v14112_v33 = vld [vmem:[%s25148_s4 + $0x20] sm:$0xff] }
 0x17f   :  { %16982 = vmatprep.mubr.msk.f32.mxu0 %vm325_vm1, %v21961_v46  ;;  %v21984_v46 = vld [vmem:[%s25147_s1 + $0x238] sm:$0xff] }
 0x180   :  { %25263 = vst [vmem:[#allocation21_spill] sm:$0xff] %v21984_v46 }
 0x182   :  { %16983 = vmatmul.mubr.msk.f32.gmra.mrb[12].mxu0 %vm325_vm1, %v21970_v56  ;;  %v14113_v56 = vld [vmem:[%s25148_s4 + $0x28] sm:$0xff] }
 0x183   :  { %16985 = vmatprep.mubr.msk.f32.mxu0 %vm325_vm1, %v21975_v36  ;;  %v19438_v36 = vpack.c.bf16 %v14113_v56, %v14112_v33 }
 0x185   :  { %19439 = vmatprep.subr.bf16.mxu1 %v19438_v36 }
 0x186   :  { %16986 = vmatmul.mubr.msk.f32.gmra.mrb[14].mxu0 %vm325_vm1, %v21984_v46 }
 0x187   :  { %17044 = vmatprep.mubr.msk.f32.mxu0 %vm325_vm1, %v21471_v62  ;;  %v14114_v62 = vld [vmem:[%s25148_s4 + $0x30] sm:$0xff] }
 0x188   :  { %v19442_v44 = vpack.c.bf16 %v14115_v5, %v14114_v62 }
 0x24d   :  { %v16978_v21 = vpop.f32.mrb[8].mxu0 }
 0x24e   :  { %v2384_v18 = vadd.f32 %v16978_v21, %v14103_v26  ;;  %v2329_v46 = vpop.f32.mrb[9].mxu0  ;;  %v14140_v21 = vld [vmem:[%s25148_s4 + $0x40] sm:$0xff] }
 0x24f   :  { %v2383_v13 = vadd.f32 %v14103_v26, %v2329_v46  ;;  %v14141_v46 = vld [vmem:[%s25148_s4 + $0x48] sm:$0xff] }
 0x250   :  { %v22007_v56 = vmax.f32 %v2384_v18, 0.0 }
 0x251   :  { %v22005_v8 = vmax.f32 %v2383_v13, 0.0  ;;  %v16981_v33 = vpop.f32.mrb[10].mxu0 }
 0x252   :  { %v2386_v54 = vadd.f32 %v16981_v33, %v14103_v26  ;;  %v2339_v0 = vpop.f32.mrb[11].mxu0  ;;  %v19478_v33 = vpack.c.bf16 %v14141_v46, %v14140_v21 }
 0x253   :  { %v2385_v50 = vadd.f32 %v14103_v26, %v2339_v0  ;;  %16996 = vmatprep.mubr.msk.f32.mxu1 %vm68_vm0, %v22005_v8 }
 0x254   :  { %16997 = vmatmul.mubr.msk.f32.vlgmr.msra.gmra.mrb[64].mxu1 %vm68_vm0, %v22007_v56  ;;  %v22021_v5 = vmax.f32 %v2386_v54, 0.0 }
 0x255   :  { %v22019_v13 = vmax.f32 %v2385_v50, 0.0  ;;  %v16984_v18 = vpop.f32.mrb[12].mxu0  ;;  %19441 = vmatpush3.bf16.msra.mxu1 %v19438_v36 }
 0x256   :  { %v2388_v0 = vadd.f32 %v16984_v18, %v14103_v26  ;;  %v2349_v62 = vpop.f32.mrb[13].mxu0  ;;  %19443 = vmatprep.subr.bf16.mxu1 %v19442_v44 }
 0x257   :  { %v2387_v40 = vadd.f32 %v14103_v26, %v2349_v62  ;;  %16999 = vmatprep.mubr.msk.f32.mxu1 %vm68_vm0, %v22019_v13 }
 0x258   :  { %17000 = vmatmul.mubr.msk.f32.gmra.mrb[66].mxu1 %vm68_vm0, %v22021_v5  ;;  %v22029_v50 = vmax.f32 %v2388_v0, 0.0  ;;  %v14161_v0 = vld [vmem:[%s25148_s4 + $0x68] sm:$0xff] }
 0x259   :  { %v22027_v30 = vmax.f32 %v2387_v40, 0.0  ;;  %v16987_v25 = vpop.f32.mrb[14].mxu0  ;;  %19445 = vmatpush3.bf16.msra.mxu1 %v19442_v44  ;;  %v14143_v40 = vld [vmem:[%s25148_s4 + $0x58] sm:$0xff] }
 0x25a   :  { %v2390_v36 = vadd.f32 %v16987_v25, %v14103_v26  ;;  %v2359_v54 = vpop.f32.mrb[15].mxu0  ;;  %19479 = vmatprep.subr.bf16.mxu1 %v19478_v33  ;;  %v14142_v25 = vld [vmem:[%s25148_s4 + $0x50] sm:$0xff] }
 0x25b   :  { %v2389_v18 = vadd.f32 %v14103_v26, %v2359_v54  ;;  %17002 = vmatprep.mubr.msk.f32.mxu1 %vm68_vm0, %v22027_v30  ;;  %v19482_v44 = vpack.c.bf16 %v14143_v40, %v14142_v25  ;;  %v14160_v26 = vld [vmem:[%s25148_s4 + $0x60] sm:$0xff]  ;;  %v14181_v25 = vld [vmem:[%s25148_s4 + $0x88] sm:$0xff] }
 0x25c   :  { %17003 = vmatmul.mubr.msk.f32.gmra.mrb[68].mxu1 %vm68_vm0, %v22029_v50  ;;  %v22037_v46 = vmax.f32 %v2390_v36, 0.0  ;;  %v19502_v62 = vpack.c.bf16 %v14161_v0, %v14160_v26  ;;  %v14163_v36 = vld [vmem:[%s25148_s4 + $0x78] sm:$0xff] }
 0x25d   :  { %v22035_v21 = vmax.f32 %v2389_v18, 0.0  ;;  %v14180_v18 = vld [vmem:[%s25148_s4 + $0x80] sm:$0xff]  ;;  %v14183_v26 = vld [vmem:[%s25148_s4 + $0x98] sm:$0xff] }
 0x25e   :  { %v19526_v40 = vpack.c.bf16 %v14181_v25, %v14180_v18  ;;  %v14203_v18 = vld [vmem:[%s25148_s4 + $0xb8] sm:$0xff] }
 0x25f   :  { %17005 = vmatprep.mubr.msk.f32.mxu1 %vm68_vm0, %v22035_v21 }
 0x260   :  { %17006 = vmatmul.mubr.msk.f32.gmra.mrb[70].mxu1 %vm68_vm0, %v22037_v46 }
 0x261   :  { %17016 = vmatprep.mubr.msk.f32.mxu1 %vm68_vm0, %v22005_v8 }
 0x264   :  { %17017 = vmatmul.mubr.msk.f32.vlgmr.msra.gmra.mrb[72].mxu1 %vm68_vm0, %v22007_v56 }
 0x265   :  { %17019 = vmatprep.mubr.msk.f32.mxu1 %vm68_vm0, %v22019_v13  ;;  %19481 = vmatpush3.bf16.msra.mxu1 %v19478_v33  ;;  %v14162_v33 = vld [vmem:[%s25148_s4 + $0x70] sm:$0xff] }
 0x266   :  { %19483 = vmatprep.subr.bf16.mxu1 %v19482_v44  ;;  %v19506_v54 = vpack.c.bf16 %v14163_v36, %v14162_v33  ;;  %v14201_v33 = vld [vmem:[%s25148_s4 + $0xa8] sm:$0xff] }
 0x268   :  { %17020 = vmatmul.mubr.msk.f32.gmra.mrb[74].mxu1 %vm68_vm0, %v22021_v5 }
 0x269   :  { %17022 = vmatprep.mubr.msk.f32.mxu1 %vm68_vm0, %v22027_v30  ;;  %19485 = vmatpush3.bf16.msra.mxu1 %v19482_v44  ;;  %v14182_v44 = vld [vmem:[%s25148_s4 + $0x90] sm:$0xff] }
 0x26a   :  { %19503 = vmatprep.subr.bf16.mxu1 %v19502_v62  ;;  %v19530_v0 = vpack.c.bf16 %v14183_v26, %v14182_v44  ;;  %v14221_v44 = vld [vmem:[%s25148_s4 + $0xc8] sm:$0xff] }
 0x26c   :  { %17023 = vmatmul.mubr.msk.f32.gmra.mrb[76].mxu1 %vm68_vm0, %v22029_v50 }
 0x26d   :  { %17025 = vmatprep.mubr.msk.f32.mxu1 %vm68_vm0, %v22035_v21 }
 0x270   :  { %17026 = vmatmul.mubr.msk.f32.gmra.mrb[78].mxu1 %vm68_vm0, %v22037_v46 }
 0x271   :  { %17092 = vmatprep.mubr.msk.f32.mxu1 %vm68_vm0, %v22005_v8 }
 0x274   :  { %17093 = vmatmul.mubr.msk.f32.vlgmr.msra.gmra.mrb[80].mxu1 %vm68_vm0, %v22007_v56 }
 0x275   :  { %17095 = vmatprep.mubr.msk.f32.mxu1 %vm68_vm0, %v22019_v13  ;;  %19505 = vmatpush3.bf16.msra.mxu1 %v19502_v62  ;;  %v14200_v62 = vld [vmem:[%s25148_s4 + $0xa0] sm:$0xff] }
 0x276   :  { %19507 = vmatprep.subr.bf16.mxu1 %v19506_v54  ;;  %v19550_v36 = vpack.c.bf16 %v14201_v33, %v14200_v62  ;;  %v14223_v62 = vld [vmem:[%s25148_s4 + $0xd8] sm:$0xff] }
 0x278   :  { %17096 = vmatmul.mubr.msk.f32.gmra.mrb[82].mxu1 %vm68_vm0, %v22021_v5 }
 0x279   :  { %17098 = vmatprep.mubr.msk.f32.mxu1 %vm68_vm0, %v22027_v30  ;;  %19509 = vmatpush3.bf16.msra.mxu1 %v19506_v54  ;;  %v14202_v54 = vld [vmem:[%s25148_s4 + $0xb0] sm:$0xff] }
 0x27a   :  { %19527 = vmatprep.subr.bf16.mxu1 %v19526_v40  ;;  %v19554_v25 = vpack.c.bf16 %v14203_v18, %v14202_v54  ;;  %v14241_v54 = vld [vmem:[%s25148_s4 + $0xe8] sm:$0xff] }
 0x27c   :  { %17099 = vmatmul.mubr.msk.f32.gmra.mrb[84].mxu1 %vm68_vm0, %v22029_v50 }
 0x27d   :  { %17101 = vmatprep.mubr.msk.f32.mxu1 %vm68_vm0, %v22035_v21 }
 0x280   :  { %17102 = vmatmul.mubr.msk.f32.gmra.mrb[86].mxu1 %vm68_vm0, %v22037_v46 }
 0x281   :  { %17140 = vmatprep.mubr.msk.f32.mxu1 %vm68_vm0, %v22005_v8 }
 0x284   :  { %17141 = vmatmul.mubr.msk.f32.vlgmr.msra.gmra.mrb[88].mxu1 %vm68_vm0, %v22007_v56 }
 0x285   :  { %17143 = vmatprep.mubr.msk.f32.mxu1 %vm68_vm0, %v22019_v13  ;;  %19529 = vmatpush3.bf16.msra.mxu1 %v19526_v40  ;;  %v14220_v40 = vld [vmem:[%s25148_s4 + $0xc0] sm:$0xff] }
 0x286   :  { %19531 = vmatprep.subr.bf16.mxu1 %v19530_v0  ;;  %v19574_v26 = vpack.c.bf16 %v14221_v44, %v14220_v40  ;;  %v14243_v40 = vld [vmem:[%s25148_s4 + $0xf8] sm:$0xff] }
 0x288   :  { %17144 = vmatmul.mubr.msk.f32.gmra.mrb[90].mxu1 %vm68_vm0, %v22021_v5 }
 0x289   :  { %17146 = vmatprep.mubr.msk.f32.mxu1 %vm68_vm0, %v22027_v30  ;;  %19533 = vmatpush3.bf16.msra.mxu1 %v19530_v0  ;;  %v14222_v0 = vld [vmem:[%s25148_s4 + $0xd0] sm:$0xff] }
 0x28a   :  { %19551 = vmatprep.subr.bf16.mxu1 %v19550_v36  ;;  %v19578_v33 = vpack.c.bf16 %v14223_v62, %v14222_v0  ;;  %v14261_v0 = vld [vmem:[%s25148_s4 + $0x108] sm:$0xff] }
 0x28c   :  { %17147 = vmatmul.mubr.msk.f32.gmra.mrb[92].mxu1 %vm68_vm0, %v22029_v50 }
 0x28d   :  { %17149 = vmatprep.mubr.msk.f32.mxu1 %vm68_vm0, %v22035_v21 }
 0x290   :  { %17150 = vmatmul.mubr.msk.f32.gmra.mrb[94].mxu1 %vm68_vm0, %v22037_v46 }
 0x291   :  { %17188 = vmatprep.mubr.msk.f32.mxu1 %vm68_vm0, %v22005_v8 }
 0x294   :  { %17189 = vmatmul.mubr.msk.f32.vlgmr.msra.gmra.mrb[96].mxu1 %vm68_vm0, %v22007_v56 }
 0x295   :  { %17191 = vmatprep.mubr.msk.f32.mxu1 %vm68_vm0, %v22019_v13  ;;  %19553 = vmatpush3.bf16.msra.mxu1 %v19550_v36  ;;  %v14240_v36 = vld [vmem:[%s25148_s4 + $0xe0] sm:$0xff] }
 0x296   :  { %19555 = vmatprep.subr.bf16.mxu1 %v19554_v25  ;;  %v19598_v18 = vpack.c.bf16 %v14241_v54, %v14240_v36  ;;  %v14263_v36 = vld [vmem:[%s25148_s4 + $0x118] sm:$0xff] }
 0x298   :  { %17192 = vmatmul.mubr.msk.f32.gmra.mrb[98].mxu1 %vm68_vm0, %v22021_v5 }
 0x299   :  { %17194 = vmatprep.mubr.msk.f32.mxu1 %vm68_vm0, %v22027_v30  ;;  %19557 = vmatpush3.bf16.msra.mxu1 %v19554_v25  ;;  %v14242_v25 = vld [vmem:[%s25148_s4 + $0xf0] sm:$0xff] }
 0x29a   :  { %19575 = vmatprep.subr.bf16.mxu1 %v19574_v26  ;;  %v19602_v44 = vpack.c.bf16 %v14243_v40, %v14242_v25 }
 0x29c   :  { %17195 = vmatmul.mubr.msk.f32.gmra.mrb[100].mxu1 %vm68_vm0, %v22029_v50 }
 0x29d   :  { %17197 = vmatprep.mubr.msk.f32.mxu1 %vm68_vm0, %v22035_v21 }
 0x2a0   :  { %17198 = vmatmul.mubr.msk.f32.gmra.mrb[102].mxu1 %vm68_vm0, %v22037_v46 }
 0x2a1   :  { %17236 = vmatprep.mubr.msk.f32.mxu1 %vm68_vm0, %v22005_v8 }
 0x2a4   :  { %17237 = vmatmul.mubr.msk.f32.vlgmr.msra.gmra.mrb[104].mxu1 %vm68_vm0, %v22007_v56 }
 0x2a5   :  { %17239 = vmatprep.mubr.msk.f32.mxu1 %vm68_vm0, %v22019_v13  ;;  %19577 = vmatpush3.bf16.msra.mxu1 %v19574_v26  ;;  %v14260_v26 = vld [vmem:[%s25148_s4 + $0x100] sm:$0xff] }
 0x2a6   :  { %19579 = vmatprep.subr.bf16.mxu1 %v19578_v33  ;;  %v19622_v62 = vpack.c.bf16 %v14261_v0, %v14260_v26 }
 0x2a8   :  { %17240 = vmatmul.mubr.msk.f32.gmra.mrb[106].mxu1 %vm68_vm0, %v22021_v5 }
 0x2a9   :  { %17242 = vmatprep.mubr.msk.f32.mxu1 %vm68_vm0, %v22027_v30  ;;  %19581 = vmatpush3.bf16.msra.mxu1 %v19578_v33  ;;  %v14262_v33 = vld [vmem:[%s25148_s4 + $0x110] sm:$0xff] }
 0x2aa   :  { %19599 = vmatprep.subr.bf16.mxu1 %v19598_v18  ;;  %v19626_v54 = vpack.c.bf16 %v14263_v36, %v14262_v33 }
 0x2ac   :  { %17243 = vmatmul.mubr.msk.f32.gmra.mrb[108].mxu1 %vm68_vm0, %v22029_v50 }
 0x2ad   :  { %17245 = vmatprep.mubr.msk.f32.mxu1 %vm68_vm0, %v22035_v21 }
 0x2b0   :  { %17246 = vmatmul.mubr.msk.f32.gmra.mrb[110].mxu1 %vm68_vm0, %v22037_v46 }
 0x2b1   :  { %17284 = vmatprep.mubr.msk.f32.mxu1 %vm68_vm0, %v22005_v8 }
 0x2b4   :  { %17285 = vmatmul.mubr.msk.f32.vlgmr.msra.gmra.mrb[112].mxu1 %vm68_vm0, %v22007_v56 }
 0x2b5   :  { %17287 = vmatprep.mubr.msk.f32.mxu1 %vm68_vm0, %v22019_v13  ;;  %19601 = vmatpush3.bf16.msra.mxu1 %v19598_v18 }
 0x2b6   :  { %19603 = vmatprep.subr.bf16.mxu1 %v19602_v44 }
 0x2b8   :  { %17288 = vmatmul.mubr.msk.f32.gmra.mrb[114].mxu1 %vm68_vm0, %v22021_v5 }
 0x2b9   :  { %17290 = vmatprep.mubr.msk.f32.mxu1 %vm68_vm0, %v22027_v30  ;;  %19605 = vmatpush3.bf16.msra.mxu1 %v19602_v44 }
 0x2ba   :  { %19623 = vmatprep.subr.bf16.mxu1 %v19622_v62 }
 0x2bc   :  { %17291 = vmatmul.mubr.msk.f32.gmra.mrb[116].mxu1 %vm68_vm0, %v22029_v50 }
 0x2bd   :  { %17293 = vmatprep.mubr.msk.f32.mxu1 %vm68_vm0, %v22035_v21 }
 0x2c0   :  { %17294 = vmatmul.mubr.msk.f32.gmra.mrb[118].mxu1 %vm68_vm0, %v22037_v46 }
 0x2c1   :  { %17332 = vmatprep.mubr.msk.f32.mxu1 %vm68_vm0, %v22005_v8 }
 0x2c4   :  { %17333 = vmatmul.mubr.msk.f32.vlgmr.msra.gmra.mrb[120].mxu1 %vm68_vm0, %v22007_v56 }
 0x2c5   :  { %17335 = vmatprep.mubr.msk.f32.mxu1 %vm68_vm0, %v22019_v13  ;;  %19625 = vmatpush3.bf16.msra.mxu1 %v19622_v62 }
 0x2c6   :  { %19627 = vmatprep.subr.bf16.mxu1 %v19626_v54 }
 0x2c8   :  { %17336 = vmatmul.mubr.msk.f32.gmra.mrb[122].mxu1 %vm68_vm0, %v22021_v5 }
 0x2c9   :  { %17338 = vmatprep.mubr.msk.f32.mxu1 %vm68_vm0, %v22027_v30  ;;  %19629 = vmatpush3.bf16.msra.mxu1 %v19626_v54 }
 0x2cc   :  { %17339 = vmatmul.mubr.msk.f32.gmra.mrb[124].mxu1 %vm68_vm0, %v22029_v50 }
 0x2cd   :  { %17341 = vmatprep.mubr.msk.f32.mxu1 %vm68_vm0, %v22035_v21 }
 0x2d0   :  { %17342 = vmatmul.mubr.msk.f32.gmra.mrb[126].mxu1 %vm68_vm0, %v22037_v46 }
 0x2d1   :  { %17380 = vmatprep.mubr.msk.f32.mxu1 %vm68_vm0, %v22005_v8 }
 0x2d4   :  { %17381 = vmatmul.mubr.msk.f32.vlgmr.msra.gmra.mrb[128].mxu1 %vm68_vm0, %v22007_v56 }
 0x2d5   :  { %17383 = vmatprep.mubr.msk.f32.mxu1 %vm68_vm0, %v22019_v13 }
 0x2d8   :  { %17384 = vmatmul.mubr.msk.f32.gmra.mrb[130].mxu1 %vm68_vm0, %v22021_v5 }
 0x2d9   :  { %17386 = vmatprep.mubr.msk.f32.mxu1 %vm68_vm0, %v22027_v30 }
 0x2dc   :  { %17387 = vmatmul.mubr.msk.f32.gmra.mrb[132].mxu1 %vm68_vm0, %v22029_v50 }
 0x2dd   :  { %17389 = vmatprep.mubr.msk.f32.mxu1 %vm68_vm0, %v22035_v21 }
 0x2e0   :  { %17390 = vmatmul.mubr.msk.f32.gmra.mrb[134].mxu1 %vm68_vm0, %v22037_v46 }
 0x327   :  { %v16998_v8 = vpop.f32.mrb[64].mxu1 }
 0x328   :  { %v2493_v56 = vpop.f32.mrb[65].mxu1 }
 0x329   :  { %v19462_v18 = vpack.c.bf16 %v16998_v8, %v2493_v56 }
 0x32b   :  { %v17001_v25 = vpop.f32.mrb[66].mxu1 }
 0x32c   :  { %v2503_v13 = vpop.f32.mrb[67].mxu1 }
 0x32d   :  { %v19466_v40 = vpack.c.bf16 %v17001_v25, %v2503_v13 }
 0x32f   :  { %v17004_v44 = vpop.f32.mrb[68].mxu1 }
 0x330   :  { %v2513_v5 = vpop.f32.mrb[69].mxu1 }
 0x331   :  { %v19470_v26 = vpack.c.bf16 %v17004_v44, %v2513_v5 }
 0x333   :  { %v17007_v0 = vpop.f32.mrb[70].mxu1 }
 0x334   :  { %v2523_v30 = vpop.f32.mrb[71].mxu1 }
 0x335   :  { %v19474_v62 = vpack.c.bf16 %v17007_v0, %v2523_v30 }
 0x337   :  { %v17018_v33 = vpop.f32.mrb[72].mxu1 }
 0x338   :  { %v2603_v50 = vpop.f32.mrb[73].mxu1 }
 0x339   :  { %v19446_v36 = vpack.c.bf16 %v17018_v33, %v2603_v50  ;;  %v22252_v33 = vld [vmem:[%s25147_s1 + $0x48] sm:$0xff] }
 0x33b   :  { %v17021_v54 = vpop.f32.mrb[74].mxu1  ;;  %19447 = vmatprep.subr.bf16.mxu0 %v19446_v36 }
 0x33c   :  { %v2613_v21 = vpop.f32.mrb[75].mxu1  ;;  %19449 = vmatpush3.bf16.msra.mxu0 %v19446_v36  ;;  %v22259_v36 = vld [vmem:[%s25147_s1 + $0x50] sm:$0xff] }
 0x33d   :  { %v19450_v46 = vpack.c.bf16 %v17021_v54, %v2613_v21  ;;  %v22266_v21 = vld [vmem:[%s25147_s1 + $0x58] sm:$0xff] }
 0x33f   :  { %v17024_v16 = vpop.f32.mrb[76].mxu1  ;;  %19451 = vmatprep.subr.bf16.mxu0 %v19450_v46 }
 0x340   :  { %v2623_v8 = vpop.f32.mrb[77].mxu1  ;;  %19453 = vmatpush3.bf16.msra.mxu0 %v19450_v46 }
 0x341   :  { %v19454_v56 = vpack.c.bf16 %v17024_v16, %v2623_v8  ;;  %v22273_v8 = vld [vmem:[%s25147_s1 + $0x60] sm:$0xff] }
 0x343   :  { %v17027_v25 = vpop.f32.mrb[78].mxu1  ;;  %19455 = vmatprep.subr.bf16.mxu0 %v19454_v56 }
 0x344   :  { %v2633_v13 = vpop.f32.mrb[79].mxu1  ;;  %19457 = vmatpush3.bf16.msra.mxu0 %v19454_v56 }
 0x345   :  { %v19458_v44 = vpack.c.bf16 %v17027_v25, %v2633_v13 }
 0x347   :  { %19459 = vmatprep.subr.bf16.mxu0 %v19458_v44  ;;  %v17094_v5 = vpop.f32.mrb[80].mxu1 }
 0x348   :  { %19461 = vmatpush3.bf16.msra.mxu0 %v19458_v44  ;;  %v2923_v0 = vpop.f32.mrb[81].mxu1 }
 0x349   :  { %v19486_v30 = vpack.c.bf16 %v17094_v5, %v2923_v0  ;;  %19463 = vmatprep.subr.bf16.mxu0 %v19462_v18 }
 0x34b   :  { %17045 = vmatmul.mubr.msk.f32.vlgmr.msra.gmra.mrb[16].mxu0 %vm325_vm1, %v22252_v33  ;;  %v17097_v16 = vpop.f32.mrb[82].mxu1 }
 0x34c   :  { %19465 = vmatpush3.bf16.msra.mxu0 %v19462_v18  ;;  %v2933_v50 = vpop.f32.mrb[83].mxu1  ;;  %17047 = vmatprep.mubr.msk.f32.mxu0 %vm325_vm1, %v22259_v36 }
 0x34d   :  { %v19490_v54 = vpack.c.bf16 %v17097_v16, %v2933_v50  ;;  %19467 = vmatprep.subr.bf16.mxu0 %v19466_v40 }
 0x34f   :  { %17048 = vmatmul.mubr.msk.f32.gmra.mrb[18].mxu0 %vm325_vm1, %v22266_v21  ;;  %v17100_v18 = vpop.f32.mrb[84].mxu1 }
 0x350   :  { %19469 = vmatpush3.bf16.msra.mxu0 %v19466_v40  ;;  %v2943_v46 = vpop.f32.mrb[85].mxu1  ;;  %17050 = vmatprep.mubr.msk.f32.mxu0 %vm325_vm1, %v22273_v8  ;;  %v22282_v40 = vld [vmem:[%s25147_s1 + $0x70] sm:$0xff] }
 0x351   :  { %v19494_v56 = vpack.c.bf16 %v17100_v18, %v2943_v46  ;;  %19471 = vmatprep.subr.bf16.mxu0 %v19470_v26 }
 0x353   :  { %17051 = vmatmul.mubr.msk.f32.gmra.mrb[20].mxu0 %vm325_vm1, %v21516_v34  ;;  %v17103_v25 = vpop.f32.mrb[86].mxu1  ;;  %v4444_v34 = vld [vmem:[%s25150_s6] sm:$0xff] }
 0x354   :  { %19473 = vmatpush3.bf16.msra.mxu0 %v19470_v26  ;;  %v2953_v13 = vpop.f32.mrb[87].mxu1  ;;  %17053 = vmatprep.mubr.msk.f32.mxu0 %vm325_vm1, %v22282_v40  ;;  %v4445_v26 = vld [vmem:[%s25150_s6 + $0x8] sm:$0xff] }
 0x355   :  { %v19498_v44 = vpack.c.bf16 %v17103_v25, %v2953_v13  ;;  %19475 = vmatprep.subr.bf16.mxu0 %v19474_v62  ;;  %v19646_v50 = vpack.c.bf16 %v4445_v26, %v4444_v34 }
 0x357   :  { %17054 = vmatmul.mubr.msk.f32.gmra.mrb[22].mxu0 %vm325_vm1, %v21527_v39  ;;  %v17142_v5 = vpop.f32.mrb[88].mxu1  ;;  %v22299_v39 = vld [vmem:[%s25147_s1 + $0x8] sm:$0xff]  ;;  %19647 = vmatprep.subr.bf16.mxu1 %v19646_v50 }
 0x358   :  { %19477 = vmatpush3.bf16.msra.mxu0 %v19474_v62  ;;  %v3146_v0 = vpop.f32.mrb[89].mxu1  ;;  %17072 = vmatprep.mubr.msk.f32.mxu0 %vm325_vm1, %v21532_v41 }
 0x359   :  { %v19510_v16 = vpack.c.bf16 %v17142_v5, %v3146_v0  ;;  %19487 = vmatprep.subr.bf16.mxu0 %v19486_v30  ;;  %19649 = vmatpush3.bf16.msra.mxu1 %v19646_v50 }
 0x35b   :  { %17073 = vmatmul.mubr.msk.f32.vlgmr.msra.gmra.mrb[16].mxu0 %vm325_vm1, %v22299_v39  ;;  %v17145_v41 = vpop.f32.mrb[90].mxu1 }
 0x35c   :  { %19489 = vmatpush3.bf16.msra.mxu0 %v19486_v30  ;;  %v3156_v62 = vpop.f32.mrb[91].mxu1  ;;  %17075 = vmatprep.mubr.msk.f32.mxu0 %vm325_vm1, %v21553_v49 }
 0x35d   :  { %v19514_v18 = vpack.c.bf16 %v17145_v41, %v3156_v62  ;;  %19491 = vmatprep.subr.bf16.mxu0 %v19490_v54 }
 0x35f   :  { %17076 = vmatmul.mubr.msk.f32.gmra.mrb[18].mxu0 %vm325_vm1, %v21564_v55  ;;  %v17148_v46 = vpop.f32.mrb[92].mxu1 }
 0x360   :  { %19493 = vmatpush3.bf16.msra.mxu0 %v19490_v54  ;;  %v3166_v25 = vpop.f32.mrb[93].mxu1  ;;  %17078 = vmatprep.mubr.msk.f32.mxu0 %vm325_vm1, %v21569_v57 }
 0x361   :  { %v19518_v13 = vpack.c.bf16 %v17148_v46, %v3166_v25  ;;  %19495 = vmatprep.subr.bf16.mxu0 %v19494_v56 }
 0x363   :  { %17079 = vmatmul.mubr.msk.f32.gmra.mrb[20].mxu0 %vm325_vm1, %v21578_v60  ;;  %v17151_v30 = vpop.f32.mrb[94].mxu1 }
 0x364   :  { %19497 = vmatpush3.bf16.msra.mxu0 %v19494_v56  ;;  %v3176_v49 = vpop.f32.mrb[95].mxu1  ;;  %17081 = vmatprep.mubr.msk.f32.mxu0 %vm325_vm1, %v21583_v63 }
 0x365   :  { %v19522_v5 = vpack.c.bf16 %v17151_v30, %v3176_v49  ;;  %19499 = vmatprep.subr.bf16.mxu0 %v19498_v44 }
 0x367   :  { %17082 = vmatmul.mubr.msk.f32.gmra.mrb[22].mxu0 %vm325_vm1, %v21592_v2  ;;  %v17190_v55 = vpop.f32.mrb[96].mxu1 }
 0x368   :  { %19501 = vmatpush3.bf16.msra.mxu0 %v19498_v44  ;;  %v3369_v54 = vpop.f32.mrb[97].mxu1  ;;  %17120 = vmatprep.mubr.msk.f32.mxu0 %vm325_vm1, %v21597_v4 }
 0x369   :  { %v19534_v57 = vpack.c.bf16 %v17190_v55, %v3369_v54  ;;  %19511 = vmatprep.subr.bf16.mxu0 %v19510_v16 }
 0x36b   :  { %17121 = vmatmul.mubr.msk.f32.vlgmr.msra.gmra.mrb[16].mxu0 %vm325_vm1, %v21606_v7  ;;  %v17193_v60 = vpop.f32.mrb[98].mxu1 }
 0x36c   :  { %19513 = vmatpush3.bf16.msra.mxu0 %v19510_v16  ;;  %v3379_v56 = vpop.f32.mrb[99].mxu1  ;;  %17123 = vmatprep.mubr.msk.f32.mxu0 %vm325_vm1, %v21611_v9 }
 0x36d   :  { %v19538_v63 = vpack.c.bf16 %v17193_v60, %v3379_v56  ;;  %19515 = vmatprep.subr.bf16.mxu0 %v19514_v18 }
 0x36f   :  { %17124 = vmatmul.mubr.msk.f32.gmra.mrb[18].mxu0 %vm325_vm1, %v21620_v12  ;;  %v17196_v2 = vpop.f32.mrb[100].mxu1 }
 0x370   :  { %19517 = vmatpush3.bf16.msra.mxu0 %v19514_v18  ;;  %v3389_v44 = vpop.f32.mrb[101].mxu1  ;;  %17126 = vmatprep.mubr.msk.f32.mxu0 %vm325_vm1, %v21625_v14 }
 0x371   :  { %v19542_v4 = vpack.c.bf16 %v17196_v2, %v3389_v44  ;;  %19519 = vmatprep.subr.bf16.mxu0 %v19518_v13  ;;  %v25268_v2 = vld [vmem:[#allocation6_spill] sm:$0xff]  ;;  %v25269_v44 = vld [vmem:[#allocation7_spill] sm:$0xff] }
 0x373   :  { %17127 = vmatmul.mubr.msk.f32.gmra.mrb[20].mxu0 %vm325_vm1, %v21634_v17  ;;  %v17199_v7 = vpop.f32.mrb[102].mxu1 }
 0x374   :  { %19521 = vmatpush3.bf16.msra.mxu0 %v19518_v13  ;;  %v3399_v0 = vpop.f32.mrb[103].mxu1  ;;  %17129 = vmatprep.mubr.msk.f32.mxu0 %vm325_vm1, %v21639_v19 }
 0x375   :  { %v19546_v9 = vpack.c.bf16 %v17199_v7, %v3399_v0  ;;  %19523 = vmatprep.subr.bf16.mxu0 %v19522_v5  ;;  %v25271_v7 = vld [vmem:[#allocation9_spill] sm:$0xff]  ;;  %v25272_v0 = vld [vmem:[#allocation10_spill] sm:$0xff] }
 0x377   :  { %17130 = vmatmul.mubr.msk.f32.gmra.mrb[22].mxu0 %vm325_vm1, %v21648_v22  ;;  %v17238_v12 = vpop.f32.mrb[104].mxu1 }
 0x378   :  { %19525 = vmatpush3.bf16.msra.mxu0 %v19522_v5  ;;  %v3592_v34 = vpop.f32.mrb[105].mxu1  ;;  %17168 = vmatprep.mubr.msk.f32.mxu0 %vm325_vm1, %v21653_v24 }
 0x379   :  { %v19558_v14 = vpack.c.bf16 %v17238_v12, %v3592_v34  ;;  %19535 = vmatprep.subr.bf16.mxu0 %v19534_v57  ;;  %v25274_v12 = vld [vmem:[#allocation12_spill] sm:$0xff]  ;;  %v25275_v34 = vld [vmem:[#allocation13_spill] sm:$0xff] }
 0x37b   :  { %17169 = vmatmul.mubr.msk.f32.vlgmr.msra.gmra.mrb[16].mxu0 %vm325_vm1, %v21662_v27  ;;  %v17241_v17 = vpop.f32.mrb[106].mxu1 }
 0x37c   :  { %19537 = vmatpush3.bf16.msra.mxu0 %v19534_v57  ;;  %v3602_v26 = vpop.f32.mrb[107].mxu1  ;;  %17171 = vmatprep.mubr.msk.f32.mxu0 %vm325_vm1, %v21667_v29 }
 0x37d   :  { %v19562_v19 = vpack.c.bf16 %v17241_v17, %v3602_v26  ;;  %19539 = vmatprep.subr.bf16.mxu0 %v19538_v63  ;;  %v25277_v17 = vld [vmem:[#allocation15_spill] sm:$0xff]  ;;  %v25278_v26 = vld [vmem:[#allocation16_spill] sm:$0xff] }
 0x37f   :  { %17172 = vmatmul.mubr.msk.f32.gmra.mrb[18].mxu0 %vm325_vm1, %v21676_v32  ;;  %v17244_v22 = vpop.f32.mrb[108].mxu1 }
 0x380   :  { %19541 = vmatpush3.bf16.msra.mxu0 %v19538_v63  ;;  %v3612_v16 = vpop.f32.mrb[109].mxu1  ;;  %17174 = vmatprep.mubr.msk.f32.mxu0 %vm325_vm1, %v21681_v35 }
 0x381   :  { %v19566_v24 = vpack.c.bf16 %v17244_v22, %v3612_v16  ;;  %19543 = vmatprep.subr.bf16.mxu0 %v19542_v4  ;;  %v25280_v22 = vld [vmem:[#allocation18_spill] sm:$0xff]  ;;  %v25281_v16 = vld [vmem:[#allocation19_spill] sm:$0xff] }
 0x383   :  { %17175 = vmatmul.mubr.msk.f32.gmra.mrb[20].mxu0 %vm325_vm1, %v21690_v38  ;;  %v17247_v27 = vpop.f32.mrb[110].mxu1 }
 0x384   :  { %19545 = vmatpush3.bf16.msra.mxu0 %v19542_v4  ;;  %v3622_v50 = vpop.f32.mrb[111].mxu1  ;;  %17177 = vmatprep.mubr.msk.f32.mxu0 %vm325_vm1, %v21695_v42  ;;  %v25270_v4 = vld [vmem:[#allocation8_spill] sm:$0xff] }
 0x385   :  { %v19570_v29 = vpack.c.bf16 %v17247_v27, %v3622_v50  ;;  %19547 = vmatprep.subr.bf16.mxu0 %v19546_v9  ;;  %v25283_v27 = vld [vmem:[#allocation21_spill] sm:$0xff]  ;;  %v22430_v50 = vld [vmem:[%s25147_s1 + $0x40] sm:$0xff] }
 0x387   :  { %17178 = vmatmul.mubr.msk.f32.gmra.mrb[22].mxu0 %vm325_vm1, %v21704_v45  ;;  %v17286_v32 = vpop.f32.mrb[112].mxu1 }
 0x388   :  { %19549 = vmatpush3.bf16.msra.mxu0 %v19546_v9  ;;  %v3815_v41 = vpop.f32.mrb[113].mxu1  ;;  %17216 = vmatprep.mubr.msk.f32.mxu0 %vm325_vm1, %v21709_v47  ;;  %v25273_v9 = vld [vmem:[#allocation11_spill] sm:$0xff] }
 0x389   :  { %v19582_v35 = vpack.c.bf16 %v17286_v32, %v3815_v41  ;;  %19559 = vmatprep.subr.bf16.mxu0 %v19558_v14  ;;  %v4447_v32 = vld [vmem:[%s25150_s6 + $0x18] sm:$0xff] }
 0x38b   :  { %17217 = vmatmul.mubr.msk.f32.vlgmr.msra.gmra.mrb[16].mxu0 %vm325_vm1, %v21718_v51  ;;  %v17289_v38 = vpop.f32.mrb[114].mxu1 }
 0x38c   :  { %19561 = vmatpush3.bf16.msra.mxu0 %v19558_v14  ;;  %v3825_v62 = vpop.f32.mrb[115].mxu1  ;;  %17219 = vmatprep.mubr.msk.f32.mxu0 %vm325_vm1, %v21723_v53  ;;  %v25276_v14 = vld [vmem:[#allocation14_spill] sm:$0xff] }
 0x38d   :  { %v19586_v42 = vpack.c.bf16 %v17289_v38, %v3825_v62  ;;  %19563 = vmatprep.subr.bf16.mxu0 %v19562_v19  ;;  %v14290_v38 = vld [vmem:[%s25150_s6 + $0x28] sm:$0xff] }
 0x38f   :  { %17220 = vmatmul.mubr.msk.f32.gmra.mrb[18].mxu0 %vm325_vm1, %v21732_v58  ;;  %v17292_v45 = vpop.f32.mrb[116].mxu1 }
 0x390   :  { %19565 = vmatpush3.bf16.msra.mxu0 %v19562_v19  ;;  %v3835_v18 = vpop.f32.mrb[117].mxu1  ;;  %17222 = vmatprep.mubr.msk.f32.mxu0 %vm325_vm1, %v21737_v61  ;;  %v25279_v19 = vld [vmem:[#allocation17_spill] sm:$0xff] }
 0x391   :  { %v19590_v47 = vpack.c.bf16 %v17292_v45, %v3835_v18  ;;  %19567 = vmatprep.subr.bf16.mxu0 %v19566_v24 }
 0x393   :  { %17223 = vmatmul.mubr.msk.f32.gmra.mrb[20].mxu0 %vm325_vm1, %v21746_v3  ;;  %v17295_v51 = vpop.f32.mrb[118].mxu1 }
 0x394   :  { %19569 = vmatpush3.bf16.msra.mxu0 %v19566_v24  ;;  %v3845_v46 = vpop.f32.mrb[119].mxu1  ;;  %17225 = vmatprep.mubr.msk.f32.mxu0 %vm325_vm1, %v21751_v6  ;;  %v25282_v24 = vld [vmem:[#allocation20_spill] sm:$0xff] }
 0x395   :  { %v19594_v53 = vpack.c.bf16 %v17295_v51, %v3845_v46  ;;  %19571 = vmatprep.subr.bf16.mxu0 %v19570_v29  ;;  %v20952_v46 = vld [vmem:[%s25243_s20 + $0x8] sm:$0xff] }
 0x397   :  { %17226 = vmatmul.mubr.msk.f32.gmra.mrb[22].mxu0 %vm325_vm1, %v21760_v11  ;;  %v17334_v58 = vpop.f32.mrb[120].mxu1 }
 0x398   :  { %19573 = vmatpush3.bf16.msra.mxu0 %v19570_v29  ;;  %v4038_v25 = vpop.f32.mrb[121].mxu1  ;;  %17264 = vmatprep.mubr.msk.f32.mxu0 %vm325_vm1, %v21765_v15  ;;  %v4446_v29 = vld [vmem:[%s25150_s6 + $0x10] sm:$0xff] }
 0x399   :  { %v19606_v61 = vpack.c.bf16 %v17334_v58, %v4038_v25  ;;  %19583 = vmatprep.subr.bf16.mxu0 %v19582_v35  ;;  %v19650_v41 = vpack.c.bf16 %v4447_v32, %v4446_v29  ;;  %v20953_v58 = vld [vmem:[%s25243_s20] sm:$0xff]  ;;  %v14338_v29 = vld [vmem:[%s25150_s6 + $0x68] sm:$0xff] }
 0x39b   :  { %17265 = vmatmul.mubr.msk.f32.vlgmr.msra.gmra.mrb[16].mxu0 %vm325_vm1, %v21774_v20  ;;  %v17337_v3 = vpop.f32.mrb[122].mxu1  ;;  %19651 = vmatprep.subr.bf16.mxu1 %v19650_v41 }
 0x39c   :  { %19585 = vmatpush3.bf16.msra.mxu0 %v19582_v35  ;;  %v4048_v13 = vpop.f32.mrb[123].mxu1  ;;  %17267 = vmatprep.mubr.msk.f32.mxu0 %vm325_vm1, %v21779_v23  ;;  %v14289_v35 = vld [vmem:[%s25150_s6 + $0x20] sm:$0xff] }
 0x39d   :  { %v19610_v6 = vpack.c.bf16 %v17337_v3, %v4048_v13  ;;  %19587 = vmatprep.subr.bf16.mxu0 %v19586_v42  ;;  %19653 = vmatpush3.bf16.msra.mxu1 %v19650_v41  ;;  %v19654_v62 = vpack.c.bf16 %v14290_v38, %v14289_v35  ;;  %v14291_v3 = vld [vmem:[%s25150_s6 + $0x30] sm:$0xff]  ;;  %v14292_v13 = vld [vmem:[%s25150_s6 + $0x38] sm:$0xff] }
 0x39e   :  { %v14339_v41 = vld [vmem:[%s25150_s6 + $0x70] sm:$0xff]  ;;  %v14340_v35 = vld [vmem:[%s25150_s6 + $0x78] sm:$0xff] }
 0x39f   :  { %17268 = vmatmul.mubr.msk.f32.gmra.mrb[18].mxu0 %vm325_vm1, %v21788_v28  ;;  %v17340_v11 = vpop.f32.mrb[124].mxu1  ;;  %19655 = vmatprep.subr.bf16.mxu1 %v19654_v62  ;;  %v19722_v38 = vpack.c.bf16 %v14340_v35, %v14339_v41 }
 0x3a0   :  { %19589 = vmatpush3.bf16.msra.mxu0 %v19586_v42  ;;  %v4058_v30 = vpop.f32.mrb[125].mxu1  ;;  %17270 = vmatprep.mubr.msk.f32.mxu0 %vm325_vm1, %v21793_v31  ;;  %v14280_v42 = vld [vmem:[%s25151_s5] ss:$0 sm:$0xff] }
 0x3a1   :  { %v19614_v15 = vpack.c.bf16 %v17340_v11, %v4058_v30  ;;  %19591 = vmatprep.subr.bf16.mxu0 %v19590_v47 }
 0x3a3   :  { %17271 = vmatmul.mubr.msk.f32.gmra.mrb[20].mxu0 %vm325_vm1, %v21802_v37  ;;  %v17343_v20 = vpop.f32.mrb[126].mxu1 }
 0x3a4   :  { %19593 = vmatpush3.bf16.msra.mxu0 %v19590_v47  ;;  %v4068_v49 = vpop.f32.mrb[127].mxu1  ;;  %17273 = vmatprep.mubr.msk.f32.mxu0 %vm325_vm1, %v21807_v43 }
 0x3a5   :  { %v19618_v23 = vpack.c.bf16 %v17343_v20, %v4068_v49  ;;  %19595 = vmatprep.subr.bf16.mxu0 %v19594_v53  ;;  %v20954_v49 = vld [vmem:[%s25243_s20 + $0x18] sm:$0xff] }
 0x3a7   :  { %17274 = vmatmul.mubr.msk.f32.gmra.mrb[22].mxu0 %vm325_vm1, %v21816_v48  ;;  %v17382_v28 = vpop.f32.mrb[128].mxu1 }
 0x3a8   :  { %19597 = vmatpush3.bf16.msra.mxu0 %v19594_v53  ;;  %v4261_v5 = vpop.f32.mrb[129].mxu1  ;;  %17312 = vmatprep.mubr.msk.f32.mxu0 %vm325_vm1, %v21821_v52  ;;  %v25264_v52 = vld [vmem:[#allocation2_spill] sm:$0xff] }
 0x3a9   :  { %v19630_v31 = vpack.c.bf16 %v17382_v28, %v4261_v5  ;;  %19607 = vmatprep.subr.bf16.mxu0 %v19606_v61  ;;  %v19658_v28 = vpack.c.bf16 %v14292_v13, %v14291_v3  ;;  %v20955_v5 = vld [vmem:[%s25243_s20 + $0x10] sm:$0xff]  ;;  %v14397_v13 = vld [vmem:[%s25150_s6 + $0xc0] sm:$0xff] }
 0x3ab   :  { %17313 = vmatmul.mubr.msk.f32.vlgmr.msra.gmra.mrb[16].mxu0 %vm325_vm1, %v21830_v59  ;;  %v17385_v37 = vpop.f32.mrb[130].mxu1  ;;  %v25265_v59 = vld [vmem:[#allocation3_spill] sm:$0xff] }
 0x3ac   :  { %19609 = vmatpush3.bf16.msra.mxu0 %v19606_v61  ;;  %v4271_v55 = vpop.f32.mrb[131].mxu1  ;;  %17315 = vmatprep.mubr.msk.f32.mxu0 %vm325_vm1, %v21835_v1  ;;  %v25266_v1 = vld [vmem:[#allocation4_spill] sm:$0xff] }
 0x3ad   :  { %v19634_v43 = vpack.c.bf16 %v17385_v37, %v4271_v55  ;;  %19611 = vmatprep.subr.bf16.mxu0 %v19610_v6  ;;  %v14317_v55 = vld [vmem:[%s25150_s6 + $0x40] sm:$0xff] }
 0x3af   :  { %17316 = vmatmul.mubr.msk.f32.gmra.mrb[18].mxu0 %vm325_vm1, %v21844_v10  ;;  %v17388_v48 = vpop.f32.mrb[132].mxu1  ;;  %v25267_v10 = vld [vmem:[#allocation5_spill] sm:$0xff] }
 0x3b0   :  { %19613 = vmatpush3.bf16.msra.mxu0 %v19610_v6  ;;  %v4281_v54 = vpop.f32.mrb[133].mxu1  ;;  %17318 = vmatprep.mubr.msk.f32.mxu0 %vm325_vm1, %v25264_v52 }
 0x3b1   :  { %v19638_v57 = vpack.c.bf16 %v17388_v48, %v4281_v54  ;;  %19615 = vmatprep.subr.bf16.mxu0 %v19614_v15 }
 0x3b3   :  { %17319 = vmatmul.mubr.msk.f32.gmra.mrb[20].mxu0 %vm325_vm1, %v25265_v59  ;;  %v17391_v60 = vpop.f32.mrb[134].mxu1 }
 0x3b4   :  { %19617 = vmatpush3.bf16.msra.mxu0 %v19614_v15  ;;  %v4291_v56 = vpop.f32.mrb[135].mxu1  ;;  %17321 = vmatprep.mubr.msk.f32.mxu0 %vm325_vm1, %v25266_v1 }
 0x3b5   :  { %v19642_v63 = vpack.c.bf16 %v17391_v60, %v4291_v56  ;;  %19619 = vmatprep.subr.bf16.mxu0 %v19618_v23  ;;  %v20956_v60 = vld [vmem:[%s25243_s20 + $0x28] sm:$0xff] }
 0x3b7   :  { %17322 = vmatmul.mubr.msk.f32.gmra.mrb[22].mxu0 %vm325_vm1, %v25267_v10 }
 0x3b8   :  { %19621 = vmatpush3.bf16.msra.mxu0 %v19618_v23  ;;  %17360 = vmatprep.mubr.msk.f32.mxu0 %vm325_vm1, %v25268_v2 }
 0x3b9   :  { %19631 = vmatprep.subr.bf16.mxu0 %v19630_v31 }
 0x3bb   :  { %17361 = vmatmul.mubr.msk.f32.vlgmr.msra.gmra.mrb[16].mxu0 %vm325_vm1, %v25269_v44 }
 0x3bc   :  { %19633 = vmatpush3.bf16.msra.mxu0 %v19630_v31  ;;  %17363 = vmatprep.mubr.msk.f32.mxu0 %vm325_vm1, %v25270_v4 }
 0x3bd   :  { %19635 = vmatprep.subr.bf16.mxu0 %v19634_v43 }
 0x3bf   :  { %17364 = vmatmul.mubr.msk.f32.gmra.mrb[18].mxu0 %vm325_vm1, %v25271_v7 }
 0x3c0   :  { %19637 = vmatpush3.bf16.msra.mxu0 %v19634_v43  ;;  %17366 = vmatprep.mubr.msk.f32.mxu0 %vm325_vm1, %v25272_v0  ;;  %v14318_v43 = vld [vmem:[%s25150_s6 + $0x48] sm:$0xff] }
 0x3c1   :  { %19639 = vmatprep.subr.bf16.mxu0 %v19638_v57  ;;  %v19694_v1 = vpack.c.bf16 %v14318_v43, %v14317_v55  ;;  %v14420_v55 = vld [vmem:[%s25150_s6 + $0xf8] sm:$0xff] }
 0x3c3   :  { %17367 = vmatmul.mubr.msk.f32.gmra.mrb[20].mxu0 %vm325_vm1, %v25273_v9 }
 0x3c4   :  { %19641 = vmatpush3.bf16.msra.mxu0 %v19638_v57  ;;  %17369 = vmatprep.mubr.msk.f32.mxu0 %vm325_vm1, %v25274_v12  ;;  %v20958_v12 = vld [vmem:[%s25243_s20 + $0x38] sm:$0xff] }
 0x3c5   :  { %19643 = vmatprep.subr.bf16.mxu0 %v19642_v63 }
 0x3c7   :  { %17370 = vmatmul.mubr.msk.f32.gmra.mrb[22].mxu0 %vm325_vm1, %v25275_v34 }
 0x3c8   :  { %19645 = vmatpush3.bf16.msra.mxu0 %v19642_v63  ;;  %17408 = vmatprep.mubr.msk.f32.mxu0 %vm325_vm1, %v25276_v14  ;;  %v20957_v63 = vld [vmem:[%s25243_s20 + $0x20] sm:$0xff]  ;;  %v20959_v14 = vld [vmem:[%s25243_s20 + $0x30] sm:$0xff] }
 0x3cb   :  { %17409 = vmatmul.mubr.msk.f32.vlgmr.msra.gmra.mrb[16].mxu0 %vm325_vm1, %v25277_v17 }
 0x3cc   :  { %17411 = vmatprep.mubr.msk.f32.mxu0 %vm325_vm1, %v25278_v26 }
 0x3cf   :  { %17412 = vmatmul.mubr.msk.f32.gmra.mrb[18].mxu0 %vm325_vm1, %v25279_v19 }
 0x3d0   :  { %17414 = vmatprep.mubr.msk.f32.mxu0 %vm325_vm1, %v25280_v22  ;;  %v14319_v22 = vld [vmem:[%s25150_s6 + $0x50] sm:$0xff] }
 0x3d3   :  { %17415 = vmatmul.mubr.msk.f32.gmra.mrb[20].mxu0 %vm325_vm1, %v25281_v16  ;;  %v14320_v16 = vld [vmem:[%s25150_s6 + $0x58] sm:$0xff] }
 0x3d4   :  { %17417 = vmatprep.mubr.msk.f32.mxu0 %vm325_vm1, %v25282_v24  ;;  %v19698_v24 = vpack.c.bf16 %v14320_v16, %v14319_v22 }
 0x3d7   :  { %17418 = vmatmul.mubr.msk.f32.gmra.mrb[22].mxu0 %vm325_vm1, %v25283_v27  ;;  %v14337_v27 = vld [vmem:[%s25150_s6 + $0x60] sm:$0xff] }
 0x3d8   :  { %17476 = vmatprep.mubr.msk.f32.mxu0 %vm325_vm1, %v22430_v50  ;;  %v19718_v32 = vpack.c.bf16 %v14338_v29, %v14337_v27 }
 0x49e   :  { %v17410_v45 = vpop.f32.mrb[16].mxu0 }
 0x49f   :  { %v4421_v18 = vadd.f32 %v17410_v45, %v14280_v42  ;;  %v4366_v47 = vpop.f32.mrb[17].mxu0 }
 0x4a0   :  { %v4420_v51 = vadd.f32 %v14280_v42, %v4366_v47  ;;  %v14360_v47 = vld [vmem:[%s25150_s6 + $0x98] sm:$0xff] }
 0x4a1   :  { %v4429_v53 = vadd.f32 %v20952_v46, %v4421_v18  ;;  %v14359_v18 = vld [vmem:[%s25150_s6 + $0x90] sm:$0xff]  ;;  %v14377_v46 = vld [vmem:[%s25150_s6 + $0xa0] sm:$0xff] }
 0x4a2   :  { %v4428_v25 = vadd.f32 %v20953_v58, %v4420_v51  ;;  %v17413_v61 = vpop.f32.mrb[18].mxu0  ;;  %v19746_v51 = vpack.c.bf16 %v14360_v47, %v14359_v18 }
 0x4a3   :  { %v4423_v6 = vadd.f32 %v17413_v61, %v14280_v42  ;;  %v4376_v11 = vpop.f32.mrb[19].mxu0  ;;  %v22463_v20 = vmax.f32 %v4429_v53, 0.0  ;;  %v14378_v53 = vld [vmem:[%s25150_s6 + $0xa8] sm:$0xff]  ;;  %v14380_v61 = vld [vmem:[%s25150_s6 + $0xb8] sm:$0xff] }
 0x4a4   :  { %v22461_v30 = vmax.f32 %v4428_v25, 0.0  ;;  %v4422_v15 = vadd.f32 %v14280_v42, %v4376_v11  ;;  %v19766_v58 = vpack.c.bf16 %v14378_v53, %v14377_v46  ;;  %v14379_v25 = vld [vmem:[%s25150_s6 + $0xb0] sm:$0xff] }
 0x4a5   :  { %25285 = vst [vmem:[#allocation3_spill] sm:$0xff] %v22463_v20  ;;  %v4431_v23 = vadd.f32 %v20954_v49, %v4423_v6  ;;  %v19770_v3 = vpack.c.bf16 %v14380_v61, %v14379_v25  ;;  %v14398_v6 = vld [vmem:[%s25150_s6 + $0xc8] sm:$0xff]  ;;  %v14400_v49 = vld [vmem:[%s25150_s6 + $0xd8] sm:$0xff] }
 0x4a6   :  { %25284 = vst [vmem:[#allocation2_spill] sm:$0xff] %v22461_v30  ;;  %v4430_v31 = vadd.f32 %v20955_v5, %v4422_v15  ;;  %v17416_v37 = vpop.f32.mrb[20].mxu0  ;;  %17428 = vmatprep.mubr.msk.f32.mxu1 %vm68_vm0, %v22461_v30  ;;  %v19790_v11 = vpack.c.bf16 %v14398_v6, %v14397_v13  ;;  %v14399_v15 = vld [vmem:[%s25150_s6 + $0xd0] sm:$0xff]  ;;  %v14418_v5 = vld [vmem:[%s25150_s6 + $0xe8] sm:$0xff] }
 0x4a7   :  { %v4425_v48 = vadd.f32 %v17416_v37, %v14280_v42  ;;  %v4386_v54 = vpop.f32.mrb[21].mxu0  ;;  %17429 = vmatmul.mubr.msk.f32.vlgmr.msra.gmra.mrb[136].mxu1 %vm68_vm0, %v22463_v20  ;;  %v22483_v59 = vmax.f32 %v4431_v23, 0.0  ;;  %v19794_v23 = vpack.c.bf16 %v14400_v49, %v14399_v15  ;;  %v14419_v37 = vld [vmem:[%s25150_s6 + $0xf0] sm:$0xff] }
 0x4a8   :  { %v22481_v52 = vmax.f32 %v4430_v31, 0.0  ;;  %v4424_v57 = vadd.f32 %v14280_v42, %v4386_v54  ;;  %19657 = vmatpush3.bf16.msra.mxu1 %v19654_v62  ;;  %v14357_v62 = vld [vmem:[%s25150_s6 + $0x80] sm:$0xff]  ;;  %v19818_v43 = vpack.c.bf16 %v14420_v55, %v14419_v37  ;;  %v14438_v54 = vld [vmem:[%s25150_s6 + $0x108] sm:$0xff]  ;;  %v6484_v55 = vld [vmem:[%s25152_s8 + $0x18] sm:$0xff] }
 0x4a9   :  { %25287 = vst [vmem:[#allocation5_spill] sm:$0xff] %v22483_v59  ;;  %v4433_v56 = vadd.f32 %v20956_v60, %v4425_v48  ;;  %19659 = vmatprep.subr.bf16.mxu1 %v19658_v28  ;;  %v14437_v48 = vld [vmem:[%s25150_s6 + $0x100] sm:$0xff]  ;;  %v14439_v60 = vld [vmem:[%s25150_s6 + $0x110] sm:$0xff] }
 0x4aa   :  { %25286 = vst [vmem:[#allocation4_spill] sm:$0xff] %v22481_v52  ;;  %v4432_v10 = vadd.f32 %v20957_v63, %v4424_v57  ;;  %v17419_v2 = vpop.f32.mrb[22].mxu0  ;;  %17431 = vmatprep.mubr.msk.f32.mxu1 %vm68_vm0, %v22481_v52  ;;  %v19838_v57 = vpack.c.bf16 %v14438_v54, %v14437_v48 }
 0x4ab   :  { %v4427_v44 = vadd.f32 %v17419_v2, %v14280_v42  ;;  %v4396_v4 = vpop.f32.mrb[23].mxu0  ;;  %17432 = vmatmul.mubr.msk.f32.gmra.mrb[138].mxu1 %vm68_vm0, %v22483_v59  ;;  %v22497_v9 = vmax.f32 %v4433_v56, 0.0  ;;  %v14440_v56 = vld [vmem:[%s25150_s6 + $0x118] sm:$0xff] }
 0x4ac   :  { %v22495_v7 = vmax.f32 %v4432_v10, 0.0  ;;  %v4426_v0 = vadd.f32 %v14280_v42, %v4396_v4  ;;  %19661 = vmatpush3.bf16.msra.mxu1 %v19658_v28  ;;  %v14358_v42 = vld [vmem:[%s25150_s6 + $0x88] sm:$0xff]  ;;  %v14417_v28 = vld [vmem:[%s25150_s6 + $0xe0] sm:$0xff] }
 0x4ad   :  { %25289 = vst [vmem:[#allocation7_spill] sm:$0xff] %v22497_v9  ;;  %v4435_v34 = vadd.f32 %v20958_v12, %v4427_v44  ;;  %19695 = vmatprep.subr.bf16.mxu1 %v19694_v1  ;;  %v19742_v45 = vpack.c.bf16 %v14358_v42, %v14357_v62  ;;  %v19814_v31 = vpack.c.bf16 %v14418_v5, %v14417_v28  ;;  %v6482_v28 = vld [vmem:[%s25152_s8 + $0x8] sm:$0xff]  ;;  %v6483_v5 = vld [vmem:[%s25152_s8 + $0x10] sm:$0xff] }
 0x4ae   :  { %25288 = vst [vmem:[#allocation6_spill] sm:$0xff] %v22495_v7  ;;  %v4434_v17 = vadd.f32 %v20959_v14, %v4426_v0  ;;  %17434 = vmatprep.mubr.msk.f32.mxu1 %vm68_vm0, %v22495_v7 }
 0x4af   :  { %17435 = vmatmul.mubr.msk.f32.gmra.mrb[140].mxu1 %vm68_vm0, %v22497_v9  ;;  %v22511_v19 = vmax.f32 %v4435_v34, 0.0 }
 0x4b0   :  { %v22509_v26 = vmax.f32 %v4434_v17, 0.0 }
 0x4b1   :  { %25291 = vst [vmem:[#allocation9_spill] sm:$0xff] %v22511_v19 }
 0x4b2   :  { %25290 = vst [vmem:[#allocation8_spill] sm:$0xff] %v22509_v26  ;;  %17437 = vmatprep.mubr.msk.f32.mxu1 %vm68_vm0, %v22509_v26 }
 0x4b3   :  { %17438 = vmatmul.mubr.msk.f32.gmra.mrb[142].mxu1 %vm68_vm0, %v22511_v19 }
 0x4b4   :  { %17448 = vmatprep.mubr.msk.f32.mxu1 %vm68_vm0, %v22461_v30 }
 0x4b7   :  { %17449 = vmatmul.mubr.msk.f32.vlgmr.msra.gmra.mrb[144].mxu1 %vm68_vm0, %v22463_v20 }
 0x4b8   :  { %17451 = vmatprep.mubr.msk.f32.mxu1 %vm68_vm0, %v22481_v52  ;;  %19697 = vmatpush3.bf16.msra.mxu1 %v19694_v1  ;;  %v19842_v1 = vpack.c.bf16 %v14440_v56, %v14439_v60 }
 0x4b9   :  { %19699 = vmatprep.subr.bf16.mxu1 %v19698_v24 }
 0x4bb   :  { %17452 = vmatmul.mubr.msk.f32.gmra.mrb[146].mxu1 %vm68_vm0, %v22483_v59 }
 0x4bc   :  { %17454 = vmatprep.mubr.msk.f32.mxu1 %vm68_vm0, %v22495_v7  ;;  %19701 = vmatpush3.bf16.msra.mxu1 %v19698_v24 }
 0x4bd   :  { %19719 = vmatprep.subr.bf16.mxu1 %v19718_v32 }
 0x4bf   :  { %17455 = vmatmul.mubr.msk.f32.gmra.mrb[148].mxu1 %vm68_vm0, %v22497_v9 }
 0x4c0   :  { %17457 = vmatprep.mubr.msk.f32.mxu1 %vm68_vm0, %v22509_v26 }
 0x4c3   :  { %17458 = vmatmul.mubr.msk.f32.gmra.mrb[150].mxu1 %vm68_vm0, %v22511_v19 }
 0x4c4   :  { %17524 = vmatprep.mubr.msk.f32.mxu1 %vm68_vm0, %v22461_v30 }
 0x4c7   :  { %17525 = vmatmul.mubr.msk.f32.vlgmr.msra.gmra.mrb[152].mxu1 %vm68_vm0, %v22463_v20 }
 0x4c8   :  { %17527 = vmatprep.mubr.msk.f32.mxu1 %vm68_vm0, %v22481_v52  ;;  %19721 = vmatpush3.bf16.msra.mxu1 %v19718_v32 }
 0x4c9   :  { %19723 = vmatprep.subr.bf16.mxu1 %v19722_v38 }
 0x4cb   :  { %17528 = vmatmul.mubr.msk.f32.gmra.mrb[154].mxu1 %vm68_vm0, %v22483_v59 }
 0x4cc   :  { %17530 = vmatprep.mubr.msk.f32.mxu1 %vm68_vm0, %v22495_v7  ;;  %19725 = vmatpush3.bf16.msra.mxu1 %v19722_v38 }
 0x4cd   :  { %19743 = vmatprep.subr.bf16.mxu1 %v19742_v45 }
 0x4cf   :  { %17531 = vmatmul.mubr.msk.f32.gmra.mrb[156].mxu1 %vm68_vm0, %v22497_v9 }
 0x4d0   :  { %17533 = vmatprep.mubr.msk.f32.mxu1 %vm68_vm0, %v22509_v26 }
 0x4d3   :  { %17534 = vmatmul.mubr.msk.f32.gmra.mrb[158].mxu1 %vm68_vm0, %v22511_v19 }
 0x4d4   :  { %17572 = vmatprep.mubr.msk.f32.mxu1 %vm68_vm0, %v22461_v30 }
 0x4d7   :  { %17573 = vmatmul.mubr.msk.f32.vlgmr.msra.gmra.mrb[160].mxu1 %vm68_vm0, %v22463_v20 }
 0x4d8   :  { %17575 = vmatprep.mubr.msk.f32.mxu1 %vm68_vm0, %v22481_v52  ;;  %19745 = vmatpush3.bf16.msra.mxu1 %v19742_v45 }
 0x4d9   :  { %19747 = vmatprep.subr.bf16.mxu1 %v19746_v51 }
 0x4db   :  { %17576 = vmatmul.mubr.msk.f32.gmra.mrb[162].mxu1 %vm68_vm0, %v22483_v59 }
 0x4dc   :  { %17578 = vmatprep.mubr.msk.f32.mxu1 %vm68_vm0, %v22495_v7  ;;  %19749 = vmatpush3.bf16.msra.mxu1 %v19746_v51 }
 0x4dd   :  { %19767 = vmatprep.subr.bf16.mxu1 %v19766_v58 }
 0x4df   :  { %17579 = vmatmul.mubr.msk.f32.gmra.mrb[164].mxu1 %vm68_vm0, %v22497_v9 }
 0x4e0   :  { %17581 = vmatprep.mubr.msk.f32.mxu1 %vm68_vm0, %v22509_v26 }
 0x4e3   :  { %17582 = vmatmul.mubr.msk.f32.gmra.mrb[166].mxu1 %vm68_vm0, %v22511_v19 }
 0x4e4   :  { %17620 = vmatprep.mubr.msk.f32.mxu1 %vm68_vm0, %v22461_v30 }
 0x4e7   :  { %17621 = vmatmul.mubr.msk.f32.vlgmr.msra.gmra.mrb[168].mxu1 %vm68_vm0, %v22463_v20 }
 0x4e8   :  { %17623 = vmatprep.mubr.msk.f32.mxu1 %vm68_vm0, %v22481_v52  ;;  %19769 = vmatpush3.bf16.msra.mxu1 %v19766_v58 }
 0x4e9   :  { %19771 = vmatprep.subr.bf16.mxu1 %v19770_v3 }
 0x4eb   :  { %17624 = vmatmul.mubr.msk.f32.gmra.mrb[170].mxu1 %vm68_vm0, %v22483_v59 }
 0x4ec   :  { %17626 = vmatprep.mubr.msk.f32.mxu1 %vm68_vm0, %v22495_v7  ;;  %19773 = vmatpush3.bf16.msra.mxu1 %v19770_v3 }
 0x4ed   :  { %19791 = vmatprep.subr.bf16.mxu1 %v19790_v11 }
 0x4ef   :  { %17627 = vmatmul.mubr.msk.f32.gmra.mrb[172].mxu1 %vm68_vm0, %v22497_v9 }
 0x4f0   :  { %17629 = vmatprep.mubr.msk.f32.mxu1 %vm68_vm0, %v22509_v26 }
 0x4f3   :  { %17630 = vmatmul.mubr.msk.f32.gmra.mrb[174].mxu1 %vm68_vm0, %v22511_v19 }
 0x4f4   :  { %17668 = vmatprep.mubr.msk.f32.mxu1 %vm68_vm0, %v22461_v30 }
 0x4f7   :  { %17669 = vmatmul.mubr.msk.f32.vlgmr.msra.gmra.mrb[176].mxu1 %vm68_vm0, %v22463_v20 }
 0x4f8   :  { %17671 = vmatprep.mubr.msk.f32.mxu1 %vm68_vm0, %v22481_v52  ;;  %19793 = vmatpush3.bf16.msra.mxu1 %v19790_v11 }
 0x4f9   :  { %19795 = vmatprep.subr.bf16.mxu1 %v19794_v23 }
 0x4fb   :  { %17672 = vmatmul.mubr.msk.f32.gmra.mrb[178].mxu1 %vm68_vm0, %v22483_v59 }
 0x4fc   :  { %17674 = vmatprep.mubr.msk.f32.mxu1 %vm68_vm0, %v22495_v7  ;;  %19797 = vmatpush3.bf16.msra.mxu1 %v19794_v23  ;;  %v22750_v23 = vld [vmem:[%s25147_s1] sm:$0xff] }
 0x4fd   :  { %19815 = vmatprep.subr.bf16.mxu1 %v19814_v31 }
 0x4ff   :  { %17675 = vmatmul.mubr.msk.f32.gmra.mrb[180].mxu1 %vm68_vm0, %v22497_v9 }
 0x500   :  { %17677 = vmatprep.mubr.msk.f32.mxu1 %vm68_vm0, %v22509_v26 }
 0x503   :  { %17678 = vmatmul.mubr.msk.f32.gmra.mrb[182].mxu1 %vm68_vm0, %v22511_v19 }
 0x504   :  { %17716 = vmatprep.mubr.msk.f32.mxu1 %vm68_vm0, %v22461_v30 }
 0x507   :  { %17717 = vmatmul.mubr.msk.f32.vlgmr.msra.gmra.mrb[184].mxu1 %vm68_vm0, %v22463_v20 }
 0x508   :  { %17719 = vmatprep.mubr.msk.f32.mxu1 %vm68_vm0, %v22481_v52  ;;  %19817 = vmatpush3.bf16.msra.mxu1 %v19814_v31 }
 0x509   :  { %19819 = vmatprep.subr.bf16.mxu1 %v19818_v43 }
 0x50b   :  { %17720 = vmatmul.mubr.msk.f32.gmra.mrb[186].mxu1 %vm68_vm0, %v22483_v59 }
 0x50c   :  { %17722 = vmatprep.mubr.msk.f32.mxu1 %vm68_vm0, %v22495_v7  ;;  %19821 = vmatpush3.bf16.msra.mxu1 %v19818_v43  ;;  %v19866_v43 = vpack.c.bf16 %v6484_v55, %v6483_v5  ;;  %v22897_v5 = vld [vmem:[%s25147_s1 + $0xe0] sm:$0xff] }
 0x50d   :  { %19839 = vmatprep.subr.bf16.mxu1 %v19838_v57 }
 0x50f   :  { %17723 = vmatmul.mubr.msk.f32.gmra.mrb[188].mxu1 %vm68_vm0, %v22497_v9 }
 0x510   :  { %17725 = vmatprep.mubr.msk.f32.mxu1 %vm68_vm0, %v22509_v26 }
 0x513   :  { %17726 = vmatmul.mubr.msk.f32.gmra.mrb[190].mxu1 %vm68_vm0, %v22511_v19 }
 0x514   :  { %17764 = vmatprep.mubr.msk.f32.mxu1 %vm68_vm0, %v22461_v30 }
 0x517   :  { %17765 = vmatmul.mubr.msk.f32.vlgmr.msra.gmra.mrb[192].mxu1 %vm68_vm0, %v22463_v20 }
 0x518   :  { %17767 = vmatprep.mubr.msk.f32.mxu1 %vm68_vm0, %v22481_v52  ;;  %19841 = vmatpush3.bf16.msra.mxu1 %v19838_v57  ;;  %v22771_v57 = vld [vmem:[%s25147_s1 + $0x10] sm:$0xff] }
 0x519   :  { %19843 = vmatprep.subr.bf16.mxu1 %v19842_v1 }
 0x51b   :  { %17768 = vmatmul.mubr.msk.f32.gmra.mrb[194].mxu1 %vm68_vm0, %v22483_v59 }
 0x51c   :  { %17770 = vmatprep.mubr.msk.f32.mxu1 %vm68_vm0, %v22495_v7  ;;  %19845 = vmatpush3.bf16.msra.mxu1 %v19842_v1 }
 0x51f   :  { %17771 = vmatmul.mubr.msk.f32.gmra.mrb[196].mxu1 %vm68_vm0, %v22497_v9 }
 0x520   :  { %17773 = vmatprep.mubr.msk.f32.mxu1 %vm68_vm0, %v22509_v26 }
 0x523   :  { %17774 = vmatmul.mubr.msk.f32.gmra.mrb[198].mxu1 %vm68_vm0, %v22511_v19 }
 0x524   :  { %17812 = vmatprep.mubr.msk.f32.mxu1 %vm68_vm0, %v22461_v30  ;;  %v23177_v30 = vld [vmem:[%s25147_s1 + $0x220] sm:$0xff] }
 0x525   :  { %25308 = vst [vmem:[#allocation26_spill] sm:$0xff] %v23177_v30 }
 0x527   :  { %17813 = vmatmul.mubr.msk.f32.vlgmr.msra.gmra.mrb[200].mxu1 %vm68_vm0, %v22463_v20  ;;  %v23184_v20 = vld [vmem:[%s25147_s1 + $0x228] sm:$0xff] }
 0x528   :  { %17815 = vmatprep.mubr.msk.f32.mxu1 %vm68_vm0, %v22481_v52  ;;  %v23156_v52 = vld [vmem:[%s25147_s1 + $0x208] sm:$0xff]  ;;  %25309 = vst [vmem:[#allocation27_spill] sm:$0xff] %v23184_v20 }
 0x529   :  { %25305 = vst [vmem:[#allocation23_spill] sm:$0xff] %v23156_v52 }
 0x52b   :  { %17816 = vmatmul.mubr.msk.f32.gmra.mrb[202].mxu1 %vm68_vm0, %v22483_v59  ;;  %v23170_v59 = vld [vmem:[%s25147_s1 + $0x218] sm:$0xff] }
 0x52c   :  { %17818 = vmatprep.mubr.msk.f32.mxu1 %vm68_vm0, %v22495_v7  ;;  %v23128_v7 = vld [vmem:[%s25147_s1 + $0x1e8] sm:$0xff]  ;;  %25307 = vst [vmem:[#allocation25_spill] sm:$0xff] %v23170_v59 }
 0x52d   :  { %25301 = vst [vmem:[#allocation19_spill] sm:$0xff] %v23128_v7 }
 0x52f   :  { %17819 = vmatmul.mubr.msk.f32.gmra.mrb[204].mxu1 %vm68_vm0, %v22497_v9  ;;  %v23142_v9 = vld [vmem:[%s25147_s1 + $0x1f8] sm:$0xff] }
 0x530   :  { %17821 = vmatprep.mubr.msk.f32.mxu1 %vm68_vm0, %v22509_v26  ;;  %25303 = vst [vmem:[#allocation21_spill] sm:$0xff] %v23142_v9 }
 0x533   :  { %17822 = vmatmul.mubr.msk.f32.gmra.mrb[206].mxu1 %vm68_vm0, %v22511_v19  ;;  %v23079_v19 = vld [vmem:[%s25147_s1 + $0x1b0] sm:$0xff] }
 0x534   :  { %25294 = vst [vmem:[#allocation12_spill] sm:$0xff] %v23079_v19 }
 0x57a   :  { %v17430_v63 = vpop.f32.mrb[136].mxu1 }
 0x57b   :  { %v4538_v10 = vpop.f32.mrb[137].mxu1 }
 0x57c   :  { %v19678_v2 = vpack.c.bf16 %v17430_v63, %v4538_v10  ;;  %v22785_v63 = vld [vmem:[%s25147_s1 + $0x20] sm:$0xff] }
 0x57e   :  { %v17433_v44 = vpop.f32.mrb[138].mxu1 }
 0x57f   :  { %v4548_v4 = vpop.f32.mrb[139].mxu1 }
 0x580   :  { %v19682_v0 = vpack.c.bf16 %v17433_v44, %v4548_v4 }
 0x582   :  { %v17436_v12 = vpop.f32.mrb[140].mxu1 }
 0x583   :  { %v4558_v34 = vpop.f32.mrb[141].mxu1 }
 0x584   :  { %v19686_v14 = vpack.c.bf16 %v17436_v12, %v4558_v34  ;;  %v22806_v34 = vld [vmem:[%s25147_s1 + $0x38] sm:$0xff] }
 0x586   :  { %v17439_v17 = vpop.f32.mrb[142].mxu1 }
 0x587   :  { %v4568_v22 = vpop.f32.mrb[143].mxu1 }
 0x588   :  { %v19690_v16 = vpack.c.bf16 %v17439_v17, %v4568_v22  ;;  %v22813_v22 = vld [vmem:[%s25147_s1 + $0x80] sm:$0xff] }
 0x58a   :  { %v17450_v24 = vpop.f32.mrb[144].mxu1 }
 0x58b   :  { %v4648_v27 = vpop.f32.mrb[145].mxu1 }
 0x58c   :  { %v19662_v29 = vpack.c.bf16 %v17450_v24, %v4648_v27  ;;  %v22820_v24 = vld [vmem:[%s25147_s1 + $0x88] sm:$0xff] }
 0x58e   :  { %v17453_v32 = vpop.f32.mrb[146].mxu1  ;;  %19663 = vmatprep.subr.bf16.mxu0 %v19662_v29 }
 0x58f   :  { %v4658_v41 = vpop.f32.mrb[147].mxu1  ;;  %19665 = vmatpush3.bf16.msra.mxu0 %v19662_v29 }
 0x590   :  { %v19666_v35 = vpack.c.bf16 %v17453_v32, %v4658_v41  ;;  %v22827_v32 = vld [vmem:[%s25147_s1 + $0x90] sm:$0xff] }
 0x592   :  { %v17456_v38 = vpop.f32.mrb[148].mxu1  ;;  %19667 = vmatprep.subr.bf16.mxu0 %v19666_v35 }
 0x593   :  { %v4668_v62 = vpop.f32.mrb[149].mxu1  ;;  %19669 = vmatpush3.bf16.msra.mxu0 %v19666_v35  ;;  %v22834_v35 = vld [vmem:[%s25147_s1 + $0x98] sm:$0xff] }
 0x594   :  { %v19670_v42 = vpack.c.bf16 %v17456_v38, %v4668_v62 }
 0x596   :  { %v17459_v45 = vpop.f32.mrb[150].mxu1  ;;  %19671 = vmatprep.subr.bf16.mxu0 %v19670_v42 }
 0x597   :  { %v4678_v18 = vpop.f32.mrb[151].mxu1  ;;  %19673 = vmatpush3.bf16.msra.mxu0 %v19670_v42  ;;  %v22841_v42 = vld [vmem:[%s25147_s1 + $0xa0] sm:$0xff] }
 0x598   :  { %v19674_v47 = vpack.c.bf16 %v17459_v45, %v4678_v18  ;;  %v22848_v18 = vld [vmem:[%s25147_s1 + $0xa8] sm:$0xff] }
 0x59a   :  { %19675 = vmatprep.subr.bf16.mxu0 %v19674_v47  ;;  %v17526_v51 = vpop.f32.mrb[152].mxu1 }
 0x59b   :  { %19677 = vmatpush3.bf16.msra.mxu0 %v19674_v47  ;;  %v4968_v46 = vpop.f32.mrb[153].mxu1 }
 0x59c   :  { %v19702_v53 = vpack.c.bf16 %v17526_v51, %v4968_v46  ;;  %19679 = vmatprep.subr.bf16.mxu0 %v19678_v2  ;;  %v22855_v46 = vld [vmem:[%s25147_s1 + $0xb0] sm:$0xff] }
 0x59e   :  { %17477 = vmatmul.mubr.msk.f32.vlgmr.msra.gmra.mrb[24].mxu0 %vm325_vm1, %v22252_v33  ;;  %v17529_v58 = vpop.f32.mrb[154].mxu1  ;;  %v22734_v33 = vld [vmem:[%s25147_s1 + $0x68] sm:$0xff] }
 0x59f   :  { %19681 = vmatpush3.bf16.msra.mxu0 %v19678_v2  ;;  %v4978_v25 = vpop.f32.mrb[155].mxu1  ;;  %17479 = vmatprep.mubr.msk.f32.mxu0 %vm325_vm1, %v22259_v36  ;;  %v22792_v2 = vld [vmem:[%s25147_s1 + $0x28] sm:$0xff] }
 0x5a0   :  { %v19706_v61 = vpack.c.bf16 %v17529_v58, %v4978_v25  ;;  %19683 = vmatprep.subr.bf16.mxu0 %v19682_v0  ;;  %v22862_v58 = vld [vmem:[%s25147_s1 + $0xb8] sm:$0xff] }
 0x5a2   :  { %17480 = vmatmul.mubr.msk.f32.gmra.mrb[26].mxu0 %vm325_vm1, %v22266_v21  ;;  %v17532_v3 = vpop.f32.mrb[156].mxu1 }
 0x5a3   :  { %19685 = vmatpush3.bf16.msra.mxu0 %v19682_v0  ;;  %v4988_v13 = vpop.f32.mrb[157].mxu1  ;;  %17482 = vmatprep.mubr.msk.f32.mxu0 %vm325_vm1, %v22273_v8  ;;  %v22743_v8 = vld [vmem:[%s25147_s1 + $0x78] sm:$0xff]  ;;  %v22799_v0 = vld [vmem:[%s25147_s1 + $0x30] sm:$0xff] }
 0x5a4   :  { %v19710_v6 = vpack.c.bf16 %v17532_v3, %v4988_v13  ;;  %19687 = vmatprep.subr.bf16.mxu0 %v19686_v14  ;;  %v22869_v3 = vld [vmem:[%s25147_s1 + $0xc0] sm:$0xff] }
 0x5a6   :  { %17483 = vmatmul.mubr.msk.f32.gmra.mrb[28].mxu0 %vm325_vm1, %v22734_v33  ;;  %v17535_v36 = vpop.f32.mrb[158].mxu1 }
 0x5a7   :  { %19689 = vmatpush3.bf16.msra.mxu0 %v19686_v14  ;;  %v4998_v11 = vpop.f32.mrb[159].mxu1  ;;  %17485 = vmatprep.mubr.msk.f32.mxu0 %vm325_vm1, %v22282_v40  ;;  %v6481_v40 = vld [vmem:[%s25152_s8] sm:$0xff] }
 0x5a8   :  { %v19714_v21 = vpack.c.bf16 %v17535_v36, %v4998_v11  ;;  %19691 = vmatprep.subr.bf16.mxu0 %v19690_v16  ;;  %v19862_v37 = vpack.c.bf16 %v6482_v28, %v6481_v40 }
 0x5aa   :  { %17486 = vmatmul.mubr.msk.f32.gmra.mrb[30].mxu0 %vm325_vm1, %v22743_v8  ;;  %v17574_v15 = vpop.f32.mrb[160].mxu1  ;;  %19863 = vmatprep.subr.bf16.mxu1 %v19862_v37 }
 0x5ab   :  { %19693 = vmatpush3.bf16.msra.mxu0 %v19690_v16  ;;  %v5191_v49 = vpop.f32.mrb[161].mxu1  ;;  %17504 = vmatprep.mubr.msk.f32.mxu0 %vm325_vm1, %v22750_v23 }
 0x5ac   :  { %v19726_v31 = vpack.c.bf16 %v17574_v15, %v5191_v49  ;;  %19703 = vmatprep.subr.bf16.mxu0 %v19702_v53  ;;  %19865 = vmatpush3.bf16.msra.mxu1 %v19862_v37  ;;  %v22890_v49 = vld [vmem:[%s25147_s1 + $0xd8] sm:$0xff]  ;;  %v22904_v37 = vld [vmem:[%s25147_s1 + $0xe8] sm:$0xff] }
 0x5ad   :  { %19867 = vmatprep.subr.bf16.mxu1 %v19866_v43 }
 0x5ae   :  { %17505 = vmatmul.mubr.msk.f32.vlgmr.msra.gmra.mrb[24].mxu0 %vm325_vm1, %v22299_v39  ;;  %v17577_v48 = vpop.f32.mrb[162].mxu1  ;;  %v22778_v39 = vld [vmem:[%s25147_s1 + $0x18] sm:$0xff] }
 0x5af   :  { %19705 = vmatpush3.bf16.msra.mxu0 %v19702_v53  ;;  %v5201_v54 = vpop.f32.mrb[163].mxu1  ;;  %17507 = vmatprep.mubr.msk.f32.mxu0 %vm325_vm1, %v22771_v57 }
 0x5b0   :  { %v19730_v60 = vpack.c.bf16 %v17577_v48, %v5201_v54  ;;  %19707 = vmatprep.subr.bf16.mxu0 %v19706_v61  ;;  %19869 = vmatpush3.bf16.msra.mxu1 %v19866_v43  ;;  %v22911_v48 = vld [vmem:[%s25147_s1 + $0xf0] sm:$0xff] }
 0x5b2   :  { %17508 = vmatmul.mubr.msk.f32.gmra.mrb[26].mxu0 %vm325_vm1, %v22778_v39  ;;  %v17580_v56 = vpop.f32.mrb[164].mxu1 }
 0x5b3   :  { %19709 = vmatpush3.bf16.msra.mxu0 %v19706_v61  ;;  %v5211_v1 = vpop.f32.mrb[165].mxu1  ;;  %17510 = vmatprep.mubr.msk.f32.mxu0 %vm325_vm1, %v22785_v63 }
 0x5b4   :  { %v19734_v10 = vpack.c.bf16 %v17580_v56, %v5211_v1  ;;  %19711 = vmatprep.subr.bf16.mxu0 %v19710_v6 }
 0x5b6   :  { %17511 = vmatmul.mubr.msk.f32.gmra.mrb[28].mxu0 %vm325_vm1, %v22792_v2  ;;  %v17583_v44 = vpop.f32.mrb[166].mxu1 }
 0x5b7   :  { %19713 = vmatpush3.bf16.msra.mxu0 %v19710_v6  ;;  %v5221_v4 = vpop.f32.mrb[167].mxu1  ;;  %17513 = vmatprep.mubr.msk.f32.mxu0 %vm325_vm1, %v22799_v0  ;;  %v22876_v6 = vld [vmem:[%s25147_s1 + $0xc8] sm:$0xff] }
 0x5b8   :  { %v19738_v12 = vpack.c.bf16 %v17583_v44, %v5221_v4  ;;  %19715 = vmatprep.subr.bf16.mxu0 %v19714_v21  ;;  %v22932_v4 = vld [vmem:[%s25147_s1 + $0x108] sm:$0xff] }
 0x5ba   :  { %17514 = vmatmul.mubr.msk.f32.gmra.mrb[30].mxu0 %vm325_vm1, %v22806_v34  ;;  %v17622_v14 = vpop.f32.mrb[168].mxu1 }
 0x5bb   :  { %19717 = vmatpush3.bf16.msra.mxu0 %v19714_v21  ;;  %v5414_v17 = vpop.f32.mrb[169].mxu1  ;;  %17552 = vmatprep.mubr.msk.f32.mxu0 %vm325_vm1, %v22813_v22  ;;  %v22883_v21 = vld [vmem:[%s25147_s1 + $0xd0] sm:$0xff] }
 0x5bc   :  { %v19750_v16 = vpack.c.bf16 %v17622_v14, %v5414_v17  ;;  %19727 = vmatprep.subr.bf16.mxu0 %v19726_v31  ;;  %v22939_v17 = vld [vmem:[%s25147_s1 + $0x110] sm:$0xff] }
 0x5be   :  { %17553 = vmatmul.mubr.msk.f32.vlgmr.msra.gmra.mrb[24].mxu0 %vm325_vm1, %v22820_v24  ;;  %v17625_v27 = vpop.f32.mrb[170].mxu1 }
 0x5bf   :  { %19729 = vmatpush3.bf16.msra.mxu0 %v19726_v31  ;;  %v5424_v29 = vpop.f32.mrb[171].mxu1  ;;  %17555 = vmatprep.mubr.msk.f32.mxu0 %vm325_vm1, %v22827_v32 }
 0x5c0   :  { %v19754_v41 = vpack.c.bf16 %v17625_v27, %v5424_v29  ;;  %19731 = vmatprep.subr.bf16.mxu0 %v19730_v60  ;;  %v22946_v27 = vld [vmem:[%s25147_s1 + $0x118] sm:$0xff] }
 0x5c2   :  { %17556 = vmatmul.mubr.msk.f32.gmra.mrb[26].mxu0 %vm325_vm1, %v22834_v35  ;;  %v17628_v38 = vpop.f32.mrb[172].mxu1 }
 0x5c3   :  { %19733 = vmatpush3.bf16.msra.mxu0 %v19730_v60  ;;  %v5434_v62 = vpop.f32.mrb[173].mxu1  ;;  %17558 = vmatprep.mubr.msk.f32.mxu0 %vm325_vm1, %v22841_v42  ;;  %v22918_v60 = vld [vmem:[%s25147_s1 + $0xf8] sm:$0xff] }
 0x5c4   :  { %v19758_v45 = vpack.c.bf16 %v17628_v38, %v5434_v62  ;;  %19735 = vmatprep.subr.bf16.mxu0 %v19734_v10  ;;  %v22953_v38 = vld [vmem:[%s25147_s1 + $0x120] sm:$0xff] }
 0x5c6   :  { %17559 = vmatmul.mubr.msk.f32.gmra.mrb[28].mxu0 %vm325_vm1, %v22848_v18  ;;  %v17631_v47 = vpop.f32.mrb[174].mxu1 }
 0x5c7   :  { %19737 = vmatpush3.bf16.msra.mxu0 %v19734_v10  ;;  %v5444_v51 = vpop.f32.mrb[175].mxu1  ;;  %17561 = vmatprep.mubr.msk.f32.mxu0 %vm325_vm1, %v22855_v46  ;;  %v22925_v10 = vld [vmem:[%s25147_s1 + $0x100] sm:$0xff] }
 0x5c8   :  { %v19762_v53 = vpack.c.bf16 %v17631_v47, %v5444_v51  ;;  %19739 = vmatprep.subr.bf16.mxu0 %v19738_v12 }
 0x5ca   :  { %17562 = vmatmul.mubr.msk.f32.gmra.mrb[30].mxu0 %vm325_vm1, %v22862_v58  ;;  %v17670_v25 = vpop.f32.mrb[176].mxu1 }
 0x5cb   :  { %19741 = vmatpush3.bf16.msra.mxu0 %v19738_v12  ;;  %v5637_v61 = vpop.f32.mrb[177].mxu1  ;;  %17600 = vmatprep.mubr.msk.f32.mxu0 %vm325_vm1, %v22869_v3 }
 0x5cc   :  { %v19774_v13 = vpack.c.bf16 %v17670_v25, %v5637_v61  ;;  %19751 = vmatprep.subr.bf16.mxu0 %v19750_v16  ;;  %v22974_v61 = vld [vmem:[%s25147_s1 + $0x138] sm:$0xff] }
 0x5ce   :  { %17601 = vmatmul.mubr.msk.f32.vlgmr.msra.gmra.mrb[24].mxu0 %vm325_vm1, %v22876_v6  ;;  %v17673_v36 = vpop.f32.mrb[178].mxu1 }
 0x5cf   :  { %19753 = vmatpush3.bf16.msra.mxu0 %v19750_v16  ;;  %v5647_v11 = vpop.f32.mrb[179].mxu1  ;;  %17603 = vmatprep.mubr.msk.f32.mxu0 %vm325_vm1, %v22883_v21 }
 0x5d0   :  { %v19778_v15 = vpack.c.bf16 %v17673_v36, %v5647_v11  ;;  %19755 = vmatprep.subr.bf16.mxu0 %v19754_v41  ;;  %v22981_v11 = vld [vmem:[%s25147_s1 + $0x140] sm:$0xff] }
 0x5d2   :  { %17604 = vmatmul.mubr.msk.f32.gmra.mrb[26].mxu0 %vm325_vm1, %v22890_v49  ;;  %v17676_v40 = vpop.f32.mrb[180].mxu1 }
 0x5d3   :  { %19757 = vmatpush3.bf16.msra.mxu0 %v19754_v41  ;;  %v5657_v28 = vpop.f32.mrb[181].mxu1  ;;  %17606 = vmatprep.mubr.msk.f32.mxu0 %vm325_vm1, %v22897_v5 }
 0x5d4   :  { %v19782_v31 = vpack.c.bf16 %v17676_v40, %v5657_v28  ;;  %19759 = vmatprep.subr.bf16.mxu0 %v19758_v45  ;;  %v22988_v40 = vld [vmem:[%s25147_s1 + $0x148] sm:$0xff] }
 0x5d6   :  { %17607 = vmatmul.mubr.msk.f32.gmra.mrb[28].mxu0 %vm325_vm1, %v22904_v37  ;;  %v17679_v55 = vpop.f32.mrb[182].mxu1 }
 0x5d7   :  { %19761 = vmatpush3.bf16.msra.mxu0 %v19758_v45  ;;  %v5667_v43 = vpop.f32.mrb[183].mxu1  ;;  %17609 = vmatprep.mubr.msk.f32.mxu0 %vm325_vm1, %v22911_v48  ;;  %v22960_v45 = vld [vmem:[%s25147_s1 + $0x128] sm:$0xff] }
 0x5d8   :  { %v19786_v54 = vpack.c.bf16 %v17679_v55, %v5667_v43  ;;  %19763 = vmatprep.subr.bf16.mxu0 %v19762_v53  ;;  %v22995_v55 = vld [vmem:[%s25147_s1 + $0x150] sm:$0xff] }
 0x5da   :  { %17610 = vmatmul.mubr.msk.f32.gmra.mrb[30].mxu0 %vm325_vm1, %v22918_v60  ;;  %v17718_v56 = vpop.f32.mrb[184].mxu1 }
 0x5db   :  { %19765 = vmatpush3.bf16.msra.mxu0 %v19762_v53  ;;  %v5860_v1 = vpop.f32.mrb[185].mxu1  ;;  %17648 = vmatprep.mubr.msk.f32.mxu0 %vm325_vm1, %v22925_v10  ;;  %v22967_v53 = vld [vmem:[%s25147_s1 + $0x130] sm:$0xff] }
 0x5dc   :  { %v19798_v44 = vpack.c.bf16 %v17718_v56, %v5860_v1  ;;  %19775 = vmatprep.subr.bf16.mxu0 %v19774_v13 }
 0x5de   :  { %17649 = vmatmul.mubr.msk.f32.vlgmr.msra.gmra.mrb[24].mxu0 %vm325_vm1, %v22932_v4  ;;  %v17721_v12 = vpop.f32.mrb[186].mxu1 }
 0x5df   :  { %19777 = vmatpush3.bf16.msra.mxu0 %v19774_v13  ;;  %v5870_v14 = vpop.f32.mrb[187].mxu1  ;;  %17651 = vmatprep.mubr.msk.f32.mxu0 %vm325_vm1, %v22939_v17 }
 0x5e0   :  { %v19802_v16 = vpack.c.bf16 %v17721_v12, %v5870_v14  ;;  %19779 = vmatprep.subr.bf16.mxu0 %v19778_v15  ;;  %v23016_v14 = vld [vmem:[%s25147_s1 + $0x168] sm:$0xff] }
 0x5e2   :  { %17652 = vmatmul.mubr.msk.f32.gmra.mrb[26].mxu0 %vm325_vm1, %v22946_v27  ;;  %v17724_v29 = vpop.f32.mrb[188].mxu1 }
 0x5e3   :  { %19781 = vmatpush3.bf16.msra.mxu0 %v19778_v15  ;;  %v5880_v41 = vpop.f32.mrb[189].mxu1  ;;  %17654 = vmatprep.mubr.msk.f32.mxu0 %vm325_vm1, %v22953_v38 }
 0x5e4   :  { %v19806_v62 = vpack.c.bf16 %v17724_v29, %v5880_v41  ;;  %19783 = vmatprep.subr.bf16.mxu0 %v19782_v31  ;;  %v23023_v41 = vld [vmem:[%s25147_s1 + $0x170] sm:$0xff] }
 0x5e6   :  { %17655 = vmatmul.mubr.msk.f32.gmra.mrb[28].mxu0 %vm325_vm1, %v22960_v45  ;;  %v17727_v47 = vpop.f32.mrb[190].mxu1 }
 0x5e7   :  { %19785 = vmatpush3.bf16.msra.mxu0 %v19782_v31  ;;  %v5890_v51 = vpop.f32.mrb[191].mxu1  ;;  %17657 = vmatprep.mubr.msk.f32.mxu0 %vm325_vm1, %v22967_v53 }
 0x5e8   :  { %v19810_v25 = vpack.c.bf16 %v17727_v47, %v5890_v51  ;;  %19787 = vmatprep.subr.bf16.mxu0 %v19786_v54  ;;  %v23030_v51 = vld [vmem:[%s25147_s1 + $0x178] sm:$0xff] }
 0x5ea   :  { %17658 = vmatmul.mubr.msk.f32.gmra.mrb[30].mxu0 %vm325_vm1, %v22974_v61  ;;  %v17766_v13 = vpop.f32.mrb[192].mxu1 }
 0x5eb   :  { %19789 = vmatpush3.bf16.msra.mxu0 %v19786_v54  ;;  %v6083_v36 = vpop.f32.mrb[193].mxu1  ;;  %17696 = vmatprep.mubr.msk.f32.mxu0 %vm325_vm1, %v22981_v11  ;;  %v23002_v54 = vld [vmem:[%s25147_s1 + $0x158] sm:$0xff] }
 0x5ec   :  { %v19822_v15 = vpack.c.bf16 %v17766_v13, %v6083_v36  ;;  %19799 = vmatprep.subr.bf16.mxu0 %v19798_v44  ;;  %v23037_v36 = vld [vmem:[%s25147_s1 + $0x180] sm:$0xff] }
 0x5ee   :  { %17697 = vmatmul.mubr.msk.f32.vlgmr.msra.gmra.mrb[24].mxu0 %vm325_vm1, %v22988_v40  ;;  %v17769_v28 = vpop.f32.mrb[194].mxu1 }
 0x5ef   :  { %19801 = vmatpush3.bf16.msra.mxu0 %v19798_v44  ;;  %v6093_v31 = vpop.f32.mrb[195].mxu1  ;;  %17699 = vmatprep.mubr.msk.f32.mxu0 %vm325_vm1, %v22995_v55  ;;  %v23009_v44 = vld [vmem:[%s25147_s1 + $0x160] sm:$0xff] }
 0x5f0   :  { %v19826_v43 = vpack.c.bf16 %v17769_v28, %v6093_v31  ;;  %19803 = vmatprep.subr.bf16.mxu0 %v19802_v16  ;;  %v23044_v31 = vld [vmem:[%s25147_s1 + $0x188] sm:$0xff] }
 0x5f2   :  { %17700 = vmatmul.mubr.msk.f32.gmra.mrb[26].mxu0 %vm325_vm1, %v23002_v54  ;;  %v17772_v56 = vpop.f32.mrb[196].mxu1 }
 0x5f3   :  { %19805 = vmatpush3.bf16.msra.mxu0 %v19802_v16  ;;  %v6103_v1 = vpop.f32.mrb[197].mxu1  ;;  %17702 = vmatprep.mubr.msk.f32.mxu0 %vm325_vm1, %v23009_v44 }
 0x5f4   :  { %v19830_v12 = vpack.c.bf16 %v17772_v56, %v6103_v1  ;;  %19807 = vmatprep.subr.bf16.mxu0 %v19806_v62  ;;  %v23051_v1 = vld [vmem:[%s25147_s1 + $0x190] sm:$0xff] }
 0x5f6   :  { %17703 = vmatmul.mubr.msk.f32.gmra.mrb[28].mxu0 %vm325_vm1, %v23016_v14  ;;  %v17775_v16 = vpop.f32.mrb[198].mxu1 }
 0x5f7   :  { %19809 = vmatpush3.bf16.msra.mxu0 %v19806_v62  ;;  %v6113_v29 = vpop.f32.mrb[199].mxu1  ;;  %17705 = vmatprep.mubr.msk.f32.mxu0 %vm325_vm1, %v23023_v41 }
 0x5f8   :  { %v19834_v47 = vpack.c.bf16 %v17775_v16, %v6113_v29  ;;  %19811 = vmatprep.subr.bf16.mxu0 %v19810_v25  ;;  %v23058_v29 = vld [vmem:[%s25147_s1 + $0x198] sm:$0xff] }
 0x5fa   :  { %17706 = vmatmul.mubr.msk.f32.gmra.mrb[30].mxu0 %vm325_vm1, %v23030_v51  ;;  %v17814_v62 = vpop.f32.mrb[200].mxu1 }
 0x5fb   :  { %19813 = vmatpush3.bf16.msra.mxu0 %v19810_v25  ;;  %v6306_v13 = vpop.f32.mrb[201].mxu1  ;;  %17744 = vmatprep.mubr.msk.f32.mxu0 %vm325_vm1, %v23037_v36 }
 0x5fc   :  { %v19846_v28 = vpack.c.bf16 %v17814_v62, %v6306_v13  ;;  %19823 = vmatprep.subr.bf16.mxu0 %v19822_v15  ;;  %v23065_v13 = vld [vmem:[%s25147_s1 + $0x1a0] sm:$0xff] }
 0x5fd   :  { %25292 = vst [vmem:[#allocation10_spill] sm:$0xff] %v23065_v13 }
 0x5fe   :  { %17745 = vmatmul.mubr.msk.f32.vlgmr.msra.gmra.mrb[24].mxu0 %vm325_vm1, %v23044_v31  ;;  %v17817_v25 = vpop.f32.mrb[202].mxu1 }
 0x5ff   :  { %19825 = vmatpush3.bf16.msra.mxu0 %v19822_v15  ;;  %v6316_v56 = vpop.f32.mrb[203].mxu1  ;;  %17747 = vmatprep.mubr.msk.f32.mxu0 %vm325_vm1, %v23051_v1 }
 0x600   :  { %v19850_v16 = vpack.c.bf16 %v17817_v25, %v6316_v56  ;;  %19827 = vmatprep.subr.bf16.mxu0 %v19826_v43  ;;  %v23072_v56 = vld [vmem:[%s25147_s1 + $0x1a8] sm:$0xff] }
 0x601   :  { %25293 = vst [vmem:[#allocation11_spill] sm:$0xff] %v23072_v56 }
 0x602   :  { %17748 = vmatmul.mubr.msk.f32.gmra.mrb[26].mxu0 %vm325_vm1, %v23058_v29  ;;  %v17820_v15 = vpop.f32.mrb[204].mxu1 }
 0x603   :  { %19829 = vmatpush3.bf16.msra.mxu0 %v19826_v43  ;;  %v6326_v62 = vpop.f32.mrb[205].mxu1  ;;  %17750 = vmatprep.mubr.msk.f32.mxu0 %vm325_vm1, %v23065_v13 }
 0x604   :  { %v19854_v25 = vpack.c.bf16 %v17820_v15, %v6326_v62  ;;  %19831 = vmatprep.subr.bf16.mxu0 %v19830_v12  ;;  %v23086_v62 = vld [vmem:[%s25147_s1 + $0x1b8] sm:$0xff] }
 0x605   :  { %25295 = vst [vmem:[#allocation13_spill] sm:$0xff] %v23086_v62 }
 0x606   :  { %17751 = vmatmul.mubr.msk.f32.gmra.mrb[28].mxu0 %vm325_vm1, %v23072_v56  ;;  %v17823_v43 = vpop.f32.mrb[206].mxu1 }
 0x607   :  { %19833 = vmatpush3.bf16.msra.mxu0 %v19830_v12  ;;  %v6336_v26 = vpop.f32.mrb[207].mxu1  ;;  %17753 = vmatprep.mubr.msk.f32.mxu0 %vm325_vm1, %v23079_v19  ;;  %v23093_v12 = vld [vmem:[%s25147_s1 + $0x1c0] sm:$0xff] }
 0x608   :  { %v19858_v15 = vpack.c.bf16 %v17823_v43, %v6336_v26  ;;  %19835 = vmatprep.subr.bf16.mxu0 %v19834_v47  ;;  %25296 = vst [vmem:[#allocation14_spill] sm:$0xff] %v23093_v12  ;;  %v23100_v26 = vld [vmem:[%s25147_s1 + $0x1c8] sm:$0xff]  ;;  %v23114_v43 = vld [vmem:[%s25147_s1 + $0x1d8] sm:$0xff] }
 0x609   :  { %25297 = vst [vmem:[#allocation15_spill] sm:$0xff] %v23100_v26  ;;  %25299 = vst [vmem:[#allocation17_spill] sm:$0xff] %v23114_v43 }
 0x60a   :  { %17754 = vmatmul.mubr.msk.f32.gmra.mrb[30].mxu0 %vm325_vm1, %v23086_v62 }
 0x60b   :  { %19837 = vmatpush3.bf16.msra.mxu0 %v19834_v47  ;;  %17792 = vmatprep.mubr.msk.f32.mxu0 %vm325_vm1, %v23093_v12  ;;  %v23107_v47 = vld [vmem:[%s25147_s1 + $0x1d0] sm:$0xff] }
 0x60c   :  { %19847 = vmatprep.subr.bf16.mxu0 %v19846_v28  ;;  %25298 = vst [vmem:[#allocation16_spill] sm:$0xff] %v23107_v47 }
 0x60e   :  { %17793 = vmatmul.mubr.msk.f32.vlgmr.msra.gmra.mrb[24].mxu0 %vm325_vm1, %v23100_v26 }
 0x60f   :  { %19849 = vmatpush3.bf16.msra.mxu0 %v19846_v28  ;;  %17795 = vmatprep.mubr.msk.f32.mxu0 %vm325_vm1, %v23107_v47  ;;  %v23121_v28 = vld [vmem:[%s25147_s1 + $0x1e0] sm:$0xff] }
 0x610   :  { %19851 = vmatprep.subr.bf16.mxu0 %v19850_v16  ;;  %25300 = vst [vmem:[#allocation18_spill] sm:$0xff] %v23121_v28 }
 0x612   :  { %17796 = vmatmul.mubr.msk.f32.gmra.mrb[26].mxu0 %vm325_vm1, %v23114_v43 }
 0x613   :  { %19853 = vmatpush3.bf16.msra.mxu0 %v19850_v16  ;;  %17798 = vmatprep.mubr.msk.f32.mxu0 %vm325_vm1, %v23121_v28  ;;  %v23135_v16 = vld [vmem:[%s25147_s1 + $0x1f0] sm:$0xff] }
 0x614   :  { %19855 = vmatprep.subr.bf16.mxu0 %v19854_v25  ;;  %25302 = vst [vmem:[#allocation20_spill] sm:$0xff] %v23135_v16 }
 0x616   :  { %17799 = vmatmul.mubr.msk.f32.gmra.mrb[28].mxu0 %vm325_vm1, %v23128_v7  ;;  %v14469_v7 = vld [vmem:[%s25152_s8 + $0x38] sm:$0xff] }
 0x617   :  { %19857 = vmatpush3.bf16.msra.mxu0 %v19854_v25  ;;  %17801 = vmatprep.mubr.msk.f32.mxu0 %vm325_vm1, %v23135_v16  ;;  %v23149_v25 = vld [vmem:[%s25147_s1 + $0x200] sm:$0xff] }
 0x618   :  { %19859 = vmatprep.subr.bf16.mxu0 %v19858_v15  ;;  %25304 = vst [vmem:[#allocation22_spill] sm:$0xff] %v23149_v25 }
 0x61a   :  { %17802 = vmatmul.mubr.msk.f32.gmra.mrb[30].mxu0 %vm325_vm1, %v23142_v9 }
 0x61b   :  { %19861 = vmatpush3.bf16.msra.mxu0 %v19858_v15  ;;  %17840 = vmatprep.mubr.msk.f32.mxu0 %vm325_vm1, %v23149_v25  ;;  %v23163_v15 = vld [vmem:[%s25147_s1 + $0x210] sm:$0xff] }
 0x61c   :  { %25306 = vst [vmem:[#allocation24_spill] sm:$0xff] %v23163_v15 }
 0x61e   :  { %17841 = vmatmul.mubr.msk.f32.vlgmr.msra.gmra.mrb[24].mxu0 %vm325_vm1, %v23156_v52  ;;  %v14457_v52 = vld [vmem:[%s25153_s7] ss:$0 sm:$0xff] }
 0x61f   :  { %17843 = vmatprep.mubr.msk.f32.mxu0 %vm325_vm1, %v23163_v15  ;;  %v14467_v15 = vld [vmem:[%s25152_s8 + $0x28] sm:$0xff] }
 0x622   :  { %17844 = vmatmul.mubr.msk.f32.gmra.mrb[26].mxu0 %vm325_vm1, %v23170_v59  ;;  %v23191_v59 = vld [vmem:[%s25147_s1 + $0x230] sm:$0xff] }
 0x623   :  { %17846 = vmatprep.mubr.msk.f32.mxu0 %vm325_vm1, %v23177_v30  ;;  %25310 = vst [vmem:[#allocation28_spill] sm:$0xff] %v23191_v59  ;;  %v23198_v30 = vld [vmem:[%s25147_s1 + $0x238] sm:$0xff] }
 0x624   :  { %25311 = vst [vmem:[#allocation29_spill] sm:$0xff] %v23198_v30 }
 0x626   :  { %17847 = vmatmul.mubr.msk.f32.gmra.mrb[28].mxu0 %vm325_vm1, %v23184_v20  ;;  %v14466_v20 = vld [vmem:[%s25152_s8 + $0x20] sm:$0xff] }
 0x627   :  { %17849 = vmatprep.mubr.msk.f32.mxu0 %vm325_vm1, %v23191_v59  ;;  %v19870_v59 = vpack.c.bf16 %v14467_v15, %v14466_v20 }
 0x629   :  { %19871 = vmatprep.subr.bf16.mxu1 %v19870_v59 }
 0x62a   :  { %17850 = vmatmul.mubr.msk.f32.gmra.mrb[30].mxu0 %vm325_vm1, %v23198_v30 }
 0x62b   :  { %17908 = vmatprep.mubr.msk.f32.mxu0 %vm325_vm1, %v22430_v50  ;;  %v14468_v50 = vld [vmem:[%s25152_s8 + $0x30] sm:$0xff] }
 0x62c   :  { %v19874_v26 = vpack.c.bf16 %v14469_v7, %v14468_v50 }
 0x6f1   :  { %v17842_v25 = vpop.f32.mrb[24].mxu0 }
 0x6f2   :  { %v6466_v9 = vadd.f32 %v17842_v25, %v14457_v52  ;;  %v6411_v30 = vpop.f32.mrb[25].mxu0  ;;  %v14495_v25 = vld [vmem:[%s25152_s8 + $0x48] sm:$0xff] }
 0x6f3   :  { %v6465_v16 = vadd.f32 %v14457_v52, %v6411_v30  ;;  %v14494_v30 = vld [vmem:[%s25152_s8 + $0x40] sm:$0xff] }
 0x6f4   :  { %v23221_v15 = vmax.f32 %v6466_v9, 0.0 }
 0x6f5   :  { %v23219_v28 = vmax.f32 %v6465_v16, 0.0  ;;  %v17845_v20 = vpop.f32.mrb[26].mxu0 }
 0x6f6   :  { %v6468_v43 = vadd.f32 %v17845_v20, %v14457_v52  ;;  %v6421_v47 = vpop.f32.mrb[27].mxu0  ;;  %v19910_v20 = vpack.c.bf16 %v14495_v25, %v14494_v30 }
 0x6f7   :  { %v6467_v12 = vadd.f32 %v14457_v52, %v6421_v47  ;;  %17860 = vmatprep.mubr.msk.f32.mxu1 %vm68_vm0, %v23219_v28 }
 0x6f8   :  { %17861 = vmatmul.mubr.msk.f32.vlgmr.msra.gmra.mrb[208].mxu1 %vm68_vm0, %v23221_v15  ;;  %v23235_v7 = vmax.f32 %v6468_v43, 0.0 }
 0x6f9   :  { %v23233_v9 = vmax.f32 %v6467_v12, 0.0  ;;  %v17848_v16 = vpop.f32.mrb[28].mxu0  ;;  %19873 = vmatpush3.bf16.msra.mxu1 %v19870_v59 }
 0x6fa   :  { %v6470_v47 = vadd.f32 %v17848_v16, %v14457_v52  ;;  %v6431_v50 = vpop.f32.mrb[29].mxu0  ;;  %19875 = vmatprep.subr.bf16.mxu1 %v19874_v26 }
 0x6fb   :  { %v6469_v62 = vadd.f32 %v14457_v52, %v6431_v50  ;;  %17863 = vmatprep.mubr.msk.f32.mxu1 %vm68_vm0, %v23233_v9 }
 0x6fc   :  { %17864 = vmatmul.mubr.msk.f32.gmra.mrb[210].mxu1 %vm68_vm0, %v23235_v7  ;;  %v23243_v12 = vmax.f32 %v6470_v47, 0.0  ;;  %v14515_v47 = vld [vmem:[%s25152_s8 + $0x68] sm:$0xff] }
 0x6fd   :  { %v23241_v19 = vmax.f32 %v6469_v62, 0.0  ;;  %v17851_v56 = vpop.f32.mrb[30].mxu0  ;;  %19877 = vmatpush3.bf16.msra.mxu1 %v19874_v26  ;;  %v14514_v26 = vld [vmem:[%s25152_s8 + $0x60] sm:$0xff] }
 0x6fe   :  { %v6472_v59 = vadd.f32 %v17851_v56, %v14457_v52  ;;  %v6441_v43 = vpop.f32.mrb[31].mxu0  ;;  %19911 = vmatprep.subr.bf16.mxu1 %v19910_v20  ;;  %v14496_v56 = vld [vmem:[%s25152_s8 + $0x50] sm:$0xff]  ;;  %v19934_v50 = vpack.c.bf16 %v14515_v47, %v14514_v26  ;;  %v14537_v26 = vld [vmem:[%s25152_s8 + $0x98] sm:$0xff] }
 0x6ff   :  { %v6471_v16 = vadd.f32 %v14457_v52, %v6441_v43  ;;  %17866 = vmatprep.mubr.msk.f32.mxu1 %vm68_vm0, %v23241_v19  ;;  %v14497_v52 = vld [vmem:[%s25152_s8 + $0x58] sm:$0xff] }
 0x700   :  { %17867 = vmatmul.mubr.msk.f32.gmra.mrb[212].mxu1 %vm68_vm0, %v23243_v12  ;;  %v23251_v25 = vmax.f32 %v6472_v59, 0.0  ;;  %v19914_v62 = vpack.c.bf16 %v14497_v52, %v14496_v56  ;;  %v14517_v59 = vld [vmem:[%s25152_s8 + $0x78] sm:$0xff]  ;;  %v14535_v56 = vld [vmem:[%s25152_s8 + $0x88] sm:$0xff] }
 0x701   :  { %v23249_v30 = vmax.f32 %v6471_v16, 0.0  ;;  %v14534_v16 = vld [vmem:[%s25152_s8 + $0x80] sm:$0xff] }
 0x702   :  { %v19958_v52 = vpack.c.bf16 %v14535_v56, %v14534_v16  ;;  %v14557_v16 = vld [vmem:[%s25152_s8 + $0xb8] sm:$0xff] }
 0x703   :  { %17869 = vmatprep.mubr.msk.f32.mxu1 %vm68_vm0, %v23249_v30 }
 0x704   :  { %17870 = vmatmul.mubr.msk.f32.gmra.mrb[214].mxu1 %vm68_vm0, %v23251_v25 }
 0x705   :  { %17880 = vmatprep.mubr.msk.f32.mxu1 %vm68_vm0, %v23219_v28 }
 0x708   :  { %17881 = vmatmul.mubr.msk.f32.vlgmr.msra.gmra.mrb[216].mxu1 %vm68_vm0, %v23221_v15 }
 0x709   :  { %17883 = vmatprep.mubr.msk.f32.mxu1 %vm68_vm0, %v23233_v9  ;;  %19913 = vmatpush3.bf16.msra.mxu1 %v19910_v20  ;;  %v14516_v20 = vld [vmem:[%s25152_s8 + $0x70] sm:$0xff] }
 0x70a   :  { %19915 = vmatprep.subr.bf16.mxu1 %v19914_v62  ;;  %v19938_v43 = vpack.c.bf16 %v14517_v59, %v14516_v20  ;;  %v14555_v20 = vld [vmem:[%s25152_s8 + $0xa8] sm:$0xff] }
 0x70c   :  { %17884 = vmatmul.mubr.msk.f32.gmra.mrb[218].mxu1 %vm68_vm0, %v23235_v7 }
 0x70d   :  { %17886 = vmatprep.mubr.msk.f32.mxu1 %vm68_vm0, %v23241_v19  ;;  %19917 = vmatpush3.bf16.msra.mxu1 %v19914_v62  ;;  %v14536_v62 = vld [vmem:[%s25152_s8 + $0x90] sm:$0xff] }
 0x70e   :  { %19935 = vmatprep.subr.bf16.mxu1 %v19934_v50  ;;  %v19962_v47 = vpack.c.bf16 %v14537_v26, %v14536_v62  ;;  %v14575_v62 = vld [vmem:[%s25152_s8 + $0xc8] sm:$0xff] }
 0x710   :  { %17887 = vmatmul.mubr.msk.f32.gmra.mrb[220].mxu1 %vm68_vm0, %v23243_v12 }
 0x711   :  { %17889 = vmatprep.mubr.msk.f32.mxu1 %vm68_vm0, %v23249_v30 }
 0x714   :  { %17890 = vmatmul.mubr.msk.f32.gmra.mrb[222].mxu1 %vm68_vm0, %v23251_v25 }
 0x715   :  { %17956 = vmatprep.mubr.msk.f32.mxu1 %vm68_vm0, %v23219_v28 }
 0x718   :  { %17957 = vmatmul.mubr.msk.f32.vlgmr.msra.gmra.mrb[224].mxu1 %vm68_vm0, %v23221_v15 }
 0x719   :  { %17959 = vmatprep.mubr.msk.f32.mxu1 %vm68_vm0, %v23233_v9  ;;  %19937 = vmatpush3.bf16.msra.mxu1 %v19934_v50  ;;  %v14554_v50 = vld [vmem:[%s25152_s8 + $0xa0] sm:$0xff] }
 0x71a   :  { %19939 = vmatprep.subr.bf16.mxu1 %v19938_v43  ;;  %v19982_v59 = vpack.c.bf16 %v14555_v20, %v14554_v50  ;;  %v14577_v50 = vld [vmem:[%s25152_s8 + $0xd8] sm:$0xff] }
 0x71c   :  { %17960 = vmatmul.mubr.msk.f32.gmra.mrb[226].mxu1 %vm68_vm0, %v23235_v7 }
 0x71d   :  { %17962 = vmatprep.mubr.msk.f32.mxu1 %vm68_vm0, %v23241_v19  ;;  %19941 = vmatpush3.bf16.msra.mxu1 %v19938_v43  ;;  %v14556_v43 = vld [vmem:[%s25152_s8 + $0xb0] sm:$0xff] }
 0x71e   :  { %19959 = vmatprep.subr.bf16.mxu1 %v19958_v52  ;;  %v19986_v56 = vpack.c.bf16 %v14557_v16, %v14556_v43  ;;  %v14595_v43 = vld [vmem:[%s25152_s8 + $0xe8] sm:$0xff] }
 0x720   :  { %17963 = vmatmul.mubr.msk.f32.gmra.mrb[228].mxu1 %vm68_vm0, %v23243_v12 }
 0x721   :  { %17965 = vmatprep.mubr.msk.f32.mxu1 %vm68_vm0, %v23249_v30 }
 0x724   :  { %17966 = vmatmul.mubr.msk.f32.gmra.mrb[230].mxu1 %vm68_vm0, %v23251_v25 }
 0x725   :  { %18004 = vmatprep.mubr.msk.f32.mxu1 %vm68_vm0, %v23219_v28 }
 0x728   :  { %18005 = vmatmul.mubr.msk.f32.vlgmr.msra.gmra.mrb[232].mxu1 %vm68_vm0, %v23221_v15 }
 0x729   :  { %18007 = vmatprep.mubr.msk.f32.mxu1 %vm68_vm0, %v23233_v9  ;;  %19961 = vmatpush3.bf16.msra.mxu1 %v19958_v52  ;;  %v14574_v52 = vld [vmem:[%s25152_s8 + $0xc0] sm:$0xff] }
 0x72a   :  { %19963 = vmatprep.subr.bf16.mxu1 %v19962_v47  ;;  %v20006_v26 = vpack.c.bf16 %v14575_v62, %v14574_v52  ;;  %v14597_v52 = vld [vmem:[%s25152_s8 + $0xf8] sm:$0xff] }
 0x72c   :  { %18008 = vmatmul.mubr.msk.f32.gmra.mrb[234].mxu1 %vm68_vm0, %v23235_v7 }
 0x72d   :  { %18010 = vmatprep.mubr.msk.f32.mxu1 %vm68_vm0, %v23241_v19  ;;  %19965 = vmatpush3.bf16.msra.mxu1 %v19962_v47  ;;  %v14576_v47 = vld [vmem:[%s25152_s8 + $0xd0] sm:$0xff] }
 0x72e   :  { %19983 = vmatprep.subr.bf16.mxu1 %v19982_v59  ;;  %v20010_v20 = vpack.c.bf16 %v14577_v50, %v14576_v47  ;;  %v14615_v47 = vld [vmem:[%s25152_s8 + $0x108] sm:$0xff] }
 0x730   :  { %18011 = vmatmul.mubr.msk.f32.gmra.mrb[236].mxu1 %vm68_vm0, %v23243_v12 }
 0x731   :  { %18013 = vmatprep.mubr.msk.f32.mxu1 %vm68_vm0, %v23249_v30 }
 0x734   :  { %18014 = vmatmul.mubr.msk.f32.gmra.mrb[238].mxu1 %vm68_vm0, %v23251_v25 }
 0x735   :  { %18052 = vmatprep.mubr.msk.f32.mxu1 %vm68_vm0, %v23219_v28 }
 0x738   :  { %18053 = vmatmul.mubr.msk.f32.vlgmr.msra.gmra.mrb[240].mxu1 %vm68_vm0, %v23221_v15 }
 0x739   :  { %18055 = vmatprep.mubr.msk.f32.mxu1 %vm68_vm0, %v23233_v9  ;;  %19985 = vmatpush3.bf16.msra.mxu1 %v19982_v59  ;;  %v14594_v59 = vld [vmem:[%s25152_s8 + $0xe0] sm:$0xff] }
 0x73a   :  { %19987 = vmatprep.subr.bf16.mxu1 %v19986_v56  ;;  %v20030_v16 = vpack.c.bf16 %v14595_v43, %v14594_v59  ;;  %v14617_v59 = vld [vmem:[%s25152_s8 + $0x118] sm:$0xff] }
 0x73c   :  { %18056 = vmatmul.mubr.msk.f32.gmra.mrb[242].mxu1 %vm68_vm0, %v23235_v7 }
 0x73d   :  { %18058 = vmatprep.mubr.msk.f32.mxu1 %vm68_vm0, %v23241_v19  ;;  %19989 = vmatpush3.bf16.msra.mxu1 %v19986_v56  ;;  %v14596_v56 = vld [vmem:[%s25152_s8 + $0xf0] sm:$0xff] }
 0x73e   :  { %20007 = vmatprep.subr.bf16.mxu1 %v20006_v26  ;;  %v20034_v62 = vpack.c.bf16 %v14597_v52, %v14596_v56 }
 0x740   :  { %18059 = vmatmul.mubr.msk.f32.gmra.mrb[244].mxu1 %vm68_vm0, %v23243_v12 }
 0x741   :  { %18061 = vmatprep.mubr.msk.f32.mxu1 %vm68_vm0, %v23249_v30 }
 0x744   :  { %18062 = vmatmul.mubr.msk.f32.gmra.mrb[246].mxu1 %vm68_vm0, %v23251_v25 }
 0x745   :  { %18100 = vmatprep.mubr.msk.f32.mxu1 %vm68_vm0, %v23219_v28 }
 0x748   :  { %18101 = vmatmul.mubr.msk.f32.vlgmr.msra.gmra.mrb[248].mxu1 %vm68_vm0, %v23221_v15 }
 0x749   :  { %18103 = vmatprep.mubr.msk.f32.mxu1 %vm68_vm0, %v23233_v9  ;;  %20009 = vmatpush3.bf16.msra.mxu1 %v20006_v26  ;;  %v14614_v26 = vld [vmem:[%s25152_s8 + $0x100] sm:$0xff] }
 0x74a   :  { %20011 = vmatprep.subr.bf16.mxu1 %v20010_v20  ;;  %v20054_v50 = vpack.c.bf16 %v14615_v47, %v14614_v26 }
 0x74c   :  { %18104 = vmatmul.mubr.msk.f32.gmra.mrb[250].mxu1 %vm68_vm0, %v23235_v7 }
 0x74d   :  { %18106 = vmatprep.mubr.msk.f32.mxu1 %vm68_vm0, %v23241_v19  ;;  %20013 = vmatpush3.bf16.msra.mxu1 %v20010_v20  ;;  %v14616_v20 = vld [vmem:[%s25152_s8 + $0x110] sm:$0xff] }
 0x74e   :  { %20031 = vmatprep.subr.bf16.mxu1 %v20030_v16  ;;  %v20058_v43 = vpack.c.bf16 %v14617_v59, %v14616_v20 }
 0x750   :  { %18107 = vmatmul.mubr.msk.f32.gmra.mrb[252].mxu1 %vm68_vm0, %v23243_v12 }
 0x751   :  { %18109 = vmatprep.mubr.msk.f32.mxu1 %vm68_vm0, %v23249_v30 }
 0x754   :  { %18110 = vmatmul.mubr.msk.f32.gmra.mrb[254].mxu1 %vm68_vm0, %v23251_v25 }
 0x755   :  { %18148 = vmatprep.mubr.msk.f32.mxu1 %vm68_vm0, %v23219_v28 }
 0x758   :  { %18149 = vmatmul.mubr.msk.f32.vlgmr.msra.gmra.mrb[0].mxu1 %vm68_vm0, %v23221_v15 }
 0x759   :  { %18151 = vmatprep.mubr.msk.f32.mxu1 %vm68_vm0, %v23233_v9  ;;  %20033 = vmatpush3.bf16.msra.mxu1 %v20030_v16 }
 0x75a   :  { %20035 = vmatprep.subr.bf16.mxu1 %v20034_v62 }
 0x75c   :  { %18152 = vmatmul.mubr.msk.f32.gmra.mrb[2].mxu1 %vm68_vm0, %v23235_v7 }
 0x75d   :  { %18154 = vmatprep.mubr.msk.f32.mxu1 %vm68_vm0, %v23241_v19  ;;  %20037 = vmatpush3.bf16.msra.mxu1 %v20034_v62 }
 0x75e   :  { %20055 = vmatprep.subr.bf16.mxu1 %v20054_v50 }
 0x760   :  { %18155 = vmatmul.mubr.msk.f32.gmra.mrb[4].mxu1 %vm68_vm0, %v23243_v12 }
 0x761   :  { %18157 = vmatprep.mubr.msk.f32.mxu1 %vm68_vm0, %v23249_v30 }
 0x764   :  { %18158 = vmatmul.mubr.msk.f32.gmra.mrb[6].mxu1 %vm68_vm0, %v23251_v25 }
 0x765   :  { %18196 = vmatprep.mubr.msk.f32.mxu1 %vm68_vm0, %v23219_v28 }
 0x768   :  { %18197 = vmatmul.mubr.msk.f32.vlgmr.msra.gmra.mrb[8].mxu1 %vm68_vm0, %v23221_v15 }
 0x769   :  { %18199 = vmatprep.mubr.msk.f32.mxu1 %vm68_vm0, %v23233_v9  ;;  %20057 = vmatpush3.bf16.msra.mxu1 %v20054_v50 }
 0x76a   :  { %20059 = vmatprep.subr.bf16.mxu1 %v20058_v43 }
 0x76c   :  { %18200 = vmatmul.mubr.msk.f32.gmra.mrb[10].mxu1 %vm68_vm0, %v23235_v7 }
 0x76d   :  { %18202 = vmatprep.mubr.msk.f32.mxu1 %vm68_vm0, %v23241_v19  ;;  %20061 = vmatpush3.bf16.msra.mxu1 %v20058_v43 }
 0x770   :  { %18203 = vmatmul.mubr.msk.f32.gmra.mrb[12].mxu1 %vm68_vm0, %v23243_v12 }
 0x771   :  { %18205 = vmatprep.mubr.msk.f32.mxu1 %vm68_vm0, %v23249_v30 }
 0x774   :  { %18206 = vmatmul.mubr.msk.f32.gmra.mrb[14].mxu1 %vm68_vm0, %v23251_v25 }
 0x775   :  { %18244 = vmatprep.mubr.msk.f32.mxu1 %vm68_vm0, %v23219_v28 }
 0x778   :  { %18245 = vmatmul.mubr.msk.f32.vlgmr.msra.gmra.mrb[16].mxu1 %vm68_vm0, %v23221_v15 }
 0x779   :  { %18247 = vmatprep.mubr.msk.f32.mxu1 %vm68_vm0, %v23233_v9 }
 0x77c   :  { %18248 = vmatmul.mubr.msk.f32.gmra.mrb[18].mxu1 %vm68_vm0, %v23235_v7 }
 0x77d   :  { %18250 = vmatprep.mubr.msk.f32.mxu1 %vm68_vm0, %v23241_v19 }
 0x780   :  { %18251 = vmatmul.mubr.msk.f32.gmra.mrb[20].mxu1 %vm68_vm0, %v23243_v12 }
 0x781   :  { %18253 = vmatprep.mubr.msk.f32.mxu1 %vm68_vm0, %v23249_v30 }
 0x784   :  { %18254 = vmatmul.mubr.msk.f32.gmra.mrb[22].mxu1 %vm68_vm0, %v23251_v25 }
 0x7cb   :  { %v17862_v28 = vpop.f32.mrb[208].mxu1 }
 0x7cc   :  { %v6575_v15 = vpop.f32.mrb[209].mxu1 }
 0x7cd   :  { %v19894_v16 = vpack.c.bf16 %v17862_v28, %v6575_v15 }
 0x7cf   :  { %v17865_v56 = vpop.f32.mrb[210].mxu1 }
 0x7d0   :  { %v6585_v9 = vpop.f32.mrb[211].mxu1 }
 0x7d1   :  { %v19898_v52 = vpack.c.bf16 %v17865_v56, %v6585_v9 }
 0x7d3   :  { %v17868_v62 = vpop.f32.mrb[212].mxu1 }
 0x7d4   :  { %v6595_v7 = vpop.f32.mrb[213].mxu1 }
 0x7d5   :  { %v19902_v26 = vpack.c.bf16 %v17868_v62, %v6595_v7 }
 0x7d7   :  { %v17871_v47 = vpop.f32.mrb[214].mxu1 }
 0x7d8   :  { %v6605_v19 = vpop.f32.mrb[215].mxu1 }
 0x7d9   :  { %v19906_v50 = vpack.c.bf16 %v17871_v47, %v6605_v19 }
 0x7db   :  { %v17882_v20 = vpop.f32.mrb[216].mxu1 }
 0x7dc   :  { %v6685_v12 = vpop.f32.mrb[217].mxu1 }
 0x7dd   :  { %v19878_v59 = vpack.c.bf16 %v17882_v20, %v6685_v12  ;;  %v21025_v20 = vld [vmem:[%s25147_s1 + $0x48] sm:$0xff] }
 0x7df   :  { %v17885_v43 = vpop.f32.mrb[218].mxu1  ;;  %19879 = vmatprep.subr.bf16.mxu0 %v19878_v59 }
 0x7e0   :  { %v6695_v30 = vpop.f32.mrb[219].mxu1  ;;  %19881 = vmatpush3.bf16.msra.mxu0 %v19878_v59  ;;  %v21026_v59 = vld [vmem:[%s25147_s1 + $0x50] sm:$0xff] }
 0x7e1   :  { %v19882_v25 = vpack.c.bf16 %v17885_v43, %v6695_v30  ;;  %v21027_v30 = vld [vmem:[%s25147_s1 + $0x58] sm:$0xff] }
 0x7e3   :  { %v17888_v13 = vpop.f32.mrb[220].mxu1  ;;  %19883 = vmatprep.subr.bf16.mxu0 %v19882_v25 }
 0x7e4   :  { %v6705_v28 = vpop.f32.mrb[221].mxu1  ;;  %19885 = vmatpush3.bf16.msra.mxu0 %v19882_v25 }
 0x7e5   :  { %v19886_v15 = vpack.c.bf16 %v17888_v13, %v6705_v28 }
 0x7e7   :  { %v17891_v56 = vpop.f32.mrb[222].mxu1  ;;  %19887 = vmatprep.subr.bf16.mxu0 %v19886_v15 }
 0x7e8   :  { %v6715_v9 = vpop.f32.mrb[223].mxu1  ;;  %19889 = vmatpush3.bf16.msra.mxu0 %v19886_v15 }
 0x7e9   :  { %v19890_v62 = vpack.c.bf16 %v17891_v56, %v6715_v9 }
 0x7eb   :  { %19891 = vmatprep.subr.bf16.mxu0 %v19890_v62  ;;  %v17958_v7 = vpop.f32.mrb[224].mxu1 }
 0x7ec   :  { %19893 = vmatpush3.bf16.msra.mxu0 %v19890_v62  ;;  %v7005_v47 = vpop.f32.mrb[225].mxu1  ;;  %v21029_v62 = vld [vmem:[%s25147_s1 + $0x70] sm:$0xff] }
 0x7ed   :  { %v19918_v19 = vpack.c.bf16 %v17958_v7, %v7005_v47  ;;  %19895 = vmatprep.subr.bf16.mxu0 %v19894_v16 }
 0x7ef   :  { %17909 = vmatmul.mubr.msk.f32.vlgmr.msra.gmra.mrb[32].mxu0 %vm325_vm1, %v21025_v20  ;;  %v17961_v12 = vpop.f32.mrb[226].mxu1 }
 0x7f0   :  { %19897 = vmatpush3.bf16.msra.mxu0 %v19894_v16  ;;  %v7015_v13 = vpop.f32.mrb[227].mxu1  ;;  %17911 = vmatprep.mubr.msk.f32.mxu0 %vm325_vm1, %v21026_v59  ;;  %v21028_v16 = vld [vmem:[%s25147_s1 + $0x60] sm:$0xff] }
 0x7f1   :  { %v19922_v43 = vpack.c.bf16 %v17961_v12, %v7015_v13  ;;  %19899 = vmatprep.subr.bf16.mxu0 %v19898_v52 }
 0x7f3   :  { %17912 = vmatmul.mubr.msk.f32.gmra.mrb[34].mxu0 %vm325_vm1, %v21027_v30  ;;  %v17964_v25 = vpop.f32.mrb[228].mxu1 }
 0x7f4   :  { %19901 = vmatpush3.bf16.msra.mxu0 %v19898_v52  ;;  %v7025_v28 = vpop.f32.mrb[229].mxu1  ;;  %17914 = vmatprep.mubr.msk.f32.mxu0 %vm325_vm1, %v21028_v16 }
 0x7f5   :  { %v19926_v15 = vpack.c.bf16 %v17964_v25, %v7025_v28  ;;  %19903 = vmatprep.subr.bf16.mxu0 %v19902_v26 }
 0x7f7   :  { %17915 = vmatmul.mubr.msk.f32.gmra.mrb[36].mxu0 %vm325_vm1, %v22734_v33  ;;  %v17967_v56 = vpop.f32.mrb[230].mxu1 }
 0x7f8   :  { %19905 = vmatpush3.bf16.msra.mxu0 %v19902_v26  ;;  %v7035_v9 = vpop.f32.mrb[231].mxu1  ;;  %17917 = vmatprep.mubr.msk.f32.mxu0 %vm325_vm1, %v21029_v62  ;;  %v21030_v26 = vld [vmem:[%s25147_s1 + $0x8] sm:$0xff] }
 0x7f9   :  { %v19930_v52 = vpack.c.bf16 %v17967_v56, %v7035_v9  ;;  %19907 = vmatprep.subr.bf16.mxu0 %v19906_v50 }
 0x7fb   :  { %17918 = vmatmul.mubr.msk.f32.gmra.mrb[38].mxu0 %vm325_vm1, %v22743_v8  ;;  %v18006_v7 = vpop.f32.mrb[232].mxu1 }
 0x7fc   :  { %19909 = vmatpush3.bf16.msra.mxu0 %v19906_v50  ;;  %v7228_v47 = vpop.f32.mrb[233].mxu1  ;;  %17936 = vmatprep.mubr.msk.f32.mxu0 %vm325_vm1, %v22750_v23 }
 0x7fd   :  { %v19942_v33 = vpack.c.bf16 %v18006_v7, %v7228_v47  ;;  %19919 = vmatprep.subr.bf16.mxu0 %v19918_v19 }
 0x7ff   :  { %17937 = vmatmul.mubr.msk.f32.vlgmr.msra.gmra.mrb[32].mxu0 %vm325_vm1, %v21030_v26  ;;  %v18009_v20 = vpop.f32.mrb[234].mxu1 }
 0x800   :  { %19921 = vmatpush3.bf16.msra.mxu0 %v19918_v19  ;;  %v7238_v12 = vpop.f32.mrb[235].mxu1  ;;  %17939 = vmatprep.mubr.msk.f32.mxu0 %vm325_vm1, %v22771_v57 }
 0x801   :  { %v19946_v8 = vpack.c.bf16 %v18009_v20, %v7238_v12  ;;  %19923 = vmatprep.subr.bf16.mxu0 %v19922_v43 }
 0x803   :  { %17940 = vmatmul.mubr.msk.f32.gmra.mrb[34].mxu0 %vm325_vm1, %v22778_v39  ;;  %v18012_v23 = vpop.f32.mrb[236].mxu1 }
 0x804   :  { %19925 = vmatpush3.bf16.msra.mxu0 %v19922_v43  ;;  %v7248_v50 = vpop.f32.mrb[237].mxu1  ;;  %17942 = vmatprep.mubr.msk.f32.mxu0 %vm325_vm1, %v22785_v63 }
 0x805   :  { %v19950_v13 = vpack.c.bf16 %v18012_v23, %v7248_v50  ;;  %19927 = vmatprep.subr.bf16.mxu0 %v19926_v15 }
 0x807   :  { %17943 = vmatmul.mubr.msk.f32.gmra.mrb[36].mxu0 %vm325_vm1, %v22792_v2  ;;  %v18015_v19 = vpop.f32.mrb[238].mxu1 }
 0x808   :  { %19929 = vmatpush3.bf16.msra.mxu0 %v19926_v15  ;;  %v7258_v59 = vpop.f32.mrb[239].mxu1  ;;  %17945 = vmatprep.mubr.msk.f32.mxu0 %vm325_vm1, %v22799_v0 }
 0x809   :  { %v19954_v57 = vpack.c.bf16 %v18015_v19, %v7258_v59  ;;  %19931 = vmatprep.subr.bf16.mxu0 %v19930_v52 }
 0x80b   :  { %17946 = vmatmul.mubr.msk.f32.gmra.mrb[38].mxu0 %vm325_vm1, %v22806_v34  ;;  %v18054_v39 = vpop.f32.mrb[240].mxu1 }
 0x80c   :  { %19933 = vmatpush3.bf16.msra.mxu0 %v19930_v52  ;;  %v7451_v43 = vpop.f32.mrb[241].mxu1  ;;  %17984 = vmatprep.mubr.msk.f32.mxu0 %vm325_vm1, %v22813_v22 }
 0x80d   :  { %v19966_v63 = vpack.c.bf16 %v18054_v39, %v7451_v43  ;;  %19943 = vmatprep.subr.bf16.mxu0 %v19942_v33  ;;  %v25316_v39 = vld [vmem:[#allocation14_spill] sm:$0xff]  ;;  %v25317_v43 = vld [vmem:[#allocation15_spill] sm:$0xff] }
 0x80f   :  { %17985 = vmatmul.mubr.msk.f32.vlgmr.msra.gmra.mrb[32].mxu0 %vm325_vm1, %v22820_v24  ;;  %v18057_v2 = vpop.f32.mrb[242].mxu1 }
 0x810   :  { %19945 = vmatpush3.bf16.msra.mxu0 %v19942_v33  ;;  %v7461_v30 = vpop.f32.mrb[243].mxu1  ;;  %17987 = vmatprep.mubr.msk.f32.mxu0 %vm325_vm1, %v22827_v32 }
 0x811   :  { %v19970_v0 = vpack.c.bf16 %v18057_v2, %v7461_v30  ;;  %19947 = vmatprep.subr.bf16.mxu0 %v19946_v8  ;;  %v25319_v2 = vld [vmem:[#allocation17_spill] sm:$0xff]  ;;  %v25320_v30 = vld [vmem:[#allocation18_spill] sm:$0xff] }
 0x813   :  { %17988 = vmatmul.mubr.msk.f32.gmra.mrb[34].mxu0 %vm325_vm1, %v22834_v35  ;;  %v18060_v34 = vpop.f32.mrb[244].mxu1 }
 0x814   :  { %19949 = vmatpush3.bf16.msra.mxu0 %v19946_v8  ;;  %v7471_v25 = vpop.f32.mrb[245].mxu1  ;;  %17990 = vmatprep.mubr.msk.f32.mxu0 %vm325_vm1, %v22841_v42 }
 0x815   :  { %v19974_v22 = vpack.c.bf16 %v18060_v34, %v7471_v25  ;;  %19951 = vmatprep.subr.bf16.mxu0 %v19950_v13  ;;  %v25322_v34 = vld [vmem:[#allocation20_spill] sm:$0xff]  ;;  %v25323_v25 = vld [vmem:[#allocation21_spill] sm:$0xff] }
 0x817   :  { %17991 = vmatmul.mubr.msk.f32.gmra.mrb[36].mxu0 %vm325_vm1, %v22848_v18  ;;  %v18063_v24 = vpop.f32.mrb[246].mxu1 }
 0x818   :  { %19953 = vmatpush3.bf16.msra.mxu0 %v19950_v13  ;;  %v7481_v28 = vpop.f32.mrb[247].mxu1  ;;  %17993 = vmatprep.mubr.msk.f32.mxu0 %vm325_vm1, %v22855_v46 }
 0x819   :  { %v19978_v32 = vpack.c.bf16 %v18063_v24, %v7481_v28  ;;  %19955 = vmatprep.subr.bf16.mxu0 %v19954_v57  ;;  %v25325_v24 = vld [vmem:[#allocation23_spill] sm:$0xff]  ;;  %v25326_v28 = vld [vmem:[#allocation24_spill] sm:$0xff] }
 0x81b   :  { %17994 = vmatmul.mubr.msk.f32.gmra.mrb[38].mxu0 %vm325_vm1, %v22862_v58  ;;  %v18102_v35 = vpop.f32.mrb[248].mxu1 }
 0x81c   :  { %19957 = vmatpush3.bf16.msra.mxu0 %v19954_v57  ;;  %v7674_v16 = vpop.f32.mrb[249].mxu1  ;;  %18032 = vmatprep.mubr.msk.f32.mxu0 %vm325_vm1, %v22869_v3 }
 0x81d   :  { %v19990_v42 = vpack.c.bf16 %v18102_v35, %v7674_v16  ;;  %19967 = vmatprep.subr.bf16.mxu0 %v19966_v63  ;;  %v25328_v35 = vld [vmem:[#allocation26_spill] sm:$0xff]  ;;  %v25329_v16 = vld [vmem:[#allocation27_spill] sm:$0xff] }
 0x81f   :  { %18033 = vmatmul.mubr.msk.f32.vlgmr.msra.gmra.mrb[32].mxu0 %vm325_vm1, %v22876_v6  ;;  %v18105_v18 = vpop.f32.mrb[250].mxu1 }
 0x820   :  { %19969 = vmatpush3.bf16.msra.mxu0 %v19966_v63  ;;  %v7684_v15 = vpop.f32.mrb[251].mxu1  ;;  %18035 = vmatprep.mubr.msk.f32.mxu0 %vm325_vm1, %v22883_v21  ;;  %v25318_v63 = vld [vmem:[#allocation16_spill] sm:$0xff] }
 0x821   :  { %v19994_v46 = vpack.c.bf16 %v18105_v18, %v7684_v15  ;;  %19971 = vmatprep.subr.bf16.mxu0 %v19970_v0  ;;  %v25331_v18 = vld [vmem:[#allocation29_spill] sm:$0xff]  ;;  %v8618_v15 = vld [vmem:[%s25154_s10] sm:$0xff] }
 0x823   :  { %18036 = vmatmul.mubr.msk.f32.gmra.mrb[34].mxu0 %vm325_vm1, %v22890_v49  ;;  %v18108_v58 = vpop.f32.mrb[252].mxu1 }
 0x824   :  { %19973 = vmatpush3.bf16.msra.mxu0 %v19970_v0  ;;  %v7694_v56 = vpop.f32.mrb[253].mxu1  ;;  %18038 = vmatprep.mubr.msk.f32.mxu0 %vm325_vm1, %v22897_v5  ;;  %v25321_v0 = vld [vmem:[#allocation19_spill] sm:$0xff] }
 0x825   :  { %v19998_v3 = vpack.c.bf16 %v18108_v58, %v7694_v56  ;;  %19975 = vmatprep.subr.bf16.mxu0 %v19974_v22  ;;  %v21103_v56 = vmov 0.0|0.0  }
 0x826   :  { %20078 = vmatprep.subr.bf16.mxu1 %v21103_v56 }
 0x827   :  { %18039 = vmatmul.mubr.msk.f32.gmra.mrb[36].mxu0 %vm325_vm1, %v22904_v37  ;;  %v18111_v6 = vpop.f32.mrb[254].mxu1 }
 0x828   :  { %19977 = vmatpush3.bf16.msra.mxu0 %v19974_v22  ;;  %v7704_v9 = vpop.f32.mrb[255].mxu1  ;;  %18041 = vmatprep.mubr.msk.f32.mxu0 %vm325_vm1, %v22911_v48  ;;  %v25324_v22 = vld [vmem:[#allocation22_spill] sm:$0xff] }
 0x829   :  { %v20002_v21 = vpack.c.bf16 %v18111_v6, %v7704_v9  ;;  %19979 = vmatprep.subr.bf16.mxu0 %v19978_v32  ;;  %v8621_v6 = vld [vmem:[%s25154_s10 + $0x18] sm:$0xff] }
 0x82b   :  { %18042 = vmatmul.mubr.msk.f32.gmra.mrb[38].mxu0 %vm325_vm1, %v22918_v60  ;;  %v18150_v49 = vpop.f32.mrb[0].mxu1 }
 0x82c   :  { %19981 = vmatpush3.bf16.msra.mxu0 %v19978_v32  ;;  %v7897_v62 = vpop.f32.mrb[1].mxu1  ;;  %18080 = vmatprep.mubr.msk.f32.mxu0 %vm325_vm1, %v22925_v10  ;;  %v25327_v32 = vld [vmem:[#allocation25_spill] sm:$0xff] }
 0x82d   :  { %v20014_v5 = vpack.c.bf16 %v18150_v49, %v7897_v62  ;;  %19991 = vmatprep.subr.bf16.mxu0 %v19990_v42  ;;  %v8526_v49 = vlaneseq  ;;  %v14634_v62 = vld [vmem:[%s25155_s9] ss:$0 sm:$0xff] }
 0x82f   :  { %18081 = vmatmul.mubr.msk.f32.vlgmr.msra.gmra.mrb[32].mxu0 %vm325_vm1, %v22932_v4  ;;  %v18153_v37 = vpop.f32.mrb[2].mxu1 }
 0x830   :  { %19993 = vmatpush3.bf16.msra.mxu0 %v19990_v42  ;;  %v7907_v52 = vpop.f32.mrb[3].mxu1  ;;  %18083 = vmatprep.mubr.msk.f32.mxu0 %vm325_vm1, %v22939_v17  ;;  %v25330_v42 = vld [vmem:[#allocation28_spill] sm:$0xff] }
 0x831   :  { %v20018_v48 = vpack.c.bf16 %v18153_v37, %v7907_v52  ;;  %19995 = vmatprep.subr.bf16.mxu0 %v19994_v46  ;;  %v23649_v37 = vshrl.u32 %v8526_v49, 7  ;;  %v25338_v49 = vld [vmem:[#allocation9_spill] sm:$0xff] }
 0x833   :  { %18084 = vmatmul.mubr.msk.f32.gmra.mrb[34].mxu0 %vm325_vm1, %v22946_v27  ;;  %v18156_v60 = vpop.f32.mrb[4].mxu1 }
 0x834   :  { %19997 = vmatpush3.bf16.msra.mxu0 %v19994_v46  ;;  %v7917_v7 = vpop.f32.mrb[5].mxu1  ;;  %18086 = vmatprep.mubr.msk.f32.mxu0 %vm325_vm1, %v22953_v38  ;;  %v8619_v46 = vld [vmem:[%s25154_s10 + $0x8] sm:$0xff] }
 0x835   :  { %v20022_v10 = vpack.c.bf16 %v18156_v60, %v7917_v7  ;;  %19999 = vmatprep.subr.bf16.mxu0 %v19998_v3  ;;  %v23623_v58 = vpack.c.bf16 %v8619_v46, %v8618_v15  ;;  %v25332_v7 = vld [vmem:[#allocation3_spill] sm:$0xff] }
 0x837   :  { %18087 = vmatmul.mubr.msk.f32.gmra.mrb[36].mxu0 %vm325_vm1, %v22960_v45  ;;  %v18159_v4 = vpop.f32.mrb[6].mxu1  ;;  %20080 = vmatpush3.bf16.msra.mxu1 %v23623_v58 }
 0x838   :  { %20001 = vmatpush3.bf16.msra.mxu0 %v19998_v3  ;;  %v7927_v47 = vpop.f32.mrb[7].mxu1  ;;  %18089 = vmatprep.mubr.msk.f32.mxu0 %vm325_vm1, %v22967_v53  ;;  %v8620_v3 = vld [vmem:[%s25154_s10 + $0x10] sm:$0xff] }
 0x839   :  { %v20026_v17 = vpack.c.bf16 %v18159_v4, %v7927_v47  ;;  %20003 = vmatprep.subr.bf16.mxu0 %v20002_v21  ;;  %20081 = vmatprep.subr.bf16.mxu1 %v21103_v56  ;;  %v23637_v9 = vpack.c.bf16 %v8621_v6, %v8620_v3  ;;  %v25333_v4 = vld [vmem:[#allocation2_spill] sm:$0xff] }
 0x83b   :  { %18090 = vmatmul.mubr.msk.f32.gmra.mrb[38].mxu0 %vm325_vm1, %v22974_v61  ;;  %v18198_v27 = vpop.f32.mrb[8].mxu1  ;;  %20083 = vmatpush3.bf16.msra.mxu1 %v23637_v9 }
 0x83c   :  { %20005 = vmatpush3.bf16.msra.mxu0 %v20002_v21  ;;  %v8120_v33 = vpop.f32.mrb[9].mxu1  ;;  %18128 = vmatprep.mubr.msk.f32.mxu0 %vm325_vm1, %v22981_v11  ;;  %v21105_v21 = vmov 0.0  }
 0x83d   :  { %v20038_v38 = vpack.c.bf16 %v18198_v27, %v8120_v33  ;;  %20015 = vmatprep.subr.bf16.mxu0 %v20014_v5  ;;  %20084 = vmatprep.subr.bf16.mxu1 %v21103_v56  ;;  %v8530_v27 = vadd.s32 24, %v23649_v37 }
 0x83e   :  { %18292 = vmatprep.mubr.msk.f32.mxu1 %vm21104_vm2, %v21105_v21 }
 0x83f   :  { %18129 = vmatmul.mubr.msk.f32.vlgmr.msra.gmra.mrb[32].mxu0 %vm325_vm1, %v22988_v40  ;;  %v18201_v45 = vpop.f32.mrb[10].mxu1  ;;  %vm8546_vm3 = vcmp.lt.s32.totalorder %v8530_v27, 25 }
 0x840   :  { %20017 = vmatpush3.bf16.msra.mxu0 %v20014_v5  ;;  %v8130_v26 = vpop.f32.mrb[11].mxu1  ;;  %18131 = vmatprep.mubr.msk.f32.mxu0 %vm325_vm1, %v22995_v55 }
 0x841   :  { %v20042_v53 = vpack.c.bf16 %v18201_v45, %v8130_v26  ;;  %20019 = vmatprep.subr.bf16.mxu0 %v20018_v48 }
 0x843   :  { %18132 = vmatmul.mubr.msk.f32.gmra.mrb[34].mxu0 %vm325_vm1, %v23002_v54  ;;  %v18204_v61 = vpop.f32.mrb[12].mxu1 }
 0x844   :  { %20021 = vmatpush3.bf16.msra.mxu0 %v20018_v48  ;;  %v8140_v20 = vpop.f32.mrb[13].mxu1  ;;  %18134 = vmatprep.mubr.msk.f32.mxu0 %vm325_vm1, %v23009_v44 }
 0x845   :  { %v20046_v11 = vpack.c.bf16 %v18204_v61, %v8140_v20  ;;  %20023 = vmatprep.subr.bf16.mxu0 %v20022_v10 }
 0x847   :  { %18135 = vmatmul.mubr.msk.f32.gmra.mrb[36].mxu0 %vm325_vm1, %v23016_v14  ;;  %v18207_v40 = vpop.f32.mrb[14].mxu1 }
 0x848   :  { %20025 = vmatpush3.bf16.msra.mxu0 %v20022_v10  ;;  %v8150_v12 = vpop.f32.mrb[15].mxu1  ;;  %18137 = vmatprep.mubr.msk.f32.mxu0 %vm325_vm1, %v23023_v41 }
 0x849   :  { %v20050_v55 = vpack.c.bf16 %v18207_v40, %v8150_v12  ;;  %20027 = vmatprep.subr.bf16.mxu0 %v20026_v17  ;;  %v25334_v12 = vld [vmem:[#allocation5_spill] sm:$0xff] }
 0x84b   :  { %18138 = vmatmul.mubr.msk.f32.gmra.mrb[38].mxu0 %vm325_vm1, %v23030_v51  ;;  %v18246_v54 = vpop.f32.mrb[16].mxu1 }
 0x84c   :  { %20029 = vmatpush3.bf16.msra.mxu0 %v20026_v17  ;;  %v8343_v8 = vpop.f32.mrb[17].mxu1  ;;  %18176 = vmatprep.mubr.msk.f32.mxu0 %vm325_vm1, %v23037_v36  ;;  %v25312_v36 = vld [vmem:[#allocation10_spill] sm:$0xff] }
 0x84d   :  { %v20062_v44 = vpack.c.bf16 %v18246_v54, %v8343_v8  ;;  %20039 = vmatprep.subr.bf16.mxu0 %v20038_v38 }
 0x84f   :  { %18177 = vmatmul.mubr.msk.f32.vlgmr.msra.gmra.mrb[32].mxu0 %vm325_vm1, %v23044_v31  ;;  %v18249_v14 = vpop.f32.mrb[18].mxu1  ;;  %v25313_v31 = vld [vmem:[#allocation11_spill] sm:$0xff] }
 0x850   :  { %20041 = vmatpush3.bf16.msra.mxu0 %v20038_v38  ;;  %v8353_v23 = vpop.f32.mrb[19].mxu1  ;;  %18179 = vmatprep.mubr.msk.f32.mxu0 %vm325_vm1, %v23051_v1  ;;  %v25314_v1 = vld [vmem:[#allocation12_spill] sm:$0xff] }
 0x851   :  { %v20066_v41 = vpack.c.bf16 %v18249_v14, %v8353_v23  ;;  %20043 = vmatprep.subr.bf16.mxu0 %v20042_v53 }
 0x853   :  { %18180 = vmatmul.mubr.msk.f32.gmra.mrb[34].mxu0 %vm325_vm1, %v23058_v29  ;;  %v18252_v51 = vpop.f32.mrb[20].mxu1  ;;  %v25315_v29 = vld [vmem:[#allocation13_spill] sm:$0xff] }
 0x854   :  { %20045 = vmatpush3.bf16.msra.mxu0 %v20042_v53  ;;  %v8363_v50 = vpop.f32.mrb[21].mxu1  ;;  %18182 = vmatprep.mubr.msk.f32.mxu0 %vm325_vm1, %v25312_v36 }
 0x855   :  { %v20070_v13 = vpack.c.bf16 %v18252_v51, %v8363_v50  ;;  %20047 = vmatprep.subr.bf16.mxu0 %v20046_v11 }
 0x857   :  { %18183 = vmatmul.mubr.msk.f32.gmra.mrb[36].mxu0 %vm325_vm1, %v25313_v31  ;;  %v18255_v19 = vpop.f32.mrb[22].mxu1 }
 0x858   :  { %20049 = vmatpush3.bf16.msra.mxu0 %v20046_v11  ;;  %v8373_v59 = vpop.f32.mrb[23].mxu1  ;;  %18185 = vmatprep.mubr.msk.f32.mxu0 %vm325_vm1, %v25314_v1  ;;  %v21106_v11 = vmov -inf  }
 0x859   :  { %v20074_v57 = vpack.c.bf16 %v18255_v19, %v8373_v59  ;;  %20051 = vmatprep.subr.bf16.mxu0 %v20050_v55  ;;  %v8601_v40 = vsel %vm68_vm0, -1e+30, %v21106_v11 }
 0x85b   :  { %18186 = vmatmul.mubr.msk.f32.gmra.mrb[38].mxu0 %vm325_vm1, %v25315_v29  ;;  %v25336_v29 = vld [vmem:[#allocation7_spill] sm:$0xff] }
 0x85c   :  { %20053 = vmatpush3.bf16.msra.mxu0 %v20050_v55  ;;  %18224 = vmatprep.mubr.msk.f32.mxu0 %vm325_vm1, %v25316_v39 }
 0x85d   :  { %20063 = vmatprep.subr.bf16.mxu0 %v20062_v44 }
 0x85f   :  { %18225 = vmatmul.mubr.msk.f32.vlgmr.msra.gmra.mrb[32].mxu0 %vm325_vm1, %v25317_v43 }
 0x860   :  { %20065 = vmatpush3.bf16.msra.mxu0 %v20062_v44  ;;  %18227 = vmatprep.mubr.msk.f32.mxu0 %vm325_vm1, %v25318_v63  ;;  %v25335_v44 = vld [vmem:[#allocation4_spill] sm:$0xff] }
 0x861   :  { %20067 = vmatprep.subr.bf16.mxu0 %v20066_v41 }
 0x863   :  { %18228 = vmatmul.mubr.msk.f32.gmra.mrb[34].mxu0 %vm325_vm1, %v25319_v2 }
 0x864   :  { %20069 = vmatpush3.bf16.msra.mxu0 %v20066_v41  ;;  %18230 = vmatprep.mubr.msk.f32.mxu0 %vm325_vm1, %v25320_v30 }
 0x865   :  { %20071 = vmatprep.subr.bf16.mxu0 %v20070_v13 }
 0x867   :  { %18231 = vmatmul.mubr.msk.f32.gmra.mrb[36].mxu0 %vm325_vm1, %v25321_v0  ;;  %v23682_v0 = vadd.s32 56, %v23649_v37 }
 0x868   :  { %20073 = vmatpush3.bf16.msra.mxu0 %v20070_v13  ;;  %18233 = vmatprep.mubr.msk.f32.mxu0 %vm325_vm1, %v25322_v34 }
 0x869   :  { %20075 = vmatprep.subr.bf16.mxu0 %v20074_v57  ;;  %vm8947_vm4 = vcmp.lt.s32.totalorder %v23682_v0, 57 }
 0x86b   :  { %18234 = vmatmul.mubr.msk.f32.gmra.mrb[38].mxu0 %vm325_vm1, %v25323_v25 }
 0x86c   :  { %20077 = vmatpush3.bf16.msra.mxu0 %v20074_v57  ;;  %18272 = vmatprep.mubr.msk.f32.mxu0 %vm325_vm1, %v25324_v22 }
 0x86d   :  { %20096 = vmatprep.subr.bf16.mxu0 %v21103_v56 }
 0x86f   :  { %18273 = vmatmul.mubr.msk.f32.vlgmr.msra.gmra.mrb[32].mxu0 %vm325_vm1, %v25325_v24 }
 0x870   :  { %18275 = vmatprep.mubr.msk.f32.mxu0 %vm325_vm1, %v25326_v28  ;;  %20098 = vmatpush3.bf16.msra.mxu0 %v23623_v58 }
 0x871   :  { %20099 = vmatprep.subr.bf16.mxu0 %v21103_v56 }
 0x873   :  { %18276 = vmatmul.mubr.msk.f32.gmra.mrb[34].mxu0 %vm325_vm1, %v25327_v32 }
 0x874   :  { %18278 = vmatprep.mubr.msk.f32.mxu0 %vm325_vm1, %v25328_v35  ;;  %20101 = vmatpush3.bf16.msra.mxu0 %v23637_v9  ;;  %v25337_v35 = vld [vmem:[#allocation6_spill] sm:$0xff] }
 0x877   :  { %18279 = vmatmul.mubr.msk.f32.gmra.mrb[36].mxu0 %vm325_vm1, %v25329_v16 }
 0x878   :  { %18281 = vmatprep.mubr.msk.f32.mxu0 %vm325_vm1, %v25330_v42 }
 0x87b   :  { %18282 = vmatmul.mubr.msk.f32.gmra.mrb[38].mxu0 %vm325_vm1, %v25331_v18 }
 0x87c   :  { %18335 = vmatprep.mubr.msk.f32.mxu0 %vm21104_vm2, %v21105_v21 }
 0x942   :  { %v18274_v5 = vpop.f32.mrb[32].mxu0 }
 0x943   :  { %v8503_v52 = vadd.f32 %v18274_v5, %v14634_v62  ;;  %v8448_v48 = vpop.f32.mrb[33].mxu0 }
 0x944   :  { %v8502_v60 = vadd.f32 %v14634_v62, %v8448_v48 }
 0x945   :  { %v8511_v10 = vadd.f32 %v8503_v52, %v25332_v7  ;;  %v25339_v52 = vld [vmem:[#allocation8_spill] sm:$0xff] }
 0x946   :  { %v8510_v47 = vadd.f32 %v8502_v60, %v25333_v4  ;;  %v18277_v17 = vpop.f32.mrb[34].mxu0 }
 0x947   :  { %v23654_v33 = vmax.f32 %v8511_v10, 0.0  ;;  %v8505_v38 = vadd.f32 %v18277_v17, %v14634_v62  ;;  %v8458_v45 = vpop.f32.mrb[35].mxu0 }
 0x948   :  { %v23656_v26 = vmax.f32 %v8510_v47, 0.0  ;;  %v8504_v53 = vadd.f32 %v14634_v62, %v8458_v45 }
 0x949   :  { %v8568_v61 = vsel %vm68_vm0, %v23654_v33, 0.0  ;;  %v8598_v20 = vsel %vm68_vm0, %v23654_v33, -inf  ;;  %v8513_v55 = vadd.f32 %v8505_v38, %v25334_v12 }
 0x94a   :  { %v8567_v54 = vsel %vm68_vm0, %v23656_v26, 0.0  ;;  %v8597_v8 = vsel %vm68_vm0, %v23656_v26, -inf  ;;  %v8512_v14 = vadd.f32 %v8504_v53, %v25335_v44  ;;  %v18280_v23 = vpop.f32.mrb[36].mxu0  ;;  %v8604_v36 = vmax.f32 %v8598_v20, %v8601_v40 }
 0x94b   :  { %v23669_v41 = vmax.f32 %v8513_v55, 0.0  ;;  %v8507_v51 = vadd.f32 %v18280_v23, %v14634_v62  ;;  %v8468_v50 = vpop.f32.mrb[37].mxu0  ;;  %v8569_v13 = vadd.f32 %v8568_v61, %v8567_v54  ;;  %v8602_v59 = vmax.f32 %v8597_v8, %v8601_v40 }
 0x94c   :  { %v23671_v31 = vmax.f32 %v8512_v14, 0.0  ;;  %v8506_v19 = vadd.f32 %v14634_v62, %v8468_v50 }
 0x94d   :  { %v8562_v1 = vsel %vm8546_vm3, %v23669_v41, 0.0  ;;  %v8592_v57 = vsel %vm8546_vm3, %v23669_v41, -1e+30  ;;  %v8515_v39 = vadd.f32 %v8507_v51, %v25336_v29  ;;  %v8609_v15 = vmax.f32 %v8602_v59, %v8604_v36 }
 0x94e   :  { %v8600_v43 = vsel %vm68_vm0, %v8592_v57, -inf  ;;  %v8570_v63 = vsel %vm68_vm0, %v23671_v31, 0.0  ;;  %v8599_v2 = vsel %vm68_vm0, %v23671_v31, -inf  ;;  %v18283_v30 = vpop.f32.mrb[38].mxu0  ;;  %v8572_v34 = vsel %vm68_vm0, %v8562_v1, 0.0 }
 0x94f   :  { %v8608_v25 = vmax.f32 %v8600_v43, %v8601_v40  ;;  %v8571_v22 = vadd.f32 %v8570_v63, %v8569_v13  ;;  %v8606_v24 = vmax.f32 %v8599_v2, %v8601_v40  ;;  %v8478_v28 = vpop.f32.mrb[39].mxu0  ;;  %v23685_v32 = vmax.f32 %v8515_v39, 0.0  ;;  %v8696_v2 = vld [vmem:[%s25156_s11] sm:$0x3] }
 0x950   :  { %v8514_v16 = vadd.f32 %v8506_v19, %v25337_v35  ;;  %v8509_v42 = vadd.f32 %v18283_v30, %v14634_v62  ;;  %v8508_v18 = vadd.f32 %v14634_v62, %v8478_v28 }
 0x951   :  { %v8573_v46 = vadd.f32 %v8572_v34, %v8571_v22  ;;  %v8610_v3 = vmax.f32 %v8606_v24, %v8608_v25  ;;  %v9000_v10 = vsel %vm68_vm0, %v23685_v32, -inf  ;;  %v8973_v30 = vsel %vm68_vm0, %v23685_v32, 0.0 }
 0x952   :  { %v23688_v6 = vmax.f32 %v8514_v16, 0.0  ;;  %v8517_v5 = vadd.f32 %v8509_v42, %v25338_v49  ;;  %v8516_v48 = vadd.f32 %v8508_v18, %v25339_v52  ;;  %v9001_v20 = vmax.f32 %v8601_v40, %v9000_v10 }
 0x953   :  { %v8582_v60 = vrot.slane %v8573_v46, 4  ;;  %v8611_v7 = vmax.f32 %v8609_v15, %v8610_v3 }
 0x954   :  { %v8998_v4 = vsel %vm68_vm0, %v23688_v6, -inf  ;;  %v23697_v62 = vmax.f32 %v8517_v5, 0.0  ;;  %v23699_v47 = vmax.f32 %v8516_v48, 0.0  ;;  %v8971_v34 = vsel %vm68_vm0, %v23688_v6, 0.0 }
 0x955   :  { %v8583_v17 = vadd.f32 %v8582_v60, %v8573_v46  ;;  %v8612_v27 = vrot.slane %v8611_v7, 4  ;;  %v8999_v11 = vmax.f32 %v8601_v40, %v8998_v4  ;;  %v8974_v22 = vadd.f32 %v8973_v30, %v8971_v34 }
 0x956   :  { %v8993_v38 = vsel %vm8947_vm4, %v23697_v62, -1e+30  ;;  %v9002_v45 = vsel %vm68_vm0, %v23699_v47, -inf  ;;  %v8975_v25 = vsel %vm68_vm0, %v23699_v47, 0.0  ;;  %v8963_v24 = vsel %vm8947_vm4, %v23697_v62, 0.0 }
 0x957   :  { %v8584_v53 = vrot.slane %v8583_v17, 2  ;;  %v8613_v61 = vmax.f32 %v8611_v7, %v8612_v27  ;;  %v9004_v12 = vsel %vm68_vm0, %v8993_v38, -inf  ;;  %v9003_v55 = vmax.f32 %v8601_v40, %v9002_v45 }
 0x958   :  { %v9005_v8 = vmax.f32 %v8601_v40, %v9004_v12  ;;  %v9006_v23 = vmax.f32 %v8999_v11, %v9001_v20  ;;  %v8976_v28 = vadd.f32 %v8975_v25, %v8974_v22  ;;  %v8977_v35 = vsel %vm68_vm0, %v8963_v24, 0.0 }
 0x959   :  { %v8585_v54 = vadd.f32 %v8584_v53, %v8583_v17  ;;  %v8614_v14 = vrot.slane %v8613_v61, 2  ;;  %v8930_v11 = vsub.s32 0, %v23649_v37 }
 0x95a   :  { %v9007_v51 = vmax.f32 %v9003_v55, %v9005_v8  ;;  %v8978_v16 = vadd.f32 %v8977_v35, %v8976_v28 }
 0x95b   :  { %v8586_v44 = vrot.slane %v8585_v54, 1  ;;  %v8615_v19 = vmax.f32 %v8613_v61, %v8614_v14 }
 0x95c   :  { %v9008_v36 = vmax.f32 %v9006_v23, %v9007_v51  ;;  %v8979_v18 = vrot.slane %v8978_v16, 4 }
 0x95d   :  { %v8587_v50 = vadd.f32 %v8586_v44, %v8585_v54  ;;  %v8616_v57 = vrot.slane %v8615_v19, 1 }
 0x95e   :  { %v9009_v59 = vrot.slane %v9008_v36, 4  ;;  %v8980_v46 = vadd.f32 %v8979_v18, %v8978_v16 }
 0x95f   :  { %v8588_v13 = vmul.f32 0.04, %v8587_v50  ;;  %v8617_v39 = vmax.f32 %v8615_v19, %v8616_v57 }
 0x960   :  { %v9010_v1 = vmax.f32 %v9008_v36, %v9009_v59  ;;  %v8981_v49 = vrot.slane %v8980_v46, 2 }
 0x961   :  { %18293 = vmatmul.mubr.msk.f32.vlgmr.msra.gmra.mrb[24].mxu1 %vm68_vm0, %v8588_v13 }
 0x962   :  { %20086 = vmatpush3.bf16.msra.mxu1 %v23623_v58  ;;  %18303 = vmatprep.mubr.msk.f32.mxu1 %vm21104_vm2, %v21105_v21  ;;  %v9011_v29 = vrot.slane %v9010_v1, 2  ;;  %v8982_v0 = vadd.f32 %v8981_v49, %v8980_v46 }
 0x963   :  { %20087 = vmatprep.subr.bf16.mxu1 %v21103_v56 }
 0x964   :  { %v9012_v40 = vmax.f32 %v9010_v1, %v9011_v29  ;;  %v8983_v7 = vrot.slane %v8982_v0, 1 }
 0x966   :  { %20089 = vmatpush3.bf16.msra.mxu1 %v23637_v9  ;;  %v9013_v43 = vrot.slane %v9012_v40, 1  ;;  %v8984_v4 = vadd.f32 %v8983_v7, %v8982_v0 }
 0x967   :  { %18306 = vmatprep.subr.mxu1 %v21105_v21 }
 0x968   :  { %v9014_v63 = vmax.f32 %v9012_v40, %v9013_v43  ;;  %v8985_v17 = vmul.f32 0.04, %v8984_v4 }
 0x969   :  { %18304 = vmatmul.mubr.msk.f32.vlgmr.msra.gmra.mrb[26].mxu1 %vm68_vm0, %v8617_v39 }
 0x96a   :  { %18308 = vmatprep.mubr.msk.f32.mxu1 %vm21104_vm2, %v21105_v21  ;;  %18336 = vmatmul.mubr.msk.f32.vlgmr.msra.gmra.mrb[40].mxu0 %vm68_vm0, %v9014_v63 }
 0x96b   :  { %18307 = vmatpush3.msk.msra.mxu1 %vm8775_vm5, %v8696_v2 }
 0x96c   :  { %18311 = vmatprep.subr.mxu1 %v21105_v21 }
 0xa34   :  { %v8691_v42 = vpop.f32.mrb[24].mxu1 }
 0xa35   :  { %v18294_v15 = vpop.f32.mrb[25].mxu1  ;;  %v8695_v10 = vmax.f32 %v8691_v42, 0.0  ;;  %v14649_v42 = vld [vmem:[%s25157_s12 + $0x40] sm:$0xff] }
 0xa36   :  { %18364 = vmatprep.mubr.msk.f32.mxu0 %vm325_vm1, %v14649_v42 }
 0xa3c   :  { %v8766_v3 = vpop.f32.mrb[26].mxu1 }
 0xa3d   :  { %v8770_v5 = vmax.f32 %v8766_v3, 0.0  ;;  %v18305_v52 = vpop.f32.mrb[27].mxu1  ;;  %v9158_v48 = vpop.f32.mrb[40].mxu0 }
 0xa3e   :  { %v18337_v60 = vpop.f32.mrb[41].mxu0  ;;  %v9162_v27 = vmax.f32 %v9158_v48, 0.0 }
 0xa3f   :  { %18309 = vmatmul.mubr.msk.f32.vlgmr.msra.gmra.mrb[28].mxu1 %vm8771_vm6, %v8770_v5  ;;  %v14650_v60 = vld [vmem:[%s25157_s12 + $0x48] sm:$0xff] }
 0xa40   :  { %18312 = vmatpush3.msk.msra.mxu1 %vm8775_vm5, %v8696_v2  ;;  %18313 = vmatprep.mubr.msk.f32.mxu1 %vm21104_vm2, %v21105_v21 }
 0xa41   :  { %20090 = vmatprep.subr.bf16.mxu1 %v21103_v56 }
 0xa47   :  { %18314 = vmatmul.mubr.msk.f32.vlgmr.msra.gmra.mrb[28].mxu1 %vm8771_vm6, %v8695_v10  ;;  %v14651_v10 = vld [vmem:[%s25157_s12 + $0x50] sm:$0xff] }
 0xa48   :  { %20092 = vmatpush3.bf16.msra.mxu1 %v23623_v58  ;;  %18324 = vmatprep.mubr.msk.f32.mxu1 %vm21104_vm2, %v21105_v21 }
 0xa49   :  { %20093 = vmatprep.subr.bf16.mxu1 %v21103_v56 }
 0xa4c   :  { %20095 = vmatpush3.bf16.msra.mxu1 %v23637_v9 }
 0xa4d   :  { %18338 = vmatprep.subr.mxu1 %v21105_v21 }
 0xa4f   :  { %18325 = vmatmul.mubr.msk.f32.vlgmr.msra.gmra.mrb[30].mxu1 %vm68_vm0, %v8985_v17 }
 0xa50   :  { %18339 = vmatpush3.msk.msra.mxu1 %vm8775_vm5, %v8696_v2  ;;  %18340 = vmatprep.mubr.msk.f32.mxu1 %vm21104_vm2, %v21105_v21 }
 0xa51   :  { %18343 = vmatprep.subr.mxu1 %v21105_v21 }
 0xa53   :  { %18341 = vmatmul.mubr.msk.f32.vlgmr.msra.gmra.mrb[32].mxu1 %vm8771_vm6, %v9162_v27 }
 0xa54   :  { %18344 = vmatpush3.msk.msra.mxu1 %vm8775_vm5, %v8696_v2  ;;  %18345 = vmatprep.mubr.msk.f32.mxu1 %vm21104_vm2, %v21105_v21 }
 0xb1a   :  { %v8918_v58 = vpop.f32.mrb[28].mxu1 }
 0xb1b   :  { %v14641_v56 = vmul.f32 -1.442695, %v8918_v58  ;;  %v18315_v9 = vpop.f32.mrb[29].mxu1  ;;  %v14652_v58 = vld [vmem:[%s25157_s12 + $0x58] sm:$0xff] }
 0xb1d   :  { %20905 = vpow2.f32 %v14641_v56 }
 0xb22   :  { %v9084_v38 = vpop.f32.mrb[30].mxu1 }
 0xb23   :  { %v9088_v45 = vmax.f32 %v9084_v38, 0.0  ;;  %v18326_v53 = vpop.f32.mrb[31].mxu1  ;;  %v14653_v38 = vld [vmem:[%s25157_s12 + $0x60] sm:$0xff] }
 0xb25   :  { %18346 = vmatmul.mubr.msk.f32.vlgmr.msra.gmra.mrb[32].mxu1 %vm8771_vm6, %v9088_v45 }
 0xb27   :  { %v20906_v61 = vpop.eup %20905 }
 0xb28   :  { %v8925_v20 = vadd.f32 1.0, %v20906_v61 }
 0xb2a   :  { %20907 = vrcp.f32 %v8925_v20  ;;  %v14654_v20 = vld [vmem:[%s25157_s12 + $0x68] sm:$0xff] }
 0xb34   :  { %v20908_v12 = vpop.eup %20907 }
 0xb35   :  { %v8931_v55 = vrot.slane %v20908_v12, %v8930_v11 }
 0xb37   :  { %v23757_v54 = vmul.f32 %v8931_v55, %v23671_v31  ;;  %v23760_v21 = vmul.f32 %v8931_v55, %v23656_v26  ;;  %v23767_v14 = vmul.f32 %v8931_v55, %v23669_v41  ;;  %v23770_v23 = vmul.f32 %v8931_v55, %v23654_v33  ;;  %v14655_v55 = vld [vmem:[%s25157_s12 + $0x70] sm:$0xff] }
 0xb39   :  { %v9382_v8 = vsel %vm68_vm0, %v23757_v54, -inf  ;;  %v9376_v44 = vsel %vm68_vm0, %v23760_v21, -inf  ;;  %v9385_v37 = vsel %vm68_vm0, %v23767_v14, -inf  ;;  %v9379_v26 = vsel %vm68_vm0, %v23770_v23, -inf }
 0xb3a   :  { %9383 = vmax.xlane.f32.xlu1 %v9382_v8  ;;  %9377 = vmax.xlane.f32.xlu0 %v9376_v44  ;;  %v9346_v25 = vsel %vm68_vm0, %v23770_v23, 0.0  ;;  %v9349_v22 = vsel %vm68_vm0, %v23757_v54, 0.0 }
 0xb3e   :  { %9386 = vmax.xlane.f32.xlu1 %v9385_v37  ;;  %9380 = vmax.xlane.f32.xlu0 %v9379_v26  ;;  %v14656_v26 = vld [vmem:[%s25157_s12 + $0x78] sm:$0xff] }
 0xbc7   :  { %v9384_v31 = vpop.xlane.xlu1 %9383  ;;  %v9378_v51 = vpop.xlane.xlu0 %9377 }
 0xbcb   :  { %v9387_v50 = vpop.xlane.xlu1 %9386  ;;  %v9381_v36 = vpop.xlane.xlu0 %9380 }
 0xbcc   :  { %v20102_v13 = vpack.c.bf16 %v9381_v36, %v9378_v51  ;;  %v20106_v41 = vpack.c.bf16 %v9387_v50, %v9384_v31  ;;  %v9400_v50 = vld [vmem:[%s25157_s12] sm:$0xff] }
 0xbce   :  { %20103 = vmatprep.subr.bf16.mxu0 %v20102_v13 }
 0xbcf   :  { %20105 = vmatpush3.bf16.msra.mxu0 %v20102_v13  ;;  %v9401_v13 = vld [vmem:[%s25157_s12 + $0x8] sm:$0xff] }
 0xbd0   :  { %20107 = vmatprep.subr.bf16.mxu0 %v20106_v41 }
 0xbd3   :  { %20109 = vmatpush3.bf16.msra.mxu0 %v20106_v41  ;;  %v9402_v41 = vld [vmem:[%s25157_s12 + $0x10] sm:$0xff] }
 0xbf8   :  { %v9305_v33 = vpop.f32.mrb[32].mxu1 }
 0xbf9   :  { %v14648_v19 = vmul.f32 -1.442695, %v9305_v33  ;;  %v18347_v59 = vpop.f32.mrb[33].mxu1  ;;  %v9403_v33 = vld [vmem:[%s25157_s12 + $0x18] sm:$0xff] }
 0xbfa   :  { %v9405_v59 = vld [vmem:[%s25157_s12 + $0x28] sm:$0xff] }
 0xbfb   :  { %20909 = vpow2.f32 %v14648_v19  ;;  %v9404_v19 = vld [vmem:[%s25157_s12 + $0x20] sm:$0xff] }
 0xc05   :  { %v20910_v1 = vpop.eup %20909 }
 0xc06   :  { %v9312_v57 = vadd.f32 1.0, %v20910_v1  ;;  %v9406_v1 = vld [vmem:[%s25157_s12 + $0x30] sm:$0xff] }
 0xc08   :  { %20911 = vrcp.f32 %v9312_v57  ;;  %v9407_v57 = vld [vmem:[%s25157_s12 + $0x38] sm:$0xff] }
 0xc12   :  { %v20912_v29 = vpop.eup %20911 }
 0xc13   :  { %v9318_v40 = vrot.slane %v20912_v29, %v8930_v11  ;;  %v21107_v29 = vmov 0  }
 0xc14   :  { %20904 = vset.pattern.permute.xlu1 %v21107_v29  ;;  %20903 = vset.pattern.permute.xlu0 %v21107_v29  ;;  %v14738_v29 = vld [vmem:[%s25158_s13 + $0x68] sm:$0xff] }
 0xc15   :  { %v23777_v39 = vmul.f32 %v9318_v40, %v23685_v32  ;;  %v23780_v43 = vmul.f32 %v9318_v40, %v23688_v6  ;;  %v23787_v30 = vmul.f32 %v9318_v40, %v23697_v62  ;;  %v23790_v34 = vmul.f32 %v9318_v40, %v23699_v47  ;;  %v9771_v40 = vld [vmem:[%s25158_s13] sm:$0xff] }
 0xc16   :  { %v9343_v62 = vsel %vm68_vm0, %v23760_v21, 0.0  ;;  %v9352_v47 = vsel %vm68_vm0, %v23767_v14, 0.0 }
 0xc17   :  { %v9391_v63 = vsel %vm68_vm0, %v23777_v39, -inf  ;;  %v9388_v2 = vsel %vm68_vm0, %v23780_v43, -inf  ;;  %v9397_v32 = vsel %vm68_vm0, %v23787_v30, -inf  ;;  %v9394_v6 = vsel %vm68_vm0, %v23790_v34, -inf }
 0xc18   :  { %9392 = vmax.xlane.f32.xlu1 %v9391_v63  ;;  %9389 = vmax.xlane.f32.xlu0 %v9388_v2  ;;  %v9358_v24 = vsel %vm68_vm0, %v23777_v39, 0.0  ;;  %v9355_v28 = vsel %vm68_vm0, %v23780_v43, 0.0  ;;  %v9364_v35 = vsel %vm68_vm0, %v23787_v30, 0.0  ;;  %v9361_v16 = vsel %vm68_vm0, %v23790_v34, 0.0  ;;  %v9772_v63 = vld [vmem:[%s25158_s13 + $0x8] sm:$0xff]  ;;  %v14717_v2 = vld [vmem:[%s25158_s13 + $0x40] sm:$0xff] }
 0xc1c   :  { %9398 = vmax.xlane.f32.xlu1 %v9397_v32  ;;  %9395 = vmax.xlane.f32.xlu0 %v9394_v6  ;;  %v20134_v32 = vpack.c.bf16 %v9772_v63, %v9771_v40  ;;  %v14718_v6 = vld [vmem:[%s25158_s13 + $0x48] sm:$0xff] }
 0xc1e   :  { %20135 = vmatprep.subr.bf16.mxu1 %v20134_v32 }
 0xc1f   :  { %20137 = vmatpush3.bf16.msra.mxu1 %v20134_v32 }
 0xc20   :  { %9347 = vadd.xlane.f32.xlu1 %v9346_v25  ;;  %9344 = vadd.xlane.f32.xlu0 %v9343_v62  ;;  %v20182_v25 = vpack.c.bf16 %v14718_v6, %v14717_v2  ;;  %v14691_v2 = vld [vmem:[%s25158_s13 + $0x30] sm:$0xff]  ;;  %v14692_v6 = vld [vmem:[%s25158_s13 + $0x38] sm:$0xff] }
 0xc24   :  { %9353 = vadd.xlane.f32.xlu1 %v9352_v47  ;;  %9350 = vadd.xlane.f32.xlu0 %v9349_v22 }
 0xc28   :  { %9359 = vadd.xlane.f32.xlu1 %v9358_v24  ;;  %9356 = vadd.xlane.f32.xlu0 %v9355_v28 }
 0xc2c   :  { %9365 = vadd.xlane.f32.xlu1 %v9364_v35  ;;  %9362 = vadd.xlane.f32.xlu0 %v9361_v16 }
 0xca5   :  { %v9393_v18 = vpop.xlane.xlu1 %9392  ;;  %v9390_v15 = vpop.xlane.xlu0 %9389 }
 0xca6   :  { %v20110_v46 = vpack.c.bf16 %v9393_v18, %v9390_v15 }
 0xca8   :  { %20111 = vmatprep.subr.bf16.mxu0 %v20110_v46 }
 0xca9   :  { %v9399_v3 = vpop.xlane.xlu1 %9398  ;;  %20113 = vmatpush3.bf16.msra.mxu0 %v20110_v46  ;;  %v9396_v49 = vpop.xlane.xlu0 %9395 }
 0xcaa   :  { %v20114_v5 = vpack.c.bf16 %v9399_v3, %v9396_v49 }
 0xcac   :  { %20115 = vmatprep.subr.bf16.mxu0 %v20114_v5 }
 0xcad   :  { %v9348_v52 = vpop.xlane.xlu1 %9347  ;;  %20117 = vmatpush3.bf16.msra.mxu0 %v20114_v5  ;;  %v9345_v48 = vpop.xlane.xlu0 %9344 }
 0xcae   :  { %v9369_v0 = vmul.f32 0.03125, %v9348_v52  ;;  %v9368_v7 = vmul.f32 0.03125, %v9345_v48 }
 0xcb0   :  { %v20118_v4 = vpack.c.bf16 %v9369_v0, %v9368_v7  ;;  %18365 = vmatmul.mubr.msk.f32.vlgmr.msra.gmra.mrb[42].mxu0 %vm325_vm1, %v14650_v60 }
 0xcb1   :  { %v9354_v17 = vpop.xlane.xlu1 %9353  ;;  %v9351_v27 = vpop.xlane.xlu0 %9350  ;;  %18367 = vmatprep.mubr.msk.f32.mxu0 %vm325_vm1, %v14651_v10 }
 0xcb2   :  { %v9371_v56 = vmul.f32 0.03125, %v9354_v17  ;;  %v9370_v9 = vmul.f32 0.03125, %v9351_v27  ;;  %20119 = vmatprep.subr.bf16.mxu0 %v20118_v4 }
 0xcb3   :  { %20121 = vmatpush3.bf16.msra.mxu0 %v20118_v4 }
 0xcb4   :  { %v20122_v45 = vpack.c.bf16 %v9371_v56, %v9370_v9  ;;  %18368 = vmatmul.mubr.msk.f32.gmra.mrb[44].mxu0 %vm325_vm1, %v14652_v58 }
 0xcb5   :  { %v9360_v53 = vpop.xlane.xlu1 %9359  ;;  %v9357_v61 = vpop.xlane.xlu0 %9356  ;;  %18370 = vmatprep.mubr.msk.f32.mxu0 %vm325_vm1, %v14653_v38 }
 0xcb6   :  { %v9373_v11 = vmul.f32 0.03125, %v9360_v53  ;;  %v9372_v12 = vmul.f32 0.03125, %v9357_v61  ;;  %20123 = vmatprep.subr.bf16.mxu0 %v20122_v45  ;;  %v9773_v53 = vld [vmem:[%s25158_s13 + $0x10] sm:$0xff]  ;;  %v9774_v61 = vld [vmem:[%s25158_s13 + $0x18] sm:$0xff] }
 0xcb7   :  { %20125 = vmatpush3.bf16.msra.mxu0 %v20122_v45 }
 0xcb8   :  { %v20126_v8 = vpack.c.bf16 %v9373_v11, %v9372_v12  ;;  %18371 = vmatmul.mubr.msk.f32.gmra.mrb[46].mxu0 %vm325_vm1, %v14654_v20  ;;  %v14719_v20 = vld [vmem:[%s25158_s13 + $0x50] sm:$0xff]  ;;  %v20138_v12 = vpack.c.bf16 %v9774_v61, %v9773_v53  ;;  %v14817_v61 = vld [vmem:[%s25158_s13 + $0xe0] sm:$0xff] }
 0xcb9   :  { %v9366_v44 = vpop.xlane.xlu1 %9365  ;;  %v9363_v37 = vpop.xlane.xlu0 %9362  ;;  %18373 = vmatprep.mubr.msk.f32.mxu0 %vm325_vm1, %v14655_v55  ;;  %v14720_v55 = vld [vmem:[%s25158_s13 + $0x58] sm:$0xff] }
 0xcba   :  { %v9375_v31 = vmul.f32 0.03125, %v9366_v44  ;;  %v9374_v51 = vmul.f32 0.03125, %v9363_v37  ;;  %20127 = vmatprep.subr.bf16.mxu0 %v20126_v8  ;;  %v20186_v44 = vpack.c.bf16 %v14720_v55, %v14719_v20  ;;  %20139 = vmatprep.subr.bf16.mxu1 %v20138_v12  ;;  %v14818_v20 = vld [vmem:[%s25158_s13 + $0xe8] sm:$0xff]  ;;  %v14820_v55 = vld [vmem:[%s25158_s13 + $0xf8] sm:$0xff] }
 0xcbb   :  { %20129 = vmatpush3.bf16.msra.mxu0 %v20126_v8  ;;  %20141 = vmatpush3.bf16.msra.mxu1 %v20138_v12  ;;  %v14819_v12 = vld [vmem:[%s25158_s13 + $0xf0] sm:$0xff] }
 0xcbc   :  { %v20130_v36 = vpack.c.bf16 %v9375_v31, %v9374_v51  ;;  %18374 = vmatmul.mubr.msk.f32.gmra.mrb[48].mxu0 %vm325_vm1, %v14656_v26 }
 0xcbd   :  { %18392 = vmatprep.mubr.msk.f32.mxu0 %vm325_vm1, %v9400_v50 }
 0xcbe   :  { %20131 = vmatprep.subr.bf16.mxu0 %v20130_v36 }
 0xcbf   :  { %20133 = vmatpush3.bf16.msra.mxu0 %v20130_v36 }
 0xcc0   :  { %20183 = vmatprep.subr.bf16.mxu0 %v20182_v25 }
 0xcc2   :  { %18393 = vmatmul.mubr.msk.f32.vlgmr.msra.gmra.mrb[42].mxu0 %vm325_vm1, %v9401_v13 }
 0xcc3   :  { %18395 = vmatprep.mubr.msk.f32.mxu0 %vm325_vm1, %v9402_v41  ;;  %20185 = vmatpush3.bf16.msra.mxu0 %v20182_v25  ;;  %v14689_v41 = vld [vmem:[%s25158_s13 + $0x20] sm:$0xff]  ;;  %v14739_v25 = vld [vmem:[%s25158_s13 + $0x70] sm:$0xff] }
 0xcc4   :  { %20187 = vmatprep.subr.bf16.mxu0 %v20186_v44 }
 0xcc6   :  { %18396 = vmatmul.mubr.msk.f32.gmra.mrb[44].mxu0 %vm325_vm1, %v9403_v33  ;;  %v14690_v33 = vld [vmem:[%s25158_s13 + $0x28] sm:$0xff] }
 0xcc7   :  { %18398 = vmatprep.mubr.msk.f32.mxu0 %vm325_vm1, %v9404_v19  ;;  %20189 = vmatpush3.bf16.msra.mxu0 %v20186_v44  ;;  %v20142_v19 = vpack.c.bf16 %v14690_v33, %v14689_v41  ;;  %v14837_v44 = vld [vmem:[%s25158_s13 + $0x100] sm:$0xff] }
 0xcc9   :  { %20143 = vmatprep.subr.bf16.mxu1 %v20142_v19 }
 0xcca   :  { %18399 = vmatmul.mubr.msk.f32.gmra.mrb[46].mxu0 %vm325_vm1, %v9405_v59 }
 0xccb   :  { %18401 = vmatprep.mubr.msk.f32.mxu0 %vm325_vm1, %v9406_v1 }
 0xcce   :  { %18402 = vmatmul.mubr.msk.f32.gmra.mrb[48].mxu0 %vm325_vm1, %v9407_v57  ;;  %v14737_v57 = vld [vmem:[%s25158_s13 + $0x60] sm:$0xff] }
 0xccf   :  { %v20206_v40 = vpack.c.bf16 %v14738_v29, %v14737_v57 }
 0xcd1   :  { %20207 = vmatprep.subr.bf16.mxu0 %v20206_v40 }
 0xd95   :  { %v18394_v62 = vpop.f32.mrb[42].mxu0 }
 0xd96   :  { %v14674_v47 = vmul.f32 -1.442695, %v18394_v62  ;;  %v9636_v22 = vpop.f32.mrb[43].mxu0  ;;  %v14740_v62 = vld [vmem:[%s25158_s13 + $0x78] sm:$0xff] }
 0xd97   :  { %v14673_v24 = vmul.f32 -1.442695, %v9636_v22 }
 0xd98   :  { %20913 = vpow2.f32 %v14674_v47 }
 0xd99   :  { %20915 = vpow2.f32 %v14673_v24  ;;  %v18397_v28 = vpop.f32.mrb[44].mxu0 }
 0xd9a   :  { %v14676_v35 = vmul.f32 -1.442695, %v18397_v28  ;;  %v9646_v16 = vpop.f32.mrb[45].mxu0  ;;  %v20146_v28 = vpack.c.bf16 %v14692_v6, %v14691_v2 }
 0xd9b   :  { %v14675_v42 = vmul.f32 -1.442695, %v9646_v16 }
 0xd9c   :  { %20917 = vpow2.f32 %v14676_v35  ;;  %v20210_v35 = vpack.c.bf16 %v14740_v62, %v14739_v25 }
 0xd9d   :  { %20919 = vpow2.f32 %v14675_v42  ;;  %v18400_v18 = vpop.f32.mrb[46].mxu0 }
 0xd9e   :  { %v14678_v15 = vmul.f32 -1.442695, %v18400_v18  ;;  %v9656_v46 = vpop.f32.mrb[47].mxu0 }
 0xd9f   :  { %v14677_v3 = vmul.f32 -1.442695, %v9656_v46 }
 0xda0   :  { %20921 = vpow2.f32 %v14678_v15 }
 0xda1   :  { %v18403_v49 = vpop.f32.mrb[48].mxu0  ;;  %20923 = vpow2.f32 %v14677_v3 }
 0xda2   :  { %v20914_v5 = vpop.eup %20913  ;;  %v9666_v52 = vpop.f32.mrb[49].mxu0  ;;  %v14680_v27 = vmul.f32 -1.442695, %v18403_v49 }
 0xda3   :  { %v20916_v48 = vpop.eup %20915  ;;  %v9700_v60 = vadd.f32 1.0, %v20914_v5  ;;  %v14679_v7 = vmul.f32 -1.442695, %v9666_v52 }
 0xda4   :  { %v9699_v0 = vadd.f32 1.0, %v20916_v48  ;;  %v14760_v48 = vld [vmem:[%s25158_s13 + $0x98] sm:$0xff] }
 0xda5   :  { %20925 = vrcp.f32 %v9700_v60  ;;  %v14777_v60 = vld [vmem:[%s25158_s13 + $0xa0] sm:$0xff] }
 0xda6   :  { %v20918_v10 = vpop.eup %20917  ;;  %20927 = vrcp.f32 %v9699_v0  ;;  %v14778_v0 = vld [vmem:[%s25158_s13 + $0xa8] sm:$0xff] }
 0xda7   :  { %v20920_v4 = vpop.eup %20919  ;;  %v9702_v17 = vadd.f32 1.0, %v20918_v10  ;;  %20929 = vpow2.f32 %v14679_v7  ;;  %v20254_v7 = vpack.c.bf16 %v14778_v0, %v14777_v60  ;;  %v14779_v10 = vld [vmem:[%s25158_s13 + $0xb0] sm:$0xff] }
 0xda8   :  { %v9701_v58 = vadd.f32 1.0, %v20920_v4  ;;  %v14780_v4 = vld [vmem:[%s25158_s13 + $0xb8] sm:$0xff] }
 0xda9   :  { %20931 = vrcp.f32 %v9702_v17  ;;  %v24041_v17 = vld [vmem:[%s25147_s1 + $0x40] sm:$0xff] }
 0xdaa   :  { %v20922_v56 = vpop.eup %20921  ;;  %20933 = vpow2.f32 %v14680_v27  ;;  %v20258_v27 = vpack.c.bf16 %v14780_v4, %v14779_v10 }
 0xdab   :  { %20935 = vrcp.f32 %v9701_v58  ;;  %v9704_v9 = vadd.f32 1.0, %v20922_v56  ;;  %v20924_v38 = vpop.eup %20923  ;;  %v14797_v58 = vld [vmem:[%s25158_s13 + $0xc0] sm:$0xff]  ;;  %v14798_v56 = vld [vmem:[%s25158_s13 + $0xc8] sm:$0xff] }
 0xdac   :  { %v9703_v8 = vadd.f32 1.0, %v20924_v38  ;;  %v14799_v38 = vld [vmem:[%s25158_s13 + $0xd0] sm:$0xff] }
 0xdad   :  { %20937 = vrcp.f32 %v9704_v9  ;;  %v20278_v9 = vpack.c.bf16 %v14798_v56, %v14797_v58 }
 0xdae   :  { %20939 = vrcp.f32 %v9703_v8  ;;  %v20306_v8 = vpack.c.bf16 %v14820_v55, %v14819_v12  ;;  %v24191_v12 = vld [vmem:[%s25147_s1 + $0x50] sm:$0xff] }
 0xdaf   :  { %v20926_v45 = vpop.eup %20925 }
 0xdb0   :  { %v20928_v11 = vpop.eup %20927  ;;  %9730 = vperm.xlu1 %20904, %v20926_v45   ;;  %v14800_v45 = vld [vmem:[%s25158_s13 + $0xd8] sm:$0xff] }
 0xdb1   :  { %9725 = vperm.xlu0 %20903, %v20928_v11   ;;  %v20930_v37 = vpop.eup %20929  ;;  %v20282_v53 = vpack.c.bf16 %v14800_v45, %v14799_v38  ;;  %v20302_v11 = vpack.c.bf16 %v14818_v20, %v14817_v61  ;;  %v24184_v61 = vld [vmem:[%s25147_s1 + $0x48] sm:$0xff] }
 0xdb2   :  { %v9705_v31 = vadd.f32 1.0, %v20930_v37  ;;  %v14838_v37 = vld [vmem:[%s25158_s13 + $0x108] sm:$0xff] }
 0xdb3   :  { %v20932_v26 = vpop.eup %20931 }
 0xdb4   :  { %9740 = vperm.xlu1 %20904, %v20932_v26   ;;  %v20934_v51 = vpop.eup %20933  ;;  %20941 = vrcp.f32 %v9705_v31  ;;  %v20326_v26 = vpack.c.bf16 %v14838_v37, %v14837_v44  ;;  %v14839_v31 = vld [vmem:[%s25158_s13 + $0x110] sm:$0xff] }
 0xdb5   :  { %v20936_v50 = vpop.eup %20935  ;;  %v9706_v36 = vadd.f32 1.0, %v20934_v51  ;;  %v14840_v51 = vld [vmem:[%s25158_s13 + $0x118] sm:$0xff] }
 0xdb7   :  { %v20938_v13 = vpop.eup %20937  ;;  %20943 = vrcp.f32 %v9706_v36 }
 0xdb8   :  { %9735 = vperm.xlu1 %20904, %v20936_v50   ;;  %v20940_v59 = vpop.eup %20939  ;;  %v20330_v50 = vpack.c.bf16 %v14840_v51, %v14839_v31  ;;  %v24217_v51 = vld [vmem:[%s25147_s1 + $0x68] sm:$0xff] }
 0xdbc   :  { %9750 = vperm.xlu1 %20904, %v20938_v13  }
 0xdbe   :  { %v20942_v1 = vpop.eup %20941 }
 0xdc0   :  { %9745 = vperm.xlu1 %20904, %v20940_v59  }
 0xdc1   :  { %v20944_v63 = vpop.eup %20943 }
 0xdc4   :  { %9755 = vperm.xlu1 %20904, %v20942_v1  }
 0xdc8   :  { %9760 = vperm.xlu1 %20904, %v20944_v63  }
 0xe2f   :  { %v9731_v32 = vpop.permute.xlu1 %9730 }
 0xe30   :  { %v9726_v47 = vpop.permute.xlu0 %9725  ;;  %v23928_v24 = vmul.f32 %v9731_v32, %v23770_v23  ;;  %v14758_v23 = vld [vmem:[%s25158_s13 + $0x88] sm:$0xff] }
 0xe31   :  { %v23925_v22 = vmul.f32 %v9726_v47, %v23760_v21  ;;  %v14757_v21 = vld [vmem:[%s25158_s13 + $0x80] sm:$0xff] }
 0xe32   :  { %v20230_v15 = vpack.c.bf16 %v14758_v23, %v14757_v21 }
 0xe33   :  { %18412 = vmatprep.mubr.msk.f32.mxu1 %vm68_vm0, %v23925_v22  ;;  %18508 = vmatprep.mubr.msk.f32.mxu0 %vm68_vm0, %v23925_v22  ;;  %v9741_v16 = vpop.permute.xlu1 %9740 }
 0xe34   :  { %18413 = vmatmul.mubr.msk.f32.vlgmr.msra.gmra.mrb[34].mxu1 %vm68_vm0, %v23928_v24  ;;  %18509 = vmatmul.mubr.msk.f32.vlgmr.msra.gmra.mrb[50].mxu0 %vm68_vm0, %v23928_v24  ;;  %v23948_v46 = vmul.f32 %v9741_v16, %v23767_v14 }
 0xe35   :  { %20145 = vmatpush3.bf16.msra.mxu1 %v20142_v19  ;;  %20209 = vmatpush3.bf16.msra.mxu0 %v20206_v40 }
 0xe36   :  { %20147 = vmatprep.subr.bf16.mxu1 %v20146_v28  ;;  %20211 = vmatprep.subr.bf16.mxu0 %v20210_v35 }
 0xe37   :  { %v9736_v42 = vpop.permute.xlu1 %9735 }
 0xe38   :  { %v23945_v18 = vmul.f32 %v9736_v42, %v23757_v54 }
 0xe39   :  { %20149 = vmatpush3.bf16.msra.mxu1 %v20146_v28  ;;  %20213 = vmatpush3.bf16.msra.mxu0 %v20210_v35 }
 0xe3a   :  { %18415 = vmatprep.mubr.msk.f32.mxu1 %vm68_vm0, %v23945_v18  ;;  %18511 = vmatprep.mubr.msk.f32.mxu0 %vm68_vm0, %v23945_v18 }
 0xe3b   :  { %18416 = vmatmul.mubr.msk.f32.gmra.mrb[36].mxu1 %vm68_vm0, %v23948_v46  ;;  %18512 = vmatmul.mubr.msk.f32.gmra.mrb[52].mxu0 %vm68_vm0, %v23948_v46  ;;  %v9751_v54 = vpop.permute.xlu1 %9750 }
 0xe3c   :  { %20231 = vmatprep.subr.bf16.mxu0 %v20230_v15  ;;  %v23962_v49 = vmul.f32 %v9751_v54, %v23777_v39 }
 0xe3f   :  { %v9746_v3 = vpop.permute.xlu1 %9745 }
 0xe40   :  { %v23959_v14 = vmul.f32 %v9746_v3, %v23780_v43 }
 0xe42   :  { %18418 = vmatprep.mubr.msk.f32.mxu1 %vm68_vm0, %v23959_v14  ;;  %18514 = vmatprep.mubr.msk.f32.mxu0 %vm68_vm0, %v23959_v14 }
 0xe43   :  { %18419 = vmatmul.mubr.msk.f32.gmra.mrb[38].mxu1 %vm68_vm0, %v23962_v49  ;;  %18515 = vmatmul.mubr.msk.f32.gmra.mrb[54].mxu0 %vm68_vm0, %v23962_v49  ;;  %v9756_v5 = vpop.permute.xlu1 %9755 }
 0xe44   :  { %v23973_v52 = vmul.f32 %v9756_v5, %v23790_v34  ;;  %v14759_v34 = vld [vmem:[%s25158_s13 + $0x90] sm:$0xff] }
 0xe46   :  { %18421 = vmatprep.mubr.msk.f32.mxu1 %vm68_vm0, %v23973_v52  ;;  %18517 = vmatprep.mubr.msk.f32.mxu0 %vm68_vm0, %v23973_v52 }
 0xe47   :  { %v9761_v39 = vpop.permute.xlu1 %9760 }
 0xe48   :  { %v23980_v43 = vmul.f32 %v9761_v39, %v23787_v30  ;;  %v20234_v30 = vpack.c.bf16 %v14760_v48, %v14759_v34 }
 0xe4a   :  { %18422 = vmatmul.mubr.msk.f32.gmra.mrb[40].mxu1 %vm68_vm0, %v23980_v43  ;;  %18518 = vmatmul.mubr.msk.f32.gmra.mrb[56].mxu0 %vm68_vm0, %v23980_v43 }
 0xe4b   :  { %18432 = vmatprep.mubr.msk.f32.mxu1 %vm68_vm0, %v23925_v22  ;;  %18556 = vmatprep.mubr.msk.f32.mxu0 %vm68_vm0, %v23925_v22 }
 0xe4e   :  { %18433 = vmatmul.mubr.msk.f32.vlgmr.msra.gmra.mrb[42].mxu1 %vm68_vm0, %v23928_v24  ;;  %18557 = vmatmul.mubr.msk.f32.vlgmr.msra.gmra.mrb[58].mxu0 %vm68_vm0, %v23928_v24 }
 0xe4f   :  { %18435 = vmatprep.mubr.msk.f32.mxu1 %vm68_vm0, %v23945_v18  ;;  %18559 = vmatprep.mubr.msk.f32.mxu0 %vm68_vm0, %v23945_v18 }
 0xe50   :  { %20233 = vmatpush3.bf16.msra.mxu0 %v20230_v15 }
 0xe51   :  { %20235 = vmatprep.subr.bf16.mxu0 %v20234_v30 }
 0xe52   :  { %18436 = vmatmul.mubr.msk.f32.gmra.mrb[44].mxu1 %vm68_vm0, %v23948_v46  ;;  %18560 = vmatmul.mubr.msk.f32.gmra.mrb[60].mxu0 %vm68_vm0, %v23948_v46 }
 0xe53   :  { %18438 = vmatprep.mubr.msk.f32.mxu1 %vm68_vm0, %v23959_v14  ;;  %18562 = vmatprep.mubr.msk.f32.mxu0 %vm68_vm0, %v23959_v14 }
 0xe54   :  { %20237 = vmatpush3.bf16.msra.mxu0 %v20234_v30 }
 0xe55   :  { %20255 = vmatprep.subr.bf16.mxu0 %v20254_v7 }
 0xe56   :  { %18439 = vmatmul.mubr.msk.f32.gmra.mrb[46].mxu1 %vm68_vm0, %v23962_v49  ;;  %18563 = vmatmul.mubr.msk.f32.gmra.mrb[62].mxu0 %vm68_vm0, %v23962_v49 }
 0xe57   :  { %18441 = vmatprep.mubr.msk.f32.mxu1 %vm68_vm0, %v23973_v52  ;;  %18565 = vmatprep.mubr.msk.f32.mxu0 %vm68_vm0, %v23973_v52 }
 0xe5a   :  { %18442 = vmatmul.mubr.msk.f32.gmra.mrb[48].mxu1 %vm68_vm0, %v23980_v43  ;;  %18566 = vmatmul.mubr.msk.f32.gmra.mrb[64].mxu0 %vm68_vm0, %v23980_v43 }
 0xe5b   :  { %18604 = vmatprep.mubr.msk.f32.mxu0 %vm68_vm0, %v23925_v22  ;;  %18460 = vmatprep.mubr.msk.f32.mxu1 %vm325_vm1, %v24041_v17 }
 0xe5e   :  { %18605 = vmatmul.mubr.msk.f32.vlgmr.msra.gmra.mrb[66].mxu0 %vm68_vm0, %v23928_v24 }
 0xe5f   :  { %18607 = vmatprep.mubr.msk.f32.mxu0 %vm68_vm0, %v23945_v18  ;;  %20257 = vmatpush3.bf16.msra.mxu0 %v20254_v7 }
 0xe60   :  { %20259 = vmatprep.subr.bf16.mxu0 %v20258_v27 }
 0xe62   :  { %18608 = vmatmul.mubr.msk.f32.gmra.mrb[68].mxu0 %vm68_vm0, %v23948_v46 }
 0xe63   :  { %18610 = vmatprep.mubr.msk.f32.mxu0 %vm68_vm0, %v23959_v14  ;;  %20261 = vmatpush3.bf16.msra.mxu0 %v20258_v27 }
 0xe64   :  { %20279 = vmatprep.subr.bf16.mxu0 %v20278_v9 }
 0xe66   :  { %18611 = vmatmul.mubr.msk.f32.gmra.mrb[70].mxu0 %vm68_vm0, %v23962_v49 }
 0xe67   :  { %18613 = vmatprep.mubr.msk.f32.mxu0 %vm68_vm0, %v23973_v52 }
 0xe6a   :  { %18614 = vmatmul.mubr.msk.f32.gmra.mrb[72].mxu0 %vm68_vm0, %v23980_v43 }
 0xe6b   :  { %18652 = vmatprep.mubr.msk.f32.mxu0 %vm68_vm0, %v23925_v22 }
 0xe6e   :  { %18653 = vmatmul.mubr.msk.f32.vlgmr.msra.gmra.mrb[74].mxu0 %vm68_vm0, %v23928_v24 }
 0xe6f   :  { %18655 = vmatprep.mubr.msk.f32.mxu0 %vm68_vm0, %v23945_v18  ;;  %20281 = vmatpush3.bf16.msra.mxu0 %v20278_v9 }
 0xe70   :  { %20283 = vmatprep.subr.bf16.mxu0 %v20282_v53 }
 0xe72   :  { %18656 = vmatmul.mubr.msk.f32.gmra.mrb[76].mxu0 %vm68_vm0, %v23948_v46 }
 0xe73   :  { %18658 = vmatprep.mubr.msk.f32.mxu0 %vm68_vm0, %v23959_v14  ;;  %20285 = vmatpush3.bf16.msra.mxu0 %v20282_v53 }
 0xe74   :  { %20303 = vmatprep.subr.bf16.mxu0 %v20302_v11 }
 0xe76   :  { %18659 = vmatmul.mubr.msk.f32.gmra.mrb[78].mxu0 %vm68_vm0, %v23962_v49 }
 0xe77   :  { %18661 = vmatprep.mubr.msk.f32.mxu0 %vm68_vm0, %v23973_v52 }
 0xe7a   :  { %18662 = vmatmul.mubr.msk.f32.gmra.mrb[80].mxu0 %vm68_vm0, %v23980_v43 }
 0xe7b   :  { %18700 = vmatprep.mubr.msk.f32.mxu0 %vm68_vm0, %v23925_v22 }
 0xe7e   :  { %18701 = vmatmul.mubr.msk.f32.vlgmr.msra.gmra.mrb[82].mxu0 %vm68_vm0, %v23928_v24 }
 0xe7f   :  { %18703 = vmatprep.mubr.msk.f32.mxu0 %vm68_vm0, %v23945_v18  ;;  %20305 = vmatpush3.bf16.msra.mxu0 %v20302_v11 }
 0xe80   :  { %20307 = vmatprep.subr.bf16.mxu0 %v20306_v8 }
 0xe82   :  { %18704 = vmatmul.mubr.msk.f32.gmra.mrb[84].mxu0 %vm68_vm0, %v23948_v46 }
 0xe83   :  { %18706 = vmatprep.mubr.msk.f32.mxu0 %vm68_vm0, %v23959_v14  ;;  %20309 = vmatpush3.bf16.msra.mxu0 %v20306_v8  ;;  %v24200_v8 = vld [vmem:[%s25147_s1 + $0x58] sm:$0xff] }
 0xe84   :  { %20327 = vmatprep.subr.bf16.mxu0 %v20326_v26 }
 0xe86   :  { %18707 = vmatmul.mubr.msk.f32.gmra.mrb[86].mxu0 %vm68_vm0, %v23962_v49 }
 0xe87   :  { %18709 = vmatprep.mubr.msk.f32.mxu0 %vm68_vm0, %v23973_v52 }
 0xe8a   :  { %18710 = vmatmul.mubr.msk.f32.gmra.mrb[88].mxu0 %vm68_vm0, %v23980_v43 }
 0xe8b   :  { %18748 = vmatprep.mubr.msk.f32.mxu0 %vm68_vm0, %v23925_v22 }
 0xe8e   :  { %18749 = vmatmul.mubr.msk.f32.vlgmr.msra.gmra.mrb[90].mxu0 %vm68_vm0, %v23928_v24 }
 0xe8f   :  { %18751 = vmatprep.mubr.msk.f32.mxu0 %vm68_vm0, %v23945_v18  ;;  %20329 = vmatpush3.bf16.msra.mxu0 %v20326_v26  ;;  %v24207_v26 = vld [vmem:[%s25147_s1 + $0x60] sm:$0xff] }
 0xe90   :  { %20331 = vmatprep.subr.bf16.mxu0 %v20330_v50 }
 0xe92   :  { %18752 = vmatmul.mubr.msk.f32.gmra.mrb[92].mxu0 %vm68_vm0, %v23948_v46 }
 0xe93   :  { %18754 = vmatprep.mubr.msk.f32.mxu0 %vm68_vm0, %v23959_v14  ;;  %20333 = vmatpush3.bf16.msra.mxu0 %v20330_v50 }
 0xe96   :  { %18755 = vmatmul.mubr.msk.f32.gmra.mrb[94].mxu0 %vm68_vm0, %v23962_v49 }
 0xe97   :  { %18757 = vmatprep.mubr.msk.f32.mxu0 %vm68_vm0, %v23973_v52 }
 0xe9a   :  { %18758 = vmatmul.mubr.msk.f32.gmra.mrb[96].mxu0 %vm68_vm0, %v23980_v43 }
 0xe9b   :  { %18796 = vmatprep.mubr.msk.f32.mxu0 %vm68_vm0, %v23925_v22 }
 0xe9e   :  { %18797 = vmatmul.mubr.msk.f32.vlgmr.msra.gmra.mrb[98].mxu0 %vm68_vm0, %v23928_v24 }
 0xe9f   :  { %18799 = vmatprep.mubr.msk.f32.mxu0 %vm68_vm0, %v23945_v18 }
 0xea2   :  { %18800 = vmatmul.mubr.msk.f32.gmra.mrb[100].mxu0 %vm68_vm0, %v23948_v46 }
 0xea3   :  { %18802 = vmatprep.mubr.msk.f32.mxu0 %vm68_vm0, %v23959_v14 }
 0xea6   :  { %18803 = vmatmul.mubr.msk.f32.gmra.mrb[102].mxu0 %vm68_vm0, %v23962_v49 }
 0xea7   :  { %18805 = vmatprep.mubr.msk.f32.mxu0 %vm68_vm0, %v23973_v52 }
 0xeaa   :  { %18806 = vmatmul.mubr.msk.f32.gmra.mrb[104].mxu0 %vm68_vm0, %v23980_v43 }
 0xf07   :  { %v18414_v36 = vpop.f32.mrb[34].mxu1  ;;  %v18510_v13 = vpop.f32.mrb[50].mxu0 }
 0xf08   :  { %v9865_v41 = vpop.f32.mrb[35].mxu1  ;;  %v10295_v33 = vpop.f32.mrb[51].mxu0 }
 0xf09   :  { %v20166_v19 = vpack.c.bf16 %v18414_v36, %v9865_v41  ;;  %v24159_v59 = vpack.c.bf16 %v18510_v13, %v10295_v33  ;;  %v24225_v13 = vld [vmem:[%s25147_s1 + $0x70] sm:$0xff]  ;;  %v24235_v33 = vld [vmem:[%s25147_s1 + $0x78] sm:$0xff] }
 0xf0e   :  { %v18417_v1 = vpop.f32.mrb[36].mxu1  ;;  %v18513_v57 = vpop.f32.mrb[52].mxu0 }
 0xf0f   :  { %v9875_v29 = vpop.f32.mrb[37].mxu1  ;;  %v10305_v40 = vpop.f32.mrb[53].mxu0 }
 0xf10   :  { %v20170_v63 = vpack.c.bf16 %v18417_v1, %v9875_v29  ;;  %v24161_v2 = vpack.c.bf16 %v18513_v57, %v10305_v40  ;;  %v24243_v57 = vld [vmem:[%s25147_s1] sm:$0xff] }
 0xf11   :  { %v11824_v29 = vld [vmem:[%s25159_s15] sm:$0xff] }
 0xf12   :  { %18836 = vmatprep.subr.mxu0 %v11824_v29 }
 0xf13   :  { %18837 = vmatpush3.msra.mxu0 %v11824_v29  ;;  %v24436_v29 = vld [vmem:[%s25147_s1 + $0xe8] sm:$0xff] }
 0xf16   :  { %v18420_v32 = vpop.f32.mrb[38].mxu1  ;;  %v18516_v6 = vpop.f32.mrb[54].mxu0 }
 0xf17   :  { %v9885_v25 = vpop.f32.mrb[39].mxu1  ;;  %v10315_v62 = vpop.f32.mrb[55].mxu0 }
 0xf18   :  { %v24163_v47 = vpack.c.bf16 %v18420_v32, %v9885_v25  ;;  %v24165_v22 = vpack.c.bf16 %v18516_v6, %v10315_v62  ;;  %v24264_v25 = vld [vmem:[%s25147_s1 + $0x10] sm:$0xff] }
 0xf1d   :  { %v18423_v24 = vpop.f32.mrb[40].mxu1  ;;  %v18519_v28 = vpop.f32.mrb[56].mxu0 }
 0xf1e   :  { %v9895_v35 = vpop.f32.mrb[41].mxu1  ;;  %v10325_v16 = vpop.f32.mrb[57].mxu0 }
 0xf1f   :  { %v24167_v21 = vpack.c.bf16 %v18423_v24, %v9895_v35  ;;  %v24169_v23 = vpack.c.bf16 %v18519_v28, %v10325_v16  ;;  %v24282_v28 = vld [vmem:[%s25147_s1 + $0x20] sm:$0xff]  ;;  %v24292_v16 = vld [vmem:[%s25147_s1 + $0x28] sm:$0xff] }
 0xf21   :  { %v18434_v42 = vpop.f32.mrb[42].mxu1  ;;  %v18558_v18 = vpop.f32.mrb[58].mxu0 }
 0xf22   :  { %v9975_v15 = vpop.f32.mrb[43].mxu1  ;;  %v10518_v46 = vpop.f32.mrb[59].mxu0 }
 0xf23   :  { %v20150_v54 = vpack.c.bf16 %v18434_v42, %v9975_v15  ;;  %v24171_v3 = vpack.c.bf16 %v18558_v18, %v10518_v46  ;;  %v24300_v42 = vld [vmem:[%s25147_s1 + $0x30] sm:$0xff]  ;;  %v24310_v15 = vld [vmem:[%s25147_s1 + $0x38] sm:$0xff] }
 0xf25   :  { %v18437_v14 = vpop.f32.mrb[44].mxu1  ;;  %20151 = vmatprep.subr.bf16.mxu1 %v20150_v54  ;;  %v18561_v49 = vpop.f32.mrb[60].mxu0 }
 0xf26   :  { %v9985_v5 = vpop.f32.mrb[45].mxu1  ;;  %20153 = vmatpush3.bf16.msra.mxu1 %v20150_v54  ;;  %v10528_v52 = vpop.f32.mrb[61].mxu0  ;;  %v24318_v54 = vld [vmem:[%s25147_s1 + $0x80] sm:$0xff] }
 0xf27   :  { %v20154_v39 = vpack.c.bf16 %v18437_v14, %v9985_v5  ;;  %v24173_v43 = vpack.c.bf16 %v18561_v49, %v10528_v52  ;;  %v24328_v49 = vld [vmem:[%s25147_s1 + $0x88] sm:$0xff]  ;;  %v24336_v52 = vld [vmem:[%s25147_s1 + $0x90] sm:$0xff] }
 0xf29   :  { %v18440_v34 = vpop.f32.mrb[46].mxu1  ;;  %20155 = vmatprep.subr.bf16.mxu1 %v20154_v39  ;;  %v18564_v48 = vpop.f32.mrb[62].mxu0 }
 0xf2a   :  { %v9995_v30 = vpop.f32.mrb[47].mxu1  ;;  %20157 = vmatpush3.bf16.msra.mxu1 %v20154_v39  ;;  %v10538_v60 = vpop.f32.mrb[63].mxu0 }
 0xf2b   :  { %v20158_v0 = vpack.c.bf16 %v18440_v34, %v9995_v30  ;;  %v24175_v7 = vpack.c.bf16 %v18564_v48, %v10538_v60  ;;  %v24346_v34 = vld [vmem:[%s25147_s1 + $0x98] sm:$0xff]  ;;  %v24354_v30 = vld [vmem:[%s25147_s1 + $0xa0] sm:$0xff] }
 0xf2d   :  { %v18443_v10 = vpop.f32.mrb[48].mxu1  ;;  %20159 = vmatprep.subr.bf16.mxu1 %v20158_v0  ;;  %v18567_v4 = vpop.f32.mrb[64].mxu0 }
 0xf2e   :  { %v10005_v27 = vpop.f32.mrb[49].mxu1  ;;  %20161 = vmatpush3.bf16.msra.mxu1 %v20158_v0  ;;  %v10548_v58 = vpop.f32.mrb[65].mxu0  ;;  %v24364_v0 = vld [vmem:[%s25147_s1 + $0xa8] sm:$0xff] }
 0xf2f   :  { %v20162_v56 = vpack.c.bf16 %v18443_v10, %v10005_v27  ;;  %v24177_v9 = vpack.c.bf16 %v18567_v4, %v10548_v58  ;;  %v24372_v4 = vld [vmem:[%s25147_s1 + $0xb0] sm:$0xff]  ;;  %v24382_v58 = vld [vmem:[%s25147_s1 + $0xb8] sm:$0xff] }
 0xf31   :  { %20163 = vmatprep.subr.bf16.mxu1 %v20162_v56  ;;  %v18606_v38 = vpop.f32.mrb[66].mxu0 }
 0xf32   :  { %20165 = vmatpush3.bf16.msra.mxu1 %v20162_v56  ;;  %v10741_v45 = vpop.f32.mrb[67].mxu0 }
 0xf33   :  { %v24179_v53 = vpack.c.bf16 %v18606_v38, %v10741_v45  ;;  %20167 = vmatprep.subr.bf16.mxu1 %v20166_v19  ;;  %v24390_v38 = vld [vmem:[%s25147_s1 + $0xc0] sm:$0xff] }
 0xf35   :  { %18461 = vmatmul.mubr.msk.f32.vlgmr.msra.gmra.mrb[50].mxu1 %vm325_vm1, %v24184_v61  ;;  %v18609_v20 = vpop.f32.mrb[68].mxu0 }
 0xf36   :  { %20169 = vmatpush3.bf16.msra.mxu1 %v20166_v19  ;;  %v10751_v11 = vpop.f32.mrb[69].mxu0  ;;  %18463 = vmatprep.mubr.msk.f32.mxu1 %vm325_vm1, %v24191_v12 }
 0xf37   :  { %v24195_v55 = vpack.c.bf16 %v18609_v20, %v10751_v11  ;;  %20171 = vmatprep.subr.bf16.mxu1 %v20170_v63  ;;  %v24400_v20 = vld [vmem:[%s25147_s1 + $0xc8] sm:$0xff] }
 0xf39   :  { %18464 = vmatmul.mubr.msk.f32.gmra.mrb[52].mxu1 %vm325_vm1, %v24200_v8  ;;  %v18612_v44 = vpop.f32.mrb[70].mxu0 }
 0xf3a   :  { %20173 = vmatpush3.bf16.msra.mxu1 %v20170_v63  ;;  %v10761_v37 = vpop.f32.mrb[71].mxu0  ;;  %18466 = vmatprep.mubr.msk.f32.mxu1 %vm325_vm1, %v24207_v26  ;;  %v24256_v63 = vld [vmem:[%s25147_s1 + $0x8] sm:$0xff] }
 0xf3b   :  { %v24211_v31 = vpack.c.bf16 %v18612_v44, %v10761_v37  ;;  %20175 = vmatprep.subr.bf16.mxu1 %v24163_v47  ;;  %v24408_v44 = vld [vmem:[%s25147_s1 + $0xd0] sm:$0xff] }
 0xf3d   :  { %18467 = vmatmul.mubr.msk.f32.gmra.mrb[54].mxu1 %vm325_vm1, %v24217_v51  ;;  %v18615_v50 = vpop.f32.mrb[72].mxu0 }
 0xf3e   :  { %20177 = vmatpush3.bf16.msra.mxu1 %v24163_v47  ;;  %v10771_v36 = vpop.f32.mrb[73].mxu0  ;;  %18469 = vmatprep.mubr.msk.f32.mxu1 %vm325_vm1, %v24225_v13  ;;  %v24274_v47 = vld [vmem:[%s25147_s1 + $0x18] sm:$0xff] }
 0xf3f   :  { %v24229_v41 = vpack.c.bf16 %v18615_v50, %v10771_v36  ;;  %20179 = vmatprep.subr.bf16.mxu1 %v24167_v21  ;;  %v24418_v50 = vld [vmem:[%s25147_s1 + $0xd8] sm:$0xff] }
 0xf41   :  { %18470 = vmatmul.mubr.msk.f32.gmra.mrb[56].mxu1 %vm325_vm1, %v24235_v33  ;;  %v18654_v19 = vpop.f32.mrb[74].mxu0 }
 0xf42   :  { %20181 = vmatpush3.bf16.msra.mxu1 %v24167_v21  ;;  %v10964_v1 = vpop.f32.mrb[75].mxu0  ;;  %18488 = vmatprep.mubr.msk.f32.mxu1 %vm325_vm1, %v24243_v57 }
 0xf43   :  { %v24250_v40 = vpack.c.bf16 %v18654_v19, %v10964_v1  ;;  %20191 = vmatprep.subr.bf16.mxu1 %v24159_v59  ;;  %v24426_v19 = vld [vmem:[%s25147_s1 + $0xe0] sm:$0xff] }
 0xf45   :  { %18489 = vmatmul.mubr.msk.f32.vlgmr.msra.gmra.mrb[50].mxu1 %vm325_vm1, %v24256_v63  ;;  %v18657_v32 = vpop.f32.mrb[76].mxu0 }
 0xf46   :  { %20193 = vmatpush3.bf16.msra.mxu1 %v24159_v59  ;;  %v10974_v6 = vpop.f32.mrb[77].mxu0  ;;  %18491 = vmatprep.mubr.msk.f32.mxu1 %vm325_vm1, %v24264_v25 }
 0xf47   :  { %v24268_v62 = vpack.c.bf16 %v18657_v32, %v10974_v6  ;;  %20195 = vmatprep.subr.bf16.mxu1 %v24161_v2  ;;  %v24444_v6 = vld [vmem:[%s25147_s1 + $0xf0] sm:$0xff] }
 0xf49   :  { %18492 = vmatmul.mubr.msk.f32.gmra.mrb[52].mxu1 %vm325_vm1, %v24274_v47  ;;  %v18660_v59 = vpop.f32.mrb[78].mxu0 }
 0xf4a   :  { %20197 = vmatpush3.bf16.msra.mxu1 %v24161_v2  ;;  %v10984_v24 = vpop.f32.mrb[79].mxu0  ;;  %18494 = vmatprep.mubr.msk.f32.mxu1 %vm325_vm1, %v24282_v28 }
 0xf4b   :  { %v24286_v35 = vpack.c.bf16 %v18660_v59, %v10984_v24  ;;  %20199 = vmatprep.subr.bf16.mxu1 %v24165_v22  ;;  %v24454_v24 = vld [vmem:[%s25147_s1 + $0xf8] sm:$0xff] }
 0xf4d   :  { %18495 = vmatmul.mubr.msk.f32.gmra.mrb[54].mxu1 %vm325_vm1, %v24292_v16  ;;  %v18663_v2 = vpop.f32.mrb[80].mxu0 }
 0xf4e   :  { %20201 = vmatpush3.bf16.msra.mxu1 %v24165_v22  ;;  %v10994_v21 = vpop.f32.mrb[81].mxu0  ;;  %18497 = vmatprep.mubr.msk.f32.mxu1 %vm325_vm1, %v24300_v42 }
 0xf4f   :  { %v24304_v18 = vpack.c.bf16 %v18663_v2, %v10994_v21  ;;  %20203 = vmatprep.subr.bf16.mxu1 %v24169_v23  ;;  %v24462_v21 = vld [vmem:[%s25147_s1 + $0x100] sm:$0xff] }
 0xf51   :  { %18498 = vmatmul.mubr.msk.f32.gmra.mrb[56].mxu1 %vm325_vm1, %v24310_v15  ;;  %v18702_v22 = vpop.f32.mrb[82].mxu0 }
 0xf52   :  { %20205 = vmatpush3.bf16.msra.mxu1 %v24169_v23  ;;  %v11187_v46 = vpop.f32.mrb[83].mxu0  ;;  %18536 = vmatprep.mubr.msk.f32.mxu1 %vm325_vm1, %v24318_v54 }
 0xf53   :  { %v24322_v14 = vpack.c.bf16 %v18702_v22, %v11187_v46  ;;  %20215 = vmatprep.subr.bf16.mxu1 %v24171_v3  ;;  %v24472_v46 = vld [vmem:[%s25147_s1 + $0x108] sm:$0xff] }
 0xf55   :  { %18537 = vmatmul.mubr.msk.f32.vlgmr.msra.gmra.mrb[50].mxu1 %vm325_vm1, %v24328_v49  ;;  %v18705_v23 = vpop.f32.mrb[84].mxu0 }
 0xf56   :  { %20217 = vmatpush3.bf16.msra.mxu1 %v24171_v3  ;;  %v11197_v5 = vpop.f32.mrb[85].mxu0  ;;  %18539 = vmatprep.mubr.msk.f32.mxu1 %vm325_vm1, %v24336_v52 }
 0xf57   :  { %v24340_v39 = vpack.c.bf16 %v18705_v23, %v11197_v5  ;;  %20219 = vmatprep.subr.bf16.mxu1 %v24173_v43  ;;  %v24480_v5 = vld [vmem:[%s25147_s1 + $0x110] sm:$0xff] }
 0xf59   :  { %18540 = vmatmul.mubr.msk.f32.gmra.mrb[52].mxu1 %vm325_vm1, %v24346_v34  ;;  %v18708_v3 = vpop.f32.mrb[86].mxu0 }
 0xf5a   :  { %20221 = vmatpush3.bf16.msra.mxu1 %v24173_v43  ;;  %v11207_v48 = vpop.f32.mrb[87].mxu0  ;;  %18542 = vmatprep.mubr.msk.f32.mxu1 %vm325_vm1, %v24354_v30 }
 0xf5b   :  { %v24358_v60 = vpack.c.bf16 %v18708_v3, %v11207_v48  ;;  %20223 = vmatprep.subr.bf16.mxu1 %v24175_v7  ;;  %v24490_v48 = vld [vmem:[%s25147_s1 + $0x118] sm:$0xff] }
 0xf5d   :  { %18543 = vmatmul.mubr.msk.f32.gmra.mrb[54].mxu1 %vm325_vm1, %v24364_v0  ;;  %v18711_v43 = vpop.f32.mrb[88].mxu0 }
 0xf5e   :  { %20225 = vmatpush3.bf16.msra.mxu1 %v24175_v7  ;;  %v11217_v10 = vpop.f32.mrb[89].mxu0  ;;  %18545 = vmatprep.mubr.msk.f32.mxu1 %vm325_vm1, %v24372_v4 }
 0xf5f   :  { %v24376_v27 = vpack.c.bf16 %v18711_v43, %v11217_v10  ;;  %20227 = vmatprep.subr.bf16.mxu1 %v24177_v9  ;;  %v24498_v10 = vld [vmem:[%s25147_s1 + $0x120] sm:$0xff] }
 0xf61   :  { %18546 = vmatmul.mubr.msk.f32.gmra.mrb[56].mxu1 %vm325_vm1, %v24382_v58  ;;  %v18750_v7 = vpop.f32.mrb[90].mxu0 }
 0xf62   :  { %20229 = vmatpush3.bf16.msra.mxu1 %v24177_v9  ;;  %v11410_v56 = vpop.f32.mrb[91].mxu0  ;;  %18584 = vmatprep.mubr.msk.f32.mxu1 %vm325_vm1, %v24390_v38 }
 0xf63   :  { %v24394_v45 = vpack.c.bf16 %v18750_v7, %v11410_v56  ;;  %20239 = vmatprep.subr.bf16.mxu1 %v24179_v53  ;;  %v24508_v56 = vld [vmem:[%s25147_s1 + $0x128] sm:$0xff] }
 0xf65   :  { %18585 = vmatmul.mubr.msk.f32.vlgmr.msra.gmra.mrb[50].mxu1 %vm325_vm1, %v24400_v20  ;;  %v18753_v9 = vpop.f32.mrb[92].mxu0 }
 0xf66   :  { %20241 = vmatpush3.bf16.msra.mxu1 %v24179_v53  ;;  %v11420_v11 = vpop.f32.mrb[93].mxu0  ;;  %18587 = vmatprep.mubr.msk.f32.mxu1 %vm325_vm1, %v24408_v44 }
 0xf67   :  { %v24412_v37 = vpack.c.bf16 %v18753_v9, %v11420_v11  ;;  %20243 = vmatprep.subr.bf16.mxu1 %v24195_v55  ;;  %v24516_v11 = vld [vmem:[%s25147_s1 + $0x130] sm:$0xff] }
 0xf69   :  { %18588 = vmatmul.mubr.msk.f32.gmra.mrb[52].mxu1 %vm325_vm1, %v24418_v50  ;;  %v18756_v53 = vpop.f32.mrb[94].mxu0 }
 0xf6a   :  { %20245 = vmatpush3.bf16.msra.mxu1 %v24195_v55  ;;  %v11430_v36 = vpop.f32.mrb[95].mxu0  ;;  %18590 = vmatprep.mubr.msk.f32.mxu1 %vm325_vm1, %v24426_v19 }
 0xf6b   :  { %v24430_v1 = vpack.c.bf16 %v18756_v53, %v11430_v36  ;;  %20247 = vmatprep.subr.bf16.mxu1 %v24211_v31  ;;  %v24526_v36 = vld [vmem:[%s25147_s1 + $0x138] sm:$0xff] }
 0xf6d   :  { %18591 = vmatmul.mubr.msk.f32.gmra.mrb[54].mxu1 %vm325_vm1, %v24436_v29  ;;  %v18759_v55 = vpop.f32.mrb[96].mxu0 }
 0xf6e   :  { %20249 = vmatpush3.bf16.msra.mxu1 %v24211_v31  ;;  %v11440_v32 = vpop.f32.mrb[97].mxu0  ;;  %18593 = vmatprep.mubr.msk.f32.mxu1 %vm325_vm1, %v24444_v6 }
 0xf6f   :  { %v24448_v59 = vpack.c.bf16 %v18759_v55, %v11440_v32  ;;  %20251 = vmatprep.subr.bf16.mxu1 %v24229_v41  ;;  %v24542_v55 = vld [vmem:[%s25147_s1 + $0x148] sm:$0xff]  ;;  %v24558_v32 = vld [vmem:[%s25147_s1 + $0x158] sm:$0xff] }
 0xf71   :  { %18594 = vmatmul.mubr.msk.f32.gmra.mrb[56].mxu1 %vm325_vm1, %v24454_v24  ;;  %v18798_v31 = vpop.f32.mrb[98].mxu0 }
 0xf72   :  { %20253 = vmatpush3.bf16.msra.mxu1 %v24229_v41  ;;  %v11633_v2 = vpop.f32.mrb[99].mxu0  ;;  %18632 = vmatprep.mubr.msk.f32.mxu1 %vm325_vm1, %v24462_v21 }
 0xf73   :  { %v24466_v22 = vpack.c.bf16 %v18798_v31, %v11633_v2  ;;  %20263 = vmatprep.subr.bf16.mxu1 %v24250_v40  ;;  %v24574_v31 = vld [vmem:[%s25147_s1 + $0x168] sm:$0xff]  ;;  %v24590_v2 = vld [vmem:[%s25147_s1 + $0x178] sm:$0xff] }
 0xf74   :  { %25341 = vst [vmem:[#allocation11_spill] sm:$0xff] %v24574_v31  ;;  %25343 = vst [vmem:[#allocation13_spill] sm:$0xff] %v24590_v2 }
 0xf75   :  { %18633 = vmatmul.mubr.msk.f32.vlgmr.msra.gmra.mrb[50].mxu1 %vm325_vm1, %v24472_v46  ;;  %v18801_v41 = vpop.f32.mrb[100].mxu0 }
 0xf76   :  { %20265 = vmatpush3.bf16.msra.mxu1 %v24250_v40  ;;  %v11643_v23 = vpop.f32.mrb[101].mxu0  ;;  %18635 = vmatprep.mubr.msk.f32.mxu1 %vm325_vm1, %v24480_v5 }
 0xf77   :  { %v24484_v3 = vpack.c.bf16 %v18801_v41, %v11643_v23  ;;  %20267 = vmatprep.subr.bf16.mxu1 %v24268_v62  ;;  %v24606_v41 = vld [vmem:[%s25147_s1 + $0x188] sm:$0xff]  ;;  %v24622_v23 = vld [vmem:[%s25147_s1 + $0x198] sm:$0xff] }
 0xf78   :  { %25345 = vst [vmem:[#allocation15_spill] sm:$0xff] %v24606_v41  ;;  %25347 = vst [vmem:[#allocation17_spill] sm:$0xff] %v24622_v23 }
 0xf79   :  { %18636 = vmatmul.mubr.msk.f32.gmra.mrb[52].mxu1 %vm325_vm1, %v24490_v48  ;;  %v18804_v40 = vpop.f32.mrb[102].mxu0 }
 0xf7a   :  { %20269 = vmatpush3.bf16.msra.mxu1 %v24268_v62  ;;  %v11653_v43 = vpop.f32.mrb[103].mxu0  ;;  %18638 = vmatprep.mubr.msk.f32.mxu1 %vm325_vm1, %v24498_v10 }
 0xf7b   :  { %v24502_v7 = vpack.c.bf16 %v18804_v40, %v11653_v43  ;;  %20271 = vmatprep.subr.bf16.mxu1 %v24286_v35  ;;  %v24638_v40 = vld [vmem:[%s25147_s1 + $0x1a8] sm:$0xff]  ;;  %v24654_v43 = vld [vmem:[%s25147_s1 + $0x1b8] sm:$0xff] }
 0xf7c   :  { %25349 = vst [vmem:[#allocation19_spill] sm:$0xff] %v24638_v40  ;;  %25351 = vst [vmem:[#allocation21_spill] sm:$0xff] %v24654_v43 }
 0xf7d   :  { %18639 = vmatmul.mubr.msk.f32.gmra.mrb[54].mxu1 %vm325_vm1, %v24508_v56  ;;  %v18807_v62 = vpop.f32.mrb[104].mxu0 }
 0xf7e   :  { %20273 = vmatpush3.bf16.msra.mxu1 %v24286_v35  ;;  %v11663_v9 = vpop.f32.mrb[105].mxu0  ;;  %18641 = vmatprep.mubr.msk.f32.mxu1 %vm325_vm1, %v24516_v11  ;;  %v24534_v35 = vld [vmem:[%s25147_s1 + $0x140] sm:$0xff] }
 0xf7f   :  { %v24520_v53 = vpack.c.bf16 %v18807_v62, %v11663_v9  ;;  %20275 = vmatprep.subr.bf16.mxu1 %v24304_v18  ;;  %v24670_v62 = vld [vmem:[%s25147_s1 + $0x1c8] sm:$0xff]  ;;  %v24686_v9 = vld [vmem:[%s25147_s1 + $0x1d8] sm:$0xff] }
 0xf80   :  { %25353 = vst [vmem:[#allocation23_spill] sm:$0xff] %v24670_v62  ;;  %25355 = vst [vmem:[#allocation25_spill] sm:$0xff] %v24686_v9 }
 0xf81   :  { %18642 = vmatmul.mubr.msk.f32.gmra.mrb[56].mxu1 %vm325_vm1, %v24526_v36 }
 0xf82   :  { %20277 = vmatpush3.bf16.msra.mxu1 %v24304_v18  ;;  %18680 = vmatprep.mubr.msk.f32.mxu1 %vm325_vm1, %v24534_v35  ;;  %v24550_v18 = vld [vmem:[%s25147_s1 + $0x150] sm:$0xff] }
 0xf83   :  { %20287 = vmatprep.subr.bf16.mxu1 %v24322_v14 }
 0xf85   :  { %18681 = vmatmul.mubr.msk.f32.vlgmr.msra.gmra.mrb[50].mxu1 %vm325_vm1, %v24542_v55 }
 0xf86   :  { %20289 = vmatpush3.bf16.msra.mxu1 %v24322_v14  ;;  %18683 = vmatprep.mubr.msk.f32.mxu1 %vm325_vm1, %v24550_v18  ;;  %v24566_v14 = vld [vmem:[%s25147_s1 + $0x160] sm:$0xff] }
 0xf87   :  { %20291 = vmatprep.subr.bf16.mxu1 %v24340_v39  ;;  %25340 = vst [vmem:[#allocation10_spill] sm:$0xff] %v24566_v14 }
 0xf89   :  { %18684 = vmatmul.mubr.msk.f32.gmra.mrb[52].mxu1 %vm325_vm1, %v24558_v32 }
 0xf8a   :  { %20293 = vmatpush3.bf16.msra.mxu1 %v24340_v39  ;;  %18686 = vmatprep.mubr.msk.f32.mxu1 %vm325_vm1, %v24566_v14  ;;  %v24582_v39 = vld [vmem:[%s25147_s1 + $0x170] sm:$0xff] }
 0xf8b   :  { %20295 = vmatprep.subr.bf16.mxu1 %v24358_v60  ;;  %25342 = vst [vmem:[#allocation12_spill] sm:$0xff] %v24582_v39 }
 0xf8d   :  { %18687 = vmatmul.mubr.msk.f32.gmra.mrb[54].mxu1 %vm325_vm1, %v24574_v31 }
 0xf8e   :  { %20297 = vmatpush3.bf16.msra.mxu1 %v24358_v60  ;;  %18689 = vmatprep.mubr.msk.f32.mxu1 %vm325_vm1, %v24582_v39  ;;  %v24598_v60 = vld [vmem:[%s25147_s1 + $0x180] sm:$0xff] }
 0xf8f   :  { %20299 = vmatprep.subr.bf16.mxu1 %v24376_v27  ;;  %25344 = vst [vmem:[#allocation14_spill] sm:$0xff] %v24598_v60 }
 0xf91   :  { %18690 = vmatmul.mubr.msk.f32.gmra.mrb[56].mxu1 %vm325_vm1, %v24590_v2 }
 0xf92   :  { %20301 = vmatpush3.bf16.msra.mxu1 %v24376_v27  ;;  %18728 = vmatprep.mubr.msk.f32.mxu1 %vm325_vm1, %v24598_v60  ;;  %v24614_v27 = vld [vmem:[%s25147_s1 + $0x190] sm:$0xff] }
 0xf93   :  { %20311 = vmatprep.subr.bf16.mxu1 %v24394_v45  ;;  %25346 = vst [vmem:[#allocation16_spill] sm:$0xff] %v24614_v27 }
 0xf95   :  { %18729 = vmatmul.mubr.msk.f32.vlgmr.msra.gmra.mrb[50].mxu1 %vm325_vm1, %v24606_v41 }
 0xf96   :  { %20313 = vmatpush3.bf16.msra.mxu1 %v24394_v45  ;;  %18731 = vmatprep.mubr.msk.f32.mxu1 %vm325_vm1, %v24614_v27  ;;  %v24630_v45 = vld [vmem:[%s25147_s1 + $0x1a0] sm:$0xff] }
 0xf97   :  { %20315 = vmatprep.subr.bf16.mxu1 %v24412_v37  ;;  %25348 = vst [vmem:[#allocation18_spill] sm:$0xff] %v24630_v45 }
 0xf99   :  { %18732 = vmatmul.mubr.msk.f32.gmra.mrb[52].mxu1 %vm325_vm1, %v24622_v23 }
 0xf9a   :  { %20317 = vmatpush3.bf16.msra.mxu1 %v24412_v37  ;;  %18734 = vmatprep.mubr.msk.f32.mxu1 %vm325_vm1, %v24630_v45  ;;  %v24646_v37 = vld [vmem:[%s25147_s1 + $0x1b0] sm:$0xff] }
 0xf9b   :  { %20319 = vmatprep.subr.bf16.mxu1 %v24430_v1  ;;  %25350 = vst [vmem:[#allocation20_spill] sm:$0xff] %v24646_v37 }
 0xf9d   :  { %18735 = vmatmul.mubr.msk.f32.gmra.mrb[54].mxu1 %vm325_vm1, %v24638_v40 }
 0xf9e   :  { %20321 = vmatpush3.bf16.msra.mxu1 %v24430_v1  ;;  %18737 = vmatprep.mubr.msk.f32.mxu1 %vm325_vm1, %v24646_v37  ;;  %v24662_v1 = vld [vmem:[%s25147_s1 + $0x1c0] sm:$0xff] }
 0xf9f   :  { %20323 = vmatprep.subr.bf16.mxu1 %v24448_v59  ;;  %25352 = vst [vmem:[#allocation22_spill] sm:$0xff] %v24662_v1 }
 0xfa1   :  { %18738 = vmatmul.mubr.msk.f32.gmra.mrb[56].mxu1 %vm325_vm1, %v24654_v43 }
 0xfa2   :  { %20325 = vmatpush3.bf16.msra.mxu1 %v24448_v59  ;;  %18776 = vmatprep.mubr.msk.f32.mxu1 %vm325_vm1, %v24662_v1  ;;  %v24678_v59 = vld [vmem:[%s25147_s1 + $0x1d0] sm:$0xff] }
 0xfa3   :  { %20335 = vmatprep.subr.bf16.mxu1 %v24466_v22  ;;  %25354 = vst [vmem:[#allocation24_spill] sm:$0xff] %v24678_v59 }
 0xfa5   :  { %18777 = vmatmul.mubr.msk.f32.vlgmr.msra.gmra.mrb[50].mxu1 %vm325_vm1, %v24670_v62 }
 0xfa6   :  { %20337 = vmatpush3.bf16.msra.mxu1 %v24466_v22  ;;  %18779 = vmatprep.mubr.msk.f32.mxu1 %vm325_vm1, %v24678_v59  ;;  %v24694_v22 = vld [vmem:[%s25147_s1 + $0x1e0] sm:$0xff]  ;;  %v24702_v59 = vld [vmem:[%s25147_s1 + $0x1e8] sm:$0xff] }
 0xfa7   :  { %20339 = vmatprep.subr.bf16.mxu1 %v24484_v3  ;;  %25356 = vst [vmem:[#allocation26_spill] sm:$0xff] %v24694_v22  ;;  %25357 = vst [vmem:[#allocation27_spill] sm:$0xff] %v24702_v59 }
 0xfa9   :  { %18780 = vmatmul.mubr.msk.f32.gmra.mrb[52].mxu1 %vm325_vm1, %v24686_v9  ;;  %v24761_v9 = vld [vmem:[%s25147_s1 + $0x228] sm:$0xff] }
 0xfaa   :  { %20341 = vmatpush3.bf16.msra.mxu1 %v24484_v3  ;;  %18782 = vmatprep.mubr.msk.f32.mxu1 %vm325_vm1, %v24694_v22  ;;  %v24710_v3 = vld [vmem:[%s25147_s1 + $0x1f0] sm:$0xff]  ;;  %v24718_v22 = vld [vmem:[%s25147_s1 + $0x1f8] sm:$0xff]  ;;  %25364 = vst [vmem:[#allocation7_spill] sm:$0xff] %v24761_v9 }
 0xfab   :  { %20343 = vmatprep.subr.bf16.mxu1 %v24502_v7  ;;  %25358 = vst [vmem:[#allocation28_spill] sm:$0xff] %v24710_v3  ;;  %25359 = vst [vmem:[#allocation29_spill] sm:$0xff] %v24718_v22 }
 0xfad   :  { %18783 = vmatmul.mubr.msk.f32.gmra.mrb[54].mxu1 %vm325_vm1, %v24702_v59  ;;  %v24754_v59 = vld [vmem:[%s25147_s1 + $0x220] sm:$0xff] }
 0xfae   :  { %20345 = vmatpush3.bf16.msra.mxu1 %v24502_v7  ;;  %18785 = vmatprep.mubr.msk.f32.mxu1 %vm325_vm1, %v24710_v3  ;;  %v24726_v7 = vld [vmem:[%s25147_s1 + $0x200] sm:$0xff]  ;;  %v24733_v3 = vld [vmem:[%s25147_s1 + $0x208] sm:$0xff]  ;;  %25363 = vst [vmem:[#allocation4_spill] sm:$0xff] %v24754_v59 }
 0xfaf   :  { %20347 = vmatprep.subr.bf16.mxu1 %v24520_v53  ;;  %25360 = vst [vmem:[#allocation3_spill] sm:$0xff] %v24733_v3 }
 0xfb1   :  { %18786 = vmatmul.mubr.msk.f32.gmra.mrb[56].mxu1 %vm325_vm1, %v24718_v22  ;;  %v24747_v22 = vld [vmem:[%s25147_s1 + $0x218] sm:$0xff] }
 0xfb2   :  { %20349 = vmatpush3.bf16.msra.mxu1 %v24520_v53  ;;  %18824 = vmatprep.mubr.msk.f32.mxu1 %vm325_vm1, %v24726_v7  ;;  %v24740_v53 = vld [vmem:[%s25147_s1 + $0x210] sm:$0xff]  ;;  %25362 = vst [vmem:[#allocation5_spill] sm:$0xff] %v24747_v22 }
 0xfb3   :  { %25361 = vst [vmem:[#allocation2_spill] sm:$0xff] %v24740_v53 }
 0xfb5   :  { %18825 = vmatmul.mubr.msk.f32.vlgmr.msra.gmra.mrb[50].mxu1 %vm325_vm1, %v24733_v3 }
 0xfb6   :  { %18827 = vmatprep.mubr.msk.f32.mxu1 %vm325_vm1, %v24740_v53 }
 0xfb9   :  { %18828 = vmatmul.mubr.msk.f32.gmra.mrb[52].mxu1 %vm325_vm1, %v24747_v22  ;;  %v24768_v22 = vld [vmem:[%s25147_s1 + $0x230] sm:$0xff] }
 0xfba   :  { %18830 = vmatprep.mubr.msk.f32.mxu1 %vm325_vm1, %v24754_v59  ;;  %25365 = vst [vmem:[#allocation6_spill] sm:$0xff] %v24768_v22  ;;  %v24775_v59 = vld [vmem:[%s25147_s1 + $0x238] sm:$0xff] }
 0xfbb   :  { %25366 = vst [vmem:[#allocation9_spill] sm:$0xff] %v24775_v59 }
 0xfbd   :  { %18831 = vmatmul.mubr.msk.f32.gmra.mrb[54].mxu1 %vm325_vm1, %v24761_v9  ;;  %v14866_v9 = vld [vmem:[%s25159_s15 + $0x8] sm:$0xff] }
 0xfbe   :  { %18833 = vmatprep.mubr.msk.f32.mxu1 %vm325_vm1, %v24768_v22  ;;  %18850 = vmatprep.subr.mxu0 %v14866_v9  ;;  %v14857_v22 = vld [vmem:[%s25160_s14] ss:$0 sm:$0xff] }
 0xfc1   :  { %18834 = vmatmul.mubr.msk.f32.gmra.mrb[56].mxu1 %vm325_vm1, %v24775_v59 }
 0xfc2   :  { %18880 = vmatprep.mubr.msk.f32.mxu1 %vm325_vm1, %v24041_v17 }
0x1088   :  { %v18826_v53 = vpop.f32.mrb[50].mxu1 }
0x1089   :  { %v11793_v3 = vadd.f32 %v18826_v53, %v14857_v22  ;;  %v11738_v62 = vpop.f32.mrb[51].mxu1 }
0x108a   :  { %v11792_v1 = vadd.f32 %v14857_v22, %v11738_v62  ;;  %v14891_v62 = vld [vmem:[%s25159_s15 + $0x10] sm:$0xff] }
0x108b   :  { %v11809_v43 = vmul.f32 0.01, %v11793_v3  ;;  %vm11801_vm7 = vcmp.ge.f32.partialorder %v11793_v3, 0.0 }
0x108c   :  { %vm11800_vm8 = vcmp.ge.f32.partialorder %v11792_v1, 0.0  ;;  %v11808_v59 = vmul.f32 0.01, %v11792_v1  ;;  %v18829_v37 = vpop.f32.mrb[52].mxu1 }
0x108d   :  { %v11795_v17 = vadd.f32 %v18829_v37, %v14857_v22  ;;  %v11748_v40 = vpop.f32.mrb[53].mxu1  ;;  %v24789_v27 = vsel %vm11801_vm7, %v11793_v3, %v11809_v43 }
0x108e   :  { %v24787_v45 = vsel %vm11800_vm8, %v11792_v1, %v11808_v59  ;;  %v11794_v23 = vadd.f32 %v14857_v22, %v11748_v40 }
0x108f   :  { %v11811_v41 = vmul.f32 0.01, %v11795_v17  ;;  %18838 = vmatprep.mubr.msk.f32.mxu0 %vm11825_vm9, %v24787_v45  ;;  %vm11803_vm10 = vcmp.ge.f32.partialorder %v11795_v17, 0.0 }
0x1090   :  { %vm11802_vm11 = vcmp.ge.f32.partialorder %v11794_v23, 0.0  ;;  %v11810_v53 = vmul.f32 0.01, %v11794_v23  ;;  %v18832_v60 = vpop.f32.mrb[54].mxu1  ;;  %18839 = vmatmul.mubr.msk.f32.vlgmr.msra.gmra.mrb[106].mxu0 %vm11825_vm9, %v24789_v27 }
0x1091   :  { %v11797_v37 = vadd.f32 %v18832_v60, %v14857_v22  ;;  %v11758_v1 = vpop.f32.mrb[55].mxu1  ;;  %18851 = vmatpush3.msra.mxu0 %v14866_v9  ;;  %v24800_v59 = vsel %vm11803_vm10, %v11795_v17, %v11811_v41 }
0x1092   :  { %v24798_v40 = vsel %vm11802_vm11, %v11794_v23, %v11810_v53  ;;  %v11796_v43 = vadd.f32 %v14857_v22, %v11758_v1  ;;  %18920 = vmatprep.subr.mxu0 %v14891_v62 }
0x1093   :  { %v11813_v3 = vmul.f32 0.01, %v11797_v37  ;;  %18841 = vmatprep.mubr.msk.f32.mxu0 %vm11825_vm9, %v24798_v40  ;;  %vm11805_vm12 = vcmp.ge.f32.partialorder %v11797_v37, 0.0 }
0x1094   :  { %vm11804_vm13 = vcmp.ge.f32.partialorder %v11796_v43, 0.0  ;;  %v11812_v2 = vmul.f32 0.01, %v11796_v43  ;;  %v18835_v39 = vpop.f32.mrb[56].mxu1  ;;  %18842 = vmatmul.mubr.msk.f32.gmra.mrb[108].mxu0 %vm11825_vm9, %v24800_v59 }
0x1095   :  { %v11799_v60 = vadd.f32 %v18835_v39, %v14857_v22  ;;  %v11768_v31 = vpop.f32.mrb[57].mxu1  ;;  %v24808_v53 = vsel %vm11805_vm12, %v11797_v37, %v11813_v3  ;;  %v14925_v39 = vld [vmem:[%s25159_s15 + $0x20] sm:$0xff] }
0x1096   :  { %v24806_v9 = vsel %vm11804_vm13, %v11796_v43, %v11812_v2  ;;  %v11798_v23 = vadd.f32 %v14857_v22, %v11768_v31  ;;  %v14908_v31 = vld [vmem:[%s25159_s15 + $0x18] sm:$0xff]  ;;  %v14942_v2 = vld [vmem:[%s25159_s15 + $0x28] sm:$0xff]  ;;  %v14959_v22 = vld [vmem:[%s25159_s15 + $0x30] sm:$0xff] }
0x1097   :  { %v11815_v41 = vmul.f32 0.01, %v11799_v60  ;;  %18844 = vmatprep.mubr.msk.f32.mxu0 %vm11825_vm9, %v24806_v9  ;;  %vm11807_vm14 = vcmp.ge.f32.partialorder %v11799_v60, 0.0  ;;  %v14993_v37 = vld [vmem:[%s25159_s15 + $0x40] sm:$0xff] }
0x1098   :  { %vm11806_vm15 = vcmp.ge.f32.partialorder %v11798_v23, 0.0  ;;  %v11814_v17 = vmul.f32 0.01, %v11798_v23  ;;  %18845 = vmatmul.mubr.msk.f32.gmra.mrb[110].mxu0 %vm11825_vm9, %v24808_v53 }
0x1099   :  { %v24816_v14 = vsel %vm11807_vm14, %v11799_v60, %v11815_v41 }
0x109a   :  { %v24814_v1 = vsel %vm11806_vm15, %v11798_v23, %v11814_v17 }
0x109b   :  { %18847 = vmatprep.mubr.msk.f32.mxu0 %vm11825_vm9, %v24814_v1 }
0x109c   :  { %18848 = vmatmul.mubr.msk.f32.gmra.mrb[112].mxu0 %vm11825_vm9, %v24816_v14 }
0x109d   :  { %18852 = vmatprep.mubr.msk.f32.mxu0 %vm11825_vm9, %v24787_v45 }
0x10a0   :  { %18853 = vmatmul.mubr.msk.f32.vlgmr.msra.gmra.mrb[114].mxu0 %vm11825_vm9, %v24789_v27 }
0x10a1   :  { %18855 = vmatprep.mubr.msk.f32.mxu0 %vm11825_vm9, %v24798_v40  ;;  %18921 = vmatpush3.msra.mxu0 %v14891_v62  ;;  %v14976_v62 = vld [vmem:[%s25159_s15 + $0x38] sm:$0xff] }
0x10a2   :  { %18962 = vmatprep.subr.mxu0 %v14908_v31 }
0x10a4   :  { %18856 = vmatmul.mubr.msk.f32.gmra.mrb[116].mxu0 %vm11825_vm9, %v24800_v59 }
0x10a5   :  { %18858 = vmatprep.mubr.msk.f32.mxu0 %vm11825_vm9, %v24806_v9 }
0x10a8   :  { %18859 = vmatmul.mubr.msk.f32.gmra.mrb[118].mxu0 %vm11825_vm9, %v24808_v53 }
0x10a9   :  { %18861 = vmatprep.mubr.msk.f32.mxu0 %vm11825_vm9, %v24814_v1 }
0x10ac   :  { %18862 = vmatmul.mubr.msk.f32.gmra.mrb[120].mxu0 %vm11825_vm9, %v24816_v14 }
0x10ad   :  { %18922 = vmatprep.mubr.msk.f32.mxu0 %vm11825_vm9, %v24787_v45 }
0x10b0   :  { %18923 = vmatmul.mubr.msk.f32.vlgmr.msra.gmra.mrb[122].mxu0 %vm11825_vm9, %v24789_v27 }
0x10b1   :  { %18925 = vmatprep.mubr.msk.f32.mxu0 %vm11825_vm9, %v24798_v40  ;;  %18963 = vmatpush3.msra.mxu0 %v14908_v31 }
0x10b2   :  { %19004 = vmatprep.subr.mxu0 %v14925_v39 }
0x10b4   :  { %18926 = vmatmul.mubr.msk.f32.gmra.mrb[124].mxu0 %vm11825_vm9, %v24800_v59 }
0x10b5   :  { %18928 = vmatprep.mubr.msk.f32.mxu0 %vm11825_vm9, %v24806_v9 }
0x10b8   :  { %18929 = vmatmul.mubr.msk.f32.gmra.mrb[126].mxu0 %vm11825_vm9, %v24808_v53 }
0x10b9   :  { %18931 = vmatprep.mubr.msk.f32.mxu0 %vm11825_vm9, %v24814_v1 }
0x10bc   :  { %18932 = vmatmul.mubr.msk.f32.gmra.mrb[128].mxu0 %vm11825_vm9, %v24816_v14 }
0x10bd   :  { %18964 = vmatprep.mubr.msk.f32.mxu0 %vm11825_vm9, %v24787_v45 }
0x10c0   :  { %18965 = vmatmul.mubr.msk.f32.vlgmr.msra.gmra.mrb[130].mxu0 %vm11825_vm9, %v24789_v27 }
0x10c1   :  { %18967 = vmatprep.mubr.msk.f32.mxu0 %vm11825_vm9, %v24798_v40  ;;  %19005 = vmatpush3.msra.mxu0 %v14925_v39 }
0x10c2   :  { %19046 = vmatprep.subr.mxu0 %v14942_v2 }
0x10c4   :  { %18968 = vmatmul.mubr.msk.f32.gmra.mrb[132].mxu0 %vm11825_vm9, %v24800_v59 }
0x10c5   :  { %18970 = vmatprep.mubr.msk.f32.mxu0 %vm11825_vm9, %v24806_v9 }
0x10c8   :  { %18971 = vmatmul.mubr.msk.f32.gmra.mrb[134].mxu0 %vm11825_vm9, %v24808_v53 }
0x10c9   :  { %18973 = vmatprep.mubr.msk.f32.mxu0 %vm11825_vm9, %v24814_v1 }
0x10cc   :  { %18974 = vmatmul.mubr.msk.f32.gmra.mrb[136].mxu0 %vm11825_vm9, %v24816_v14 }
0x10cd   :  { %19006 = vmatprep.mubr.msk.f32.mxu0 %vm11825_vm9, %v24787_v45 }
0x10d0   :  { %19007 = vmatmul.mubr.msk.f32.vlgmr.msra.gmra.mrb[138].mxu0 %vm11825_vm9, %v24789_v27 }
0x10d1   :  { %19009 = vmatprep.mubr.msk.f32.mxu0 %vm11825_vm9, %v24798_v40  ;;  %19047 = vmatpush3.msra.mxu0 %v14942_v2 }
0x10d2   :  { %19088 = vmatprep.subr.mxu0 %v14959_v22 }
0x10d4   :  { %19010 = vmatmul.mubr.msk.f32.gmra.mrb[140].mxu0 %vm11825_vm9, %v24800_v59 }
0x10d5   :  { %19012 = vmatprep.mubr.msk.f32.mxu0 %vm11825_vm9, %v24806_v9 }
0x10d8   :  { %19013 = vmatmul.mubr.msk.f32.gmra.mrb[142].mxu0 %vm11825_vm9, %v24808_v53 }
0x10d9   :  { %19015 = vmatprep.mubr.msk.f32.mxu0 %vm11825_vm9, %v24814_v1 }
0x10dc   :  { %19016 = vmatmul.mubr.msk.f32.gmra.mrb[144].mxu0 %vm11825_vm9, %v24816_v14 }
0x10dd   :  { %19048 = vmatprep.mubr.msk.f32.mxu0 %vm11825_vm9, %v24787_v45 }
0x10e0   :  { %19049 = vmatmul.mubr.msk.f32.vlgmr.msra.gmra.mrb[146].mxu0 %vm11825_vm9, %v24789_v27 }
0x10e1   :  { %19051 = vmatprep.mubr.msk.f32.mxu0 %vm11825_vm9, %v24798_v40  ;;  %19089 = vmatpush3.msra.mxu0 %v14959_v22 }
0x10e2   :  { %19130 = vmatprep.subr.mxu0 %v14976_v62 }
0x10e4   :  { %19052 = vmatmul.mubr.msk.f32.gmra.mrb[148].mxu0 %vm11825_vm9, %v24800_v59 }
0x10e5   :  { %19054 = vmatprep.mubr.msk.f32.mxu0 %vm11825_vm9, %v24806_v9 }
0x10e8   :  { %19055 = vmatmul.mubr.msk.f32.gmra.mrb[150].mxu0 %vm11825_vm9, %v24808_v53 }
0x10e9   :  { %19057 = vmatprep.mubr.msk.f32.mxu0 %vm11825_vm9, %v24814_v1 }
0x10ec   :  { %19058 = vmatmul.mubr.msk.f32.gmra.mrb[152].mxu0 %vm11825_vm9, %v24816_v14 }
0x10ed   :  { %19090 = vmatprep.mubr.msk.f32.mxu0 %vm11825_vm9, %v24787_v45 }
0x10f0   :  { %19091 = vmatmul.mubr.msk.f32.vlgmr.msra.gmra.mrb[154].mxu0 %vm11825_vm9, %v24789_v27 }
0x10f1   :  { %19093 = vmatprep.mubr.msk.f32.mxu0 %vm11825_vm9, %v24798_v40  ;;  %19131 = vmatpush3.msra.mxu0 %v14976_v62 }
0x10f2   :  { %19172 = vmatprep.subr.mxu0 %v14993_v37 }
0x10f4   :  { %19094 = vmatmul.mubr.msk.f32.gmra.mrb[156].mxu0 %vm11825_vm9, %v24800_v59 }
0x10f5   :  { %19096 = vmatprep.mubr.msk.f32.mxu0 %vm11825_vm9, %v24806_v9 }
0x10f8   :  { %19097 = vmatmul.mubr.msk.f32.gmra.mrb[158].mxu0 %vm11825_vm9, %v24808_v53 }
0x10f9   :  { %19099 = vmatprep.mubr.msk.f32.mxu0 %vm11825_vm9, %v24814_v1 }
0x10fc   :  { %19100 = vmatmul.mubr.msk.f32.gmra.mrb[160].mxu0 %vm11825_vm9, %v24816_v14 }
0x10fd   :  { %19132 = vmatprep.mubr.msk.f32.mxu0 %vm11825_vm9, %v24787_v45 }
0x1100   :  { %19133 = vmatmul.mubr.msk.f32.vlgmr.msra.gmra.mrb[162].mxu0 %vm11825_vm9, %v24789_v27 }
0x1101   :  { %19135 = vmatprep.mubr.msk.f32.mxu0 %vm11825_vm9, %v24798_v40  ;;  %19173 = vmatpush3.msra.mxu0 %v14993_v37 }
0x1104   :  { %19136 = vmatmul.mubr.msk.f32.gmra.mrb[164].mxu0 %vm11825_vm9, %v24800_v59 }
0x1105   :  { %19138 = vmatprep.mubr.msk.f32.mxu0 %vm11825_vm9, %v24806_v9 }
0x1108   :  { %19139 = vmatmul.mubr.msk.f32.gmra.mrb[166].mxu0 %vm11825_vm9, %v24808_v53 }
0x1109   :  { %19141 = vmatprep.mubr.msk.f32.mxu0 %vm11825_vm9, %v24814_v1 }
0x110c   :  { %19142 = vmatmul.mubr.msk.f32.gmra.mrb[168].mxu0 %vm11825_vm9, %v24816_v14 }
0x110d   :  { %19174 = vmatprep.mubr.msk.f32.mxu0 %vm11825_vm9, %v24787_v45 }
0x1110   :  { %19175 = vmatmul.mubr.msk.f32.vlgmr.msra.gmra.mrb[170].mxu0 %vm11825_vm9, %v24789_v27 }
0x1111   :  { %19177 = vmatprep.mubr.msk.f32.mxu0 %vm11825_vm9, %v24798_v40 }
0x1114   :  { %19178 = vmatmul.mubr.msk.f32.gmra.mrb[172].mxu0 %vm11825_vm9, %v24800_v59 }
0x1115   :  { %19180 = vmatprep.mubr.msk.f32.mxu0 %vm11825_vm9, %v24806_v9 }
0x1118   :  { %19181 = vmatmul.mubr.msk.f32.gmra.mrb[174].mxu0 %vm11825_vm9, %v24808_v53 }
0x1119   :  { %19183 = vmatprep.mubr.msk.f32.mxu0 %vm11825_vm9, %v24814_v1 }
0x111c   :  { %19184 = vmatmul.mubr.msk.f32.gmra.mrb[176].mxu0 %vm11825_vm9, %v24816_v14 }
0x111d   :  { %19202 = vmatprep.mubr.msk.f32.mxu0 %vm325_vm1, %v24726_v7 }
0x1163   :  { %v18840_v27 = vpop.f32.mrb[106].mxu0 }
0x1164   :  { %v11916_v45 = vpop.f32.mrb[107].mxu0 }
0x1165   :  { %v20366_v40 = vpack.c.bf16 %v18840_v27, %v11916_v45 }
0x1167   :  { %v18843_v43 = vpop.f32.mrb[108].mxu0 }
0x1168   :  { %v11926_v59 = vpop.f32.mrb[109].mxu0 }
0x1169   :  { %v20370_v3 = vpack.c.bf16 %v18843_v43, %v11926_v59 }
0x116b   :  { %v18846_v60 = vpop.f32.mrb[110].mxu0 }
0x116c   :  { %v11936_v9 = vpop.f32.mrb[111].mxu0 }
0x116d   :  { %v20374_v23 = vpack.c.bf16 %v18846_v60, %v11936_v9 }
0x116f   :  { %v18849_v41 = vpop.f32.mrb[112].mxu0 }
0x1170   :  { %v11946_v53 = vpop.f32.mrb[113].mxu0 }
0x1171   :  { %v20378_v17 = vpack.c.bf16 %v18849_v41, %v11946_v53 }
0x1173   :  { %v18854_v31 = vpop.f32.mrb[114].mxu0 }
0x1174   :  { %v12023_v1 = vpop.f32.mrb[115].mxu0 }
0x1175   :  { %v20350_v39 = vpack.c.bf16 %v18854_v31, %v12023_v1 }
0x1177   :  { %v18857_v2 = vpop.f32.mrb[116].mxu0  ;;  %20351 = vmatprep.subr.bf16.mxu1 %v20350_v39 }
0x1178   :  { %v12033_v14 = vpop.f32.mrb[117].mxu0  ;;  %20353 = vmatpush3.bf16.msra.mxu1 %v20350_v39 }
0x1179   :  { %v20354_v7 = vpack.c.bf16 %v18857_v2, %v12033_v14 }
0x117b   :  { %v18860_v22 = vpop.f32.mrb[118].mxu0  ;;  %20355 = vmatprep.subr.bf16.mxu1 %v20354_v7 }
0x117c   :  { %v12043_v62 = vpop.f32.mrb[119].mxu0  ;;  %20357 = vmatpush3.bf16.msra.mxu1 %v20354_v7 }
0x117d   :  { %v20358_v37 = vpack.c.bf16 %v18860_v22, %v12043_v62 }
0x117f   :  { %v18863_v27 = vpop.f32.mrb[120].mxu0  ;;  %20359 = vmatprep.subr.bf16.mxu1 %v20358_v37 }
0x1180   :  { %v12053_v45 = vpop.f32.mrb[121].mxu0  ;;  %20361 = vmatpush3.bf16.msra.mxu1 %v20358_v37 }
0x1181   :  { %v20362_v43 = vpack.c.bf16 %v18863_v27, %v12053_v45 }
0x1183   :  { %20363 = vmatprep.subr.bf16.mxu1 %v20362_v43  ;;  %v18924_v59 = vpop.f32.mrb[122].mxu0 }
0x1184   :  { %20365 = vmatpush3.bf16.msra.mxu1 %v20362_v43  ;;  %v12340_v60 = vpop.f32.mrb[123].mxu0 }
0x1185   :  { %v20382_v9 = vpack.c.bf16 %v18924_v59, %v12340_v60  ;;  %20367 = vmatprep.subr.bf16.mxu1 %v20366_v40 }
0x1187   :  { %18881 = vmatmul.mubr.msk.f32.vlgmr.msra.gmra.mrb[58].mxu1 %vm325_vm1, %v24184_v61  ;;  %v18927_v41 = vpop.f32.mrb[124].mxu0 }
0x1188   :  { %20369 = vmatpush3.bf16.msra.mxu1 %v20366_v40  ;;  %v12350_v53 = vpop.f32.mrb[125].mxu0  ;;  %18883 = vmatprep.mubr.msk.f32.mxu1 %vm325_vm1, %v24191_v12 }
0x1189   :  { %v20386_v31 = vpack.c.bf16 %v18927_v41, %v12350_v53  ;;  %20371 = vmatprep.subr.bf16.mxu1 %v20370_v3 }
0x118b   :  { %18884 = vmatmul.mubr.msk.f32.gmra.mrb[60].mxu1 %vm325_vm1, %v24200_v8  ;;  %v18930_v1 = vpop.f32.mrb[126].mxu0 }
0x118c   :  { %20373 = vmatpush3.bf16.msra.mxu1 %v20370_v3  ;;  %v12360_v39 = vpop.f32.mrb[127].mxu0  ;;  %18886 = vmatprep.mubr.msk.f32.mxu1 %vm325_vm1, %v24207_v26 }
0x118d   :  { %v20390_v2 = vpack.c.bf16 %v18930_v1, %v12360_v39  ;;  %20375 = vmatprep.subr.bf16.mxu1 %v20374_v23 }
0x118f   :  { %18887 = vmatmul.mubr.msk.f32.gmra.mrb[62].mxu1 %vm325_vm1, %v24217_v51  ;;  %v18933_v61 = vpop.f32.mrb[128].mxu0 }
0x1190   :  { %20377 = vmatpush3.bf16.msra.mxu1 %v20374_v23  ;;  %v12370_v40 = vpop.f32.mrb[129].mxu0  ;;  %18889 = vmatprep.mubr.msk.f32.mxu1 %vm325_vm1, %v24225_v13 }
0x1191   :  { %v20394_v12 = vpack.c.bf16 %v18933_v61, %v12370_v40  ;;  %20379 = vmatprep.subr.bf16.mxu1 %v20378_v17 }
0x1193   :  { %18890 = vmatmul.mubr.msk.f32.gmra.mrb[64].mxu1 %vm325_vm1, %v24235_v33  ;;  %v18966_v8 = vpop.f32.mrb[130].mxu0 }
0x1194   :  { %20381 = vmatpush3.bf16.msra.mxu1 %v20378_v17  ;;  %v12560_v3 = vpop.f32.mrb[131].mxu0  ;;  %18908 = vmatprep.mubr.msk.f32.mxu1 %vm325_vm1, %v24243_v57 }
0x1195   :  { %v20398_v26 = vpack.c.bf16 %v18966_v8, %v12560_v3  ;;  %20383 = vmatprep.subr.bf16.mxu1 %v20382_v9 }
0x1197   :  { %18909 = vmatmul.mubr.msk.f32.vlgmr.msra.gmra.mrb[58].mxu1 %vm325_vm1, %v24256_v63  ;;  %v18969_v51 = vpop.f32.mrb[132].mxu0 }
0x1198   :  { %20385 = vmatpush3.bf16.msra.mxu1 %v20382_v9  ;;  %v12570_v23 = vpop.f32.mrb[133].mxu0  ;;  %18911 = vmatprep.mubr.msk.f32.mxu1 %vm325_vm1, %v24264_v25 }
0x1199   :  { %v20402_v13 = vpack.c.bf16 %v18969_v51, %v12570_v23  ;;  %20387 = vmatprep.subr.bf16.mxu1 %v20386_v31  ;;  %v25372_v23 = vld [vmem:[#allocation15_spill] sm:$0xff] }
0x119b   :  { %18912 = vmatmul.mubr.msk.f32.gmra.mrb[60].mxu1 %vm325_vm1, %v24274_v47  ;;  %v18972_v33 = vpop.f32.mrb[134].mxu0 }
0x119c   :  { %20389 = vmatpush3.bf16.msra.mxu1 %v20386_v31  ;;  %v12580_v17 = vpop.f32.mrb[135].mxu0  ;;  %18914 = vmatprep.mubr.msk.f32.mxu1 %vm325_vm1, %v24282_v28 }
0x119d   :  { %v20406_v57 = vpack.c.bf16 %v18972_v33, %v12580_v17  ;;  %20391 = vmatprep.subr.bf16.mxu1 %v20390_v2 }
0x119f   :  { %18915 = vmatmul.mubr.msk.f32.gmra.mrb[62].mxu1 %vm325_vm1, %v24292_v16  ;;  %v18975_v63 = vpop.f32.mrb[136].mxu0 }
0x11a0   :  { %20393 = vmatpush3.bf16.msra.mxu1 %v20390_v2  ;;  %v12590_v14 = vpop.f32.mrb[137].mxu0  ;;  %18917 = vmatprep.mubr.msk.f32.mxu1 %vm325_vm1, %v24300_v42 }
0x11a1   :  { %v20410_v25 = vpack.c.bf16 %v18975_v63, %v12590_v14  ;;  %20395 = vmatprep.subr.bf16.mxu1 %v20394_v12  ;;  %v25374_v63 = vld [vmem:[#allocation17_spill] sm:$0xff] }
0x11a3   :  { %18918 = vmatmul.mubr.msk.f32.gmra.mrb[64].mxu1 %vm325_vm1, %v24310_v15  ;;  %v19008_v47 = vpop.f32.mrb[138].mxu0 }
0x11a4   :  { %20397 = vmatpush3.bf16.msra.mxu1 %v20394_v12  ;;  %v12780_v7 = vpop.f32.mrb[139].mxu0  ;;  %18950 = vmatprep.mubr.msk.f32.mxu1 %vm325_vm1, %v24318_v54 }
0x11a5   :  { %v20414_v28 = vpack.c.bf16 %v19008_v47, %v12780_v7  ;;  %20399 = vmatprep.subr.bf16.mxu1 %v20398_v26  ;;  %v25375_v7 = vld [vmem:[#allocation18_spill] sm:$0xff] }
0x11a7   :  { %18951 = vmatmul.mubr.msk.f32.vlgmr.msra.gmra.mrb[58].mxu1 %vm325_vm1, %v24328_v49  ;;  %v19011_v16 = vpop.f32.mrb[140].mxu0 }
0x11a8   :  { %20401 = vmatpush3.bf16.msra.mxu1 %v20398_v26  ;;  %v12790_v22 = vpop.f32.mrb[141].mxu0  ;;  %18953 = vmatprep.mubr.msk.f32.mxu1 %vm325_vm1, %v24336_v52  ;;  %v25371_v26 = vld [vmem:[#allocation14_spill] sm:$0xff] }
0x11a9   :  { %v20418_v42 = vpack.c.bf16 %v19011_v16, %v12790_v22  ;;  %20403 = vmatprep.subr.bf16.mxu1 %v20402_v13 }
0x11ab   :  { %18954 = vmatmul.mubr.msk.f32.gmra.mrb[60].mxu1 %vm325_vm1, %v24346_v34  ;;  %v19014_v15 = vpop.f32.mrb[142].mxu0 }
0x11ac   :  { %20405 = vmatpush3.bf16.msra.mxu1 %v20402_v13  ;;  %v12800_v62 = vpop.f32.mrb[143].mxu0  ;;  %18956 = vmatprep.mubr.msk.f32.mxu1 %vm325_vm1, %v24354_v30 }
0x11ad   :  { %v20422_v54 = vpack.c.bf16 %v19014_v15, %v12800_v62  ;;  %20407 = vmatprep.subr.bf16.mxu1 %v20406_v57  ;;  %v25377_v15 = vld [vmem:[#allocation20_spill] sm:$0xff]  ;;  %v25378_v62 = vld [vmem:[#allocation21_spill] sm:$0xff] }
0x11af   :  { %18957 = vmatmul.mubr.msk.f32.gmra.mrb[62].mxu1 %vm325_vm1, %v24364_v0  ;;  %v19017_v49 = vpop.f32.mrb[144].mxu0 }
0x11b0   :  { %20409 = vmatpush3.bf16.msra.mxu1 %v20406_v57  ;;  %v12810_v37 = vpop.f32.mrb[145].mxu0  ;;  %18959 = vmatprep.mubr.msk.f32.mxu1 %vm325_vm1, %v24372_v4  ;;  %v25373_v57 = vld [vmem:[#allocation16_spill] sm:$0xff] }
0x11b1   :  { %v20426_v52 = vpack.c.bf16 %v19017_v49, %v12810_v37  ;;  %20411 = vmatprep.subr.bf16.mxu1 %v20410_v25  ;;  %v25380_v49 = vld [vmem:[#allocation23_spill] sm:$0xff] }
0x11b2   :  { %v25381_v37 = vld [vmem:[#allocation3_spill] sm:$0xff] }
0x11b3   :  { %18960 = vmatmul.mubr.msk.f32.gmra.mrb[64].mxu1 %vm325_vm1, %v24382_v58  ;;  %v19050_v34 = vpop.f32.mrb[146].mxu0 }
0x11b4   :  { %20413 = vmatpush3.bf16.msra.mxu1 %v20410_v25  ;;  %v13000_v27 = vpop.f32.mrb[147].mxu0  ;;  %18992 = vmatprep.mubr.msk.f32.mxu1 %vm325_vm1, %v24390_v38 }
0x11b5   :  { %v20430_v30 = vpack.c.bf16 %v19050_v34, %v13000_v27  ;;  %20415 = vmatprep.subr.bf16.mxu1 %v20414_v28  ;;  %v25383_v34 = vld [vmem:[#allocation2_spill] sm:$0xff]  ;;  %v25384_v27 = vld [vmem:[#allocation25_spill] sm:$0xff] }
0x11b7   :  { %18993 = vmatmul.mubr.msk.f32.vlgmr.msra.gmra.mrb[58].mxu1 %vm325_vm1, %v24400_v20  ;;  %v19053_v0 = vpop.f32.mrb[148].mxu0 }
0x11b8   :  { %20417 = vmatpush3.bf16.msra.mxu1 %v20414_v28  ;;  %v13010_v45 = vpop.f32.mrb[149].mxu0  ;;  %18995 = vmatprep.mubr.msk.f32.mxu1 %vm325_vm1, %v24408_v44  ;;  %v25376_v28 = vld [vmem:[#allocation19_spill] sm:$0xff] }
0x11b9   :  { %v20434_v4 = vpack.c.bf16 %v19053_v0, %v13010_v45  ;;  %20419 = vmatprep.subr.bf16.mxu1 %v20418_v42  ;;  %v25386_v0 = vld [vmem:[#allocation26_spill] sm:$0xff]  ;;  %v25387_v45 = vld [vmem:[#allocation4_spill] sm:$0xff] }
0x11bb   :  { %18996 = vmatmul.mubr.msk.f32.gmra.mrb[60].mxu1 %vm325_vm1, %v24418_v50  ;;  %v19056_v58 = vpop.f32.mrb[150].mxu0 }
0x11bc   :  { %20421 = vmatpush3.bf16.msra.mxu1 %v20418_v42  ;;  %v13020_v43 = vpop.f32.mrb[151].mxu0  ;;  %18998 = vmatprep.mubr.msk.f32.mxu1 %vm325_vm1, %v24426_v19 }
0x11bd   :  { %v20438_v38 = vpack.c.bf16 %v19056_v58, %v13020_v43  ;;  %20423 = vmatprep.subr.bf16.mxu1 %v20422_v54  ;;  %v25389_v58 = vld [vmem:[#allocation7_spill] sm:$0xff]  ;;  %v25390_v43 = vld [vmem:[#allocation28_spill] sm:$0xff] }
0x11bf   :  { %18999 = vmatmul.mubr.msk.f32.gmra.mrb[62].mxu1 %vm325_vm1, %v24436_v29  ;;  %v19059_v20 = vpop.f32.mrb[152].mxu0 }
0x11c0   :  { %20425 = vmatpush3.bf16.msra.mxu1 %v20422_v54  ;;  %v13030_v59 = vpop.f32.mrb[153].mxu0  ;;  %19001 = vmatprep.mubr.msk.f32.mxu1 %vm325_vm1, %v24444_v6  ;;  %v25379_v54 = vld [vmem:[#allocation22_spill] sm:$0xff] }
0x11c1   :  { %v20442_v44 = vpack.c.bf16 %v19059_v20, %v13030_v59  ;;  %20427 = vmatprep.subr.bf16.mxu1 %v20426_v52  ;;  %v25392_v20 = vld [vmem:[#allocation6_spill] sm:$0xff]  ;;  %v25393_v59 = vld [vmem:[#allocation9_spill] sm:$0xff] }
0x11c3   :  { %19002 = vmatmul.mubr.msk.f32.gmra.mrb[64].mxu1 %vm325_vm1, %v24454_v24  ;;  %v19092_v50 = vpop.f32.mrb[154].mxu0 }
0x11c4   :  { %20429 = vmatpush3.bf16.msra.mxu1 %v20426_v52  ;;  %v13220_v60 = vpop.f32.mrb[155].mxu0  ;;  %19034 = vmatprep.mubr.msk.f32.mxu1 %vm325_vm1, %v24462_v21  ;;  %v25382_v52 = vld [vmem:[#allocation24_spill] sm:$0xff] }
0x11c5   :  { %v20446_v19 = vpack.c.bf16 %v19092_v50, %v13220_v60  ;;  %20431 = vmatprep.subr.bf16.mxu1 %v20430_v30  ;;  %v15010_v60 = vld [vmem:[%s25161_s16] ss:$0 sm:$0xff] }
0x11c7   :  { %19035 = vmatmul.mubr.msk.f32.vlgmr.msra.gmra.mrb[58].mxu1 %vm325_vm1, %v24472_v46  ;;  %v19095_v29 = vpop.f32.mrb[156].mxu0 }
0x11c8   :  { %20433 = vmatpush3.bf16.msra.mxu1 %v20430_v30  ;;  %v13230_v9 = vpop.f32.mrb[157].mxu0  ;;  %19037 = vmatprep.mubr.msk.f32.mxu1 %vm325_vm1, %v24480_v5  ;;  %v25385_v30 = vld [vmem:[#allocation5_spill] sm:$0xff] }
0x11c9   :  { %v20450_v6 = vpack.c.bf16 %v19095_v29, %v13230_v9  ;;  %20435 = vmatprep.subr.bf16.mxu1 %v20434_v4 }
0x11cb   :  { %19038 = vmatmul.mubr.msk.f32.gmra.mrb[60].mxu1 %vm325_vm1, %v24490_v48  ;;  %v19098_v24 = vpop.f32.mrb[158].mxu0 }
0x11cc   :  { %20437 = vmatpush3.bf16.msra.mxu1 %v20434_v4  ;;  %v13240_v41 = vpop.f32.mrb[159].mxu0  ;;  %19040 = vmatprep.mubr.msk.f32.mxu1 %vm325_vm1, %v24498_v10  ;;  %v25388_v4 = vld [vmem:[#allocation27_spill] sm:$0xff] }
0x11cd   :  { %v20454_v21 = vpack.c.bf16 %v19098_v24, %v13240_v41  ;;  %20439 = vmatprep.subr.bf16.mxu1 %v20438_v38 }
0x11cf   :  { %19041 = vmatmul.mubr.msk.f32.gmra.mrb[62].mxu1 %vm325_vm1, %v24508_v56  ;;  %v19101_v46 = vpop.f32.mrb[160].mxu0 }
0x11d0   :  { %20441 = vmatpush3.bf16.msra.mxu1 %v20438_v38  ;;  %v13250_v53 = vpop.f32.mrb[161].mxu0  ;;  %19043 = vmatprep.mubr.msk.f32.mxu1 %vm325_vm1, %v24516_v11  ;;  %v25391_v38 = vld [vmem:[#allocation29_spill] sm:$0xff] }
0x11d1   :  { %v20458_v5 = vpack.c.bf16 %v19101_v46, %v13250_v53  ;;  %20443 = vmatprep.subr.bf16.mxu1 %v20442_v44 }
0x11d3   :  { %19044 = vmatmul.mubr.msk.f32.gmra.mrb[64].mxu1 %vm325_vm1, %v24526_v36  ;;  %v19134_v48 = vpop.f32.mrb[162].mxu0 }
0x11d4   :  { %20445 = vmatpush3.bf16.msra.mxu1 %v20442_v44  ;;  %v13440_v31 = vpop.f32.mrb[163].mxu0  ;;  %19076 = vmatprep.mubr.msk.f32.mxu1 %vm325_vm1, %v24534_v35  ;;  %v25367_v35 = vld [vmem:[#allocation10_spill] sm:$0xff] }
0x11d5   :  { %v20462_v10 = vpack.c.bf16 %v19134_v48, %v13440_v31  ;;  %20447 = vmatprep.subr.bf16.mxu1 %v20446_v19 }
0x11d7   :  { %19077 = vmatmul.mubr.msk.f32.vlgmr.msra.gmra.mrb[58].mxu1 %vm325_vm1, %v24542_v55  ;;  %v19137_v56 = vpop.f32.mrb[164].mxu0  ;;  %v25368_v55 = vld [vmem:[#allocation11_spill] sm:$0xff] }
0x11d8   :  { %20449 = vmatpush3.bf16.msra.mxu1 %v20446_v19  ;;  %v13450_v1 = vpop.f32.mrb[165].mxu0  ;;  %19079 = vmatprep.mubr.msk.f32.mxu1 %vm325_vm1, %v24550_v18  ;;  %v25369_v18 = vld [vmem:[#allocation12_spill] sm:$0xff] }
0x11d9   :  { %v20466_v11 = vpack.c.bf16 %v19137_v56, %v13450_v1  ;;  %20451 = vmatprep.subr.bf16.mxu1 %v20450_v6 }
0x11db   :  { %19080 = vmatmul.mubr.msk.f32.gmra.mrb[60].mxu1 %vm325_vm1, %v24558_v32  ;;  %v19140_v36 = vpop.f32.mrb[166].mxu0  ;;  %v25370_v32 = vld [vmem:[#allocation13_spill] sm:$0xff] }
0x11dc   :  { %20453 = vmatpush3.bf16.msra.mxu1 %v20450_v6  ;;  %v13460_v39 = vpop.f32.mrb[167].mxu0  ;;  %19082 = vmatprep.mubr.msk.f32.mxu1 %vm325_vm1, %v25367_v35 }
0x11dd   :  { %v20470_v2 = vpack.c.bf16 %v19140_v36, %v13460_v39  ;;  %20455 = vmatprep.subr.bf16.mxu1 %v20454_v21 }
0x11df   :  { %19083 = vmatmul.mubr.msk.f32.gmra.mrb[62].mxu1 %vm325_vm1, %v25368_v55  ;;  %v19143_v61 = vpop.f32.mrb[168].mxu0 }
0x11e0   :  { %20457 = vmatpush3.bf16.msra.mxu1 %v20454_v21  ;;  %v13470_v40 = vpop.f32.mrb[169].mxu0  ;;  %19085 = vmatprep.mubr.msk.f32.mxu1 %vm325_vm1, %v25369_v18 }
0x11e1   :  { %v20474_v12 = vpack.c.bf16 %v19143_v61, %v13470_v40  ;;  %20459 = vmatprep.subr.bf16.mxu1 %v20458_v5 }
0x11e3   :  { %19086 = vmatmul.mubr.msk.f32.gmra.mrb[64].mxu1 %vm325_vm1, %v25370_v32  ;;  %v19176_v8 = vpop.f32.mrb[170].mxu0 }
0x11e4   :  { %20461 = vmatpush3.bf16.msra.mxu1 %v20458_v5  ;;  %v13660_v3 = vpop.f32.mrb[171].mxu0  ;;  %19118 = vmatprep.mubr.msk.f32.mxu1 %vm325_vm1, %v25371_v26 }
0x11e5   :  { %v20478_v51 = vpack.c.bf16 %v19176_v8, %v13660_v3  ;;  %20463 = vmatprep.subr.bf16.mxu1 %v20462_v10 }
0x11e7   :  { %19119 = vmatmul.mubr.msk.f32.vlgmr.msra.gmra.mrb[58].mxu1 %vm325_vm1, %v25372_v23  ;;  %v19179_v13 = vpop.f32.mrb[172].mxu0  ;;  %20479 = vmatprep.subr.bf16.mxu0 %v20478_v51 }
0x11e8   :  { %20465 = vmatpush3.bf16.msra.mxu1 %v20462_v10  ;;  %v13670_v33 = vpop.f32.mrb[173].mxu0  ;;  %20481 = vmatpush3.bf16.msra.mxu0 %v20478_v51 }
0x11e9   :  { %v20482_v17 = vpack.c.bf16 %v19179_v13, %v13670_v33  ;;  %20467 = vmatprep.subr.bf16.mxu1 %v20466_v11  ;;  %19121 = vmatprep.mubr.msk.f32.mxu1 %vm325_vm1, %v25373_v57 }
0x11eb   :  { %19122 = vmatmul.mubr.msk.f32.gmra.mrb[60].mxu1 %vm325_vm1, %v25374_v63  ;;  %v19182_v14 = vpop.f32.mrb[174].mxu0  ;;  %20483 = vmatprep.subr.bf16.mxu0 %v20482_v17 }
0x11ec   :  { %20469 = vmatpush3.bf16.msra.mxu1 %v20466_v11  ;;  %v13680_v25 = vpop.f32.mrb[175].mxu0  ;;  %20485 = vmatpush3.bf16.msra.mxu0 %v20482_v17 }
0x11ed   :  { %v20486_v47 = vpack.c.bf16 %v19182_v14, %v13680_v25  ;;  %20471 = vmatprep.subr.bf16.mxu1 %v20470_v2  ;;  %19124 = vmatprep.mubr.msk.f32.mxu1 %vm325_vm1, %v25375_v7 }
0x11ef   :  { %19125 = vmatmul.mubr.msk.f32.gmra.mrb[62].mxu1 %vm325_vm1, %v25376_v28  ;;  %v19185_v16 = vpop.f32.mrb[176].mxu0  ;;  %20487 = vmatprep.subr.bf16.mxu0 %v20486_v47 }
0x11f0   :  { %20473 = vmatpush3.bf16.msra.mxu1 %v20470_v2  ;;  %v13690_v22 = vpop.f32.mrb[177].mxu0  ;;  %20489 = vmatpush3.bf16.msra.mxu0 %v20486_v47 }
0x11f1   :  { %v20490_v42 = vpack.c.bf16 %v19185_v16, %v13690_v22  ;;  %20475 = vmatprep.subr.bf16.mxu1 %v20474_v12  ;;  %19127 = vmatprep.mubr.msk.f32.mxu1 %vm325_vm1, %v25377_v15 }
0x11f3   :  { %19128 = vmatmul.mubr.msk.f32.gmra.mrb[64].mxu1 %vm325_vm1, %v25378_v62  ;;  %20491 = vmatprep.subr.bf16.mxu0 %v20490_v42 }
0x11f4   :  { %20477 = vmatpush3.bf16.msra.mxu1 %v20474_v12  ;;  %20493 = vmatpush3.bf16.msra.mxu0 %v20490_v42 }
0x11f5   :  { %20494 = vmatprep.subr.bf16.mxu1 %v20478_v51  ;;  %19160 = vmatprep.mubr.msk.f32.mxu1 %vm325_vm1, %v25379_v54 }
0x11f7   :  { %19161 = vmatmul.mubr.msk.f32.vlgmr.msra.gmra.mrb[58].mxu1 %vm325_vm1, %v25380_v49  ;;  %19203 = vmatmul.mubr.msk.f32.vlgmr.msra.gmra.mrb[178].mxu0 %vm325_vm1, %v25381_v37 }
0x11f8   :  { %20498 = vmatpush3.bf16.msra.mxu1 %v20478_v51  ;;  %19163 = vmatprep.mubr.msk.f32.mxu1 %vm325_vm1, %v25382_v52 }
0x11f9   :  { %20495 = vmatprep.subr.bf16.mxu1 %v20482_v17  ;;  %19205 = vmatprep.mubr.msk.f32.mxu0 %vm325_vm1, %v25383_v34 }
0x11fb   :  { %19164 = vmatmul.mubr.msk.f32.gmra.mrb[60].mxu1 %vm325_vm1, %v25384_v27  ;;  %19206 = vmatmul.mubr.msk.f32.gmra.mrb[180].mxu0 %vm325_vm1, %v25385_v30 }
0x11fc   :  { %20499 = vmatpush3.bf16.msra.mxu1 %v20482_v17  ;;  %19166 = vmatprep.mubr.msk.f32.mxu1 %vm325_vm1, %v25386_v0 }
0x11fd   :  { %20496 = vmatprep.subr.bf16.mxu1 %v20486_v47  ;;  %19208 = vmatprep.mubr.msk.f32.mxu0 %vm325_vm1, %v25387_v45 }
0x11ff   :  { %19167 = vmatmul.mubr.msk.f32.gmra.mrb[62].mxu1 %vm325_vm1, %v25388_v4  ;;  %19209 = vmatmul.mubr.msk.f32.gmra.mrb[182].mxu0 %vm325_vm1, %v25389_v58 }
0x1200   :  { %20500 = vmatpush3.bf16.msra.mxu1 %v20486_v47  ;;  %19169 = vmatprep.mubr.msk.f32.mxu1 %vm325_vm1, %v25390_v43 }
0x1201   :  { %20497 = vmatprep.subr.bf16.mxu1 %v20490_v42 }
0x1203   :  { %19170 = vmatmul.mubr.msk.f32.gmra.mrb[64].mxu1 %vm325_vm1, %v25391_v38 }
0x1204   :  { %20501 = vmatpush3.bf16.msra.mxu1 %v20490_v42  ;;  %19211 = vmatprep.mubr.msk.f32.mxu1 %vm325_vm1, %v25392_v20 }
0x120b   :  { %19212 = vmatmul.mubr.msk.f32.vlgmr.msra.gmra.mrb[64].mxu1 %vm325_vm1, %v25393_v59 }
0x12ca   :  { %v19162_v44 = vpop.f32.mrb[58].mxu1  ;;  %v19204_v50 = vpop.f32.mrb[178].mxu0 }
0x12cb   :  { %v20502_v19 = vadd.f32 %v19204_v50, %v19162_v44  ;;  %v13545_v29 = vpop.f32.mrb[59].mxu1  ;;  %v13765_v9 = vpop.f32.mrb[179].mxu0 }
0x12cc   :  { %v20503_v6 = vadd.f32 %v13765_v9, %v13545_v29 }
0x12cd   :  { %v13820_v24 = vadd.f32 %v20502_v19, %v15010_v60 }
0x12ce   :  { %v13819_v41 = vadd.f32 %v20503_v6, %v15010_v60  ;;  %v19165_v21 = vpop.f32.mrb[60].mxu1  ;;  %v19207_v46 = vpop.f32.mrb[180].mxu0 }
0x12cf   :  { %vm13828_vm0 = vcmp.ge.f32.partialorder %v13820_v24, 0.0  ;;  %v13836_v53 = vmul.f32 0.01, %v13820_v24  ;;  %v20504_v5 = vadd.f32 %v19207_v46, %v19165_v21  ;;  %v13555_v48 = vpop.f32.mrb[61].mxu1  ;;  %v13775_v31 = vpop.f32.mrb[181].mxu0 }
0x12d0   :  { %vm13827_vm1 = vcmp.ge.f32.partialorder %v13819_v41, 0.0  ;;  %v13835_v10 = vmul.f32 0.01, %v13819_v41  ;;  %v20505_v56 = vadd.f32 %v13775_v31, %v13555_v48 }
0x12d1   :  { %v13844_v1 = vsel %vm13828_vm0, %v13820_v24, %v13836_v53  ;;  %v13822_v11 = vadd.f32 %v20504_v5, %v15010_v60 }
0x12d2   :  { %13852 = vst.msk [vmem:[%s25162_s17 + $0x8] sm:$0xff] %vm11825_vm9, %v13844_v1  ;;  %v13843_v36 = vsel %vm13827_vm1, %v13819_v41, %v13835_v10  ;;  %v13821_v39 = vadd.f32 %v20505_v56, %v15010_v60  ;;  %v19168_v35 = vpop.f32.mrb[62].mxu1  ;;  %v19210_v2 = vpop.f32.mrb[182].mxu0 }
0x12d3   :  { %13851 = vst.msk [vmem:[%s25162_s17] sm:$0xff] %vm11825_vm9, %v13843_v36  ;;  %vm13830_vm2 = vcmp.ge.f32.partialorder %v13822_v11, 0.0  ;;  %v13838_v55 = vmul.f32 0.01, %v13822_v11  ;;  %v20506_v61 = vadd.f32 %v19210_v2, %v19168_v35  ;;  %v13565_v40 = vpop.f32.mrb[63].mxu1  ;;  %v13785_v18 = vpop.f32.mrb[183].mxu0 }
0x12d4   :  { %vm13829_vm3 = vcmp.ge.f32.partialorder %v13821_v39, 0.0  ;;  %v13837_v12 = vmul.f32 0.01, %v13821_v39  ;;  %v20507_v32 = vadd.f32 %v13785_v18, %v13565_v40 }
0x12d5   :  { %v13846_v8 = vsel %vm13830_vm2, %v13822_v11, %v13838_v55  ;;  %v13824_v3 = vadd.f32 %v20506_v61, %v15010_v60 }
0x12d6   :  { %13854 = vst.msk [vmem:[%s25162_s17 + $0x18] sm:$0xff] %vm11825_vm9, %v13846_v8  ;;  %v13845_v26 = vsel %vm13829_vm3, %v13821_v39, %v13837_v12  ;;  %v13823_v51 = vadd.f32 %v20507_v32, %v15010_v60 }
0x12d7   :  { %13853 = vst.msk [vmem:[%s25162_s17 + $0x10] sm:$0xff] %vm11825_vm9, %v13845_v26  ;;  %vm13832_vm4 = vcmp.ge.f32.partialorder %v13824_v3, 0.0  ;;  %v13840_v23 = vmul.f32 0.01, %v13824_v3 }
0x12d8   :  { %vm13831_vm5 = vcmp.ge.f32.partialorder %v13823_v51, 0.0  ;;  %v13839_v13 = vmul.f32 0.01, %v13823_v51 }
0x12d9   :  { %v13848_v33 = vsel %vm13832_vm4, %v13824_v3, %v13840_v23 }
0x12da   :  { %13856 = vst.msk [vmem:[%s25162_s17 + $0x28] sm:$0xff] %vm11825_vm9, %v13848_v33  ;;  %v13847_v17 = vsel %vm13831_vm5, %v13823_v51, %v13839_v13 }
0x12db   :  { %13855 = vst.msk [vmem:[%s25162_s17 + $0x20] sm:$0xff] %vm11825_vm9, %v13847_v17 }
0x12de   :  { %v19213_v57 = vpop.f32.mrb[64].mxu1 }
0x12df   :  { %v13826_v63 = vadd.f32 %v19213_v57, %v15010_v60  ;;  %v13795_v14 = vpop.f32.mrb[65].mxu1 }
0x12e0   :  { %v13825_v25 = vadd.f32 %v15010_v60, %v13795_v14 }
0x12e1   :  { %vm13834_vm6 = vcmp.ge.f32.partialorder %v13826_v63, 0.0  ;;  %v13842_v47 = vmul.f32 0.01, %v13826_v63 }
0x12e2   :  { %vm13833_vm7 = vcmp.ge.f32.partialorder %v13825_v25, 0.0  ;;  %v13841_v7 = vmul.f32 0.01, %v13825_v25 }
0x12e3   :  { %v13850_v28 = vsel %vm13834_vm6, %v13826_v63, %v13842_v47 }
0x12e4   :  { %13858 = vst.msk [vmem:[%s25162_s17 + $0x38] sm:$0xff] %vm11825_vm9, %v13850_v28  ;;  %v13849_v16 = vsel %vm13833_vm7, %v13825_v25, %v13841_v7 }
0x12e5   :  { %13857 = vst.msk [vmem:[%s25162_s17 + $0x30] sm:$0xff] %vm11825_vm9, %v13849_v16 }

</bundles_post_ra>
